<compile_context>
chip_gen: v7x
topology: tpu7x:2x2x1
jax: 0.10.0
libtpu: 0.0.40
codegen_flags: <defaults>
</compile_context>

<pallas_src>
import jax
import jax.numpy as jnp
from jax import lax
from jax.experimental import pallas as pl
from jax.experimental.pallas import tpu as pltpu


def _multi_branches_kernel(x_ref, selh_ref, selw_ref,
                           wa_ref, ba_ref, wb_ref, bb_ref,
                           wc_ref, bc_ref, wd_ref, bd_ref,
                           xa_ref, xb_ref, xc_ref, xd_ref, xpad_ref):
    f32 = jnp.float32
    TB, _, H, W = x_ref.shape
    Hc, Wc = xc_ref.shape[2], xc_ref.shape[3]     # pad-3 3x3 conv output (H+4, W+4)
    Hd, Wd = xd_ref.shape[2], xd_ref.shape[3]     # valid 3x3 conv output (H-2, W-2)
    Hb, Wb = xb_ref.shape[2], xb_ref.shape[3]     # conv_b output (Hp+2, Wp+2)

    # ---- shared zero pad (pad=3) + ReLU, once per block, entirely in VMEM ----
    xpad_ref[...] = jnp.zeros(xpad_ref.shape, f32)
    xpad_ref[:, :, 3:3 + H, 3:3 + W] = jnp.maximum(x_ref[...], 0.0)

    # ---- branches A / C / D: share the same 27 shifted taps ------------------
    # All three accumulate at the pad-3 output size (Hc, Wc); the pad-1 (A) and
    # valid (D) convolutions are interior crops of that accumulation.
    c_acc = jnp.zeros((TB, Hc, Wc), f32)
    d_acc = jnp.zeros((TB, Hc, Wc), f32)
    for ci in range(3):
        a_acc = jnp.zeros((TB, Hc, Wc), f32)
        for kx in range(3):
            # lane shift once per (channel, kx); ky taps are sublane-only slices
            shifted = xpad_ref[:, ci, :, kx:kx + Wc]          # (TB, H+6, Wc)
            for ky in range(3):
                tap = shifted[:, ky:ky + Hc, :]               # (TB, Hc, Wc)
                idx = ci * 9 + ky * 3 + kx
                a_acc = a_acc + wa_ref[idx] * tap             # depthwise (co == ci)
                c_acc = c_acc + wc_ref[idx] * tap
                d_acc = d_acc + wd_ref[idx] * tap
        xa_ref[:, ci] = (a_acc[:, 2:2 + H, 2:2 + W] + ba_ref[ci]).astype(xa_ref.dtype)

    xc_ref[:, 0] = (c_acc + bc_ref[0]).astype(xc_ref.dtype)
    xd_ref[:, 0] = (d_acc[:, 3:3 + Hd, 3:3 + Wd] + bd_ref[0]).astype(xd_ref.dtype)

    # ---- branch B: maxpool 3x3 / stride 3, then 5x5 conv padding=3 -----------
    # Sliding-window 3x3 max at every position, batched over (TB, 3) planes.
    wm = xpad_ref[:, :, 3:3 + H - 2, 3:3 + W - 2]
    for dy in range(3):
        for dx in range(3):
            if dy == 0 and dx == 0:
                continue
            wm = jnp.maximum(
                wm, xpad_ref[:, :, 3 + dy:3 + dy + H - 2, 3 + dx:3 + dx + W - 2])

    # Stride-3 subsample + conv_b's zero padding fused into two exact 0/1
    # selection matmuls (matrices precomputed in the wrapper): the result is the
    # zero-padded pooled plane, kept in registers (no scratch round-trip).
    selh = selh_ref[...]                                      # (Hp+6, H-2)
    selw = selw_ref[...]                                      # (W-2,  Wp+6)
    for t in range(TB):
        b_acc = jnp.zeros((Hb, Wb), f32)
        for ci in range(3):
            pooled_pad = jnp.dot(
                jnp.dot(selh, wm[t, ci], preferred_element_type=f32),
                selw, preferred_element_type=f32)             # (Hp+6, Wp+6)
            for kx in range(5):
                sh = pooled_pad[:, kx:kx + Wb]                # lane shift once per kx
                for ky in range(5):
                    b_acc = b_acc + wb_ref[ci * 25 + ky * 5 + kx] * sh[ky:ky + Hb, :]
        xb_ref[t, 0] = (b_acc + bb_ref[0]).astype(xb_ref.dtype)


def _smem_spec():
    return pl.BlockSpec(memory_space=pltpu.MemorySpace.SMEM)


def multi_branches_forward(x, params):
    """x: (N, 3, H, W) f32; params = (w_a, b_a, w_b, b_b, w_c, b_c, w_d, b_d)."""
    w_a, b_a, w_b, b_b, w_c, b_c, w_d, b_d = params
    n, c, h, w = x.shape
    assert c == 3, "module expects 3 input channels"

    hp = (h - 3) // 3 + 1
    wp = (w - 3) // 3 + 1
    h_xb, w_xb = hp + 2, wp + 2
    h_xc, w_xc = h + 4, w + 4
    h_xd, w_xd = h - 2, w - 2

    # Samples per grid step: batch up to 8 (must divide N so blocks are exact).
    tb = min(n, 8)
    while n % tb:
        tb -= 1
    grid = (n // tb,)

    x = x.astype(jnp.float32)
    flat = lambda a: a.reshape(-1).astype(jnp.float32)

    # Exact 0/1 selection matrices: pick rows/cols 0,3,6,... of the sliding-max
    # and place them at offset 3 (i.e. they also realize conv_b's zero padding).
    ih = jnp.arange(hp)
    sel_h = jnp.zeros((hp + 6, h - 2), jnp.float32).at[3 + ih, 3 * ih].set(1.0)
    iw = jnp.arange(wp)
    sel_w = jnp.zeros((w - 2, wp + 6), jnp.float32).at[3 * iw, 3 + iw].set(1.0)

    out_shape = (
        jax.ShapeDtypeStruct((n, 3, h, w), jnp.float32),
        jax.ShapeDtypeStruct((n, 1, h_xb, w_xb), jnp.float32),
        jax.ShapeDtypeStruct((n, 1, h_xc, w_xc), jnp.float32),
        jax.ShapeDtypeStruct((n, 1, h_xd, w_xd), jnp.float32),
    )
    in_specs = [
        pl.BlockSpec((tb, 3, h, w), lambda i: (i, 0, 0, 0)),        # raw x, no HBM pad
        pl.BlockSpec((hp + 6, h - 2), lambda i: (0, 0)),            # sel_h (constant)
        pl.BlockSpec((w - 2, wp + 6), lambda i: (0, 0)),            # sel_w (constant)
        _smem_spec(), _smem_spec(), _smem_spec(), _smem_spec(),
        _smem_spec(), _smem_spec(), _smem_spec(), _smem_spec(),
    ]
    out_specs = (
        pl.BlockSpec((tb, 3, h, w), lambda i: (i, 0, 0, 0)),
        pl.BlockSpec((tb, 1, h_xb, w_xb), lambda i: (i, 0, 0, 0)),
        pl.BlockSpec((tb, 1, h_xc, w_xc), lambda i: (i, 0, 0, 0)),
        pl.BlockSpec((tb, 1, h_xd, w_xd), lambda i: (i, 0, 0, 0)),
    )

    flops_per_sample = (
        2 * 81 * h_xc * w_xc                                   # A/C/D shared-tap FMAs
        + 8 * 3 * (h - 2) * (w - 2)                            # maxpool compares
        + 3 * 2 * ((hp + 6) * (h - 2) * (w - 2)
                   + (hp + 6) * (w - 2) * (wp + 6))            # selection matmuls
        + 2 * 75 * h_xb * w_xb)                                # conv_b
    bytes_accessed = 4 * (
        x.size + n * 3 * h * w + n * h_xb * w_xb + n * h_xc * w_xc + n * h_xd * w_xd
        + sel_h.size + sel_w.size + 27 + 3 + 75 + 1 + 27 + 1 + 27 + 1)

    return pl.pallas_call(
        _multi_branches_kernel,
        out_shape=out_shape,
        grid=grid,
        in_specs=in_specs,
        out_specs=out_specs,
        scratch_shapes=[pltpu.VMEM((tb, 3, h + 6, w + 6), jnp.float32)],
        compiler_params=pltpu.CompilerParams(
            dimension_semantics=("parallel",),
            vmem_limit_bytes=32 * 1024 * 1024),                # explicit VMEM budget (v7x-safe)
        cost_estimate=pl.CostEstimate(
            flops=n * flops_per_sample,
            transcendentals=0,
            bytes_accessed=bytes_accessed),
    )(x, sel_h, sel_w,
      flat(w_a), flat(b_a), flat(w_b), flat(b_b),
      flat(w_c), flat(b_c), flat(w_d), flat(b_d))


if __name__ == "__main__":
    key = jax.random.PRNGKey(0)
    kx_, ka, kb, kc, kd, kba, kbb, kbc, kbd = jax.random.split(key, 9)

    N, C, H, W = 2, 3, 16, 16
    x = jax.random.normal(kx_, (N, C, H, W), dtype=jnp.float32)

    # Deterministic small-scale parameter init (shapes match the PyTorch module).
    w_a = 0.2 * jax.random.normal(ka, (3, 1, 3, 3), dtype=jnp.float32)   # groups=3 depthwise
    b_a = 0.1 * jax.random.normal(kba, (3,), dtype=jnp.float32)
    w_b = 0.2 * jax.random.normal(kb, (1, 3, 5, 5), dtype=jnp.float32)
    b_b = 0.1 * jax.random.normal(kbb, (1,), dtype=jnp.float32)
    w_c = 0.2 * jax.random.normal(kc, (1, 3, 3, 3), dtype=jnp.float32)
    b_c = 0.1 * jax.random.normal(kbc, (1,), dtype=jnp.float32)
    w_d = 0.2 * jax.random.normal(kd, (1, 3, 3, 3), dtype=jnp.float32)
    b_d = 0.1 * jax.random.normal(kbd, (1,), dtype=jnp.float32)

    params = (w_a, b_a, w_b, b_b, w_c, b_c, w_d, b_d)
    fwd = jax.jit(multi_branches_forward)
    xa, xb, xc, xd = jax.block_until_ready(fwd(x, params))

    # Plain-JAX reference of the same forward pass.
    xr = jnp.maximum(x, 0.0)
    dn = ("NCHW", "OIHW", "NCHW")
    ref_a = lax.conv_general_dilated(xr, w_a, (1, 1), ((1, 1), (1, 1)),
                                     dimension_numbers=dn,
                                     feature_group_count=3) + b_a[None, :, None, None]
    pooled = lax.reduce_window(xr, -jnp.inf, lax.max,
                               (1, 1, 3, 3), (1, 1, 3, 3), "VALID")
    ref_b = lax.conv_general_dilated(pooled, w_b, (1, 1), ((3, 3), (3, 3)),
                                     dimension_numbers=dn) + b_b[None, :, None, None]
    ref_c = lax.conv_general_dilated(xr, w_c, (1, 1), ((3, 3), (3, 3)),
                                     dimension_numbers=dn) + b_c[None, :, None, None]
    ref_d = lax.conv_general_dilated(xr, w_d, (1, 1), ((0, 0), (0, 0)),
                                     dimension_numbers=dn) + b_d[None, :, None, None]

    for got, ref in ((xa, ref_a), (xb, ref_b), (xc, ref_c), (xd, ref_d)):
        assert got.shape == ref.shape, (got.shape, ref.shape)
        assert jnp.allclose(got, ref, atol=1e-4, rtol=1e-4), "mismatch vs reference"

    print("KERNEL_OK")
</pallas_src>

<mosaic_0001>
module attributes {stable_mosaic.version = 11 : i64} {
  func.func @_multi_branches_kernel(%arg0: i32, %arg1: memref<2x3x16x16xf32, #tpu.memory_space<vmem>>, %arg2: memref<11x14xf32, #tpu.memory_space<vmem>>, %arg3: memref<14x11xf32, #tpu.memory_space<vmem>>, %arg4: memref<27xf32, #tpu.memory_space<smem>>, %arg5: memref<3xf32, #tpu.memory_space<smem>>, %arg6: memref<75xf32, #tpu.memory_space<smem>>, %arg7: memref<1xf32, #tpu.memory_space<smem>>, %arg8: memref<27xf32, #tpu.memory_space<smem>>, %arg9: memref<1xf32, #tpu.memory_space<smem>>, %arg10: memref<27xf32, #tpu.memory_space<smem>>, %arg11: memref<1xf32, #tpu.memory_space<smem>>, %arg12: memref<2x3x16x16xf32, #tpu.memory_space<vmem>>, %arg13: memref<2x1x7x7xf32, #tpu.memory_space<vmem>>, %arg14: memref<2x1x20x20xf32, #tpu.memory_space<vmem>>, %arg15: memref<2x1x14x14xf32, #tpu.memory_space<vmem>>, %arg16: memref<2x3x22x22xf32, #tpu.memory_space<vmem>>) attributes {dimension_semantics = [#tpu.dimension_semantics<parallel>], iteration_bounds = array<i64: 1>, scalar_prefetch = 0 : i64, scratch_operands = 1 : i64, tpu.core_type = #tpu.core_type<tc>, window_params = [{transform_indices = @transform_0, window_bounds = array<i64: 2, 3, 16, 16>}, {pipeline_mode = #tpu.pipeline_mode<synchronous>, transform_indices = @transform_1, window_bounds = array<i64: 11, 14>}, {pipeline_mode = #tpu.pipeline_mode<synchronous>, transform_indices = @transform_2, window_bounds = array<i64: 14, 11>}, {transform_indices = @transform_3, window_bounds = array<i64: 27>}, {transform_indices = @transform_4, window_bounds = array<i64: 3>}, {transform_indices = @transform_5, window_bounds = array<i64: 75>}, {transform_indices = @transform_6, window_bounds = array<i64: 1>}, {transform_indices = @transform_7, window_bounds = array<i64: 27>}, {transform_indices = @transform_8, window_bounds = array<i64: 1>}, {transform_indices = @transform_9, window_bounds = array<i64: 27>}, {transform_indices = @transform_10, window_bounds = array<i64: 1>}, {transform_indices = @transform_11, window_bounds = array<i64: 2, 3, 16, 16>}, {transform_indices = @transform_12, window_bounds = array<i64: 2, 1, 7, 7>}, {transform_indices = @transform_13, window_bounds = array<i64: 2, 1, 20, 20>}, {transform_indices = @transform_14, window_bounds = array<i64: 2, 1, 14, 14>}]} {
    %cst = arith.constant 0.000000e+00 : f32
    %0 = vector.broadcast %cst : f32 to vector<2x3x22x22xf32>
    %c0 = arith.constant 0 : index
    %c0_0 = arith.constant 0 : index
    %c0_1 = arith.constant 0 : index
    %c0_2 = arith.constant 0 : index
    %1 = vector.load %arg16[%c0, %c0_0, %c0_1, %c0_2] : memref<2x3x22x22xf32, #tpu.memory_space<vmem>>, vector<2x3x22x22xf32>
    tpu.vector_store %arg16[%c0, %c0_0, %c0_1, %c0_2], %0 {strides = array<i32>} : memref<2x3x22x22xf32, #tpu.memory_space<vmem>>, vector<2x3x22x22xf32>,
    %c0_3 = arith.constant 0 : index
    %c0_4 = arith.constant 0 : index
    %c0_5 = arith.constant 0 : index
    %c0_6 = arith.constant 0 : index
    %2 = vector.load %arg1[%c0_3, %c0_4, %c0_5, %c0_6] : memref<2x3x16x16xf32, #tpu.memory_space<vmem>>, vector<2x3x16x16xf32>
    %cst_7 = arith.constant 0.000000e+00 : f32
    %3 = vector.broadcast %cst_7 : f32 to vector<2x3x16x16xf32>
    %4 = arith.maximumf %2, %3 : vector<2x3x16x16xf32>
    %c0_8 = arith.constant 0 : index
    %c0_9 = arith.constant 0 : index
    %c3 = arith.constant 3 : index
    %c3_10 = arith.constant 3 : index
    %5 = vector.load %arg16[%c0_8, %c0_9, %c3, %c3_10] : memref<2x3x22x22xf32, #tpu.memory_space<vmem>>, vector<2x3x16x16xf32>
    tpu.vector_store %arg16[%c0_8, %c0_9, %c3, %c3_10], %4 {strides = array<i32>} : memref<2x3x22x22xf32, #tpu.memory_space<vmem>>, vector<2x3x16x16xf32>,
    %cst_11 = arith.constant 0.000000e+00 : f32
    %6 = vector.broadcast %cst_11 : f32 to vector<2x20x20xf32>
    %cst_12 = arith.constant 0.000000e+00 : f32
    %7 = vector.broadcast %cst_12 : f32 to vector<2x20x20xf32>
    %cst_13 = arith.constant 0.000000e+00 : f32
    %8 = vector.broadcast %cst_13 : f32 to vector<2x20x20xf32>
    %c0_14 = arith.constant 0 : index
    %c0_15 = arith.constant 0 : index
    %c0_16 = arith.constant 0 : index
    %c0_17 = arith.constant 0 : index
    %9 = vector.load %arg16[%c0_14, %c0_15, %c0_16, %c0_17] : memref<2x3x22x22xf32, #tpu.memory_space<vmem>>, vector<2x1x22x20xf32>
    %10 = vector.shape_cast %9 : vector<2x1x22x20xf32> to vector<2x22x20xf32>
    %11 = vector.extract_strided_slice %10 {offsets = [0, 0, 0], sizes = [2, 20, 20], strides = [1, 1, 1]} : vector<2x22x20xf32> to vector<2x20x20xf32>
    %c0_18 = arith.constant 0 : index
    %12 = memref.load %arg4[%c0_18] : memref<27xf32, #tpu.memory_space<smem>>
    %13 = vector.broadcast %12 : f32 to vector<2x20x20xf32>
    %14 = arith.mulf %13, %11 : vector<2x20x20xf32>
    %15 = arith.addf %8, %14 : vector<2x20x20xf32>
    %c0_19 = arith.constant 0 : index
    %16 = memref.load %arg8[%c0_19] : memref<27xf32, #tpu.memory_space<smem>>
    %17 = vector.broadcast %16 : f32 to vector<2x20x20xf32>
    %18 = arith.mulf %17, %11 : vector<2x20x20xf32>
    %19 = arith.addf %6, %18 : vector<2x20x20xf32>
    %c0_20 = arith.constant 0 : index
    %20 = memref.load %arg10[%c0_20] : memref<27xf32, #tpu.memory_space<smem>>
    %21 = vector.broadcast %20 : f32 to vector<2x20x20xf32>
    %22 = arith.mulf %21, %11 : vector<2x20x20xf32>
    %23 = arith.addf %7, %22 : vector<2x20x20xf32>
    %24 = vector.extract_strided_slice %10 {offsets = [0, 1, 0], sizes = [2, 20, 20], strides = [1, 1, 1]} : vector<2x22x20xf32> to vector<2x20x20xf32>
    %c3_21 = arith.constant 3 : index
    %25 = memref.load %arg4[%c3_21] : memref<27xf32, #tpu.memory_space<smem>>
    %26 = vector.broadcast %25 : f32 to vector<2x20x20xf32>
    %27 = arith.mulf %26, %24 : vector<2x20x20xf32>
    %28 = arith.addf %15, %27 : vector<2x20x20xf32>
    %c3_22 = arith.constant 3 : index
    %29 = memref.load %arg8[%c3_22] : memref<27xf32, #tpu.memory_space<smem>>
    %30 = vector.broadcast %29 : f32 to vector<2x20x20xf32>
    %31 = arith.mulf %30, %24 : vector<2x20x20xf32>
    %32 = arith.addf %19, %31 : vector<2x20x20xf32>
    %c3_23 = arith.constant 3 : index
    %33 = memref.load %arg10[%c3_23] : memref<27xf32, #tpu.memory_space<smem>>
    %34 = vector.broadcast %33 : f32 to vector<2x20x20xf32>
    %35 = arith.mulf %34, %24 : vector<2x20x20xf32>
    %36 = arith.addf %23, %35 : vector<2x20x20xf32>
    %37 = vector.extract_strided_slice %10 {offsets = [0, 2, 0], sizes = [2, 20, 20], strides = [1, 1, 1]} : vector<2x22x20xf32> to vector<2x20x20xf32>
    %c6 = arith.constant 6 : index
    %38 = memref.load %arg4[%c6] : memref<27xf32, #tpu.memory_space<smem>>
    %39 = vector.broadcast %38 : f32 to vector<2x20x20xf32>
    %40 = arith.mulf %39, %37 : vector<2x20x20xf32>
    %41 = arith.addf %28, %40 : vector<2x20x20xf32>
    %c6_24 = arith.constant 6 : index
    %42 = memref.load %arg8[%c6_24] : memref<27xf32, #tpu.memory_space<smem>>
    %43 = vector.broadcast %42 : f32 to vector<2x20x20xf32>
    %44 = arith.mulf %43, %37 : vector<2x20x20xf32>
    %45 = arith.addf %32, %44 : vector<2x20x20xf32>
    %c6_25 = arith.constant 6 : index
    %46 = memref.load %arg10[%c6_25] : memref<27xf32, #tpu.memory_space<smem>>
    %47 = vector.broadcast %46 : f32 to vector<2x20x20xf32>
    %48 = arith.mulf %47, %37 : vector<2x20x20xf32>
    %49 = arith.addf %36, %48 : vector<2x20x20xf32>
    %c0_26 = arith.constant 0 : index
    %c0_27 = arith.constant 0 : index
    %c0_28 = arith.constant 0 : index
    %c1 = arith.constant 1 : index
    %50 = vector.load %arg16[%c0_26, %c0_27, %c0_28, %c1] : memref<2x3x22x22xf32, #tpu.memory_space<vmem>>, vector<2x1x22x20xf32>
    %51 = vector.shape_cast %50 : vector<2x1x22x20xf32> to vector<2x22x20xf32>
    %52 = vector.extract_strided_slice %51 {offsets = [0, 0, 0], sizes = [2, 20, 20], strides = [1, 1, 1]} : vector<2x22x20xf32> to vector<2x20x20xf32>
    %c1_29 = arith.constant 1 : index
    %53 = memref.load %arg4[%c1_29] : memref<27xf32, #tpu.memory_space<smem>>
    %54 = vector.broadcast %53 : f32 to vector<2x20x20xf32>
    %55 = arith.mulf %54, %52 : vector<2x20x20xf32>
    %56 = arith.addf %41, %55 : vector<2x20x20xf32>
    %c1_30 = arith.constant 1 : index
    %57 = memref.load %arg8[%c1_30] : memref<27xf32, #tpu.memory_space<smem>>
    %58 = vector.broadcast %57 : f32 to vector<2x20x20xf32>
    %59 = arith.mulf %58, %52 : vector<2x20x20xf32>
    %60 = arith.addf %45, %59 : vector<2x20x20xf32>
    %c1_31 = arith.constant 1 : index
    %61 = memref.load %arg10[%c1_31] : memref<27xf32, #tpu.memory_space<smem>>
    %62 = vector.broadcast %61 : f32 to vector<2x20x20xf32>
    %63 = arith.mulf %62, %52 : vector<2x20x20xf32>
    %64 = arith.addf %49, %63 : vector<2x20x20xf32>
    %65 = vector.extract_strided_slice %51 {offsets = [0, 1, 0], sizes = [2, 20, 20], strides = [1, 1, 1]} : vector<2x22x20xf32> to vector<2x20x20xf32>
    %c4 = arith.constant 4 : index
    %66 = memref.load %arg4[%c4] : memref<27xf32, #tpu.memory_space<smem>>
    %67 = vector.broadcast %66 : f32 to vector<2x20x20xf32>
    %68 = arith.mulf %67, %65 : vector<2x20x20xf32>
    %69 = arith.addf %56, %68 : vector<2x20x20xf32>
    %c4_32 = arith.constant 4 : index
    %70 = memref.load %arg8[%c4_32] : memref<27xf32, #tpu.memory_space<smem>>
    %71 = vector.broadcast %70 : f32 to vector<2x20x20xf32>
    %72 = arith.mulf %71, %65 : vector<2x20x20xf32>
    %73 = arith.addf %60, %72 : vector<2x20x20xf32>
    %c4_33 = arith.constant 4 : index
    %74 = memref.load %arg10[%c4_33] : memref<27xf32, #tpu.memory_space<smem>>
    %75 = vector.broadcast %74 : f32 to vector<2x20x20xf32>
    %76 = arith.mulf %75, %65 : vector<2x20x20xf32>
    %77 = arith.addf %64, %76 : vector<2x20x20xf32>
    %78 = vector.extract_strided_slice %51 {offsets = [0, 2, 0], sizes = [2, 20, 20], strides = [1, 1, 1]} : vector<2x22x20xf32> to vector<2x20x20xf32>
    %c7 = arith.constant 7 : index
    %79 = memref.load %arg4[%c7] : memref<27xf32, #tpu.memory_space<smem>>
    %80 = vector.broadcast %79 : f32 to vector<2x20x20xf32>
    %81 = arith.mulf %80, %78 : vector<2x20x20xf32>
    %82 = arith.addf %69, %81 : vector<2x20x20xf32>
    %c7_34 = arith.constant 7 : index
    %83 = memref.load %arg8[%c7_34] : memref<27xf32, #tpu.memory_space<smem>>
    %84 = vector.broadcast %83 : f32 to vector<2x20x20xf32>
    %85 = arith.mulf %84, %78 : vector<2x20x20xf32>
    %86 = arith.addf %73, %85 : vector<2x20x20xf32>
    %c7_35 = arith.constant 7 : index
    %87 = memref.load %arg10[%c7_35] : memref<27xf32, #tpu.memory_space<smem>>
    %88 = vector.broadcast %87 : f32 to vector<2x20x20xf32>
    %89 = arith.mulf %88, %78 : vector<2x20x20xf32>
    %90 = arith.addf %77, %89 : vector<2x20x20xf32>
    %c0_36 = arith.constant 0 : index
    %c0_37 = arith.constant 0 : index
    %c0_38 = arith.constant 0 : index
    %c2 = arith.constant 2 : index
    %91 = vector.load %arg16[%c0_36, %c0_37, %c0_38, %c2] : memref<2x3x22x22xf32, #tpu.memory_space<vmem>>, vector<2x1x22x20xf32>
    %92 = vector.shape_cast %91 : vector<2x1x22x20xf32> to vector<2x22x20xf32>
    %93 = vector.extract_strided_slice %92 {offsets = [0, 0, 0], sizes = [2, 20, 20], strides = [1, 1, 1]} : vector<2x22x20xf32> to vector<2x20x20xf32>
    %c2_39 = arith.constant 2 : index
    %94 = memref.load %arg4[%c2_39] : memref<27xf32, #tpu.memory_space<smem>>
    %95 = vector.broadcast %94 : f32 to vector<2x20x20xf32>
    %96 = arith.mulf %95, %93 : vector<2x20x20xf32>
    %97 = arith.addf %82, %96 : vector<2x20x20xf32>
    %c2_40 = arith.constant 2 : index
    %98 = memref.load %arg8[%c2_40] : memref<27xf32, #tpu.memory_space<smem>>
    %99 = vector.broadcast %98 : f32 to vector<2x20x20xf32>
    %100 = arith.mulf %99, %93 : vector<2x20x20xf32>
    %101 = arith.addf %86, %100 : vector<2x20x20xf32>
    %c2_41 = arith.constant 2 : index
    %102 = memref.load %arg10[%c2_41] : memref<27xf32, #tpu.memory_space<smem>>
    %103 = vector.broadcast %102 : f32 to vector<2x20x20xf32>
    %104 = arith.mulf %103, %93 : vector<2x20x20xf32>
    %105 = arith.addf %90, %104 : vector<2x20x20xf32>
    %106 = vector.extract_strided_slice %92 {offsets = [0, 1, 0], sizes = [2, 20, 20], strides = [1, 1, 1]} : vector<2x22x20xf32> to vector<2x20x20xf32>
    %c5 = arith.constant 5 : index
    %107 = memref.load %arg4[%c5] : memref<27xf32, #tpu.memory_space<smem>>
    %108 = vector.broadcast %107 : f32 to vector<2x20x20xf32>
    %109 = arith.mulf %108, %106 : vector<2x20x20xf32>
    %110 = arith.addf %97, %109 : vector<2x20x20xf32>
    %c5_42 = arith.constant 5 : index
    %111 = memref.load %arg8[%c5_42] : memref<27xf32, #tpu.memory_space<smem>>
    %112 = vector.broadcast %111 : f32 to vector<2x20x20xf32>
    %113 = arith.mulf %112, %106 : vector<2x20x20xf32>
    %114 = arith.addf %101, %113 : vector<2x20x20xf32>
    %c5_43 = arith.constant 5 : index
    %115 = memref.load %arg10[%c5_43] : memref<27xf32, #tpu.memory_space<smem>>
    %116 = vector.broadcast %115 : f32 to vector<2x20x20xf32>
    %117 = arith.mulf %116, %106 : vector<2x20x20xf32>
    %118 = arith.addf %105, %117 : vector<2x20x20xf32>
    %119 = vector.extract_strided_slice %92 {offsets = [0, 2, 0], sizes = [2, 20, 20], strides = [1, 1, 1]} : vector<2x22x20xf32> to vector<2x20x20xf32>
    %c8 = arith.constant 8 : index
    %120 = memref.load %arg4[%c8] : memref<27xf32, #tpu.memory_space<smem>>
    %121 = vector.broadcast %120 : f32 to vector<2x20x20xf32>
    %122 = arith.mulf %121, %119 : vector<2x20x20xf32>
    %123 = arith.addf %110, %122 : vector<2x20x20xf32>
    %c8_44 = arith.constant 8 : index
    %124 = memref.load %arg8[%c8_44] : memref<27xf32, #tpu.memory_space<smem>>
    %125 = vector.broadcast %124 : f32 to vector<2x20x20xf32>
    %126 = arith.mulf %125, %119 : vector<2x20x20xf32>
    %127 = arith.addf %114, %126 : vector<2x20x20xf32>
    %c8_45 = arith.constant 8 : index
    %128 = memref.load %arg10[%c8_45] : memref<27xf32, #tpu.memory_space<smem>>
    %129 = vector.broadcast %128 : f32 to vector<2x20x20xf32>
    %130 = arith.mulf %129, %119 : vector<2x20x20xf32>
    %131 = arith.addf %118, %130 : vector<2x20x20xf32>
    %132 = vector.extract_strided_slice %123 {offsets = [0, 2, 2], sizes = [2, 16, 16], strides = [1, 1, 1]} : vector<2x20x20xf32> to vector<2x16x16xf32>
    %c0_46 = arith.constant 0 : index
    %133 = memref.load %arg5[%c0_46] : memref<3xf32, #tpu.memory_space<smem>>
    %134 = vector.broadcast %133 : f32 to vector<2x16x16xf32>
    %135 = arith.addf %132, %134 : vector<2x16x16xf32>
    %c0_47 = arith.constant 0 : index
    %c0_48 = arith.constant 0 : index
    %c0_49 = arith.constant 0 : index
    %c0_50 = arith.constant 0 : index
    %136 = vector.load %arg12[%c0_47, %c0_48, %c0_49, %c0_50] : memref<2x3x16x16xf32, #tpu.memory_space<vmem>>, vector<2x1x16x16xf32>
    %137 = vector.shape_cast %136 : vector<2x1x16x16xf32> to vector<2x16x16xf32>
    %138 = vector.shape_cast %135 : vector<2x16x16xf32> to vector<2x1x16x16xf32>
    tpu.vector_store %arg12[%c0_47, %c0_48, %c0_49, %c0_50], %138 {strides = array<i32>} : memref<2x3x16x16xf32, #tpu.memory_space<vmem>>, vector<2x1x16x16xf32>,
    %cst_51 = arith.constant 0.000000e+00 : f32
    %139 = vector.broadcast %cst_51 : f32 to vector<2x20x20xf32>
    %c0_52 = arith.constant 0 : index
    %c1_53 = arith.constant 1 : index
    %c0_54 = arith.constant 0 : index
    %c0_55 = arith.constant 0 : index
    %140 = vector.load %arg16[%c0_52, %c1_53, %c0_54, %c0_55] : memref<2x3x22x22xf32, #tpu.memory_space<vmem>>, vector<2x1x22x20xf32>
    %141 = vector.shape_cast %140 : vector<2x1x22x20xf32> to vector<2x22x20xf32>
    %142 = vector.extract_strided_slice %141 {offsets = [0, 0, 0], sizes = [2, 20, 20], strides = [1, 1, 1]} : vector<2x22x20xf32> to vector<2x20x20xf32>
    %c9 = arith.constant 9 : index
    %143 = memref.load %arg4[%c9] : memref<27xf32, #tpu.memory_space<smem>>
    %144 = vector.broadcast %143 : f32 to vector<2x20x20xf32>
    %145 = arith.mulf %144, %142 : vector<2x20x20xf32>
    %146 = arith.addf %139, %145 : vector<2x20x20xf32>
    %c9_56 = arith.constant 9 : index
    %147 = memref.load %arg8[%c9_56] : memref<27xf32, #tpu.memory_space<smem>>
    %148 = vector.broadcast %147 : f32 to vector<2x20x20xf32>
    %149 = arith.mulf %148, %142 : vector<2x20x20xf32>
    %150 = arith.addf %127, %149 : vector<2x20x20xf32>
    %c9_57 = arith.constant 9 : index
    %151 = memref.load %arg10[%c9_57] : memref<27xf32, #tpu.memory_space<smem>>
    %152 = vector.broadcast %151 : f32 to vector<2x20x20xf32>
    %153 = arith.mulf %152, %142 : vector<2x20x20xf32>
    %154 = arith.addf %131, %153 : vector<2x20x20xf32>
    %155 = vector.extract_strided_slice %141 {offsets = [0, 1, 0], sizes = [2, 20, 20], strides = [1, 1, 1]} : vector<2x22x20xf32> to vector<2x20x20xf32>
    %c12 = arith.constant 12 : index
    %156 = memref.load %arg4[%c12] : memref<27xf32, #tpu.memory_space<smem>>
    %157 = vector.broadcast %156 : f32 to vector<2x20x20xf32>
    %158 = arith.mulf %157, %155 : vector<2x20x20xf32>
    %159 = arith.addf %146, %158 : vector<2x20x20xf32>
    %c12_58 = arith.constant 12 : index
    %160 = memref.load %arg8[%c12_58] : memref<27xf32, #tpu.memory_space<smem>>
    %161 = vector.broadcast %160 : f32 to vector<2x20x20xf32>
    %162 = arith.mulf %161, %155 : vector<2x20x20xf32>
    %163 = arith.addf %150, %162 : vector<2x20x20xf32>
    %c12_59 = arith.constant 12 : index
    %164 = memref.load %arg10[%c12_59] : memref<27xf32, #tpu.memory_space<smem>>
    %165 = vector.broadcast %164 : f32 to vector<2x20x20xf32>
    %166 = arith.mulf %165, %155 : vector<2x20x20xf32>
    %167 = arith.addf %154, %166 : vector<2x20x20xf32>
    %168 = vector.extract_strided_slice %141 {offsets = [0, 2, 0], sizes = [2, 20, 20], strides = [1, 1, 1]} : vector<2x22x20xf32> to vector<2x20x20xf32>
    %c15 = arith.constant 15 : index
    %169 = memref.load %arg4[%c15] : memref<27xf32, #tpu.memory_space<smem>>
    %170 = vector.broadcast %169 : f32 to vector<2x20x20xf32>
    %171 = arith.mulf %170, %168 : vector<2x20x20xf32>
    %172 = arith.addf %159, %171 : vector<2x20x20xf32>
    %c15_60 = arith.constant 15 : index
    %173 = memref.load %arg8[%c15_60] : memref<27xf32, #tpu.memory_space<smem>>
    %174 = vector.broadcast %173 : f32 to vector<2x20x20xf32>
    %175 = arith.mulf %174, %168 : vector<2x20x20xf32>
    %176 = arith.addf %163, %175 : vector<2x20x20xf32>
    %c15_61 = arith.constant 15 : index
    %177 = memref.load %arg10[%c15_61] : memref<27xf32, #tpu.memory_space<smem>>
    %178 = vector.broadcast %177 : f32 to vector<2x20x20xf32>
    %179 = arith.mulf %178, %168 : vector<2x20x20xf32>
    %180 = arith.addf %167, %179 : vector<2x20x20xf32>
    %c0_62 = arith.constant 0 : index
    %c1_63 = arith.constant 1 : index
    %c0_64 = arith.constant 0 : index
    %c1_65 = arith.constant 1 : index
    %181 = vector.load %arg16[%c0_62, %c1_63, %c0_64, %c1_65] : memref<2x3x22x22xf32, #tpu.memory_space<vmem>>, vector<2x1x22x20xf32>
    %182 = vector.shape_cast %181 : vector<2x1x22x20xf32> to vector<2x22x20xf32>
    %183 = vector.extract_strided_slice %182 {offsets = [0, 0, 0], sizes = [2, 20, 20], strides = [1, 1, 1]} : vector<2x22x20xf32> to vector<2x20x20xf32>
    %c10 = arith.constant 10 : index
    %184 = memref.load %arg4[%c10] : memref<27xf32, #tpu.memory_space<smem>>
    %185 = vector.broadcast %184 : f32 to vector<2x20x20xf32>
    %186 = arith.mulf %185, %183 : vector<2x20x20xf32>
    %187 = arith.addf %172, %186 : vector<2x20x20xf32>
    %c10_66 = arith.constant 10 : index
    %188 = memref.load %arg8[%c10_66] : memref<27xf32, #tpu.memory_space<smem>>
    %189 = vector.broadcast %188 : f32 to vector<2x20x20xf32>
    %190 = arith.mulf %189, %183 : vector<2x20x20xf32>
    %191 = arith.addf %176, %190 : vector<2x20x20xf32>
    %c10_67 = arith.constant 10 : index
    %192 = memref.load %arg10[%c10_67] : memref<27xf32, #tpu.memory_space<smem>>
    %193 = vector.broadcast %192 : f32 to vector<2x20x20xf32>
    %194 = arith.mulf %193, %183 : vector<2x20x20xf32>
    %195 = arith.addf %180, %194 : vector<2x20x20xf32>
    %196 = vector.extract_strided_slice %182 {offsets = [0, 1, 0], sizes = [2, 20, 20], strides = [1, 1, 1]} : vector<2x22x20xf32> to vector<2x20x20xf32>
    %c13 = arith.constant 13 : index
    %197 = memref.load %arg4[%c13] : memref<27xf32, #tpu.memory_space<smem>>
    %198 = vector.broadcast %197 : f32 to vector<2x20x20xf32>
    %199 = arith.mulf %198, %196 : vector<2x20x20xf32>
    %200 = arith.addf %187, %199 : vector<2x20x20xf32>
    %c13_68 = arith.constant 13 : index
    %201 = memref.load %arg8[%c13_68] : memref<27xf32, #tpu.memory_space<smem>>
    %202 = vector.broadcast %201 : f32 to vector<2x20x20xf32>
    %203 = arith.mulf %202, %196 : vector<2x20x20xf32>
    %204 = arith.addf %191, %203 : vector<2x20x20xf32>
    %c13_69 = arith.constant 13 : index
    %205 = memref.load %arg10[%c13_69] : memref<27xf32, #tpu.memory_space<smem>>
    %206 = vector.broadcast %205 : f32 to vector<2x20x20xf32>
    %207 = arith.mulf %206, %196 : vector<2x20x20xf32>
    %208 = arith.addf %195, %207 : vector<2x20x20xf32>
    %209 = vector.extract_strided_slice %182 {offsets = [0, 2, 0], sizes = [2, 20, 20], strides = [1, 1, 1]} : vector<2x22x20xf32> to vector<2x20x20xf32>
    %c16 = arith.constant 16 : index
    %210 = memref.load %arg4[%c16] : memref<27xf32, #tpu.memory_space<smem>>
    %211 = vector.broadcast %210 : f32 to vector<2x20x20xf32>
    %212 = arith.mulf %211, %209 : vector<2x20x20xf32>
    %213 = arith.addf %200, %212 : vector<2x20x20xf32>
    %c16_70 = arith.constant 16 : index
    %214 = memref.load %arg8[%c16_70] : memref<27xf32, #tpu.memory_space<smem>>
    %215 = vector.broadcast %214 : f32 to vector<2x20x20xf32>
    %216 = arith.mulf %215, %209 : vector<2x20x20xf32>
    %217 = arith.addf %204, %216 : vector<2x20x20xf32>
    %c16_71 = arith.constant 16 : index
    %218 = memref.load %arg10[%c16_71] : memref<27xf32, #tpu.memory_space<smem>>
    %219 = vector.broadcast %218 : f32 to vector<2x20x20xf32>
    %220 = arith.mulf %219, %209 : vector<2x20x20xf32>
    %221 = arith.addf %208, %220 : vector<2x20x20xf32>
    %c0_72 = arith.constant 0 : index
    %c1_73 = arith.constant 1 : index
    %c0_74 = arith.constant 0 : index
    %c2_75 = arith.constant 2 : index
    %222 = vector.load %arg16[%c0_72, %c1_73, %c0_74, %c2_75] : memref<2x3x22x22xf32, #tpu.memory_space<vmem>>, vector<2x1x22x20xf32>
    %223 = vector.shape_cast %222 : vector<2x1x22x20xf32> to vector<2x22x20xf32>
    %224 = vector.extract_strided_slice %223 {offsets = [0, 0, 0], sizes = [2, 20, 20], strides = [1, 1, 1]} : vector<2x22x20xf32> to vector<2x20x20xf32>
    %c11 = arith.constant 11 : index
    %225 = memref.load %arg4[%c11] : memref<27xf32, #tpu.memory_space<smem>>
    %226 = vector.broadcast %225 : f32 to vector<2x20x20xf32>
    %227 = arith.mulf %226, %224 : vector<2x20x20xf32>
    %228 = arith.addf %213, %227 : vector<2x20x20xf32>
    %c11_76 = arith.constant 11 : index
    %229 = memref.load %arg8[%c11_76] : memref<27xf32, #tpu.memory_space<smem>>
    %230 = vector.broadcast %229 : f32 to vector<2x20x20xf32>
    %231 = arith.mulf %230, %224 : vector<2x20x20xf32>
    %232 = arith.addf %217, %231 : vector<2x20x20xf32>
    %c11_77 = arith.constant 11 : index
    %233 = memref.load %arg10[%c11_77] : memref<27xf32, #tpu.memory_space<smem>>
    %234 = vector.broadcast %233 : f32 to vector<2x20x20xf32>
    %235 = arith.mulf %234, %224 : vector<2x20x20xf32>
    %236 = arith.addf %221, %235 : vector<2x20x20xf32>
    %237 = vector.extract_strided_slice %223 {offsets = [0, 1, 0], sizes = [2, 20, 20], strides = [1, 1, 1]} : vector<2x22x20xf32> to vector<2x20x20xf32>
    %c14 = arith.constant 14 : index
    %238 = memref.load %arg4[%c14] : memref<27xf32, #tpu.memory_space<smem>>
    %239 = vector.broadcast %238 : f32 to vector<2x20x20xf32>
    %240 = arith.mulf %239, %237 : vector<2x20x20xf32>
    %241 = arith.addf %228, %240 : vector<2x20x20xf32>
    %c14_78 = arith.constant 14 : index
    %242 = memref.load %arg8[%c14_78] : memref<27xf32, #tpu.memory_space<smem>>
    %243 = vector.broadcast %242 : f32 to vector<2x20x20xf32>
    %244 = arith.mulf %243, %237 : vector<2x20x20xf32>
    %245 = arith.addf %232, %244 : vector<2x20x20xf32>
    %c14_79 = arith.constant 14 : index
    %246 = memref.load %arg10[%c14_79] : memref<27xf32, #tpu.memory_space<smem>>
    %247 = vector.broadcast %246 : f32 to vector<2x20x20xf32>
    %248 = arith.mulf %247, %237 : vector<2x20x20xf32>
    %249 = arith.addf %236, %248 : vector<2x20x20xf32>
    %250 = vector.extract_strided_slice %223 {offsets = [0, 2, 0], sizes = [2, 20, 20], strides = [1, 1, 1]} : vector<2x22x20xf32> to vector<2x20x20xf32>
    %c17 = arith.constant 17 : index
    %251 = memref.load %arg4[%c17] : memref<27xf32, #tpu.memory_space<smem>>
    %252 = vector.broadcast %251 : f32 to vector<2x20x20xf32>
    %253 = arith.mulf %252, %250 : vector<2x20x20xf32>
    %254 = arith.addf %241, %253 : vector<2x20x20xf32>
    %c17_80 = arith.constant 17 : index
    %255 = memref.load %arg8[%c17_80] : memref<27xf32, #tpu.memory_space<smem>>
    %256 = vector.broadcast %255 : f32 to vector<2x20x20xf32>
    %257 = arith.mulf %256, %250 : vector<2x20x20xf32>
    %258 = arith.addf %245, %257 : vector<2x20x20xf32>
    %c17_81 = arith.constant 17 : index
    %259 = memref.load %arg10[%c17_81] : memref<27xf32, #tpu.memory_space<smem>>
    %260 = vector.broadcast %259 : f32 to vector<2x20x20xf32>
    %261 = arith.mulf %260, %250 : vector<2x20x20xf32>
    %262 = arith.addf %249, %261 : vector<2x20x20xf32>
    %263 = vector.extract_strided_slice %254 {offsets = [0, 2, 2], sizes = [2, 16, 16], strides = [1, 1, 1]} : vector<2x20x20xf32> to vector<2x16x16xf32>
    %c1_82 = arith.constant 1 : index
    %264 = memref.load %arg5[%c1_82] : memref<3xf32, #tpu.memory_space<smem>>
    %265 = vector.broadcast %264 : f32 to vector<2x16x16xf32>
    %266 = arith.addf %263, %265 : vector<2x16x16xf32>
    %c0_83 = arith.constant 0 : index
    %c1_84 = arith.constant 1 : index
    %c0_85 = arith.constant 0 : index
    %c0_86 = arith.constant 0 : index
    %267 = vector.load %arg12[%c0_83, %c1_84, %c0_85, %c0_86] : memref<2x3x16x16xf32, #tpu.memory_space<vmem>>, vector<2x1x16x16xf32>
    %268 = vector.shape_cast %267 : vector<2x1x16x16xf32> to vector<2x16x16xf32>
    %269 = vector.shape_cast %266 : vector<2x16x16xf32> to vector<2x1x16x16xf32>
    tpu.vector_store %arg12[%c0_83, %c1_84, %c0_85, %c0_86], %269 {strides = array<i32>} : memref<2x3x16x16xf32, #tpu.memory_space<vmem>>, vector<2x1x16x16xf32>,
    %cst_87 = arith.constant 0.000000e+00 : f32
    %270 = vector.broadcast %cst_87 : f32 to vector<2x20x20xf32>
    %c0_88 = arith.constant 0 : index
    %c2_89 = arith.constant 2 : index
    %c0_90 = arith.constant 0 : index
    %c0_91 = arith.constant 0 : index
    %271 = vector.load %arg16[%c0_88, %c2_89, %c0_90, %c0_91] : memref<2x3x22x22xf32, #tpu.memory_space<vmem>>, vector<2x1x22x20xf32>
    %272 = vector.shape_cast %271 : vector<2x1x22x20xf32> to vector<2x22x20xf32>
    %273 = vector.extract_strided_slice %272 {offsets = [0, 0, 0], sizes = [2, 20, 20], strides = [1, 1, 1]} : vector<2x22x20xf32> to vector<2x20x20xf32>
    %c18 = arith.constant 18 : index
    %274 = memref.load %arg4[%c18] : memref<27xf32, #tpu.memory_space<smem>>
    %275 = vector.broadcast %274 : f32 to vector<2x20x20xf32>
    %276 = arith.mulf %275, %273 : vector<2x20x20xf32>
    %277 = arith.addf %270, %276 : vector<2x20x20xf32>
    %c18_92 = arith.constant 18 : index
    %278 = memref.load %arg8[%c18_92] : memref<27xf32, #tpu.memory_space<smem>>
    %279 = vector.broadcast %278 : f32 to vector<2x20x20xf32>
    %280 = arith.mulf %279, %273 : vector<2x20x20xf32>
    %281 = arith.addf %258, %280 : vector<2x20x20xf32>
    %c18_93 = arith.constant 18 : index
    %282 = memref.load %arg10[%c18_93] : memref<27xf32, #tpu.memory_space<smem>>
    %283 = vector.broadcast %282 : f32 to vector<2x20x20xf32>
    %284 = arith.mulf %283, %273 : vector<2x20x20xf32>
    %285 = arith.addf %262, %284 : vector<2x20x20xf32>
    %286 = vector.extract_strided_slice %272 {offsets = [0, 1, 0], sizes = [2, 20, 20], strides = [1, 1, 1]} : vector<2x22x20xf32> to vector<2x20x20xf32>
    %c21 = arith.constant 21 : index
    %287 = memref.load %arg4[%c21] : memref<27xf32, #tpu.memory_space<smem>>
    %288 = vector.broadcast %287 : f32 to vector<2x20x20xf32>
    %289 = arith.mulf %288, %286 : vector<2x20x20xf32>
    %290 = arith.addf %277, %289 : vector<2x20x20xf32>
    %c21_94 = arith.constant 21 : index
    %291 = memref.load %arg8[%c21_94] : memref<27xf32, #tpu.memory_space<smem>>
    %292 = vector.broadcast %291 : f32 to vector<2x20x20xf32>
    %293 = arith.mulf %292, %286 : vector<2x20x20xf32>
    %294 = arith.addf %281, %293 : vector<2x20x20xf32>
    %c21_95 = arith.constant 21 : index
    %295 = memref.load %arg10[%c21_95] : memref<27xf32, #tpu.memory_space<smem>>
    %296 = vector.broadcast %295 : f32 to vector<2x20x20xf32>
    %297 = arith.mulf %296, %286 : vector<2x20x20xf32>
    %298 = arith.addf %285, %297 : vector<2x20x20xf32>
    %299 = vector.extract_strided_slice %272 {offsets = [0, 2, 0], sizes = [2, 20, 20], strides = [1, 1, 1]} : vector<2x22x20xf32> to vector<2x20x20xf32>
    %c24 = arith.constant 24 : index
    %300 = memref.load %arg4[%c24] : memref<27xf32, #tpu.memory_space<smem>>
    %301 = vector.broadcast %300 : f32 to vector<2x20x20xf32>
    %302 = arith.mulf %301, %299 : vector<2x20x20xf32>
    %303 = arith.addf %290, %302 : vector<2x20x20xf32>
    %c24_96 = arith.constant 24 : index
    %304 = memref.load %arg8[%c24_96] : memref<27xf32, #tpu.memory_space<smem>>
    %305 = vector.broadcast %304 : f32 to vector<2x20x20xf32>
    %306 = arith.mulf %305, %299 : vector<2x20x20xf32>
    %307 = arith.addf %294, %306 : vector<2x20x20xf32>
    %c24_97 = arith.constant 24 : index
    %308 = memref.load %arg10[%c24_97] : memref<27xf32, #tpu.memory_space<smem>>
    %309 = vector.broadcast %308 : f32 to vector<2x20x20xf32>
    %310 = arith.mulf %309, %299 : vector<2x20x20xf32>
    %311 = arith.addf %298, %310 : vector<2x20x20xf32>
    %c0_98 = arith.constant 0 : index
    %c2_99 = arith.constant 2 : index
    %c0_100 = arith.constant 0 : index
    %c1_101 = arith.constant 1 : index
    %312 = vector.load %arg16[%c0_98, %c2_99, %c0_100, %c1_101] : memref<2x3x22x22xf32, #tpu.memory_space<vmem>>, vector<2x1x22x20xf32>
    %313 = vector.shape_cast %312 : vector<2x1x22x20xf32> to vector<2x22x20xf32>
    %314 = vector.extract_strided_slice %313 {offsets = [0, 0, 0], sizes = [2, 20, 20], strides = [1, 1, 1]} : vector<2x22x20xf32> to vector<2x20x20xf32>
    %c19 = arith.constant 19 : index
    %315 = memref.load %arg4[%c19] : memref<27xf32, #tpu.memory_space<smem>>
    %316 = vector.broadcast %315 : f32 to vector<2x20x20xf32>
    %317 = arith.mulf %316, %314 : vector<2x20x20xf32>
    %318 = arith.addf %303, %317 : vector<2x20x20xf32>
    %c19_102 = arith.constant 19 : index
    %319 = memref.load %arg8[%c19_102] : memref<27xf32, #tpu.memory_space<smem>>
    %320 = vector.broadcast %319 : f32 to vector<2x20x20xf32>
    %321 = arith.mulf %320, %314 : vector<2x20x20xf32>
    %322 = arith.addf %307, %321 : vector<2x20x20xf32>
    %c19_103 = arith.constant 19 : index
    %323 = memref.load %arg10[%c19_103] : memref<27xf32, #tpu.memory_space<smem>>
    %324 = vector.broadcast %323 : f32 to vector<2x20x20xf32>
    %325 = arith.mulf %324, %314 : vector<2x20x20xf32>
    %326 = arith.addf %311, %325 : vector<2x20x20xf32>
    %327 = vector.extract_strided_slice %313 {offsets = [0, 1, 0], sizes = [2, 20, 20], strides = [1, 1, 1]} : vector<2x22x20xf32> to vector<2x20x20xf32>
    %c22 = arith.constant 22 : index
    %328 = memref.load %arg4[%c22] : memref<27xf32, #tpu.memory_space<smem>>
    %329 = vector.broadcast %328 : f32 to vector<2x20x20xf32>
    %330 = arith.mulf %329, %327 : vector<2x20x20xf32>
    %331 = arith.addf %318, %330 : vector<2x20x20xf32>
    %c22_104 = arith.constant 22 : index
    %332 = memref.load %arg8[%c22_104] : memref<27xf32, #tpu.memory_space<smem>>
    %333 = vector.broadcast %332 : f32 to vector<2x20x20xf32>
    %334 = arith.mulf %333, %327 : vector<2x20x20xf32>
    %335 = arith.addf %322, %334 : vector<2x20x20xf32>
    %c22_105 = arith.constant 22 : index
    %336 = memref.load %arg10[%c22_105] : memref<27xf32, #tpu.memory_space<smem>>
    %337 = vector.broadcast %336 : f32 to vector<2x20x20xf32>
    %338 = arith.mulf %337, %327 : vector<2x20x20xf32>
    %339 = arith.addf %326, %338 : vector<2x20x20xf32>
    %340 = vector.extract_strided_slice %313 {offsets = [0, 2, 0], sizes = [2, 20, 20], strides = [1, 1, 1]} : vector<2x22x20xf32> to vector<2x20x20xf32>
    %c25 = arith.constant 25 : index
    %341 = memref.load %arg4[%c25] : memref<27xf32, #tpu.memory_space<smem>>
    %342 = vector.broadcast %341 : f32 to vector<2x20x20xf32>
    %343 = arith.mulf %342, %340 : vector<2x20x20xf32>
    %344 = arith.addf %331, %343 : vector<2x20x20xf32>
    %c25_106 = arith.constant 25 : index
    %345 = memref.load %arg8[%c25_106] : memref<27xf32, #tpu.memory_space<smem>>
    %346 = vector.broadcast %345 : f32 to vector<2x20x20xf32>
    %347 = arith.mulf %346, %340 : vector<2x20x20xf32>
    %348 = arith.addf %335, %347 : vector<2x20x20xf32>
    %c25_107 = arith.constant 25 : index
    %349 = memref.load %arg10[%c25_107] : memref<27xf32, #tpu.memory_space<smem>>
    %350 = vector.broadcast %349 : f32 to vector<2x20x20xf32>
    %351 = arith.mulf %350, %340 : vector<2x20x20xf32>
    %352 = arith.addf %339, %351 : vector<2x20x20xf32>
    %c0_108 = arith.constant 0 : index
    %c2_109 = arith.constant 2 : index
    %c0_110 = arith.constant 0 : index
    %c2_111 = arith.constant 2 : index
    %353 = vector.load %arg16[%c0_108, %c2_109, %c0_110, %c2_111] : memref<2x3x22x22xf32, #tpu.memory_space<vmem>>, vector<2x1x22x20xf32>
    %354 = vector.shape_cast %353 : vector<2x1x22x20xf32> to vector<2x22x20xf32>
    %355 = vector.extract_strided_slice %354 {offsets = [0, 0, 0], sizes = [2, 20, 20], strides = [1, 1, 1]} : vector<2x22x20xf32> to vector<2x20x20xf32>
    %c20 = arith.constant 20 : index
    %356 = memref.load %arg4[%c20] : memref<27xf32, #tpu.memory_space<smem>>
    %357 = vector.broadcast %356 : f32 to vector<2x20x20xf32>
    %358 = arith.mulf %357, %355 : vector<2x20x20xf32>
    %359 = arith.addf %344, %358 : vector<2x20x20xf32>
    %c20_112 = arith.constant 20 : index
    %360 = memref.load %arg8[%c20_112] : memref<27xf32, #tpu.memory_space<smem>>
    %361 = vector.broadcast %360 : f32 to vector<2x20x20xf32>
    %362 = arith.mulf %361, %355 : vector<2x20x20xf32>
    %363 = arith.addf %348, %362 : vector<2x20x20xf32>
    %c20_113 = arith.constant 20 : index
    %364 = memref.load %arg10[%c20_113] : memref<27xf32, #tpu.memory_space<smem>>
    %365 = vector.broadcast %364 : f32 to vector<2x20x20xf32>
    %366 = arith.mulf %365, %355 : vector<2x20x20xf32>
    %367 = arith.addf %352, %366 : vector<2x20x20xf32>
    %368 = vector.extract_strided_slice %354 {offsets = [0, 1, 0], sizes = [2, 20, 20], strides = [1, 1, 1]} : vector<2x22x20xf32> to vector<2x20x20xf32>
    %c23 = arith.constant 23 : index
    %369 = memref.load %arg4[%c23] : memref<27xf32, #tpu.memory_space<smem>>
    %370 = vector.broadcast %369 : f32 to vector<2x20x20xf32>
    %371 = arith.mulf %370, %368 : vector<2x20x20xf32>
    %372 = arith.addf %359, %371 : vector<2x20x20xf32>
    %c23_114 = arith.constant 23 : index
    %373 = memref.load %arg8[%c23_114] : memref<27xf32, #tpu.memory_space<smem>>
    %374 = vector.broadcast %373 : f32 to vector<2x20x20xf32>
    %375 = arith.mulf %374, %368 : vector<2x20x20xf32>
    %376 = arith.addf %363, %375 : vector<2x20x20xf32>
    %c23_115 = arith.constant 23 : index
    %377 = memref.load %arg10[%c23_115] : memref<27xf32, #tpu.memory_space<smem>>
    %378 = vector.broadcast %377 : f32 to vector<2x20x20xf32>
    %379 = arith.mulf %378, %368 : vector<2x20x20xf32>
    %380 = arith.addf %367, %379 : vector<2x20x20xf32>
    %381 = vector.extract_strided_slice %354 {offsets = [0, 2, 0], sizes = [2, 20, 20], strides = [1, 1, 1]} : vector<2x22x20xf32> to vector<2x20x20xf32>
    %c26 = arith.constant 26 : index
    %382 = memref.load %arg4[%c26] : memref<27xf32, #tpu.memory_space<smem>>
    %383 = vector.broadcast %382 : f32 to vector<2x20x20xf32>
    %384 = arith.mulf %383, %381 : vector<2x20x20xf32>
    %385 = arith.addf %372, %384 : vector<2x20x20xf32>
    %c26_116 = arith.constant 26 : index
    %386 = memref.load %arg8[%c26_116] : memref<27xf32, #tpu.memory_space<smem>>
    %387 = vector.broadcast %386 : f32 to vector<2x20x20xf32>
    %388 = arith.mulf %387, %381 : vector<2x20x20xf32>
    %389 = arith.addf %376, %388 : vector<2x20x20xf32>
    %c26_117 = arith.constant 26 : index
    %390 = memref.load %arg10[%c26_117] : memref<27xf32, #tpu.memory_space<smem>>
    %391 = vector.broadcast %390 : f32 to vector<2x20x20xf32>
    %392 = arith.mulf %391, %381 : vector<2x20x20xf32>
    %393 = arith.addf %380, %392 : vector<2x20x20xf32>
    %394 = vector.extract_strided_slice %385 {offsets = [0, 2, 2], sizes = [2, 16, 16], strides = [1, 1, 1]} : vector<2x20x20xf32> to vector<2x16x16xf32>
    %c2_118 = arith.constant 2 : index
    %395 = memref.load %arg5[%c2_118] : memref<3xf32, #tpu.memory_space<smem>>
    %396 = vector.broadcast %395 : f32 to vector<2x16x16xf32>
    %397 = arith.addf %394, %396 : vector<2x16x16xf32>
    %c0_119 = arith.constant 0 : index
    %c2_120 = arith.constant 2 : index
    %c0_121 = arith.constant 0 : index
    %c0_122 = arith.constant 0 : index
    %398 = vector.load %arg12[%c0_119, %c2_120, %c0_121, %c0_122] : memref<2x3x16x16xf32, #tpu.memory_space<vmem>>, vector<2x1x16x16xf32>
    %399 = vector.shape_cast %398 : vector<2x1x16x16xf32> to vector<2x16x16xf32>
    %400 = vector.shape_cast %397 : vector<2x16x16xf32> to vector<2x1x16x16xf32>
    tpu.vector_store %arg12[%c0_119, %c2_120, %c0_121, %c0_122], %400 {strides = array<i32>} : memref<2x3x16x16xf32, #tpu.memory_space<vmem>>, vector<2x1x16x16xf32>,
    %c0_123 = arith.constant 0 : index
    %401 = memref.load %arg9[%c0_123] : memref<1xf32, #tpu.memory_space<smem>>
    %402 = vector.broadcast %401 : f32 to vector<2x20x20xf32>
    %403 = arith.addf %389, %402 : vector<2x20x20xf32>
    %c0_124 = arith.constant 0 : index
    %c0_125 = arith.constant 0 : index
    %c0_126 = arith.constant 0 : index
    %c0_127 = arith.constant 0 : index
    %404 = vector.load %arg14[%c0_124, %c0_125, %c0_126, %c0_127] : memref<2x1x20x20xf32, #tpu.memory_space<vmem>>, vector<2x1x20x20xf32>
    %405 = vector.shape_cast %404 : vector<2x1x20x20xf32> to vector<2x20x20xf32>
    %406 = vector.shape_cast %403 : vector<2x20x20xf32> to vector<2x1x20x20xf32>
    tpu.vector_store %arg14[%c0_124, %c0_125, %c0_126, %c0_127], %406 {strides = array<i32>} : memref<2x1x20x20xf32, #tpu.memory_space<vmem>>, vector<2x1x20x20xf32>,
    %407 = vector.extract_strided_slice %393 {offsets = [0, 3, 3], sizes = [2, 14, 14], strides = [1, 1, 1]} : vector<2x20x20xf32> to vector<2x14x14xf32>
    %c0_128 = arith.constant 0 : index
    %408 = memref.load %arg11[%c0_128] : memref<1xf32, #tpu.memory_space<smem>>
    %409 = vector.broadcast %408 : f32 to vector<2x14x14xf32>
    %410 = arith.addf %407, %409 : vector<2x14x14xf32>
    %c0_129 = arith.constant 0 : index
    %c0_130 = arith.constant 0 : index
    %c0_131 = arith.constant 0 : index
    %c0_132 = arith.constant 0 : index
    %411 = vector.load %arg15[%c0_129, %c0_130, %c0_131, %c0_132] : memref<2x1x14x14xf32, #tpu.memory_space<vmem>>, vector<2x1x14x14xf32>
    %412 = vector.shape_cast %411 : vector<2x1x14x14xf32> to vector<2x14x14xf32>
    %413 = vector.shape_cast %410 : vector<2x14x14xf32> to vector<2x1x14x14xf32>
    tpu.vector_store %arg15[%c0_129, %c0_130, %c0_131, %c0_132], %413 {strides = array<i32>} : memref<2x1x14x14xf32, #tpu.memory_space<vmem>>, vector<2x1x14x14xf32>,
    %c0_133 = arith.constant 0 : index
    %c0_134 = arith.constant 0 : index
    %c3_135 = arith.constant 3 : index
    %c3_136 = arith.constant 3 : index
    %414 = vector.load %arg16[%c0_133, %c0_134, %c3_135, %c3_136] : memref<2x3x22x22xf32, #tpu.memory_space<vmem>>, vector<2x3x14x14xf32>
    %c0_137 = arith.constant 0 : index
    %c0_138 = arith.constant 0 : index
    %c3_139 = arith.constant 3 : index
    %c4_140 = arith.constant 4 : index
    %415 = vector.load %arg16[%c0_137, %c0_138, %c3_139, %c4_140] : memref<2x3x22x22xf32, #tpu.memory_space<vmem>>, vector<2x3x14x14xf32>
    %416 = arith.maximumf %414, %415 : vector<2x3x14x14xf32>
    %c0_141 = arith.constant 0 : index
    %c0_142 = arith.constant 0 : index
    %c3_143 = arith.constant 3 : index
    %c5_144 = arith.constant 5 : index
    %417 = vector.load %arg16[%c0_141, %c0_142, %c3_143, %c5_144] : memref<2x3x22x22xf32, #tpu.memory_space<vmem>>, vector<2x3x14x14xf32>
    %418 = arith.maximumf %416, %417 : vector<2x3x14x14xf32>
    %c0_145 = arith.constant 0 : index
    %c0_146 = arith.constant 0 : index
    %c4_147 = arith.constant 4 : index
    %c3_148 = arith.constant 3 : index
    %419 = vector.load %arg16[%c0_145, %c0_146, %c4_147, %c3_148] : memref<2x3x22x22xf32, #tpu.memory_space<vmem>>, vector<2x3x14x14xf32>
    %420 = arith.maximumf %418, %419 : vector<2x3x14x14xf32>
    %c0_149 = arith.constant 0 : index
    %c0_150 = arith.constant 0 : index
    %c4_151 = arith.constant 4 : index
    %c4_152 = arith.constant 4 : index
    %421 = vector.load %arg16[%c0_149, %c0_150, %c4_151, %c4_152] : memref<2x3x22x22xf32, #tpu.memory_space<vmem>>, vector<2x3x14x14xf32>
    %422 = arith.maximumf %420, %421 : vector<2x3x14x14xf32>
    %c0_153 = arith.constant 0 : index
    %c0_154 = arith.constant 0 : index
    %c4_155 = arith.constant 4 : index
    %c5_156 = arith.constant 5 : index
    %423 = vector.load %arg16[%c0_153, %c0_154, %c4_155, %c5_156] : memref<2x3x22x22xf32, #tpu.memory_space<vmem>>, vector<2x3x14x14xf32>
    %424 = arith.maximumf %422, %423 : vector<2x3x14x14xf32>
    %c0_157 = arith.constant 0 : index
    %c0_158 = arith.constant 0 : index
    %c5_159 = arith.constant 5 : index
    %c3_160 = arith.constant 3 : index
    %425 = vector.load %arg16[%c0_157, %c0_158, %c5_159, %c3_160] : memref<2x3x22x22xf32, #tpu.memory_space<vmem>>, vector<2x3x14x14xf32>
    %426 = arith.maximumf %424, %425 : vector<2x3x14x14xf32>
    %c0_161 = arith.constant 0 : index
    %c0_162 = arith.constant 0 : index
    %c5_163 = arith.constant 5 : index
    %c4_164 = arith.constant 4 : index
    %427 = vector.load %arg16[%c0_161, %c0_162, %c5_163, %c4_164] : memref<2x3x22x22xf32, #tpu.memory_space<vmem>>, vector<2x3x14x14xf32>
    %428 = arith.maximumf %426, %427 : vector<2x3x14x14xf32>
    %c0_165 = arith.constant 0 : index
    %c0_166 = arith.constant 0 : index
    %c5_167 = arith.constant 5 : index
    %c5_168 = arith.constant 5 : index
    %429 = vector.load %arg16[%c0_165, %c0_166, %c5_167, %c5_168] : memref<2x3x22x22xf32, #tpu.memory_space<vmem>>, vector<2x3x14x14xf32>
    %430 = arith.maximumf %428, %429 : vector<2x3x14x14xf32>
    %c0_169 = arith.constant 0 : index
    %c0_170 = arith.constant 0 : index
    %431 = vector.load %arg2[%c0_169, %c0_170] : memref<11x14xf32, #tpu.memory_space<vmem>>, vector<11x14xf32>
    %c0_171 = arith.constant 0 : index
    %c0_172 = arith.constant 0 : index
    %432 = vector.load %arg3[%c0_171, %c0_172] : memref<14x11xf32, #tpu.memory_space<vmem>>, vector<14x11xf32>
    %cst_173 = arith.constant 0.000000e+00 : f32
    %433 = vector.broadcast %cst_173 : f32 to vector<7x7xf32>
    %434 = vector.extract_strided_slice %430 {offsets = [0, 0, 0, 0], sizes = [1, 1, 14, 14], strides = [1, 1, 1, 1]} : vector<2x3x14x14xf32> to vector<1x1x14x14xf32>
    %435 = vector.shape_cast %434 : vector<1x1x14x14xf32> to vector<14x14xf32>
    %cst_174 = arith.constant dense<0.000000e+00> : vector<11x14xf32>
    %436 = tpu.matmul %431, %435, %cst_174 {dimension_numbers = #tpu.dot_dimension_numbers<[1], [0], [0], [1], [0, 0, 1, 1], [], []>} : vector<11x14xf32>, vector<14x14xf32>, vector<11x14xf32> -> vector<11x14xf32>
    %cst_175 = arith.constant dense<0.000000e+00> : vector<11x11xf32>
    %437 = tpu.matmul %436, %432, %cst_175 {dimension_numbers = #tpu.dot_dimension_numbers<[1], [0], [0], [1], [0, 0, 1, 1], [], []>} : vector<11x14xf32>, vector<14x11xf32>, vector<11x11xf32> -> vector<11x11xf32>
    %438 = vector.extract_strided_slice %437 {offsets = [0, 0], sizes = [11, 7], strides = [1, 1]} : vector<11x11xf32> to vector<11x7xf32>
    %c0_176 = arith.constant 0 : index
    %439 = memref.load %arg6[%c0_176] : memref<75xf32, #tpu.memory_space<smem>>
    %440 = vector.extract_strided_slice %438 {offsets = [0, 0], sizes = [7, 7], strides = [1, 1]} : vector<11x7xf32> to vector<7x7xf32>
    %441 = vector.broadcast %439 : f32 to vector<7x7xf32>
    %442 = arith.mulf %441, %440 : vector<7x7xf32>
    %443 = arith.addf %433, %442 : vector<7x7xf32>
    %c5_177 = arith.constant 5 : index
    %444 = memref.load %arg6[%c5_177] : memref<75xf32, #tpu.memory_space<smem>>
    %445 = vector.extract_strided_slice %438 {offsets = [1, 0], sizes = [7, 7], strides = [1, 1]} : vector<11x7xf32> to vector<7x7xf32>
    %446 = vector.broadcast %444 : f32 to vector<7x7xf32>
    %447 = arith.mulf %446, %445 : vector<7x7xf32>
    %448 = arith.addf %443, %447 : vector<7x7xf32>
    %c10_178 = arith.constant 10 : index
    %449 = memref.load %arg6[%c10_178] : memref<75xf32, #tpu.memory_space<smem>>
    %450 = vector.extract_strided_slice %438 {offsets = [2, 0], sizes = [7, 7], strides = [1, 1]} : vector<11x7xf32> to vector<7x7xf32>
    %451 = vector.broadcast %449 : f32 to vector<7x7xf32>
    %452 = arith.mulf %451, %450 : vector<7x7xf32>
    %453 = arith.addf %448, %452 : vector<7x7xf32>
    %c15_179 = arith.constant 15 : index
    %454 = memref.load %arg6[%c15_179] : memref<75xf32, #tpu.memory_space<smem>>
    %455 = vector.extract_strided_slice %438 {offsets = [3, 0], sizes = [7, 7], strides = [1, 1]} : vector<11x7xf32> to vector<7x7xf32>
    %456 = vector.broadcast %454 : f32 to vector<7x7xf32>
    %457 = arith.mulf %456, %455 : vector<7x7xf32>
    %458 = arith.addf %453, %457 : vector<7x7xf32>
    %c20_180 = arith.constant 20 : index
    %459 = memref.load %arg6[%c20_180] : memref<75xf32, #tpu.memory_space<smem>>
    %460 = vector.extract_strided_slice %438 {offsets = [4, 0], sizes = [7, 7], strides = [1, 1]} : vector<11x7xf32> to vector<7x7xf32>
    %461 = vector.broadcast %459 : f32 to vector<7x7xf32>
    %462 = arith.mulf %461, %460 : vector<7x7xf32>
    %463 = arith.addf %458, %462 : vector<7x7xf32>
    %464 = vector.extract_strided_slice %437 {offsets = [0, 1], sizes = [11, 7], strides = [1, 1]} : vector<11x11xf32> to vector<11x7xf32>
    %c1_181 = arith.constant 1 : index
    %465 = memref.load %arg6[%c1_181] : memref<75xf32, #tpu.memory_space<smem>>
    %466 = vector.extract_strided_slice %464 {offsets = [0, 0], sizes = [7, 7], strides = [1, 1]} : vector<11x7xf32> to vector<7x7xf32>
    %467 = vector.broadcast %465 : f32 to vector<7x7xf32>
    %468 = arith.mulf %467, %466 : vector<7x7xf32>
    %469 = arith.addf %463, %468 : vector<7x7xf32>
    %c6_182 = arith.constant 6 : index
    %470 = memref.load %arg6[%c6_182] : memref<75xf32, #tpu.memory_space<smem>>
    %471 = vector.extract_strided_slice %464 {offsets = [1, 0], sizes = [7, 7], strides = [1, 1]} : vector<11x7xf32> to vector<7x7xf32>
    %472 = vector.broadcast %470 : f32 to vector<7x7xf32>
    %473 = arith.mulf %472, %471 : vector<7x7xf32>
    %474 = arith.addf %469, %473 : vector<7x7xf32>
    %c11_183 = arith.constant 11 : index
    %475 = memref.load %arg6[%c11_183] : memref<75xf32, #tpu.memory_space<smem>>
    %476 = vector.extract_strided_slice %464 {offsets = [2, 0], sizes = [7, 7], strides = [1, 1]} : vector<11x7xf32> to vector<7x7xf32>
    %477 = vector.broadcast %475 : f32 to vector<7x7xf32>
    %478 = arith.mulf %477, %476 : vector<7x7xf32>
    %479 = arith.addf %474, %478 : vector<7x7xf32>
    %c16_184 = arith.constant 16 : index
    %480 = memref.load %arg6[%c16_184] : memref<75xf32, #tpu.memory_space<smem>>
    %481 = vector.extract_strided_slice %464 {offsets = [3, 0], sizes = [7, 7], strides = [1, 1]} : vector<11x7xf32> to vector<7x7xf32>
    %482 = vector.broadcast %480 : f32 to vector<7x7xf32>
    %483 = arith.mulf %482, %481 : vector<7x7xf32>
    %484 = arith.addf %479, %483 : vector<7x7xf32>
    %c21_185 = arith.constant 21 : index
    %485 = memref.load %arg6[%c21_185] : memref<75xf32, #tpu.memory_space<smem>>
    %486 = vector.extract_strided_slice %464 {offsets = [4, 0], sizes = [7, 7], strides = [1, 1]} : vector<11x7xf32> to vector<7x7xf32>
    %487 = vector.broadcast %485 : f32 to vector<7x7xf32>
    %488 = arith.mulf %487, %486 : vector<7x7xf32>
    %489 = arith.addf %484, %488 : vector<7x7xf32>
    %490 = vector.extract_strided_slice %437 {offsets = [0, 2], sizes = [11, 7], strides = [1, 1]} : vector<11x11xf32> to vector<11x7xf32>
    %c2_186 = arith.constant 2 : index
    %491 = memref.load %arg6[%c2_186] : memref<75xf32, #tpu.memory_space<smem>>
    %492 = vector.extract_strided_slice %490 {offsets = [0, 0], sizes = [7, 7], strides = [1, 1]} : vector<11x7xf32> to vector<7x7xf32>
    %493 = vector.broadcast %491 : f32 to vector<7x7xf32>
    %494 = arith.mulf %493, %492 : vector<7x7xf32>
    %495 = arith.addf %489, %494 : vector<7x7xf32>
    %c7_187 = arith.constant 7 : index
    %496 = memref.load %arg6[%c7_187] : memref<75xf32, #tpu.memory_space<smem>>
    %497 = vector.extract_strided_slice %490 {offsets = [1, 0], sizes = [7, 7], strides = [1, 1]} : vector<11x7xf32> to vector<7x7xf32>
    %498 = vector.broadcast %496 : f32 to vector<7x7xf32>
    %499 = arith.mulf %498, %497 : vector<7x7xf32>
    %500 = arith.addf %495, %499 : vector<7x7xf32>
    %c12_188 = arith.constant 12 : index
    %501 = memref.load %arg6[%c12_188] : memref<75xf32, #tpu.memory_space<smem>>
    %502 = vector.extract_strided_slice %490 {offsets = [2, 0], sizes = [7, 7], strides = [1, 1]} : vector<11x7xf32> to vector<7x7xf32>
    %503 = vector.broadcast %501 : f32 to vector<7x7xf32>
    %504 = arith.mulf %503, %502 : vector<7x7xf32>
    %505 = arith.addf %500, %504 : vector<7x7xf32>
    %c17_189 = arith.constant 17 : index
    %506 = memref.load %arg6[%c17_189] : memref<75xf32, #tpu.memory_space<smem>>
    %507 = vector.extract_strided_slice %490 {offsets = [3, 0], sizes = [7, 7], strides = [1, 1]} : vector<11x7xf32> to vector<7x7xf32>
    %508 = vector.broadcast %506 : f32 to vector<7x7xf32>
    %509 = arith.mulf %508, %507 : vector<7x7xf32>
    %510 = arith.addf %505, %509 : vector<7x7xf32>
    %c22_190 = arith.constant 22 : index
    %511 = memref.load %arg6[%c22_190] : memref<75xf32, #tpu.memory_space<smem>>
    %512 = vector.extract_strided_slice %490 {offsets = [4, 0], sizes = [7, 7], strides = [1, 1]} : vector<11x7xf32> to vector<7x7xf32>
    %513 = vector.broadcast %511 : f32 to vector<7x7xf32>
    %514 = arith.mulf %513, %512 : vector<7x7xf32>
    %515 = arith.addf %510, %514 : vector<7x7xf32>
    %516 = vector.extract_strided_slice %437 {offsets = [0, 3], sizes = [11, 7], strides = [1, 1]} : vector<11x11xf32> to vector<11x7xf32>
    %c3_191 = arith.constant 3 : index
    %517 = memref.load %arg6[%c3_191] : memref<75xf32, #tpu.memory_space<smem>>
    %518 = vector.extract_strided_slice %516 {offsets = [0, 0], sizes = [7, 7], strides = [1, 1]} : vector<11x7xf32> to vector<7x7xf32>
    %519 = vector.broadcast %517 : f32 to vector<7x7xf32>
    %520 = arith.mulf %519, %518 : vector<7x7xf32>
    %521 = arith.addf %515, %520 : vector<7x7xf32>
    %c8_192 = arith.constant 8 : index
    %522 = memref.load %arg6[%c8_192] : memref<75xf32, #tpu.memory_space<smem>>
    %523 = vector.extract_strided_slice %516 {offsets = [1, 0], sizes = [7, 7], strides = [1, 1]} : vector<11x7xf32> to vector<7x7xf32>
    %524 = vector.broadcast %522 : f32 to vector<7x7xf32>
    %525 = arith.mulf %524, %523 : vector<7x7xf32>
    %526 = arith.addf %521, %525 : vector<7x7xf32>
    %c13_193 = arith.constant 13 : index
    %527 = memref.load %arg6[%c13_193] : memref<75xf32, #tpu.memory_space<smem>>
    %528 = vector.extract_strided_slice %516 {offsets = [2, 0], sizes = [7, 7], strides = [1, 1]} : vector<11x7xf32> to vector<7x7xf32>
    %529 = vector.broadcast %527 : f32 to vector<7x7xf32>
    %530 = arith.mulf %529, %528 : vector<7x7xf32>
    %531 = arith.addf %526, %530 : vector<7x7xf32>
    %c18_194 = arith.constant 18 : index
    %532 = memref.load %arg6[%c18_194] : memref<75xf32, #tpu.memory_space<smem>>
    %533 = vector.extract_strided_slice %516 {offsets = [3, 0], sizes = [7, 7], strides = [1, 1]} : vector<11x7xf32> to vector<7x7xf32>
    %534 = vector.broadcast %532 : f32 to vector<7x7xf32>
    %535 = arith.mulf %534, %533 : vector<7x7xf32>
    %536 = arith.addf %531, %535 : vector<7x7xf32>
    %c23_195 = arith.constant 23 : index
    %537 = memref.load %arg6[%c23_195] : memref<75xf32, #tpu.memory_space<smem>>
    %538 = vector.extract_strided_slice %516 {offsets = [4, 0], sizes = [7, 7], strides = [1, 1]} : vector<11x7xf32> to vector<7x7xf32>
    %539 = vector.broadcast %537 : f32 to vector<7x7xf32>
    %540 = arith.mulf %539, %538 : vector<7x7xf32>
    %541 = arith.addf %536, %540 : vector<7x7xf32>
    %542 = vector.extract_strided_slice %437 {offsets = [0, 4], sizes = [11, 7], strides = [1, 1]} : vector<11x11xf32> to vector<11x7xf32>
    %c4_196 = arith.constant 4 : index
    %543 = memref.load %arg6[%c4_196] : memref<75xf32, #tpu.memory_space<smem>>
    %544 = vector.extract_strided_slice %542 {offsets = [0, 0], sizes = [7, 7], strides = [1, 1]} : vector<11x7xf32> to vector<7x7xf32>
    %545 = vector.broadcast %543 : f32 to vector<7x7xf32>
    %546 = arith.mulf %545, %544 : vector<7x7xf32>
    %547 = arith.addf %541, %546 : vector<7x7xf32>
    %c9_197 = arith.constant 9 : index
    %548 = memref.load %arg6[%c9_197] : memref<75xf32, #tpu.memory_space<smem>>
    %549 = vector.extract_strided_slice %542 {offsets = [1, 0], sizes = [7, 7], strides = [1, 1]} : vector<11x7xf32> to vector<7x7xf32>
    %550 = vector.broadcast %548 : f32 to vector<7x7xf32>
    %551 = arith.mulf %550, %549 : vector<7x7xf32>
    %552 = arith.addf %547, %551 : vector<7x7xf32>
    %c14_198 = arith.constant 14 : index
    %553 = memref.load %arg6[%c14_198] : memref<75xf32, #tpu.memory_space<smem>>
    %554 = vector.extract_strided_slice %542 {offsets = [2, 0], sizes = [7, 7], strides = [1, 1]} : vector<11x7xf32> to vector<7x7xf32>
    %555 = vector.broadcast %553 : f32 to vector<7x7xf32>
    %556 = arith.mulf %555, %554 : vector<7x7xf32>
    %557 = arith.addf %552, %556 : vector<7x7xf32>
    %c19_199 = arith.constant 19 : index
    %558 = memref.load %arg6[%c19_199] : memref<75xf32, #tpu.memory_space<smem>>
    %559 = vector.extract_strided_slice %542 {offsets = [3, 0], sizes = [7, 7], strides = [1, 1]} : vector<11x7xf32> to vector<7x7xf32>
    %560 = vector.broadcast %558 : f32 to vector<7x7xf32>
    %561 = arith.mulf %560, %559 : vector<7x7xf32>
    %562 = arith.addf %557, %561 : vector<7x7xf32>
    %c24_200 = arith.constant 24 : index
    %563 = memref.load %arg6[%c24_200] : memref<75xf32, #tpu.memory_space<smem>>
    %564 = vector.extract_strided_slice %542 {offsets = [4, 0], sizes = [7, 7], strides = [1, 1]} : vector<11x7xf32> to vector<7x7xf32>
    %565 = vector.broadcast %563 : f32 to vector<7x7xf32>
    %566 = arith.mulf %565, %564 : vector<7x7xf32>
    %567 = arith.addf %562, %566 : vector<7x7xf32>
    %568 = vector.extract_strided_slice %430 {offsets = [0, 1, 0, 0], sizes = [1, 1, 14, 14], strides = [1, 1, 1, 1]} : vector<2x3x14x14xf32> to vector<1x1x14x14xf32>
    %569 = vector.shape_cast %568 : vector<1x1x14x14xf32> to vector<14x14xf32>
    %cst_201 = arith.constant dense<0.000000e+00> : vector<11x14xf32>
    %570 = tpu.matmul %431, %569, %cst_201 {dimension_numbers = #tpu.dot_dimension_numbers<[1], [0], [0], [1], [0, 0, 1, 1], [], []>} : vector<11x14xf32>, vector<14x14xf32>, vector<11x14xf32> -> vector<11x14xf32>
    %cst_202 = arith.constant dense<0.000000e+00> : vector<11x11xf32>
    %571 = tpu.matmul %570, %432, %cst_202 {dimension_numbers = #tpu.dot_dimension_numbers<[1], [0], [0], [1], [0, 0, 1, 1], [], []>} : vector<11x14xf32>, vector<14x11xf32>, vector<11x11xf32> -> vector<11x11xf32>
    %572 = vector.extract_strided_slice %571 {offsets = [0, 0], sizes = [11, 7], strides = [1, 1]} : vector<11x11xf32> to vector<11x7xf32>
    %c25_203 = arith.constant 25 : index
    %573 = memref.load %arg6[%c25_203] : memref<75xf32, #tpu.memory_space<smem>>
    %574 = vector.extract_strided_slice %572 {offsets = [0, 0], sizes = [7, 7], strides = [1, 1]} : vector<11x7xf32> to vector<7x7xf32>
    %575 = vector.broadcast %573 : f32 to vector<7x7xf32>
    %576 = arith.mulf %575, %574 : vector<7x7xf32>
    %577 = arith.addf %567, %576 : vector<7x7xf32>
    %c30 = arith.constant 30 : index
    %578 = memref.load %arg6[%c30] : memref<75xf32, #tpu.memory_space<smem>>
    %579 = vector.extract_strided_slice %572 {offsets = [1, 0], sizes = [7, 7], strides = [1, 1]} : vector<11x7xf32> to vector<7x7xf32>
    %580 = vector.broadcast %578 : f32 to vector<7x7xf32>
    %581 = arith.mulf %580, %579 : vector<7x7xf32>
    %582 = arith.addf %577, %581 : vector<7x7xf32>
    %c35 = arith.constant 35 : index
    %583 = memref.load %arg6[%c35] : memref<75xf32, #tpu.memory_space<smem>>
    %584 = vector.extract_strided_slice %572 {offsets = [2, 0], sizes = [7, 7], strides = [1, 1]} : vector<11x7xf32> to vector<7x7xf32>
    %585 = vector.broadcast %583 : f32 to vector<7x7xf32>
    %586 = arith.mulf %585, %584 : vector<7x7xf32>
    %587 = arith.addf %582, %586 : vector<7x7xf32>
    %c40 = arith.constant 40 : index
    %588 = memref.load %arg6[%c40] : memref<75xf32, #tpu.memory_space<smem>>
    %589 = vector.extract_strided_slice %572 {offsets = [3, 0], sizes = [7, 7], strides = [1, 1]} : vector<11x7xf32> to vector<7x7xf32>
    %590 = vector.broadcast %588 : f32 to vector<7x7xf32>
    %591 = arith.mulf %590, %589 : vector<7x7xf32>
    %592 = arith.addf %587, %591 : vector<7x7xf32>
    %c45 = arith.constant 45 : index
    %593 = memref.load %arg6[%c45] : memref<75xf32, #tpu.memory_space<smem>>
    %594 = vector.extract_strided_slice %572 {offsets = [4, 0], sizes = [7, 7], strides = [1, 1]} : vector<11x7xf32> to vector<7x7xf32>
    %595 = vector.broadcast %593 : f32 to vector<7x7xf32>
    %596 = arith.mulf %595, %594 : vector<7x7xf32>
    %597 = arith.addf %592, %596 : vector<7x7xf32>
    %598 = vector.extract_strided_slice %571 {offsets = [0, 1], sizes = [11, 7], strides = [1, 1]} : vector<11x11xf32> to vector<11x7xf32>
    %c26_204 = arith.constant 26 : index
    %599 = memref.load %arg6[%c26_204] : memref<75xf32, #tpu.memory_space<smem>>
    %600 = vector.extract_strided_slice %598 {offsets = [0, 0], sizes = [7, 7], strides = [1, 1]} : vector<11x7xf32> to vector<7x7xf32>
    %601 = vector.broadcast %599 : f32 to vector<7x7xf32>
    %602 = arith.mulf %601, %600 : vector<7x7xf32>
    %603 = arith.addf %597, %602 : vector<7x7xf32>
    %c31 = arith.constant 31 : index
    %604 = memref.load %arg6[%c31] : memref<75xf32, #tpu.memory_space<smem>>
    %605 = vector.extract_strided_slice %598 {offsets = [1, 0], sizes = [7, 7], strides = [1, 1]} : vector<11x7xf32> to vector<7x7xf32>
    %606 = vector.broadcast %604 : f32 to vector<7x7xf32>
    %607 = arith.mulf %606, %605 : vector<7x7xf32>
    %608 = arith.addf %603, %607 : vector<7x7xf32>
    %c36 = arith.constant 36 : index
    %609 = memref.load %arg6[%c36] : memref<75xf32, #tpu.memory_space<smem>>
    %610 = vector.extract_strided_slice %598 {offsets = [2, 0], sizes = [7, 7], strides = [1, 1]} : vector<11x7xf32> to vector<7x7xf32>
    %611 = vector.broadcast %609 : f32 to vector<7x7xf32>
    %612 = arith.mulf %611, %610 : vector<7x7xf32>
    %613 = arith.addf %608, %612 : vector<7x7xf32>
    %c41 = arith.constant 41 : index
    %614 = memref.load %arg6[%c41] : memref<75xf32, #tpu.memory_space<smem>>
    %615 = vector.extract_strided_slice %598 {offsets = [3, 0], sizes = [7, 7], strides = [1, 1]} : vector<11x7xf32> to vector<7x7xf32>
    %616 = vector.broadcast %614 : f32 to vector<7x7xf32>
    %617 = arith.mulf %616, %615 : vector<7x7xf32>
    %618 = arith.addf %613, %617 : vector<7x7xf32>
    %c46 = arith.constant 46 : index
    %619 = memref.load %arg6[%c46] : memref<75xf32, #tpu.memory_space<smem>>
    %620 = vector.extract_strided_slice %598 {offsets = [4, 0], sizes = [7, 7], strides = [1, 1]} : vector<11x7xf32> to vector<7x7xf32>
    %621 = vector.broadcast %619 : f32 to vector<7x7xf32>
    %622 = arith.mulf %621, %620 : vector<7x7xf32>
    %623 = arith.addf %618, %622 : vector<7x7xf32>
    %624 = vector.extract_strided_slice %571 {offsets = [0, 2], sizes = [11, 7], strides = [1, 1]} : vector<11x11xf32> to vector<11x7xf32>
    %c27 = arith.constant 27 : index
    %625 = memref.load %arg6[%c27] : memref<75xf32, #tpu.memory_space<smem>>
    %626 = vector.extract_strided_slice %624 {offsets = [0, 0], sizes = [7, 7], strides = [1, 1]} : vector<11x7xf32> to vector<7x7xf32>
    %627 = vector.broadcast %625 : f32 to vector<7x7xf32>
    %628 = arith.mulf %627, %626 : vector<7x7xf32>
    %629 = arith.addf %623, %628 : vector<7x7xf32>
    %c32 = arith.constant 32 : index
    %630 = memref.load %arg6[%c32] : memref<75xf32, #tpu.memory_space<smem>>
    %631 = vector.extract_strided_slice %624 {offsets = [1, 0], sizes = [7, 7], strides = [1, 1]} : vector<11x7xf32> to vector<7x7xf32>
    %632 = vector.broadcast %630 : f32 to vector<7x7xf32>
    %633 = arith.mulf %632, %631 : vector<7x7xf32>
    %634 = arith.addf %629, %633 : vector<7x7xf32>
    %c37 = arith.constant 37 : index
    %635 = memref.load %arg6[%c37] : memref<75xf32, #tpu.memory_space<smem>>
    %636 = vector.extract_strided_slice %624 {offsets = [2, 0], sizes = [7, 7], strides = [1, 1]} : vector<11x7xf32> to vector<7x7xf32>
    %637 = vector.broadcast %635 : f32 to vector<7x7xf32>
    %638 = arith.mulf %637, %636 : vector<7x7xf32>
    %639 = arith.addf %634, %638 : vector<7x7xf32>
    %c42 = arith.constant 42 : index
    %640 = memref.load %arg6[%c42] : memref<75xf32, #tpu.memory_space<smem>>
    %641 = vector.extract_strided_slice %624 {offsets = [3, 0], sizes = [7, 7], strides = [1, 1]} : vector<11x7xf32> to vector<7x7xf32>
    %642 = vector.broadcast %640 : f32 to vector<7x7xf32>
    %643 = arith.mulf %642, %641 : vector<7x7xf32>
    %644 = arith.addf %639, %643 : vector<7x7xf32>
    %c47 = arith.constant 47 : index
    %645 = memref.load %arg6[%c47] : memref<75xf32, #tpu.memory_space<smem>>
    %646 = vector.extract_strided_slice %624 {offsets = [4, 0], sizes = [7, 7], strides = [1, 1]} : vector<11x7xf32> to vector<7x7xf32>
    %647 = vector.broadcast %645 : f32 to vector<7x7xf32>
    %648 = arith.mulf %647, %646 : vector<7x7xf32>
    %649 = arith.addf %644, %648 : vector<7x7xf32>
    %650 = vector.extract_strided_slice %571 {offsets = [0, 3], sizes = [11, 7], strides = [1, 1]} : vector<11x11xf32> to vector<11x7xf32>
    %c28 = arith.constant 28 : index
    %651 = memref.load %arg6[%c28] : memref<75xf32, #tpu.memory_space<smem>>
    %652 = vector.extract_strided_slice %650 {offsets = [0, 0], sizes = [7, 7], strides = [1, 1]} : vector<11x7xf32> to vector<7x7xf32>
    %653 = vector.broadcast %651 : f32 to vector<7x7xf32>
    %654 = arith.mulf %653, %652 : vector<7x7xf32>
    %655 = arith.addf %649, %654 : vector<7x7xf32>
    %c33 = arith.constant 33 : index
    %656 = memref.load %arg6[%c33] : memref<75xf32, #tpu.memory_space<smem>>
    %657 = vector.extract_strided_slice %650 {offsets = [1, 0], sizes = [7, 7], strides = [1, 1]} : vector<11x7xf32> to vector<7x7xf32>
    %658 = vector.broadcast %656 : f32 to vector<7x7xf32>
    %659 = arith.mulf %658, %657 : vector<7x7xf32>
    %660 = arith.addf %655, %659 : vector<7x7xf32>
    %c38 = arith.constant 38 : index
    %661 = memref.load %arg6[%c38] : memref<75xf32, #tpu.memory_space<smem>>
    %662 = vector.extract_strided_slice %650 {offsets = [2, 0], sizes = [7, 7], strides = [1, 1]} : vector<11x7xf32> to vector<7x7xf32>
    %663 = vector.broadcast %661 : f32 to vector<7x7xf32>
    %664 = arith.mulf %663, %662 : vector<7x7xf32>
    %665 = arith.addf %660, %664 : vector<7x7xf32>
    %c43 = arith.constant 43 : index
    %666 = memref.load %arg6[%c43] : memref<75xf32, #tpu.memory_space<smem>>
    %667 = vector.extract_strided_slice %650 {offsets = [3, 0], sizes = [7, 7], strides = [1, 1]} : vector<11x7xf32> to vector<7x7xf32>
    %668 = vector.broadcast %666 : f32 to vector<7x7xf32>
    %669 = arith.mulf %668, %667 : vector<7x7xf32>
    %670 = arith.addf %665, %669 : vector<7x7xf32>
    %c48 = arith.constant 48 : index
    %671 = memref.load %arg6[%c48] : memref<75xf32, #tpu.memory_space<smem>>
    %672 = vector.extract_strided_slice %650 {offsets = [4, 0], sizes = [7, 7], strides = [1, 1]} : vector<11x7xf32> to vector<7x7xf32>
    %673 = vector.broadcast %671 : f32 to vector<7x7xf32>
    %674 = arith.mulf %673, %672 : vector<7x7xf32>
    %675 = arith.addf %670, %674 : vector<7x7xf32>
    %676 = vector.extract_strided_slice %571 {offsets = [0, 4], sizes = [11, 7], strides = [1, 1]} : vector<11x11xf32> to vector<11x7xf32>
    %c29 = arith.constant 29 : index
    %677 = memref.load %arg6[%c29] : memref<75xf32, #tpu.memory_space<smem>>
    %678 = vector.extract_strided_slice %676 {offsets = [0, 0], sizes = [7, 7], strides = [1, 1]} : vector<11x7xf32> to vector<7x7xf32>
    %679 = vector.broadcast %677 : f32 to vector<7x7xf32>
    %680 = arith.mulf %679, %678 : vector<7x7xf32>
    %681 = arith.addf %675, %680 : vector<7x7xf32>
    %c34 = arith.constant 34 : index
    %682 = memref.load %arg6[%c34] : memref<75xf32, #tpu.memory_space<smem>>
    %683 = vector.extract_strided_slice %676 {offsets = [1, 0], sizes = [7, 7], strides = [1, 1]} : vector<11x7xf32> to vector<7x7xf32>
    %684 = vector.broadcast %682 : f32 to vector<7x7xf32>
    %685 = arith.mulf %684, %683 : vector<7x7xf32>
    %686 = arith.addf %681, %685 : vector<7x7xf32>
    %c39 = arith.constant 39 : index
    %687 = memref.load %arg6[%c39] : memref<75xf32, #tpu.memory_space<smem>>
    %688 = vector.extract_strided_slice %676 {offsets = [2, 0], sizes = [7, 7], strides = [1, 1]} : vector<11x7xf32> to vector<7x7xf32>
    %689 = vector.broadcast %687 : f32 to vector<7x7xf32>
    %690 = arith.mulf %689, %688 : vector<7x7xf32>
    %691 = arith.addf %686, %690 : vector<7x7xf32>
    %c44 = arith.constant 44 : index
    %692 = memref.load %arg6[%c44] : memref<75xf32, #tpu.memory_space<smem>>
    %693 = vector.extract_strided_slice %676 {offsets = [3, 0], sizes = [7, 7], strides = [1, 1]} : vector<11x7xf32> to vector<7x7xf32>
    %694 = vector.broadcast %692 : f32 to vector<7x7xf32>
    %695 = arith.mulf %694, %693 : vector<7x7xf32>
    %696 = arith.addf %691, %695 : vector<7x7xf32>
    %c49 = arith.constant 49 : index
    %697 = memref.load %arg6[%c49] : memref<75xf32, #tpu.memory_space<smem>>
    %698 = vector.extract_strided_slice %676 {offsets = [4, 0], sizes = [7, 7], strides = [1, 1]} : vector<11x7xf32> to vector<7x7xf32>
    %699 = vector.broadcast %697 : f32 to vector<7x7xf32>
    %700 = arith.mulf %699, %698 : vector<7x7xf32>
    %701 = arith.addf %696, %700 : vector<7x7xf32>
    %702 = vector.extract_strided_slice %430 {offsets = [0, 2, 0, 0], sizes = [1, 1, 14, 14], strides = [1, 1, 1, 1]} : vector<2x3x14x14xf32> to vector<1x1x14x14xf32>
    %703 = vector.shape_cast %702 : vector<1x1x14x14xf32> to vector<14x14xf32>
    %cst_205 = arith.constant dense<0.000000e+00> : vector<11x14xf32>
    %704 = tpu.matmul %431, %703, %cst_205 {dimension_numbers = #tpu.dot_dimension_numbers<[1], [0], [0], [1], [0, 0, 1, 1], [], []>} : vector<11x14xf32>, vector<14x14xf32>, vector<11x14xf32> -> vector<11x14xf32>
    %cst_206 = arith.constant dense<0.000000e+00> : vector<11x11xf32>
    %705 = tpu.matmul %704, %432, %cst_206 {dimension_numbers = #tpu.dot_dimension_numbers<[1], [0], [0], [1], [0, 0, 1, 1], [], []>} : vector<11x14xf32>, vector<14x11xf32>, vector<11x11xf32> -> vector<11x11xf32>
    %706 = vector.extract_strided_slice %705 {offsets = [0, 0], sizes = [11, 7], strides = [1, 1]} : vector<11x11xf32> to vector<11x7xf32>
    %c50 = arith.constant 50 : index
    %707 = memref.load %arg6[%c50] : memref<75xf32, #tpu.memory_space<smem>>
    %708 = vector.extract_strided_slice %706 {offsets = [0, 0], sizes = [7, 7], strides = [1, 1]} : vector<11x7xf32> to vector<7x7xf32>
    %709 = vector.broadcast %707 : f32 to vector<7x7xf32>
    %710 = arith.mulf %709, %708 : vector<7x7xf32>
    %711 = arith.addf %701, %710 : vector<7x7xf32>
    %c55 = arith.constant 55 : index
    %712 = memref.load %arg6[%c55] : memref<75xf32, #tpu.memory_space<smem>>
    %713 = vector.extract_strided_slice %706 {offsets = [1, 0], sizes = [7, 7], strides = [1, 1]} : vector<11x7xf32> to vector<7x7xf32>
    %714 = vector.broadcast %712 : f32 to vector<7x7xf32>
    %715 = arith.mulf %714, %713 : vector<7x7xf32>
    %716 = arith.addf %711, %715 : vector<7x7xf32>
    %c60 = arith.constant 60 : index
    %717 = memref.load %arg6[%c60] : memref<75xf32, #tpu.memory_space<smem>>
    %718 = vector.extract_strided_slice %706 {offsets = [2, 0], sizes = [7, 7], strides = [1, 1]} : vector<11x7xf32> to vector<7x7xf32>
    %719 = vector.broadcast %717 : f32 to vector<7x7xf32>
    %720 = arith.mulf %719, %718 : vector<7x7xf32>
    %721 = arith.addf %716, %720 : vector<7x7xf32>
    %c65 = arith.constant 65 : index
    %722 = memref.load %arg6[%c65] : memref<75xf32, #tpu.memory_space<smem>>
    %723 = vector.extract_strided_slice %706 {offsets = [3, 0], sizes = [7, 7], strides = [1, 1]} : vector<11x7xf32> to vector<7x7xf32>
    %724 = vector.broadcast %722 : f32 to vector<7x7xf32>
    %725 = arith.mulf %724, %723 : vector<7x7xf32>
    %726 = arith.addf %721, %725 : vector<7x7xf32>
    %c70 = arith.constant 70 : index
    %727 = memref.load %arg6[%c70] : memref<75xf32, #tpu.memory_space<smem>>
    %728 = vector.extract_strided_slice %706 {offsets = [4, 0], sizes = [7, 7], strides = [1, 1]} : vector<11x7xf32> to vector<7x7xf32>
    %729 = vector.broadcast %727 : f32 to vector<7x7xf32>
    %730 = arith.mulf %729, %728 : vector<7x7xf32>
    %731 = arith.addf %726, %730 : vector<7x7xf32>
    %732 = vector.extract_strided_slice %705 {offsets = [0, 1], sizes = [11, 7], strides = [1, 1]} : vector<11x11xf32> to vector<11x7xf32>
    %c51 = arith.constant 51 : index
    %733 = memref.load %arg6[%c51] : memref<75xf32, #tpu.memory_space<smem>>
    %734 = vector.extract_strided_slice %732 {offsets = [0, 0], sizes = [7, 7], strides = [1, 1]} : vector<11x7xf32> to vector<7x7xf32>
    %735 = vector.broadcast %733 : f32 to vector<7x7xf32>
    %736 = arith.mulf %735, %734 : vector<7x7xf32>
    %737 = arith.addf %731, %736 : vector<7x7xf32>
    %c56 = arith.constant 56 : index
    %738 = memref.load %arg6[%c56] : memref<75xf32, #tpu.memory_space<smem>>
    %739 = vector.extract_strided_slice %732 {offsets = [1, 0], sizes = [7, 7], strides = [1, 1]} : vector<11x7xf32> to vector<7x7xf32>
    %740 = vector.broadcast %738 : f32 to vector<7x7xf32>
    %741 = arith.mulf %740, %739 : vector<7x7xf32>
    %742 = arith.addf %737, %741 : vector<7x7xf32>
    %c61 = arith.constant 61 : index
    %743 = memref.load %arg6[%c61] : memref<75xf32, #tpu.memory_space<smem>>
    %744 = vector.extract_strided_slice %732 {offsets = [2, 0], sizes = [7, 7], strides = [1, 1]} : vector<11x7xf32> to vector<7x7xf32>
    %745 = vector.broadcast %743 : f32 to vector<7x7xf32>
    %746 = arith.mulf %745, %744 : vector<7x7xf32>
    %747 = arith.addf %742, %746 : vector<7x7xf32>
    %c66 = arith.constant 66 : index
    %748 = memref.load %arg6[%c66] : memref<75xf32, #tpu.memory_space<smem>>
    %749 = vector.extract_strided_slice %732 {offsets = [3, 0], sizes = [7, 7], strides = [1, 1]} : vector<11x7xf32> to vector<7x7xf32>
    %750 = vector.broadcast %748 : f32 to vector<7x7xf32>
    %751 = arith.mulf %750, %749 : vector<7x7xf32>
    %752 = arith.addf %747, %751 : vector<7x7xf32>
    %c71 = arith.constant 71 : index
    %753 = memref.load %arg6[%c71] : memref<75xf32, #tpu.memory_space<smem>>
    %754 = vector.extract_strided_slice %732 {offsets = [4, 0], sizes = [7, 7], strides = [1, 1]} : vector<11x7xf32> to vector<7x7xf32>
    %755 = vector.broadcast %753 : f32 to vector<7x7xf32>
    %756 = arith.mulf %755, %754 : vector<7x7xf32>
    %757 = arith.addf %752, %756 : vector<7x7xf32>
    %758 = vector.extract_strided_slice %705 {offsets = [0, 2], sizes = [11, 7], strides = [1, 1]} : vector<11x11xf32> to vector<11x7xf32>
    %c52 = arith.constant 52 : index
    %759 = memref.load %arg6[%c52] : memref<75xf32, #tpu.memory_space<smem>>
    %760 = vector.extract_strided_slice %758 {offsets = [0, 0], sizes = [7, 7], strides = [1, 1]} : vector<11x7xf32> to vector<7x7xf32>
    %761 = vector.broadcast %759 : f32 to vector<7x7xf32>
    %762 = arith.mulf %761, %760 : vector<7x7xf32>
    %763 = arith.addf %757, %762 : vector<7x7xf32>
    %c57 = arith.constant 57 : index
    %764 = memref.load %arg6[%c57] : memref<75xf32, #tpu.memory_space<smem>>
    %765 = vector.extract_strided_slice %758 {offsets = [1, 0], sizes = [7, 7], strides = [1, 1]} : vector<11x7xf32> to vector<7x7xf32>
    %766 = vector.broadcast %764 : f32 to vector<7x7xf32>
    %767 = arith.mulf %766, %765 : vector<7x7xf32>
    %768 = arith.addf %763, %767 : vector<7x7xf32>
    %c62 = arith.constant 62 : index
    %769 = memref.load %arg6[%c62] : memref<75xf32, #tpu.memory_space<smem>>
    %770 = vector.extract_strided_slice %758 {offsets = [2, 0], sizes = [7, 7], strides = [1, 1]} : vector<11x7xf32> to vector<7x7xf32>
    %771 = vector.broadcast %769 : f32 to vector<7x7xf32>
    %772 = arith.mulf %771, %770 : vector<7x7xf32>
    %773 = arith.addf %768, %772 : vector<7x7xf32>
    %c67 = arith.constant 67 : index
    %774 = memref.load %arg6[%c67] : memref<75xf32, #tpu.memory_space<smem>>
    %775 = vector.extract_strided_slice %758 {offsets = [3, 0], sizes = [7, 7], strides = [1, 1]} : vector<11x7xf32> to vector<7x7xf32>
    %776 = vector.broadcast %774 : f32 to vector<7x7xf32>
    %777 = arith.mulf %776, %775 : vector<7x7xf32>
    %778 = arith.addf %773, %777 : vector<7x7xf32>
    %c72 = arith.constant 72 : index
    %779 = memref.load %arg6[%c72] : memref<75xf32, #tpu.memory_space<smem>>
    %780 = vector.extract_strided_slice %758 {offsets = [4, 0], sizes = [7, 7], strides = [1, 1]} : vector<11x7xf32> to vector<7x7xf32>
    %781 = vector.broadcast %779 : f32 to vector<7x7xf32>
    %782 = arith.mulf %781, %780 : vector<7x7xf32>
    %783 = arith.addf %778, %782 : vector<7x7xf32>
    %784 = vector.extract_strided_slice %705 {offsets = [0, 3], sizes = [11, 7], strides = [1, 1]} : vector<11x11xf32> to vector<11x7xf32>
    %c53 = arith.constant 53 : index
    %785 = memref.load %arg6[%c53] : memref<75xf32, #tpu.memory_space<smem>>
    %786 = vector.extract_strided_slice %784 {offsets = [0, 0], sizes = [7, 7], strides = [1, 1]} : vector<11x7xf32> to vector<7x7xf32>
    %787 = vector.broadcast %785 : f32 to vector<7x7xf32>
    %788 = arith.mulf %787, %786 : vector<7x7xf32>
    %789 = arith.addf %783, %788 : vector<7x7xf32>
    %c58 = arith.constant 58 : index
    %790 = memref.load %arg6[%c58] : memref<75xf32, #tpu.memory_space<smem>>
    %791 = vector.extract_strided_slice %784 {offsets = [1, 0], sizes = [7, 7], strides = [1, 1]} : vector<11x7xf32> to vector<7x7xf32>
    %792 = vector.broadcast %790 : f32 to vector<7x7xf32>
    %793 = arith.mulf %792, %791 : vector<7x7xf32>
    %794 = arith.addf %789, %793 : vector<7x7xf32>
    %c63 = arith.constant 63 : index
    %795 = memref.load %arg6[%c63] : memref<75xf32, #tpu.memory_space<smem>>
    %796 = vector.extract_strided_slice %784 {offsets = [2, 0], sizes = [7, 7], strides = [1, 1]} : vector<11x7xf32> to vector<7x7xf32>
    %797 = vector.broadcast %795 : f32 to vector<7x7xf32>
    %798 = arith.mulf %797, %796 : vector<7x7xf32>
    %799 = arith.addf %794, %798 : vector<7x7xf32>
    %c68 = arith.constant 68 : index
    %800 = memref.load %arg6[%c68] : memref<75xf32, #tpu.memory_space<smem>>
    %801 = vector.extract_strided_slice %784 {offsets = [3, 0], sizes = [7, 7], strides = [1, 1]} : vector<11x7xf32> to vector<7x7xf32>
    %802 = vector.broadcast %800 : f32 to vector<7x7xf32>
    %803 = arith.mulf %802, %801 : vector<7x7xf32>
    %804 = arith.addf %799, %803 : vector<7x7xf32>
    %c73 = arith.constant 73 : index
    %805 = memref.load %arg6[%c73] : memref<75xf32, #tpu.memory_space<smem>>
    %806 = vector.extract_strided_slice %784 {offsets = [4, 0], sizes = [7, 7], strides = [1, 1]} : vector<11x7xf32> to vector<7x7xf32>
    %807 = vector.broadcast %805 : f32 to vector<7x7xf32>
    %808 = arith.mulf %807, %806 : vector<7x7xf32>
    %809 = arith.addf %804, %808 : vector<7x7xf32>
    %810 = vector.extract_strided_slice %705 {offsets = [0, 4], sizes = [11, 7], strides = [1, 1]} : vector<11x11xf32> to vector<11x7xf32>
    %c54 = arith.constant 54 : index
    %811 = memref.load %arg6[%c54] : memref<75xf32, #tpu.memory_space<smem>>
    %812 = vector.extract_strided_slice %810 {offsets = [0, 0], sizes = [7, 7], strides = [1, 1]} : vector<11x7xf32> to vector<7x7xf32>
    %813 = vector.broadcast %811 : f32 to vector<7x7xf32>
    %814 = arith.mulf %813, %812 : vector<7x7xf32>
    %815 = arith.addf %809, %814 : vector<7x7xf32>
    %c59 = arith.constant 59 : index
    %816 = memref.load %arg6[%c59] : memref<75xf32, #tpu.memory_space<smem>>
    %817 = vector.extract_strided_slice %810 {offsets = [1, 0], sizes = [7, 7], strides = [1, 1]} : vector<11x7xf32> to vector<7x7xf32>
    %818 = vector.broadcast %816 : f32 to vector<7x7xf32>
    %819 = arith.mulf %818, %817 : vector<7x7xf32>
    %820 = arith.addf %815, %819 : vector<7x7xf32>
    %c64 = arith.constant 64 : index
    %821 = memref.load %arg6[%c64] : memref<75xf32, #tpu.memory_space<smem>>
    %822 = vector.extract_strided_slice %810 {offsets = [2, 0], sizes = [7, 7], strides = [1, 1]} : vector<11x7xf32> to vector<7x7xf32>
    %823 = vector.broadcast %821 : f32 to vector<7x7xf32>
    %824 = arith.mulf %823, %822 : vector<7x7xf32>
    %825 = arith.addf %820, %824 : vector<7x7xf32>
    %c69 = arith.constant 69 : index
    %826 = memref.load %arg6[%c69] : memref<75xf32, #tpu.memory_space<smem>>
    %827 = vector.extract_strided_slice %810 {offsets = [3, 0], sizes = [7, 7], strides = [1, 1]} : vector<11x7xf32> to vector<7x7xf32>
    %828 = vector.broadcast %826 : f32 to vector<7x7xf32>
    %829 = arith.mulf %828, %827 : vector<7x7xf32>
    %830 = arith.addf %825, %829 : vector<7x7xf32>
    %c74 = arith.constant 74 : index
    %831 = memref.load %arg6[%c74] : memref<75xf32, #tpu.memory_space<smem>>
    %832 = vector.extract_strided_slice %810 {offsets = [4, 0], sizes = [7, 7], strides = [1, 1]} : vector<11x7xf32> to vector<7x7xf32>
    %833 = vector.broadcast %831 : f32 to vector<7x7xf32>
    %834 = arith.mulf %833, %832 : vector<7x7xf32>
    %835 = arith.addf %830, %834 : vector<7x7xf32>
    %c0_207 = arith.constant 0 : index
    %836 = memref.load %arg7[%c0_207] : memref<1xf32, #tpu.memory_space<smem>>
    %837 = vector.broadcast %836 : f32 to vector<7x7xf32>
    %838 = arith.addf %835, %837 : vector<7x7xf32>
    %c0_208 = arith.constant 0 : index
    %c0_209 = arith.constant 0 : index
    %c0_210 = arith.constant 0 : index
    %c0_211 = arith.constant 0 : index
    %839 = vector.load %arg13[%c0_208, %c0_209, %c0_210, %c0_211] : memref<2x1x7x7xf32, #tpu.memory_space<vmem>>, vector<1x1x7x7xf32>
    %840 = vector.shape_cast %839 : vector<1x1x7x7xf32> to vector<7x7xf32>
    %841 = vector.shape_cast %838 : vector<7x7xf32> to vector<1x1x7x7xf32>
    tpu.vector_store %arg13[%c0_208, %c0_209, %c0_210, %c0_211], %841 {strides = array<i32>} : memref<2x1x7x7xf32, #tpu.memory_space<vmem>>, vector<1x1x7x7xf32>,
    %cst_212 = arith.constant 0.000000e+00 : f32
    %842 = vector.broadcast %cst_212 : f32 to vector<7x7xf32>
    %843 = vector.extract_strided_slice %430 {offsets = [1, 0, 0, 0], sizes = [1, 1, 14, 14], strides = [1, 1, 1, 1]} : vector<2x3x14x14xf32> to vector<1x1x14x14xf32>
    %844 = vector.shape_cast %843 : vector<1x1x14x14xf32> to vector<14x14xf32>
    %cst_213 = arith.constant dense<0.000000e+00> : vector<11x14xf32>
    %845 = tpu.matmul %431, %844, %cst_213 {dimension_numbers = #tpu.dot_dimension_numbers<[1], [0], [0], [1], [0, 0, 1, 1], [], []>} : vector<11x14xf32>, vector<14x14xf32>, vector<11x14xf32> -> vector<11x14xf32>
    %cst_214 = arith.constant dense<0.000000e+00> : vector<11x11xf32>
    %846 = tpu.matmul %845, %432, %cst_214 {dimension_numbers = #tpu.dot_dimension_numbers<[1], [0], [0], [1], [0, 0, 1, 1], [], []>} : vector<11x14xf32>, vector<14x11xf32>, vector<11x11xf32> -> vector<11x11xf32>
    %847 = vector.extract_strided_slice %846 {offsets = [0, 0], sizes = [11, 7], strides = [1, 1]} : vector<11x11xf32> to vector<11x7xf32>
    %c0_215 = arith.constant 0 : index
    %848 = memref.load %arg6[%c0_215] : memref<75xf32, #tpu.memory_space<smem>>
    %849 = vector.extract_strided_slice %847 {offsets = [0, 0], sizes = [7, 7], strides = [1, 1]} : vector<11x7xf32> to vector<7x7xf32>
    %850 = vector.broadcast %848 : f32 to vector<7x7xf32>
    %851 = arith.mulf %850, %849 : vector<7x7xf32>
    %852 = arith.addf %842, %851 : vector<7x7xf32>
    %c5_216 = arith.constant 5 : index
    %853 = memref.load %arg6[%c5_216] : memref<75xf32, #tpu.memory_space<smem>>
    %854 = vector.extract_strided_slice %847 {offsets = [1, 0], sizes = [7, 7], strides = [1, 1]} : vector<11x7xf32> to vector<7x7xf32>
    %855 = vector.broadcast %853 : f32 to vector<7x7xf32>
    %856 = arith.mulf %855, %854 : vector<7x7xf32>
    %857 = arith.addf %852, %856 : vector<7x7xf32>
    %c10_217 = arith.constant 10 : index
    %858 = memref.load %arg6[%c10_217] : memref<75xf32, #tpu.memory_space<smem>>
    %859 = vector.extract_strided_slice %847 {offsets = [2, 0], sizes = [7, 7], strides = [1, 1]} : vector<11x7xf32> to vector<7x7xf32>
    %860 = vector.broadcast %858 : f32 to vector<7x7xf32>
    %861 = arith.mulf %860, %859 : vector<7x7xf32>
    %862 = arith.addf %857, %861 : vector<7x7xf32>
    %c15_218 = arith.constant 15 : index
    %863 = memref.load %arg6[%c15_218] : memref<75xf32, #tpu.memory_space<smem>>
    %864 = vector.extract_strided_slice %847 {offsets = [3, 0], sizes = [7, 7], strides = [1, 1]} : vector<11x7xf32> to vector<7x7xf32>
    %865 = vector.broadcast %863 : f32 to vector<7x7xf32>
    %866 = arith.mulf %865, %864 : vector<7x7xf32>
    %867 = arith.addf %862, %866 : vector<7x7xf32>
    %c20_219 = arith.constant 20 : index
    %868 = memref.load %arg6[%c20_219] : memref<75xf32, #tpu.memory_space<smem>>
    %869 = vector.extract_strided_slice %847 {offsets = [4, 0], sizes = [7, 7], strides = [1, 1]} : vector<11x7xf32> to vector<7x7xf32>
    %870 = vector.broadcast %868 : f32 to vector<7x7xf32>
    %871 = arith.mulf %870, %869 : vector<7x7xf32>
    %872 = arith.addf %867, %871 : vector<7x7xf32>
    %873 = vector.extract_strided_slice %846 {offsets = [0, 1], sizes = [11, 7], strides = [1, 1]} : vector<11x11xf32> to vector<11x7xf32>
    %c1_220 = arith.constant 1 : index
    %874 = memref.load %arg6[%c1_220] : memref<75xf32, #tpu.memory_space<smem>>
    %875 = vector.extract_strided_slice %873 {offsets = [0, 0], sizes = [7, 7], strides = [1, 1]} : vector<11x7xf32> to vector<7x7xf32>
    %876 = vector.broadcast %874 : f32 to vector<7x7xf32>
    %877 = arith.mulf %876, %875 : vector<7x7xf32>
    %878 = arith.addf %872, %877 : vector<7x7xf32>
    %c6_221 = arith.constant 6 : index
    %879 = memref.load %arg6[%c6_221] : memref<75xf32, #tpu.memory_space<smem>>
    %880 = vector.extract_strided_slice %873 {offsets = [1, 0], sizes = [7, 7], strides = [1, 1]} : vector<11x7xf32> to vector<7x7xf32>
    %881 = vector.broadcast %879 : f32 to vector<7x7xf32>
    %882 = arith.mulf %881, %880 : vector<7x7xf32>
    %883 = arith.addf %878, %882 : vector<7x7xf32>
    %c11_222 = arith.constant 11 : index
    %884 = memref.load %arg6[%c11_222] : memref<75xf32, #tpu.memory_space<smem>>
    %885 = vector.extract_strided_slice %873 {offsets = [2, 0], sizes = [7, 7], strides = [1, 1]} : vector<11x7xf32> to vector<7x7xf32>
    %886 = vector.broadcast %884 : f32 to vector<7x7xf32>
    %887 = arith.mulf %886, %885 : vector<7x7xf32>
    %888 = arith.addf %883, %887 : vector<7x7xf32>
    %c16_223 = arith.constant 16 : index
    %889 = memref.load %arg6[%c16_223] : memref<75xf32, #tpu.memory_space<smem>>
    %890 = vector.extract_strided_slice %873 {offsets = [3, 0], sizes = [7, 7], strides = [1, 1]} : vector<11x7xf32> to vector<7x7xf32>
    %891 = vector.broadcast %889 : f32 to vector<7x7xf32>
    %892 = arith.mulf %891, %890 : vector<7x7xf32>
    %893 = arith.addf %888, %892 : vector<7x7xf32>
    %c21_224 = arith.constant 21 : index
    %894 = memref.load %arg6[%c21_224] : memref<75xf32, #tpu.memory_space<smem>>
    %895 = vector.extract_strided_slice %873 {offsets = [4, 0], sizes = [7, 7], strides = [1, 1]} : vector<11x7xf32> to vector<7x7xf32>
    %896 = vector.broadcast %894 : f32 to vector<7x7xf32>
    %897 = arith.mulf %896, %895 : vector<7x7xf32>
    %898 = arith.addf %893, %897 : vector<7x7xf32>
    %899 = vector.extract_strided_slice %846 {offsets = [0, 2], sizes = [11, 7], strides = [1, 1]} : vector<11x11xf32> to vector<11x7xf32>
    %c2_225 = arith.constant 2 : index
    %900 = memref.load %arg6[%c2_225] : memref<75xf32, #tpu.memory_space<smem>>
    %901 = vector.extract_strided_slice %899 {offsets = [0, 0], sizes = [7, 7], strides = [1, 1]} : vector<11x7xf32> to vector<7x7xf32>
    %902 = vector.broadcast %900 : f32 to vector<7x7xf32>
    %903 = arith.mulf %902, %901 : vector<7x7xf32>
    %904 = arith.addf %898, %903 : vector<7x7xf32>
    %c7_226 = arith.constant 7 : index
    %905 = memref.load %arg6[%c7_226] : memref<75xf32, #tpu.memory_space<smem>>
    %906 = vector.extract_strided_slice %899 {offsets = [1, 0], sizes = [7, 7], strides = [1, 1]} : vector<11x7xf32> to vector<7x7xf32>
    %907 = vector.broadcast %905 : f32 to vector<7x7xf32>
    %908 = arith.mulf %907, %906 : vector<7x7xf32>
    %909 = arith.addf %904, %908 : vector<7x7xf32>
    %c12_227 = arith.constant 12 : index
    %910 = memref.load %arg6[%c12_227] : memref<75xf32, #tpu.memory_space<smem>>
    %911 = vector.extract_strided_slice %899 {offsets = [2, 0], sizes = [7, 7], strides = [1, 1]} : vector<11x7xf32> to vector<7x7xf32>
    %912 = vector.broadcast %910 : f32 to vector<7x7xf32>
    %913 = arith.mulf %912, %911 : vector<7x7xf32>
    %914 = arith.addf %909, %913 : vector<7x7xf32>
    %c17_228 = arith.constant 17 : index
    %915 = memref.load %arg6[%c17_228] : memref<75xf32, #tpu.memory_space<smem>>
    %916 = vector.extract_strided_slice %899 {offsets = [3, 0], sizes = [7, 7], strides = [1, 1]} : vector<11x7xf32> to vector<7x7xf32>
    %917 = vector.broadcast %915 : f32 to vector<7x7xf32>
    %918 = arith.mulf %917, %916 : vector<7x7xf32>
    %919 = arith.addf %914, %918 : vector<7x7xf32>
    %c22_229 = arith.constant 22 : index
    %920 = memref.load %arg6[%c22_229] : memref<75xf32, #tpu.memory_space<smem>>
    %921 = vector.extract_strided_slice %899 {offsets = [4, 0], sizes = [7, 7], strides = [1, 1]} : vector<11x7xf32> to vector<7x7xf32>
    %922 = vector.broadcast %920 : f32 to vector<7x7xf32>
    %923 = arith.mulf %922, %921 : vector<7x7xf32>
    %924 = arith.addf %919, %923 : vector<7x7xf32>
    %925 = vector.extract_strided_slice %846 {offsets = [0, 3], sizes = [11, 7], strides = [1, 1]} : vector<11x11xf32> to vector<11x7xf32>
    %c3_230 = arith.constant 3 : index
    %926 = memref.load %arg6[%c3_230] : memref<75xf32, #tpu.memory_space<smem>>
    %927 = vector.extract_strided_slice %925 {offsets = [0, 0], sizes = [7, 7], strides = [1, 1]} : vector<11x7xf32> to vector<7x7xf32>
    %928 = vector.broadcast %926 : f32 to vector<7x7xf32>
    %929 = arith.mulf %928, %927 : vector<7x7xf32>
    %930 = arith.addf %924, %929 : vector<7x7xf32>
    %c8_231 = arith.constant 8 : index
    %931 = memref.load %arg6[%c8_231] : memref<75xf32, #tpu.memory_space<smem>>
    %932 = vector.extract_strided_slice %925 {offsets = [1, 0], sizes = [7, 7], strides = [1, 1]} : vector<11x7xf32> to vector<7x7xf32>
    %933 = vector.broadcast %931 : f32 to vector<7x7xf32>
    %934 = arith.mulf %933, %932 : vector<7x7xf32>
    %935 = arith.addf %930, %934 : vector<7x7xf32>
    %c13_232 = arith.constant 13 : index
    %936 = memref.load %arg6[%c13_232] : memref<75xf32, #tpu.memory_space<smem>>
    %937 = vector.extract_strided_slice %925 {offsets = [2, 0], sizes = [7, 7], strides = [1, 1]} : vector<11x7xf32> to vector<7x7xf32>
    %938 = vector.broadcast %936 : f32 to vector<7x7xf32>
    %939 = arith.mulf %938, %937 : vector<7x7xf32>
    %940 = arith.addf %935, %939 : vector<7x7xf32>
    %c18_233 = arith.constant 18 : index
    %941 = memref.load %arg6[%c18_233] : memref<75xf32, #tpu.memory_space<smem>>
    %942 = vector.extract_strided_slice %925 {offsets = [3, 0], sizes = [7, 7], strides = [1, 1]} : vector<11x7xf32> to vector<7x7xf32>
    %943 = vector.broadcast %941 : f32 to vector<7x7xf32>
    %944 = arith.mulf %943, %942 : vector<7x7xf32>
    %945 = arith.addf %940, %944 : vector<7x7xf32>
    %c23_234 = arith.constant 23 : index
    %946 = memref.load %arg6[%c23_234] : memref<75xf32, #tpu.memory_space<smem>>
    %947 = vector.extract_strided_slice %925 {offsets = [4, 0], sizes = [7, 7], strides = [1, 1]} : vector<11x7xf32> to vector<7x7xf32>
    %948 = vector.broadcast %946 : f32 to vector<7x7xf32>
    %949 = arith.mulf %948, %947 : vector<7x7xf32>
    %950 = arith.addf %945, %949 : vector<7x7xf32>
    %951 = vector.extract_strided_slice %846 {offsets = [0, 4], sizes = [11, 7], strides = [1, 1]} : vector<11x11xf32> to vector<11x7xf32>
    %c4_235 = arith.constant 4 : index
    %952 = memref.load %arg6[%c4_235] : memref<75xf32, #tpu.memory_space<smem>>
    %953 = vector.extract_strided_slice %951 {offsets = [0, 0], sizes = [7, 7], strides = [1, 1]} : vector<11x7xf32> to vector<7x7xf32>
    %954 = vector.broadcast %952 : f32 to vector<7x7xf32>
    %955 = arith.mulf %954, %953 : vector<7x7xf32>
    %956 = arith.addf %950, %955 : vector<7x7xf32>
    %c9_236 = arith.constant 9 : index
    %957 = memref.load %arg6[%c9_236] : memref<75xf32, #tpu.memory_space<smem>>
    %958 = vector.extract_strided_slice %951 {offsets = [1, 0], sizes = [7, 7], strides = [1, 1]} : vector<11x7xf32> to vector<7x7xf32>
    %959 = vector.broadcast %957 : f32 to vector<7x7xf32>
    %960 = arith.mulf %959, %958 : vector<7x7xf32>
    %961 = arith.addf %956, %960 : vector<7x7xf32>
    %c14_237 = arith.constant 14 : index
    %962 = memref.load %arg6[%c14_237] : memref<75xf32, #tpu.memory_space<smem>>
    %963 = vector.extract_strided_slice %951 {offsets = [2, 0], sizes = [7, 7], strides = [1, 1]} : vector<11x7xf32> to vector<7x7xf32>
    %964 = vector.broadcast %962 : f32 to vector<7x7xf32>
    %965 = arith.mulf %964, %963 : vector<7x7xf32>
    %966 = arith.addf %961, %965 : vector<7x7xf32>
    %c19_238 = arith.constant 19 : index
    %967 = memref.load %arg6[%c19_238] : memref<75xf32, #tpu.memory_space<smem>>
    %968 = vector.extract_strided_slice %951 {offsets = [3, 0], sizes = [7, 7], strides = [1, 1]} : vector<11x7xf32> to vector<7x7xf32>
    %969 = vector.broadcast %967 : f32 to vector<7x7xf32>
    %970 = arith.mulf %969, %968 : vector<7x7xf32>
    %971 = arith.addf %966, %970 : vector<7x7xf32>
    %c24_239 = arith.constant 24 : index
    %972 = memref.load %arg6[%c24_239] : memref<75xf32, #tpu.memory_space<smem>>
    %973 = vector.extract_strided_slice %951 {offsets = [4, 0], sizes = [7, 7], strides = [1, 1]} : vector<11x7xf32> to vector<7x7xf32>
    %974 = vector.broadcast %972 : f32 to vector<7x7xf32>
    %975 = arith.mulf %974, %973 : vector<7x7xf32>
    %976 = arith.addf %971, %975 : vector<7x7xf32>
    %977 = vector.extract_strided_slice %430 {offsets = [1, 1, 0, 0], sizes = [1, 1, 14, 14], strides = [1, 1, 1, 1]} : vector<2x3x14x14xf32> to vector<1x1x14x14xf32>
    %978 = vector.shape_cast %977 : vector<1x1x14x14xf32> to vector<14x14xf32>
    %cst_240 = arith.constant dense<0.000000e+00> : vector<11x14xf32>
    %979 = tpu.matmul %431, %978, %cst_240 {dimension_numbers = #tpu.dot_dimension_numbers<[1], [0], [0], [1], [0, 0, 1, 1], [], []>} : vector<11x14xf32>, vector<14x14xf32>, vector<11x14xf32> -> vector<11x14xf32>
    %cst_241 = arith.constant dense<0.000000e+00> : vector<11x11xf32>
    %980 = tpu.matmul %979, %432, %cst_241 {dimension_numbers = #tpu.dot_dimension_numbers<[1], [0], [0], [1], [0, 0, 1, 1], [], []>} : vector<11x14xf32>, vector<14x11xf32>, vector<11x11xf32> -> vector<11x11xf32>
    %981 = vector.extract_strided_slice %980 {offsets = [0, 0], sizes = [11, 7], strides = [1, 1]} : vector<11x11xf32> to vector<11x7xf32>
    %c25_242 = arith.constant 25 : index
    %982 = memref.load %arg6[%c25_242] : memref<75xf32, #tpu.memory_space<smem>>
    %983 = vector.extract_strided_slice %981 {offsets = [0, 0], sizes = [7, 7], strides = [1, 1]} : vector<11x7xf32> to vector<7x7xf32>
    %984 = vector.broadcast %982 : f32 to vector<7x7xf32>
    %985 = arith.mulf %984, %983 : vector<7x7xf32>
    %986 = arith.addf %976, %985 : vector<7x7xf32>
    %c30_243 = arith.constant 30 : index
    %987 = memref.load %arg6[%c30_243] : memref<75xf32, #tpu.memory_space<smem>>
    %988 = vector.extract_strided_slice %981 {offsets = [1, 0], sizes = [7, 7], strides = [1, 1]} : vector<11x7xf32> to vector<7x7xf32>
    %989 = vector.broadcast %987 : f32 to vector<7x7xf32>
    %990 = arith.mulf %989, %988 : vector<7x7xf32>
    %991 = arith.addf %986, %990 : vector<7x7xf32>
    %c35_244 = arith.constant 35 : index
    %992 = memref.load %arg6[%c35_244] : memref<75xf32, #tpu.memory_space<smem>>
    %993 = vector.extract_strided_slice %981 {offsets = [2, 0], sizes = [7, 7], strides = [1, 1]} : vector<11x7xf32> to vector<7x7xf32>
    %994 = vector.broadcast %992 : f32 to vector<7x7xf32>
    %995 = arith.mulf %994, %993 : vector<7x7xf32>
    %996 = arith.addf %991, %995 : vector<7x7xf32>
    %c40_245 = arith.constant 40 : index
    %997 = memref.load %arg6[%c40_245] : memref<75xf32, #tpu.memory_space<smem>>
    %998 = vector.extract_strided_slice %981 {offsets = [3, 0], sizes = [7, 7], strides = [1, 1]} : vector<11x7xf32> to vector<7x7xf32>
    %999 = vector.broadcast %997 : f32 to vector<7x7xf32>
    %1000 = arith.mulf %999, %998 : vector<7x7xf32>
    %1001 = arith.addf %996, %1000 : vector<7x7xf32>
    %c45_246 = arith.constant 45 : index
    %1002 = memref.load %arg6[%c45_246] : memref<75xf32, #tpu.memory_space<smem>>
    %1003 = vector.extract_strided_slice %981 {offsets = [4, 0], sizes = [7, 7], strides = [1, 1]} : vector<11x7xf32> to vector<7x7xf32>
    %1004 = vector.broadcast %1002 : f32 to vector<7x7xf32>
    %1005 = arith.mulf %1004, %1003 : vector<7x7xf32>
    %1006 = arith.addf %1001, %1005 : vector<7x7xf32>
    %1007 = vector.extract_strided_slice %980 {offsets = [0, 1], sizes = [11, 7], strides = [1, 1]} : vector<11x11xf32> to vector<11x7xf32>
    %c26_247 = arith.constant 26 : index
    %1008 = memref.load %arg6[%c26_247] : memref<75xf32, #tpu.memory_space<smem>>
    %1009 = vector.extract_strided_slice %1007 {offsets = [0, 0], sizes = [7, 7], strides = [1, 1]} : vector<11x7xf32> to vector<7x7xf32>
    %1010 = vector.broadcast %1008 : f32 to vector<7x7xf32>
    %1011 = arith.mulf %1010, %1009 : vector<7x7xf32>
    %1012 = arith.addf %1006, %1011 : vector<7x7xf32>
    %c31_248 = arith.constant 31 : index
    %1013 = memref.load %arg6[%c31_248] : memref<75xf32, #tpu.memory_space<smem>>
    %1014 = vector.extract_strided_slice %1007 {offsets = [1, 0], sizes = [7, 7], strides = [1, 1]} : vector<11x7xf32> to vector<7x7xf32>
    %1015 = vector.broadcast %1013 : f32 to vector<7x7xf32>
    %1016 = arith.mulf %1015, %1014 : vector<7x7xf32>
    %1017 = arith.addf %1012, %1016 : vector<7x7xf32>
    %c36_249 = arith.constant 36 : index
    %1018 = memref.load %arg6[%c36_249] : memref<75xf32, #tpu.memory_space<smem>>
    %1019 = vector.extract_strided_slice %1007 {offsets = [2, 0], sizes = [7, 7], strides = [1, 1]} : vector<11x7xf32> to vector<7x7xf32>
    %1020 = vector.broadcast %1018 : f32 to vector<7x7xf32>
    %1021 = arith.mulf %1020, %1019 : vector<7x7xf32>
    %1022 = arith.addf %1017, %1021 : vector<7x7xf32>
    %c41_250 = arith.constant 41 : index
    %1023 = memref.load %arg6[%c41_250] : memref<75xf32, #tpu.memory_space<smem>>
    %1024 = vector.extract_strided_slice %1007 {offsets = [3, 0], sizes = [7, 7], strides = [1, 1]} : vector<11x7xf32> to vector<7x7xf32>
    %1025 = vector.broadcast %1023 : f32 to vector<7x7xf32>
    %1026 = arith.mulf %1025, %1024 : vector<7x7xf32>
    %1027 = arith.addf %1022, %1026 : vector<7x7xf32>
    %c46_251 = arith.constant 46 : index
    %1028 = memref.load %arg6[%c46_251] : memref<75xf32, #tpu.memory_space<smem>>
    %1029 = vector.extract_strided_slice %1007 {offsets = [4, 0], sizes = [7, 7], strides = [1, 1]} : vector<11x7xf32> to vector<7x7xf32>
    %1030 = vector.broadcast %1028 : f32 to vector<7x7xf32>
    %1031 = arith.mulf %1030, %1029 : vector<7x7xf32>
    %1032 = arith.addf %1027, %1031 : vector<7x7xf32>
    %1033 = vector.extract_strided_slice %980 {offsets = [0, 2], sizes = [11, 7], strides = [1, 1]} : vector<11x11xf32> to vector<11x7xf32>
    %c27_252 = arith.constant 27 : index
    %1034 = memref.load %arg6[%c27_252] : memref<75xf32, #tpu.memory_space<smem>>
    %1035 = vector.extract_strided_slice %1033 {offsets = [0, 0], sizes = [7, 7], strides = [1, 1]} : vector<11x7xf32> to vector<7x7xf32>
    %1036 = vector.broadcast %1034 : f32 to vector<7x7xf32>
    %1037 = arith.mulf %1036, %1035 : vector<7x7xf32>
    %1038 = arith.addf %1032, %1037 : vector<7x7xf32>
    %c32_253 = arith.constant 32 : index
    %1039 = memref.load %arg6[%c32_253] : memref<75xf32, #tpu.memory_space<smem>>
    %1040 = vector.extract_strided_slice %1033 {offsets = [1, 0], sizes = [7, 7], strides = [1, 1]} : vector<11x7xf32> to vector<7x7xf32>
    %1041 = vector.broadcast %1039 : f32 to vector<7x7xf32>
    %1042 = arith.mulf %1041, %1040 : vector<7x7xf32>
    %1043 = arith.addf %1038, %1042 : vector<7x7xf32>
    %c37_254 = arith.constant 37 : index
    %1044 = memref.load %arg6[%c37_254] : memref<75xf32, #tpu.memory_space<smem>>
    %1045 = vector.extract_strided_slice %1033 {offsets = [2, 0], sizes = [7, 7], strides = [1, 1]} : vector<11x7xf32> to vector<7x7xf32>
    %1046 = vector.broadcast %1044 : f32 to vector<7x7xf32>
    %1047 = arith.mulf %1046, %1045 : vector<7x7xf32>
    %1048 = arith.addf %1043, %1047 : vector<7x7xf32>
    %c42_255 = arith.constant 42 : index
    %1049 = memref.load %arg6[%c42_255] : memref<75xf32, #tpu.memory_space<smem>>
    %1050 = vector.extract_strided_slice %1033 {offsets = [3, 0], sizes = [7, 7], strides = [1, 1]} : vector<11x7xf32> to vector<7x7xf32>
    %1051 = vector.broadcast %1049 : f32 to vector<7x7xf32>
    %1052 = arith.mulf %1051, %1050 : vector<7x7xf32>
    %1053 = arith.addf %1048, %1052 : vector<7x7xf32>
    %c47_256 = arith.constant 47 : index
    %1054 = memref.load %arg6[%c47_256] : memref<75xf32, #tpu.memory_space<smem>>
    %1055 = vector.extract_strided_slice %1033 {offsets = [4, 0], sizes = [7, 7], strides = [1, 1]} : vector<11x7xf32> to vector<7x7xf32>
    %1056 = vector.broadcast %1054 : f32 to vector<7x7xf32>
    %1057 = arith.mulf %1056, %1055 : vector<7x7xf32>
    %1058 = arith.addf %1053, %1057 : vector<7x7xf32>
    %1059 = vector.extract_strided_slice %980 {offsets = [0, 3], sizes = [11, 7], strides = [1, 1]} : vector<11x11xf32> to vector<11x7xf32>
    %c28_257 = arith.constant 28 : index
    %1060 = memref.load %arg6[%c28_257] : memref<75xf32, #tpu.memory_space<smem>>
    %1061 = vector.extract_strided_slice %1059 {offsets = [0, 0], sizes = [7, 7], strides = [1, 1]} : vector<11x7xf32> to vector<7x7xf32>
    %1062 = vector.broadcast %1060 : f32 to vector<7x7xf32>
    %1063 = arith.mulf %1062, %1061 : vector<7x7xf32>
    %1064 = arith.addf %1058, %1063 : vector<7x7xf32>
    %c33_258 = arith.constant 33 : index
    %1065 = memref.load %arg6[%c33_258] : memref<75xf32, #tpu.memory_space<smem>>
    %1066 = vector.extract_strided_slice %1059 {offsets = [1, 0], sizes = [7, 7], strides = [1, 1]} : vector<11x7xf32> to vector<7x7xf32>
    %1067 = vector.broadcast %1065 : f32 to vector<7x7xf32>
    %1068 = arith.mulf %1067, %1066 : vector<7x7xf32>
    %1069 = arith.addf %1064, %1068 : vector<7x7xf32>
    %c38_259 = arith.constant 38 : index
    %1070 = memref.load %arg6[%c38_259] : memref<75xf32, #tpu.memory_space<smem>>
    %1071 = vector.extract_strided_slice %1059 {offsets = [2, 0], sizes = [7, 7], strides = [1, 1]} : vector<11x7xf32> to vector<7x7xf32>
    %1072 = vector.broadcast %1070 : f32 to vector<7x7xf32>
    %1073 = arith.mulf %1072, %1071 : vector<7x7xf32>
    %1074 = arith.addf %1069, %1073 : vector<7x7xf32>
    %c43_260 = arith.constant 43 : index
    %1075 = memref.load %arg6[%c43_260] : memref<75xf32, #tpu.memory_space<smem>>
    %1076 = vector.extract_strided_slice %1059 {offsets = [3, 0], sizes = [7, 7], strides = [1, 1]} : vector<11x7xf32> to vector<7x7xf32>
    %1077 = vector.broadcast %1075 : f32 to vector<7x7xf32>
    %1078 = arith.mulf %1077, %1076 : vector<7x7xf32>
    %1079 = arith.addf %1074, %1078 : vector<7x7xf32>
    %c48_261 = arith.constant 48 : index
    %1080 = memref.load %arg6[%c48_261] : memref<75xf32, #tpu.memory_space<smem>>
    %1081 = vector.extract_strided_slice %1059 {offsets = [4, 0], sizes = [7, 7], strides = [1, 1]} : vector<11x7xf32> to vector<7x7xf32>
    %1082 = vector.broadcast %1080 : f32 to vector<7x7xf32>
    %1083 = arith.mulf %1082, %1081 : vector<7x7xf32>
    %1084 = arith.addf %1079, %1083 : vector<7x7xf32>
    %1085 = vector.extract_strided_slice %980 {offsets = [0, 4], sizes = [11, 7], strides = [1, 1]} : vector<11x11xf32> to vector<11x7xf32>
    %c29_262 = arith.constant 29 : index
    %1086 = memref.load %arg6[%c29_262] : memref<75xf32, #tpu.memory_space<smem>>
    %1087 = vector.extract_strided_slice %1085 {offsets = [0, 0], sizes = [7, 7], strides = [1, 1]} : vector<11x7xf32> to vector<7x7xf32>
    %1088 = vector.broadcast %1086 : f32 to vector<7x7xf32>
    %1089 = arith.mulf %1088, %1087 : vector<7x7xf32>
    %1090 = arith.addf %1084, %1089 : vector<7x7xf32>
    %c34_263 = arith.constant 34 : index
    %1091 = memref.load %arg6[%c34_263] : memref<75xf32, #tpu.memory_space<smem>>
    %1092 = vector.extract_strided_slice %1085 {offsets = [1, 0], sizes = [7, 7], strides = [1, 1]} : vector<11x7xf32> to vector<7x7xf32>
    %1093 = vector.broadcast %1091 : f32 to vector<7x7xf32>
    %1094 = arith.mulf %1093, %1092 : vector<7x7xf32>
    %1095 = arith.addf %1090, %1094 : vector<7x7xf32>
    %c39_264 = arith.constant 39 : index
    %1096 = memref.load %arg6[%c39_264] : memref<75xf32, #tpu.memory_space<smem>>
    %1097 = vector.extract_strided_slice %1085 {offsets = [2, 0], sizes = [7, 7], strides = [1, 1]} : vector<11x7xf32> to vector<7x7xf32>
    %1098 = vector.broadcast %1096 : f32 to vector<7x7xf32>
    %1099 = arith.mulf %1098, %1097 : vector<7x7xf32>
    %1100 = arith.addf %1095, %1099 : vector<7x7xf32>
    %c44_265 = arith.constant 44 : index
    %1101 = memref.load %arg6[%c44_265] : memref<75xf32, #tpu.memory_space<smem>>
    %1102 = vector.extract_strided_slice %1085 {offsets = [3, 0], sizes = [7, 7], strides = [1, 1]} : vector<11x7xf32> to vector<7x7xf32>
    %1103 = vector.broadcast %1101 : f32 to vector<7x7xf32>
    %1104 = arith.mulf %1103, %1102 : vector<7x7xf32>
    %1105 = arith.addf %1100, %1104 : vector<7x7xf32>
    %c49_266 = arith.constant 49 : index
    %1106 = memref.load %arg6[%c49_266] : memref<75xf32, #tpu.memory_space<smem>>
    %1107 = vector.extract_strided_slice %1085 {offsets = [4, 0], sizes = [7, 7], strides = [1, 1]} : vector<11x7xf32> to vector<7x7xf32>
    %1108 = vector.broadcast %1106 : f32 to vector<7x7xf32>
    %1109 = arith.mulf %1108, %1107 : vector<7x7xf32>
    %1110 = arith.addf %1105, %1109 : vector<7x7xf32>
    %1111 = vector.extract_strided_slice %430 {offsets = [1, 2, 0, 0], sizes = [1, 1, 14, 14], strides = [1, 1, 1, 1]} : vector<2x3x14x14xf32> to vector<1x1x14x14xf32>
    %1112 = vector.shape_cast %1111 : vector<1x1x14x14xf32> to vector<14x14xf32>
    %cst_267 = arith.constant dense<0.000000e+00> : vector<11x14xf32>
    %1113 = tpu.matmul %431, %1112, %cst_267 {dimension_numbers = #tpu.dot_dimension_numbers<[1], [0], [0], [1], [0, 0, 1, 1], [], []>} : vector<11x14xf32>, vector<14x14xf32>, vector<11x14xf32> -> vector<11x14xf32>
    %cst_268 = arith.constant dense<0.000000e+00> : vector<11x11xf32>
    %1114 = tpu.matmul %1113, %432, %cst_268 {dimension_numbers = #tpu.dot_dimension_numbers<[1], [0], [0], [1], [0, 0, 1, 1], [], []>} : vector<11x14xf32>, vector<14x11xf32>, vector<11x11xf32> -> vector<11x11xf32>
    %1115 = vector.extract_strided_slice %1114 {offsets = [0, 0], sizes = [11, 7], strides = [1, 1]} : vector<11x11xf32> to vector<11x7xf32>
    %c50_269 = arith.constant 50 : index
    %1116 = memref.load %arg6[%c50_269] : memref<75xf32, #tpu.memory_space<smem>>
    %1117 = vector.extract_strided_slice %1115 {offsets = [0, 0], sizes = [7, 7], strides = [1, 1]} : vector<11x7xf32> to vector<7x7xf32>
    %1118 = vector.broadcast %1116 : f32 to vector<7x7xf32>
    %1119 = arith.mulf %1118, %1117 : vector<7x7xf32>
    %1120 = arith.addf %1110, %1119 : vector<7x7xf32>
    %c55_270 = arith.constant 55 : index
    %1121 = memref.load %arg6[%c55_270] : memref<75xf32, #tpu.memory_space<smem>>
    %1122 = vector.extract_strided_slice %1115 {offsets = [1, 0], sizes = [7, 7], strides = [1, 1]} : vector<11x7xf32> to vector<7x7xf32>
    %1123 = vector.broadcast %1121 : f32 to vector<7x7xf32>
    %1124 = arith.mulf %1123, %1122 : vector<7x7xf32>
    %1125 = arith.addf %1120, %1124 : vector<7x7xf32>
    %c60_271 = arith.constant 60 : index
    %1126 = memref.load %arg6[%c60_271] : memref<75xf32, #tpu.memory_space<smem>>
    %1127 = vector.extract_strided_slice %1115 {offsets = [2, 0], sizes = [7, 7], strides = [1, 1]} : vector<11x7xf32> to vector<7x7xf32>
    %1128 = vector.broadcast %1126 : f32 to vector<7x7xf32>
    %1129 = arith.mulf %1128, %1127 : vector<7x7xf32>
    %1130 = arith.addf %1125, %1129 : vector<7x7xf32>
    %c65_272 = arith.constant 65 : index
    %1131 = memref.load %arg6[%c65_272] : memref<75xf32, #tpu.memory_space<smem>>
    %1132 = vector.extract_strided_slice %1115 {offsets = [3, 0], sizes = [7, 7], strides = [1, 1]} : vector<11x7xf32> to vector<7x7xf32>
    %1133 = vector.broadcast %1131 : f32 to vector<7x7xf32>
    %1134 = arith.mulf %1133, %1132 : vector<7x7xf32>
    %1135 = arith.addf %1130, %1134 : vector<7x7xf32>
    %c70_273 = arith.constant 70 : index
    %1136 = memref.load %arg6[%c70_273] : memref<75xf32, #tpu.memory_space<smem>>
    %1137 = vector.extract_strided_slice %1115 {offsets = [4, 0], sizes = [7, 7], strides = [1, 1]} : vector<11x7xf32> to vector<7x7xf32>
    %1138 = vector.broadcast %1136 : f32 to vector<7x7xf32>
    %1139 = arith.mulf %1138, %1137 : vector<7x7xf32>
    %1140 = arith.addf %1135, %1139 : vector<7x7xf32>
    %1141 = vector.extract_strided_slice %1114 {offsets = [0, 1], sizes = [11, 7], strides = [1, 1]} : vector<11x11xf32> to vector<11x7xf32>
    %c51_274 = arith.constant 51 : index
    %1142 = memref.load %arg6[%c51_274] : memref<75xf32, #tpu.memory_space<smem>>
    %1143 = vector.extract_strided_slice %1141 {offsets = [0, 0], sizes = [7, 7], strides = [1, 1]} : vector<11x7xf32> to vector<7x7xf32>
    %1144 = vector.broadcast %1142 : f32 to vector<7x7xf32>
    %1145 = arith.mulf %1144, %1143 : vector<7x7xf32>
    %1146 = arith.addf %1140, %1145 : vector<7x7xf32>
    %c56_275 = arith.constant 56 : index
    %1147 = memref.load %arg6[%c56_275] : memref<75xf32, #tpu.memory_space<smem>>
    %1148 = vector.extract_strided_slice %1141 {offsets = [1, 0], sizes = [7, 7], strides = [1, 1]} : vector<11x7xf32> to vector<7x7xf32>
    %1149 = vector.broadcast %1147 : f32 to vector<7x7xf32>
    %1150 = arith.mulf %1149, %1148 : vector<7x7xf32>
    %1151 = arith.addf %1146, %1150 : vector<7x7xf32>
    %c61_276 = arith.constant 61 : index
    %1152 = memref.load %arg6[%c61_276] : memref<75xf32, #tpu.memory_space<smem>>
    %1153 = vector.extract_strided_slice %1141 {offsets = [2, 0], sizes = [7, 7], strides = [1, 1]} : vector<11x7xf32> to vector<7x7xf32>
    %1154 = vector.broadcast %1152 : f32 to vector<7x7xf32>
    %1155 = arith.mulf %1154, %1153 : vector<7x7xf32>
    %1156 = arith.addf %1151, %1155 : vector<7x7xf32>
    %c66_277 = arith.constant 66 : index
    %1157 = memref.load %arg6[%c66_277] : memref<75xf32, #tpu.memory_space<smem>>
    %1158 = vector.extract_strided_slice %1141 {offsets = [3, 0], sizes = [7, 7], strides = [1, 1]} : vector<11x7xf32> to vector<7x7xf32>
    %1159 = vector.broadcast %1157 : f32 to vector<7x7xf32>
    %1160 = arith.mulf %1159, %1158 : vector<7x7xf32>
    %1161 = arith.addf %1156, %1160 : vector<7x7xf32>
    %c71_278 = arith.constant 71 : index
    %1162 = memref.load %arg6[%c71_278] : memref<75xf32, #tpu.memory_space<smem>>
    %1163 = vector.extract_strided_slice %1141 {offsets = [4, 0], sizes = [7, 7], strides = [1, 1]} : vector<11x7xf32> to vector<7x7xf32>
    %1164 = vector.broadcast %1162 : f32 to vector<7x7xf32>
    %1165 = arith.mulf %1164, %1163 : vector<7x7xf32>
    %1166 = arith.addf %1161, %1165 : vector<7x7xf32>
    %1167 = vector.extract_strided_slice %1114 {offsets = [0, 2], sizes = [11, 7], strides = [1, 1]} : vector<11x11xf32> to vector<11x7xf32>
    %c52_279 = arith.constant 52 : index
    %1168 = memref.load %arg6[%c52_279] : memref<75xf32, #tpu.memory_space<smem>>
    %1169 = vector.extract_strided_slice %1167 {offsets = [0, 0], sizes = [7, 7], strides = [1, 1]} : vector<11x7xf32> to vector<7x7xf32>
    %1170 = vector.broadcast %1168 : f32 to vector<7x7xf32>
    %1171 = arith.mulf %1170, %1169 : vector<7x7xf32>
    %1172 = arith.addf %1166, %1171 : vector<7x7xf32>
    %c57_280 = arith.constant 57 : index
    %1173 = memref.load %arg6[%c57_280] : memref<75xf32, #tpu.memory_space<smem>>
    %1174 = vector.extract_strided_slice %1167 {offsets = [1, 0], sizes = [7, 7], strides = [1, 1]} : vector<11x7xf32> to vector<7x7xf32>
    %1175 = vector.broadcast %1173 : f32 to vector<7x7xf32>
    %1176 = arith.mulf %1175, %1174 : vector<7x7xf32>
    %1177 = arith.addf %1172, %1176 : vector<7x7xf32>
    %c62_281 = arith.constant 62 : index
    %1178 = memref.load %arg6[%c62_281] : memref<75xf32, #tpu.memory_space<smem>>
    %1179 = vector.extract_strided_slice %1167 {offsets = [2, 0], sizes = [7, 7], strides = [1, 1]} : vector<11x7xf32> to vector<7x7xf32>
    %1180 = vector.broadcast %1178 : f32 to vector<7x7xf32>
    %1181 = arith.mulf %1180, %1179 : vector<7x7xf32>
    %1182 = arith.addf %1177, %1181 : vector<7x7xf32>
    %c67_282 = arith.constant 67 : index
    %1183 = memref.load %arg6[%c67_282] : memref<75xf32, #tpu.memory_space<smem>>
    %1184 = vector.extract_strided_slice %1167 {offsets = [3, 0], sizes = [7, 7], strides = [1, 1]} : vector<11x7xf32> to vector<7x7xf32>
    %1185 = vector.broadcast %1183 : f32 to vector<7x7xf32>
    %1186 = arith.mulf %1185, %1184 : vector<7x7xf32>
    %1187 = arith.addf %1182, %1186 : vector<7x7xf32>
    %c72_283 = arith.constant 72 : index
    %1188 = memref.load %arg6[%c72_283] : memref<75xf32, #tpu.memory_space<smem>>
    %1189 = vector.extract_strided_slice %1167 {offsets = [4, 0], sizes = [7, 7], strides = [1, 1]} : vector<11x7xf32> to vector<7x7xf32>
    %1190 = vector.broadcast %1188 : f32 to vector<7x7xf32>
    %1191 = arith.mulf %1190, %1189 : vector<7x7xf32>
    %1192 = arith.addf %1187, %1191 : vector<7x7xf32>
    %1193 = vector.extract_strided_slice %1114 {offsets = [0, 3], sizes = [11, 7], strides = [1, 1]} : vector<11x11xf32> to vector<11x7xf32>
    %c53_284 = arith.constant 53 : index
    %1194 = memref.load %arg6[%c53_284] : memref<75xf32, #tpu.memory_space<smem>>
    %1195 = vector.extract_strided_slice %1193 {offsets = [0, 0], sizes = [7, 7], strides = [1, 1]} : vector<11x7xf32> to vector<7x7xf32>
    %1196 = vector.broadcast %1194 : f32 to vector<7x7xf32>
    %1197 = arith.mulf %1196, %1195 : vector<7x7xf32>
    %1198 = arith.addf %1192, %1197 : vector<7x7xf32>
    %c58_285 = arith.constant 58 : index
    %1199 = memref.load %arg6[%c58_285] : memref<75xf32, #tpu.memory_space<smem>>
    %1200 = vector.extract_strided_slice %1193 {offsets = [1, 0], sizes = [7, 7], strides = [1, 1]} : vector<11x7xf32> to vector<7x7xf32>
    %1201 = vector.broadcast %1199 : f32 to vector<7x7xf32>
    %1202 = arith.mulf %1201, %1200 : vector<7x7xf32>
    %1203 = arith.addf %1198, %1202 : vector<7x7xf32>
    %c63_286 = arith.constant 63 : index
    %1204 = memref.load %arg6[%c63_286] : memref<75xf32, #tpu.memory_space<smem>>
    %1205 = vector.extract_strided_slice %1193 {offsets = [2, 0], sizes = [7, 7], strides = [1, 1]} : vector<11x7xf32> to vector<7x7xf32>
    %1206 = vector.broadcast %1204 : f32 to vector<7x7xf32>
    %1207 = arith.mulf %1206, %1205 : vector<7x7xf32>
    %1208 = arith.addf %1203, %1207 : vector<7x7xf32>
    %c68_287 = arith.constant 68 : index
    %1209 = memref.load %arg6[%c68_287] : memref<75xf32, #tpu.memory_space<smem>>
    %1210 = vector.extract_strided_slice %1193 {offsets = [3, 0], sizes = [7, 7], strides = [1, 1]} : vector<11x7xf32> to vector<7x7xf32>
    %1211 = vector.broadcast %1209 : f32 to vector<7x7xf32>
    %1212 = arith.mulf %1211, %1210 : vector<7x7xf32>
    %1213 = arith.addf %1208, %1212 : vector<7x7xf32>
    %c73_288 = arith.constant 73 : index
    %1214 = memref.load %arg6[%c73_288] : memref<75xf32, #tpu.memory_space<smem>>
    %1215 = vector.extract_strided_slice %1193 {offsets = [4, 0], sizes = [7, 7], strides = [1, 1]} : vector<11x7xf32> to vector<7x7xf32>
    %1216 = vector.broadcast %1214 : f32 to vector<7x7xf32>
    %1217 = arith.mulf %1216, %1215 : vector<7x7xf32>
    %1218 = arith.addf %1213, %1217 : vector<7x7xf32>
    %1219 = vector.extract_strided_slice %1114 {offsets = [0, 4], sizes = [11, 7], strides = [1, 1]} : vector<11x11xf32> to vector<11x7xf32>
    %c54_289 = arith.constant 54 : index
    %1220 = memref.load %arg6[%c54_289] : memref<75xf32, #tpu.memory_space<smem>>
    %1221 = vector.extract_strided_slice %1219 {offsets = [0, 0], sizes = [7, 7], strides = [1, 1]} : vector<11x7xf32> to vector<7x7xf32>
    %1222 = vector.broadcast %1220 : f32 to vector<7x7xf32>
    %1223 = arith.mulf %1222, %1221 : vector<7x7xf32>
    %1224 = arith.addf %1218, %1223 : vector<7x7xf32>
    %c59_290 = arith.constant 59 : index
    %1225 = memref.load %arg6[%c59_290] : memref<75xf32, #tpu.memory_space<smem>>
    %1226 = vector.extract_strided_slice %1219 {offsets = [1, 0], sizes = [7, 7], strides = [1, 1]} : vector<11x7xf32> to vector<7x7xf32>
    %1227 = vector.broadcast %1225 : f32 to vector<7x7xf32>
    %1228 = arith.mulf %1227, %1226 : vector<7x7xf32>
    %1229 = arith.addf %1224, %1228 : vector<7x7xf32>
    %c64_291 = arith.constant 64 : index
    %1230 = memref.load %arg6[%c64_291] : memref<75xf32, #tpu.memory_space<smem>>
    %1231 = vector.extract_strided_slice %1219 {offsets = [2, 0], sizes = [7, 7], strides = [1, 1]} : vector<11x7xf32> to vector<7x7xf32>
    %1232 = vector.broadcast %1230 : f32 to vector<7x7xf32>
    %1233 = arith.mulf %1232, %1231 : vector<7x7xf32>
    %1234 = arith.addf %1229, %1233 : vector<7x7xf32>
    %c69_292 = arith.constant 69 : index
    %1235 = memref.load %arg6[%c69_292] : memref<75xf32, #tpu.memory_space<smem>>
    %1236 = vector.extract_strided_slice %1219 {offsets = [3, 0], sizes = [7, 7], strides = [1, 1]} : vector<11x7xf32> to vector<7x7xf32>
    %1237 = vector.broadcast %1235 : f32 to vector<7x7xf32>
    %1238 = arith.mulf %1237, %1236 : vector<7x7xf32>
    %1239 = arith.addf %1234, %1238 : vector<7x7xf32>
    %c74_293 = arith.constant 74 : index
    %1240 = memref.load %arg6[%c74_293] : memref<75xf32, #tpu.memory_space<smem>>
    %1241 = vector.extract_strided_slice %1219 {offsets = [4, 0], sizes = [7, 7], strides = [1, 1]} : vector<11x7xf32> to vector<7x7xf32>
    %1242 = vector.broadcast %1240 : f32 to vector<7x7xf32>
    %1243 = arith.mulf %1242, %1241 : vector<7x7xf32>
    %1244 = arith.addf %1239, %1243 : vector<7x7xf32>
    %c0_294 = arith.constant 0 : index
    %1245 = memref.load %arg7[%c0_294] : memref<1xf32, #tpu.memory_space<smem>>
    %1246 = vector.broadcast %1245 : f32 to vector<7x7xf32>
    %1247 = arith.addf %1244, %1246 : vector<7x7xf32>
    %c1_295 = arith.constant 1 : index
    %c0_296 = arith.constant 0 : index
    %c0_297 = arith.constant 0 : index
    %c0_298 = arith.constant 0 : index
    %1248 = vector.load %arg13[%c1_295, %c0_296, %c0_297, %c0_298] : memref<2x1x7x7xf32, #tpu.memory_space<vmem>>, vector<1x1x7x7xf32>
    %1249 = vector.shape_cast %1248 : vector<1x1x7x7xf32> to vector<7x7xf32>
    %1250 = vector.shape_cast %1247 : vector<7x7xf32> to vector<1x1x7x7xf32>
    tpu.vector_store %arg13[%c1_295, %c0_296, %c0_297, %c0_298], %1250 {strides = array<i32>} : memref<2x1x7x7xf32, #tpu.memory_space<vmem>>, vector<1x1x7x7xf32>,
    return
  }
  func.func @transform_0(%arg0: i32) -> (i32, i32, i32, i32) {
    %c0_i32 = arith.constant 0 : i32
    %c0_i32_0 = arith.constant 0 : i32
    %c0_i32_1 = arith.constant 0 : i32
    %c0_i32_2 = arith.constant 0 : i32
    return %arg0, %c0_i32, %c0_i32_0, %c0_i32_1 : i32, i32, i32, i32
  }
  func.func @transform_1(%arg0: i32) -> (i32, i32) {
    %c0_i32 = arith.constant 0 : i32
    %c0_i32_0 = arith.constant 0 : i32
    %c0_i32_1 = arith.constant 0 : i32
    return %c0_i32, %c0_i32_0 : i32, i32
  }
  func.func @transform_2(%arg0: i32) -> (i32, i32) {
    %c0_i32 = arith.constant 0 : i32
    %c0_i32_0 = arith.constant 0 : i32
    %c0_i32_1 = arith.constant 0 : i32
    return %c0_i32, %c0_i32_0 : i32, i32
  }
  func.func @transform_3(%arg0: i32) -> i32 {
    %c0_i32 = arith.constant 0 : i32
    %c0_i32_0 = arith.constant 0 : i32
    return %c0_i32 : i32
  }
  func.func @transform_4(%arg0: i32) -> i32 {
    %c0_i32 = arith.constant 0 : i32
    %c0_i32_0 = arith.constant 0 : i32
    return %c0_i32 : i32
  }
  func.func @transform_5(%arg0: i32) -> i32 {
    %c0_i32 = arith.constant 0 : i32
    %c0_i32_0 = arith.constant 0 : i32
    return %c0_i32 : i32
  }
  func.func @transform_6(%arg0: i32) -> i32 {
    %c0_i32 = arith.constant 0 : i32
    %c0_i32_0 = arith.constant 0 : i32
    return %c0_i32 : i32
  }
  func.func @transform_7(%arg0: i32) -> i32 {
    %c0_i32 = arith.constant 0 : i32
    %c0_i32_0 = arith.constant 0 : i32
    return %c0_i32 : i32
  }
  func.func @transform_8(%arg0: i32) -> i32 {
    %c0_i32 = arith.constant 0 : i32
    %c0_i32_0 = arith.constant 0 : i32
    return %c0_i32 : i32
  }
  func.func @transform_9(%arg0: i32) -> i32 {
    %c0_i32 = arith.constant 0 : i32
    %c0_i32_0 = arith.constant 0 : i32
    return %c0_i32 : i32
  }
  func.func @transform_10(%arg0: i32) -> i32 {
    %c0_i32 = arith.constant 0 : i32
    %c0_i32_0 = arith.constant 0 : i32
    return %c0_i32 : i32
  }
  func.func @transform_11(%arg0: i32) -> (i32, i32, i32, i32) {
    %c0_i32 = arith.constant 0 : i32
    %c0_i32_0 = arith.constant 0 : i32
    %c0_i32_1 = arith.constant 0 : i32
    %c0_i32_2 = arith.constant 0 : i32
    return %arg0, %c0_i32, %c0_i32_0, %c0_i32_1 : i32, i32, i32, i32
  }
  func.func @transform_12(%arg0: i32) -> (i32, i32, i32, i32) {
    %c0_i32 = arith.constant 0 : i32
    %c0_i32_0 = arith.constant 0 : i32
    %c0_i32_1 = arith.constant 0 : i32
    %c0_i32_2 = arith.constant 0 : i32
    return %arg0, %c0_i32, %c0_i32_0, %c0_i32_1 : i32, i32, i32, i32
  }
  func.func @transform_13(%arg0: i32) -> (i32, i32, i32, i32) {
    %c0_i32 = arith.constant 0 : i32
    %c0_i32_0 = arith.constant 0 : i32
    %c0_i32_1 = arith.constant 0 : i32
    %c0_i32_2 = arith.constant 0 : i32
    return %arg0, %c0_i32, %c0_i32_0, %c0_i32_1 : i32, i32, i32, i32
  }
  func.func @transform_14(%arg0: i32) -> (i32, i32, i32, i32) {
    %c0_i32 = arith.constant 0 : i32
    %c0_i32_0 = arith.constant 0 : i32
    %c0_i32_1 = arith.constant 0 : i32
    %c0_i32_2 = arith.constant 0 : i32
    return %arg0, %c0_i32, %c0_i32_0, %c0_i32_1 : i32, i32, i32, i32
  }
}

</mosaic_0001>

<bundles_post_ra>
// kernel: multi_branches_forward.1
= control target key start
LH: loop header
LB: loop body
LE: loop exit
PB: predicated region body
PF: predicated region fallthrough
CT: control target
= control target key end

     0   :  { %23 = vsyncpa [#allocation8], 0  ;;  %s13326_s0 = inlined_call_operand.vmem [shape: f32[2,3,16,16], index: 0, kind: input, shape index: {}]   ;;  %s13327_s1 = inlined_call_operand.vmem [shape: f32[11,14], index: 1, kind: input, shape index: {}]   ;;  %s13328_s2 = inlined_call_operand.vmem [shape: f32[14,11], index: 2, kind: input, shape index: {}]   ;;  %s13329_s3 = inlined_call_operand.vmem [shape: f32[27], index: 3, kind: input, shape index: {}]   ;;  %s13330_s4 = inlined_call_operand.vmem [shape: f32[3], index: 4, kind: input, shape index: {}]   ;;  %s13331_s5 = inlined_call_operand.vmem [shape: f32[75], index: 5, kind: input, shape index: {}]   ;;  %s13332_s6 = inlined_call_operand.<no memory space> [shape: f32[1], index: 6, kind: input, shape index: {}]   ;;  %s13333_s7 = inlined_call_operand.vmem [shape: f32[27], index: 7, kind: input, shape index: {}]   ;;  %s13334_s8 = inlined_call_operand.<no memory space> [shape: f32[1], index: 8, kind: input, shape index: {}]   ;;  %s13335_s9 = inlined_call_operand.vmem [shape: f32[27], index: 9, kind: input, shape index: {}]   ;;  %s13336_s10 = inlined_call_operand.<no memory space> [shape: f32[1], index: 10, kind: input, shape index: {}]   ;;  %s13337_s11 = inlined_call_operand.hbm [shape: f32[2,3,16,16], index: 11, kind: output, shape index: {0}]   ;;  %s13338_s12 = inlined_call_operand.vmem [shape: f32[2,1,7,7], index: 12, kind: output, shape index: {1}]   ;;  %s13339_s13 = inlined_call_operand.vmem [shape: f32[2,1,20,20], index: 13, kind: output, shape index: {2}]   ;;  %s13340_s14 = inlined_call_operand.vmem [shape: f32[2,1,14,14], index: 14, kind: output, shape index: {3}]  }
   0x1   :  { %24 = vsyncpa [#allocation10], 0 }
   0x2   :  { %25 = vsyncpa [#allocation13], 0  ;;  %s49_s15 = sshll.u32 %s13330_s4, 4  ;;  %s50_s15 = int_to_ptr.vmem [resolvable:$true] %s49_s15 }
   0x3   :  { %26 = vsyncpa [#allocation7], 0  ;;  %s71_s18 = sshll.u32 %s13333_s7, 4  ;;  %s7359_s19 = scalar_lea.vmem %s50_s15, 16  ;;  %s72_s18 = int_to_ptr.vmem [resolvable:$true] %s71_s18 }
   0x4   :  { %p7360_p0 = scmp.ne.s32.totalorder %s50_s15, %s7359_s19  ;;  %p7364_p1 = scmp.lt.s32.totalorder %s50_s15, %s50_s15 }
   0x5   :  { %p7365_p2 = scmp.lt.s32.totalorder %s7359_s19, %s7359_s19 }
   0x7   :  { %p7366_p3 = por %p7365_p2, %p7364_p1 }
   0x9   :  { %p7367_p4 = pnand %p7366_p3, %p7360_p0 }
   0xb   :  { %7370 = shalt.err (!%p7367_p4)
}
   0xc   :  { %s7449_s20 = smov [#allocation9]   ;;  %s7371_s21 = scalar_lea.vmem %s72_s18, 16 }
   0xd   :  { %52 = dma.vmem_to_smem %s50_s15, 16, %s7449_s20, [#allocation10]  }
   0xe   :  { %p7372_p5 = scmp.ne.s32.totalorder %s72_s18, %s7371_s21  ;;  %p7376_p6 = scmp.lt.s32.totalorder %s72_s18, %s72_s18 }
   0xf   :  { %p7377_p7 = scmp.lt.s32.totalorder %s7371_s21, %s7371_s21 }
  0x11   :  { %p7378_p8 = por %p7377_p7, %p7376_p6 }
  0x13   :  { %p7379_p9 = pnand %p7378_p8, %p7372_p5 }
  0x15   :  { %7382 = shalt.err (!%p7379_p9)
}
  0x16   :  { %s7450_s4 = smov [#allocation12]   ;;  %s39_s23 = sshll.u32 %s13329_s3, 4  ;;  %s40_s23 = int_to_ptr.vmem [resolvable:$true] %s39_s23 }
  0x17   :  { %74 = dma.vmem_to_smem %s72_s18, 16, %s7450_s4, [#allocation13]  }
  0x18   :  { %s59_s26 = sshll.u32 %s13331_s5, 4  ;;  %s7383_s27 = scalar_lea.vmem %s40_s23, 16  ;;  %s60_s26 = int_to_ptr.vmem [resolvable:$true] %s59_s26 }
  0x19   :  { %p7384_p10 = scmp.ne.s32.totalorder %s40_s23, %s7383_s27  ;;  %p7388_p11 = scmp.lt.s32.totalorder %s40_s23, %s40_s23 }
  0x1a   :  { %p7389_p12 = scmp.lt.s32.totalorder %s7383_s27, %s7383_s27 }
  0x1c   :  { %p7390_p13 = por %p7389_p12, %p7388_p11 }
  0x1e   :  { %p7391_p0 = pnand %p7390_p13, %p7384_p10 }
  0x20   :  { %7394 = shalt.err (!%p7391_p0)
}
  0x21   :  { %s7451_s28 = smov [#allocation6]   ;;  %s7395_s29 = scalar_lea.vmem %s60_s26, 16 }
  0x22   :  { %42 = dma.vmem_to_smem %s40_s23, 16, %s7451_s28, [#allocation8]  }
  0x23   :  { %p7396_p1 = scmp.ne.s32.totalorder %s60_s26, %s7395_s29  ;;  %p7400_p2 = scmp.lt.s32.totalorder %s60_s26, %s60_s26 }
  0x24   :  { %p7401_p3 = scmp.lt.s32.totalorder %s7395_s29, %s7395_s29 }
  0x26   :  { %p7402_p4 = por %p7401_p3, %p7400_p2 }
  0x28   :  { %p7403_p5 = pnand %p7402_p4, %p7396_p1 }
  0x2a   :  { %7406 = shalt.err (!%p7403_p5)
}
  0x2b   :  { %s7452_s3 = smov [#allocation11]   ;;  %s83_s15 = sshll.u32 %s13335_s9, 4  ;;  %s84_s15 = int_to_ptr.vmem [resolvable:$true] %s83_s15 }
  0x2c   :  { %62 = dma.vmem_to_smem %s60_s26, 16, %s7452_s3, [#allocation10]  }
  0x2d   :  { %s7407_s16 = scalar_lea.vmem %s84_s15, 16  ;;  %p7412_p7 = scmp.lt.s32.totalorder %s84_s15, %s84_s15 }
  0x2e   :  { %p7408_p6 = scmp.ne.s32.totalorder %s84_s15, %s7407_s16  ;;  %p7413_p8 = scmp.lt.s32.totalorder %s7407_s16, %s7407_s16 }
  0x30   :  { %p7414_p9 = por %p7413_p8, %p7412_p7 }
  0x32   :  { %p7415_p10 = pnand %p7414_p9, %p7408_p6 }
  0x34   :  { %7418 = shalt.err (!%p7415_p10)
}
  0x35   :  { %s7453_s17 = smov [#allocation14]  }
  0x36   :  { %86 = dma.vmem_to_smem %s84_s15, 16, %s7453_s17, [#allocation13]  }
  0x37   :  { %7441 = dma.done.wait [#allocation8], 16  }
  0x38   :  { %7442 = vsyncadd [#allocation8], 4294967280 }
  0x39   :  { %7443 = dma.done.wait [#allocation10], 32  }
  0x3a   :  { %7444 = vsyncadd [#allocation10], 4294967264 }
  0x3b   :  { %7445 = dma.done.wait [#allocation13], 32  }
  0x3c   :  { %7446 = vsyncadd [#allocation13], 4294967264 }
  0x3d   :  { %104 = sfence }
  0x3e   :  { %v127_v0 = vld [vmem:[%s13326_s0 + $0x10] sm:$0xff]  ;;  %v125_v1 = vld [vmem:[%s13326_s0] sm:$0xff]  ;;  %v128_v2 = vld [vmem:[%s13326_s0 + $0x18] sm:$0xff]  ;;  %vm105_vm0 = vcmask 179200   ;;  %s7454_s23 = smov 3   ;;  %v7455_v8 = vmov 0.0  }
  0x3f   :  { %v139_v3 = vmax.f32 %v127_v0, 0.0  ;;  %v137_v4 = vmax.f32 %v125_v1, 0.0  ;;  %v126_v5 = vld [vmem:[%s13326_s0 + $0x8] sm:$0xff]  ;;  %v140_v6 = vmax.f32 %v128_v2, 0.0  ;;  %110 = vst.msk [vmem:[#allocation2 + $0x18] sm:$0xff] %vm105_vm0, %v7455_v8  ;;  %111 = vst.msk [vmem:[#allocation2 + $0x20] sm:$0xff] %vm105_vm0, %v7455_v8 }
  0x40   :  { %v138_v7 = vmax.f32 %v126_v5, 0.0  ;;  %106 = vst.msk [vmem:[#allocation2] sm:$0xff] %vm105_vm0, %v7455_v8  ;;  %107 = vst.msk [vmem:[#allocation2 + $0x8] sm:$0xff] %vm105_vm0, %v7455_v8  ;;  %vm108_vm1 = vcmask 177152   ;;  %v130_v9 = vld [vmem:[%s13326_s0 + $0x28] sm:$0xff]  ;;  %v129_v10 = vld [vmem:[%s13326_s0 + $0x20] sm:$0xff] }
  0x41   :  { %165 = vrot.lane.b32.xlu1 %v139_v3, %s7454_s23  ;;  %161 = vrot.lane.b32.xlu0 %v137_v4, %s7454_s23  ;;  %113 = vst.msk [vmem:[#allocation2 + $0x30] sm:$0xff] %vm105_vm0, %v7455_v8  ;;  %114 = vst.msk [vmem:[#allocation2 + $0x38] sm:$0xff] %vm105_vm0, %v7455_v8  ;;  %v142_v11 = vmax.f32 %v130_v9, 0.0  ;;  %v141_v12 = vmax.f32 %v129_v10, 0.0  ;;  %v132_v13 = vld [vmem:[%s13326_s0 + $0x38] sm:$0xff]  ;;  %v131_v14 = vld [vmem:[%s13326_s0 + $0x30] sm:$0xff] }
  0x42   :  { %116 = vst.msk [vmem:[#allocation2 + $0x48] sm:$0xff] %vm105_vm0, %v7455_v8  ;;  %117 = vst.msk [vmem:[#allocation2 + $0x50] sm:$0xff] %vm105_vm0, %v7455_v8  ;;  %v144_v15 = vmax.f32 %v132_v13, 0.0  ;;  %v143_v16 = vmax.f32 %v131_v14, 0.0  ;;  %v133_v17 = vld [vmem:[%s13326_s0 + $0x40] sm:$0xff]  ;;  %v134_v18 = vld [vmem:[%s13326_s0 + $0x48] sm:$0xff] }
  0x43   :  { %119 = vst.msk [vmem:[#allocation2 + $0x60] sm:$0xff] %vm105_vm0, %v7455_v8  ;;  %120 = vst.msk [vmem:[#allocation2 + $0x68] sm:$0xff] %vm105_vm0, %v7455_v8  ;;  %v145_v19 = vmax.f32 %v133_v17, 0.0  ;;  %v146_v20 = vmax.f32 %v134_v18, 0.0  ;;  %v135_v21 = vld [vmem:[%s13326_s0 + $0x50] sm:$0xff]  ;;  %v136_v22 = vld [vmem:[%s13326_s0 + $0x58] sm:$0xff] }
  0x44   :  { %122 = vst.msk [vmem:[#allocation2 + $0x78] sm:$0xff] %vm105_vm0, %v7455_v8  ;;  %123 = vst.msk [vmem:[#allocation2 + $0x80] sm:$0xff] %vm105_vm0, %v7455_v8  ;;  %v147_v23 = vmax.f32 %v135_v21, 0.0  ;;  %v148_v24 = vmax.f32 %v136_v22, 0.0  ;;  %vm197_vm2 = vcmask 154648   ;;  %s6638_s21 = sld [smem:[#allocation6 + $0x1]] }
  0x45   :  { %112 = vst.msk [vmem:[#allocation2 + $0x28] sm:$0x3f] %vm108_vm1, %v7455_v8  ;;  %109 = vst.msk [vmem:[#allocation2 + $0x10] sm:$0x3f] %vm108_vm1, %v7455_v8  ;;  %167 = vrot.lane.b32.xlu1 %v140_v6, %s7454_s23  ;;  %163 = vrot.lane.b32.xlu0 %v138_v7, %s7454_s23  ;;  %s7456_s0 = smov 127   ;;  %s6639_s4 = sld [smem:[#allocation12 + $0x1]] }
  0x46   :  { %115 = vst.msk [vmem:[#allocation2 + $0x40] sm:$0x3f] %vm108_vm1, %v7455_v8  ;;  %118 = vst.msk [vmem:[#allocation2 + $0x58] sm:$0x3f] %vm108_vm1, %v7455_v8  ;;  %s6640_s7 = sld [smem:[#allocation14 + $0x1]]  ;;  %s6641_s22 = sld [smem:[#allocation6 + $0x4]] }
  0x47   :  { %121 = vst.msk [vmem:[#allocation2 + $0x70] sm:$0x3f] %vm108_vm1, %v7455_v8  ;;  %124 = vst.msk [vmem:[#allocation2 + $0x88] sm:$0x3f] %vm108_vm1, %v7455_v8  ;;  %s6633_s24 = sld [smem:[#allocation12 + $0x3]]  ;;  %s6636_s25 = sld [smem:[#allocation12 + $0x6]] }
  0x48   :  { %s6643_s26 = sld [smem:[#allocation14 + $0x4]]  ;;  %s6644_s27 = sld [smem:[#allocation6 + $0x7]]  ;;  %vm272_vm3 = vcmask 1046528   ;;  %vm381_vm4 = vcmask 1045504   ;;  %vm1316_vm5 = vcmask 123904   ;;  %vm1312_vm6 = vcmask 130050  }
  0x49   :  { %171 = vrot.lane.b32.xlu1 %v142_v11, %s7454_s23  ;;  %169 = vrot.lane.b32.xlu0 %v141_v12, %s7454_s23  ;;  %s6645_s28 = sld [smem:[#allocation12 + $0x7]]  ;;  %s7680_s3 = sld [smem:[#allocation12]]  ;;  %vm1314_vm7 = vcmask 130048   ;;  %vm3587_vm8 = vcmask 113664   ;;  %vm7459_vm9 = vmmov 1   ;;  %vm3545_vm11 = vcmask 162816  }
  0x4a   :  { %v477_v29 = vstv %s6638_s21  ;;  %s6646_s29 = sld [smem:[#allocation14 + $0x7]]  ;;  %s7682_s5 = sld [smem:[#allocation14 + $0x3]]  ;;  %vm9909_vm10 = vmpackc.low %vm381_vm4, %vm7459_vm9  ;;  %vm4196_vm12 = vcmask 1043456   ;;  %vm4184_vm13 = vcmask 1044480   ;;  %vm3548_vm14 = vcmask 158720  }
  0x4b   :  { %v515_v49 = vstv %s6639_s4  ;;  %s7698_s30 = sld [smem:[#allocation14 + $0x6]]  ;;  %s7823_s15 = sld [smem:[#allocation14]]  ;;  %vm3585_vm15 = vcmask 113667   ;;  %vm3589_vm0 = vcmask 106496  }
  0x4c   :  { %v553_v56 = vstv %s6640_s7  ;;  %v7668_v61 = vstv %s6641_s22  ;;  %s6659_s16 = sld [smem:[#allocation6 + $0xc]]  ;;  %s6662_s17 = sld [smem:[#allocation6 + $0xf]] }
  0x4d   :  { %175 = vrot.lane.b32.xlu1 %v144_v15, %s7454_s23  ;;  %173 = vrot.lane.b32.xlu0 %v143_v16, %s7454_s23  ;;  %v7694_v6 = vstv %s6633_s24  ;;  %v7696_v7 = vstv %s6636_s25  ;;  %s6656_s18 = sld [smem:[#allocation6 + $0x9]]  ;;  %s6647_s19 = sld [smem:[#allocation6 + $0x2]] }
  0x4e   :  { %13647 = vst [vmem:[#allocation20_spill] sm:$0xff] %v7694_v6  ;;  %13648 = vst [vmem:[#allocation21_spill] sm:$0xff] %v7696_v7  ;;  %v7704_v8 = vstv %s6643_s26  ;;  %v7724_v15 = vstv %s6644_s27  ;;  %s6648_s9 = sld [smem:[#allocation12 + $0x2]]  ;;  %s7457_s20 = smov 126  }
  0x4f   :  { %v7730_v17 = vstv %s6645_s28  ;;  %s6649_s21 = sld [smem:[#allocation14 + $0x2]]  ;;  %s6650_s4 = sld [smem:[#allocation6 + $0x5]] }
  0x50   :  { %v7732_v18 = vstv %s6646_s29  ;;  %s6660_s7 = sld [smem:[#allocation12 + $0xc]]  ;;  %s6663_s22 = sld [smem:[#allocation12 + $0xf]] }
  0x51   :  { %177 = vrot.lane.b32.xlu0 %v145_v19, %s7454_s23  ;;  %179 = vrot.lane.b32.xlu1 %v146_v20, %s7454_s23  ;;  %s8253_s24 = sld [smem:[#allocation14 + $0xc]]  ;;  %s8256_s25 = sld [smem:[#allocation14 + $0xf]] }
  0x52   :  { %s6673_s26 = sld [smem:[#allocation14 + $0x10]]  ;;  %s6652_s27 = sld [smem:[#allocation14 + $0x5]] }
  0x53   :  { %s6653_s28 = sld [smem:[#allocation6 + $0x8]] }
  0x54   :  { %s6654_s29 = sld [smem:[#allocation12 + $0x8]] }
  0x55   :  { %181 = vrot.lane.b32.xlu0 %v147_v23, %s7454_s23  ;;  %183 = vrot.lane.b32.xlu1 %v148_v24, %s7454_s23  ;;  %s6642_s23 = sld [smem:[#allocation12 + $0x4]]  ;;  %v7752_v24 = vstv %s7680_s3  ;;  %s8401_s3 = sld [smem:[#allocation14 + $0x8]] }
  0x56   :  { %13653 = vst [vmem:[#allocation26_spill] sm:$0xff] %v7752_v24 }
  0x5b   :  { %v7678_v1 = vstv %s6642_s23  ;;  %s8210_s23 = sld [smem:[#allocation12 + $0x5]] }
  0xb3   :  { %v166_v25 = vpop.permute.xlu1 %165  ;;  %v162_v26 = vpop.permute.xlu0 %161 }
  0xb4   :  { %200 = vst.msk [vmem:[#allocation2 + $0x1b] sm:$0xff] %vm197_vm2, %v166_v25  ;;  %198 = vst.msk [vmem:[#allocation2 + $0x3] sm:$0xff] %vm197_vm2, %v162_v26  ;;  %v7755_v25 = vstv %s7682_s5  ;;  %s8409_s5 = sld [smem:[#allocation6 + $0xe]] }
  0xb5   :  { %13654 = vst [vmem:[#allocation27_spill] sm:$0xff] %v7755_v25 }
  0xb7   :  { %v168_v27 = vpop.permute.xlu1 %167  ;;  %v164_v28 = vpop.permute.xlu0 %163 }
  0xb8   :  { %201 = vst.msk [vmem:[#allocation2 + $0x23] sm:$0xff] %vm197_vm2, %v168_v27  ;;  %199 = vst.msk [vmem:[#allocation2 + $0xb] sm:$0xff] %vm197_vm2, %v164_v28 }
  0xbb   :  { %v7618_v30 = vld [vmem:[#allocation2] sm:$0xff]  ;;  %v172_v31 = vpop.permute.xlu1 %171  ;;  %v170_v32 = vpop.permute.xlu0 %169 }
  0xbc   :  { %203 = vst.msk [vmem:[#allocation2 + $0x3b] sm:$0xff] %vm197_vm2, %v172_v31  ;;  %202 = vst.msk [vmem:[#allocation2 + $0x33] sm:$0xff] %vm197_vm2, %v170_v32  ;;  %v478_v33 = vmul.f32 %v477_v29, %v7618_v30  ;;  %v516_v51 = vmul.f32 %v515_v49, %v7618_v30  ;;  %v554_v58 = vmul.f32 %v553_v56, %v7618_v30 }
  0xbe   :  { %490 = vrot.lane.b32.xlu0 %v478_v33, %s7456_s0 }
  0xbf   :  { %v7624_v34 = vld [vmem:[#allocation2 + $0x8] sm:$0xff]  ;;  %v176_v35 = vpop.permute.xlu1 %175  ;;  %v174_v36 = vpop.permute.xlu0 %173  ;;  %v7626_v37 = vld [vmem:[#allocation2 + $0x10] sm:$0x3f] }
  0xc0   :  { %205 = vst.msk [vmem:[#allocation2 + $0x53] sm:$0xff] %vm197_vm2, %v176_v35  ;;  %204 = vst.msk [vmem:[#allocation2 + $0x4b] sm:$0xff] %vm197_vm2, %v174_v36  ;;  %v479_v38 = vmul.f32 %v477_v29, %v7624_v34  ;;  %v480_v39 = vmul.f32 %v477_v29, %v7626_v37  ;;  %v517_v52 = vmul.f32 %v515_v49, %v7624_v34  ;;  %v7773_v35 = vstv %s7698_s30  ;;  %s8411_s30 = sld [smem:[#allocation12 + $0xe]] }
  0xc1   :  { %v518_v53 = vmul.f32 %v515_v49, %v7626_v37  ;;  %v555_v59 = vmul.f32 %v553_v56, %v7624_v34  ;;  %v556_v60 = vmul.f32 %v553_v56, %v7626_v37  ;;  %v7674_v0 = vmul.f32 %v7668_v61, %v7626_v37  ;;  %13656 = vst [vmem:[#allocation29_spill] sm:$0xff] %v7773_v35 }
  0xc2   :  { %492 = vrot.lane.b32.xlu1 %v479_v38, %s7456_s0  ;;  %494 = vrot.lane.b32.xlu0 %v480_v39, %s7456_s0  ;;  %v7692_v5 = vmul.f32 %v7678_v1, %v7626_v37  ;;  %v7708_v9 = vmul.f32 %v7694_v6, %v7624_v34  ;;  %v7712_v10 = vmul.f32 %v7696_v7, %v7624_v34 }
  0xc3   :  { %v178_v40 = vpop.permute.xlu0 %177  ;;  %v180_v41 = vpop.permute.xlu1 %179  ;;  %v607_v3 = vrot.slane %v7674_v0, 1  ;;  %v7716_v11 = vmul.f32 %v7704_v8, %v7626_v37  ;;  %v7728_v16 = vmul.f32 %v7724_v15, %v7626_v37  ;;  %v7744_v21 = vmul.f32 %v7694_v6, %v7626_v37 }
  0xc4   :  { %206 = vst.msk [vmem:[#allocation2 + $0x63] sm:$0xff] %vm197_vm2, %v178_v40  ;;  %207 = vst.msk [vmem:[#allocation2 + $0x6b] sm:$0xff] %vm197_vm2, %v180_v41  ;;  %v13357_v13 = vrot.slane %v7692_v5, 1  ;;  %v13347_v19 = vrot.slane %v7708_v9, 1  ;;  %v13343_v20 = vrot.slane %v7712_v10, 2  ;;  %v7748_v22 = vmul.f32 %v7696_v7, %v7626_v37 }
  0xc5   :  { %13649 = vst [vmem:[#allocation22_spill] sm:$0xff] %v7708_v9  ;;  %13650 = vst [vmem:[#allocation23_spill] sm:$0xff] %v7712_v10  ;;  %v13355_v23 = vrot.slane %v7716_v11, 1  ;;  %v13344_v28 = vrot.slane %v7744_v21, 1  ;;  %v233_v31 = vmul.f32 %v7752_v24, %v7624_v34  ;;  %v13351_v36 = vrot.slane %v7728_v16, 2 }
  0xc6   :  { %13651 = vst [vmem:[#allocation24_spill] sm:$0xff] %v7744_v21  ;;  %13652 = vst [vmem:[#allocation25_spill] sm:$0xff] %v7748_v22  ;;  %v7784_v38 = vmul.f32 %v7730_v17, %v7626_v37 }
  0xc7   :  { %v7636_v42 = vld [vmem:[#allocation2 + $0x48] sm:$0xff]  ;;  %v7638_v43 = vld [vmem:[#allocation2 + $0x50] sm:$0xff]  ;;  %v182_v44 = vpop.permute.xlu0 %181  ;;  %v184_v45 = vpop.permute.xlu1 %183  ;;  %v7644_v48 = vld [vmem:[#allocation2 + $0x58] sm:$0x3f]  ;;  %v313_v39 = vsel %vm272_vm3, %v13347_v19, %v13344_v28  ;;  %v7887_v28 = vmul.f32 %v7755_v25, %v7626_v37  ;;  %v7894_v19 = vstv %s7823_s15  ;;  %s8413_s15 = sld [smem:[#allocation14 + $0xe]] }
  0xc8   :  { %v481_v46 = vmul.f32 %v477_v29, %v7636_v42  ;;  %v482_v47 = vmul.f32 %v477_v29, %v7638_v43  ;;  %208 = vst.msk [vmem:[#allocation2 + $0x7b] sm:$0xff] %vm197_vm2, %v182_v44  ;;  %209 = vst.msk [vmem:[#allocation2 + $0x83] sm:$0xff] %vm197_vm2, %v184_v45  ;;  %v483_v50 = vmul.f32 %v477_v29, %v7644_v48  ;;  %v13341_v29 = vrot.slane %v7748_v22, 2 }
  0xc9   :  { %v519_v54 = vmul.f32 %v515_v49, %v7636_v42  ;;  %v520_v55 = vmul.f32 %v515_v49, %v7638_v43  ;;  %v521_v57 = vmul.f32 %v515_v49, %v7644_v48  ;;  %v557_v62 = vmul.f32 %v553_v56, %v7636_v42  ;;  %13662 = vst [vmem:[#allocation35_spill] sm:$0xff] %v7887_v28 }
  0xca   :  { %496 = vrot.lane.b32.xlu1 %v481_v46, %s7456_s0  ;;  %498 = vrot.lane.b32.xlu0 %v482_v47, %s7456_s0  ;;  %v558_v63 = vmul.f32 %v553_v56, %v7638_v43  ;;  %v559_v2 = vmul.f32 %v553_v56, %v7644_v48  ;;  %v7688_v4 = vmul.f32 %v7668_v61, %v7644_v48 }
  0xcb   :  { %v7722_v14 = vmul.f32 %v7678_v1, %v7644_v48  ;;  %v7760_v27 = vmul.f32 %v7704_v8, %v7644_v48  ;;  %v300_v32 = vmul.f32 %v7694_v6, %v7636_v42  ;;  %v7770_v33 = vmul.f32 %v7694_v6, %v7638_v43  ;;  %13664 = vst [vmem:[#allocation37_spill] sm:$0xff] %v7894_v19 }
  0xcc   :  { %v612_v12 = vrot.slane %v7688_v4, 1  ;;  %v422_v40 = vsel %vm381_vm4, %v13343_v20, %v13341_v29  ;;  %v7798_v41 = vmul.f32 %v7724_v15, %v7644_v48  ;;  %v326_v44 = vadd.f32 %v313_v39, %v233_v31 }
  0xcd   :  { %v13356_v26 = vrot.slane %v7722_v14, 1  ;;  %13655 = vst [vmem:[#allocation28_spill] sm:$0xff] %v7770_v33  ;;  %v314_v45 = vrot.slane %v300_v32, 1  ;;  %v13345_v46 = vrot.slane %v7770_v33, 1  ;;  %v13353_v47 = vrot.slane %v7760_v27, 1 }
  0xce   :  { %500 = vrot.lane.b32.xlu1 %v483_v50, %s7456_s0  ;;  %528 = vrot.lane.b32.xlu0 %v516_v51, %s7456_s0  ;;  %v235_v49 = vmul.f32 %v7752_v24, %v7636_v42  ;;  %v409_v50 = vmul.f32 %v7696_v7, %v7636_v42  ;;  %v7808_v51 = vmul.f32 %v7696_v7, %v7638_v43  ;;  %v13350_v31 = vrot.slane %v7798_v41, 2 }
  0xcf   :  { %v7833_v56 = vmul.f32 %v7732_v18, %v7626_v37  ;;  %v7850_v39 = vmul.f32 %v7755_v25, %v7624_v34  ;;  %v445_v0 = vmul.f32 %v7773_v35, %v7636_v42  ;;  %v251_v4 = vmul.f32 %v7894_v19, %v7644_v48 }
  0xd0   :  { %13657 = vst [vmem:[#allocation30_spill] sm:$0xff] %v7808_v51  ;;  %v689_v22 = vmul.f32 %v7704_v8, %v7624_v34 }
  0xd1   :  { %13660 = vst [vmem:[#allocation33_spill] sm:$0xff] %v7850_v39 }
  0xd2   :  { %530 = vrot.lane.b32.xlu1 %v517_v52, %s7456_s0  ;;  %532 = vrot.lane.b32.xlu0 %v518_v53, %s7456_s0  ;;  %v7810_v52 = vadd.f32 %v422_v40, %v326_v44  ;;  %v316_v53 = vsel %vm272_vm3, %v314_v45, %v13345_v46  ;;  %v7854_v40 = vmul.f32 %v7773_v35, %v7624_v34 }
  0xd3   :  { %v593_v44 = vmul.f32 %v7668_v61, %v7624_v34  ;;  %v7891_v46 = vmul.f32 %v7773_v35, %v7626_v37 }
  0xd4   :  { %13661 = vst [vmem:[#allocation34_spill] sm:$0xff] %v7854_v40  ;;  %v13361_v20 = vrot.slane %v7854_v40, 2 }
  0xd5   :  { %13663 = vst [vmem:[#allocation36_spill] sm:$0xff] %v7891_v46 }
  0xd6   :  { %534 = vrot.lane.b32.xlu1 %v519_v54, %s7456_s0  ;;  %536 = vrot.lane.b32.xlu0 %v520_v55, %s7456_s0  ;;  %v7817_v54 = vmul.f32 %v7694_v6, %v7644_v48  ;;  %v7821_v55 = vmul.f32 %v7696_v7, %v7644_v48  ;;  %v8316_v6 = vstv %s6673_s26  ;;  %s8726_s26 = sld [smem:[#allocation6 + $0x19]] }
  0xd7   :  { %13718 = vst [vmem:[#allocation77_spill] sm:$0xff] %v8316_v6 }
  0xd8   :  { %13658 = vst [vmem:[#allocation31_spill] sm:$0xff] %v7817_v54  ;;  %13659 = vst [vmem:[#allocation32_spill] sm:$0xff] %v7821_v55 }
  0xda   :  { %538 = vrot.lane.b32.xlu1 %v521_v57, %s7456_s0  ;;  %566 = vrot.lane.b32.xlu0 %v554_v58, %s7456_s0  ;;  %v328_v57 = vadd.f32 %v316_v53, %v235_v49  ;;  %v423_v58 = vrot.slane %v409_v50, 2  ;;  %v13348_v49 = vrot.slane %v7821_v55, 2  ;;  %v13354_v53 = vrot.slane %v7833_v56, 2 }
  0xde   :  { %568 = vrot.lane.b32.xlu1 %v555_v59, %s7456_s0  ;;  %570 = vrot.lane.b32.xlu0 %v556_v60, %s7456_s0  ;;  %v13342_v59 = vrot.slane %v7808_v51, 2  ;;  %v13349_v60 = vrot.slane %v7784_v38, 2 }
  0xe0   :  { %v425_v32 = vsel %vm381_vm4, %v423_v58, %v13342_v59  ;;  %v13359_v59 = vrot.slane %v7850_v39, 1 }
  0xe1   :  { %v7858_v45 = vadd.f32 %v425_v32, %v328_v57  ;;  %v592_v57 = vmul.f32 %v7668_v61, %v7618_v30  ;;  %v7875_v32 = vmul.f32 %v7732_v18, %v7644_v48 }
  0xe2   :  { %572 = vrot.lane.b32.xlu1 %v557_v62, %s7456_s0  ;;  %574 = vrot.lane.b32.xlu0 %v558_v63, %s7456_s0  ;;  %v7839_v62 = vmul.f32 %v7730_v17, %v7644_v48  ;;  %v13346_v63 = vrot.slane %v7817_v54, 1 }
  0xe4   :  { %v13352_v58 = vrot.slane %v7839_v62, 2 }
  0xe6   :  { %576 = vrot.lane.b32.xlu1 %v559_v2, %s7456_s0  ;;  %618 = vrot.lane.b32.xlu0 %v607_v3, %s7456_s0  ;;  %v237_v2 = vmul.f32 %v7752_v24, %v7644_v48 }
  0xe8   :  { %v330_v50 = vadd.f32 %v13346_v63, %v237_v2  ;;  %v596_v2 = vmul.f32 %v7668_v61, %v7638_v43  ;;  %v605_v63 = vrot.slane %v593_v44, 1  ;;  %v13360_v44 = vrot.slane %v7891_v46, 2 }
  0xea   :  { %624 = vrot.lane.b32.xlu1 %v612_v12, %s7456_s0  ;;  %666 = vrot.lane.b32.xlu0 %v13357_v13, %s7456_s0  ;;  %v7881_v29 = vadd.f32 %v13348_v49, %v330_v50  ;;  %v595_v50 = vmul.f32 %v7668_v61, %v7636_v42  ;;  %v641_v49 = vmul.f32 %v7678_v1, %v7624_v34 }
  0xee   :  { %672 = vrot.lane.b32.xlu1 %v13356_v26, %s7456_s0  ;;  %714 = vrot.lane.b32.xlu0 %v13355_v23, %s7456_s0  ;;  %v608_v26 = vsel %vm272_vm3, %v605_v63, %v607_v3  ;;  %v644_v3 = vmul.f32 %v7678_v1, %v7638_v43 }
  0xf2   :  { %720 = vrot.lane.b32.xlu1 %v13353_v47, %s7456_s0  ;;  %762 = vrot.lane.b32.xlu0 %v13351_v36, %s7456_s0  ;;  %v640_v36 = vmul.f32 %v7678_v1, %v7618_v30  ;;  %v13362_v47 = vrot.slane %v7875_v32, 2 }
  0xf6   :  { %768 = vrot.lane.b32.xlu1 %v13350_v31, %s7456_s0  ;;  %810 = vrot.lane.b32.xlu0 %v13349_v60, %s7456_s0  ;;  %v13358_v60 = vrot.slane %v7887_v28, 1  ;;  %v604_v31 = vrot.slane %v592_v57, 1  ;;  %v458_v57 = vsel %vm381_vm4, %v13361_v20, %v13360_v44  ;;  %v7935_v44 = vmul.f32 %v7755_v25, %v7638_v43 }
  0xf8   :  { %v349_v61 = vsel %vm272_vm3, %v13359_v59, %v13358_v60  ;;  %v606_v23 = vsel %vm272_vm3, %v604_v31, %v605_v63  ;;  %v609_v60 = vrot.slane %v595_v50, 1  ;;  %v653_v59 = vrot.slane %v641_v49, 1  ;;  %13665 = vst [vmem:[#allocation38_spill] sm:$0xff] %v7935_v44 }
  0xf9   :  { %v13368_v49 = vrot.slane %v7935_v44, 1  ;;  %v459_v50 = vrot.slane %v445_v0, 2  ;;  %v8227_v44 = vstv %s6663_s22  ;;  %s8679_s22 = sld [smem:[#allocation12 + $0x16]] }
  0xfa   :  { %816 = vrot.lane.b32.xlu1 %v13352_v58, %s7456_s0  ;;  %858 = vrot.lane.b32.xlu0 %v13354_v53, %s7456_s0  ;;  %v247_v58 = vmul.f32 %v7894_v19, %v7624_v34  ;;  %v610_v53 = vrot.slane %v596_v2, 1  ;;  %v336_v2 = vmul.f32 %v7755_v25, %v7636_v42  ;;  %13699 = vst [vmem:[#allocation62_spill] sm:$0xff] %v8227_v44 }
  0xfc   :  { %v362_v13 = vadd.f32 %v349_v61, %v247_v58  ;;  %v350_v31 = vrot.slane %v336_v2, 1  ;;  %v7945_v58 = vmul.f32 %v7773_v35, %v7638_v43  ;;  %v7953_v61 = vmul.f32 %v7755_v25, %v7644_v48 }
  0xfd   :  { %v7960_v2 = vmul.f32 %v7773_v35, %v7644_v48 }
  0xfe   :  { %864 = vrot.lane.b32.xlu1 %v13362_v47, %s7456_s0  ;;  %614 = vrot.lane.b32.xlu0 %v606_v23, %s7456_s0  ;;  %v7941_v63 = vadd.f32 %v458_v57, %v362_v13  ;;  %13666 = vst [vmem:[#allocation39_spill] sm:$0xff] %v7945_v58  ;;  %v613_v23 = vsel %vm272_vm3, %v610_v53, %v612_v12  ;;  %13667 = vst [vmem:[#allocation40_spill] sm:$0xff] %v7953_v61  ;;  %v13366_v57 = vrot.slane %v7945_v58, 2 }
  0xff   :  { %v249_v13 = vmul.f32 %v7894_v19, %v7636_v42  ;;  %13668 = vst [vmem:[#allocation41_spill] sm:$0xff] %v7960_v2  ;;  %v652_v12 = vrot.slane %v640_v36, 1  ;;  %v352_v0 = vsel %vm272_vm3, %v350_v31, %v13368_v49  ;;  %v13369_v20 = vrot.slane %v7953_v61, 1 }
 0x100   :  { %v461_v46 = vsel %vm381_vm4, %v459_v50, %v13366_v57  ;;  %v658_v31 = vrot.slane %v644_v3, 1  ;;  %v8225_v19 = vstv %s6660_s7  ;;  %s216_s7 = sld [smem:[#allocation6]] }
 0x101   :  { %v364_v47 = vadd.f32 %v352_v0, %v249_v13  ;;  %v654_v40 = vsel %vm272_vm3, %v652_v12, %v653_v59  ;;  %v366_v36 = vadd.f32 %v13369_v20, %v251_v4  ;;  %v643_v13 = vmul.f32 %v7678_v1, %v7636_v42  ;;  %13698 = vst [vmem:[#allocation61_spill] sm:$0xff] %v8225_v19 }
 0x102   :  { %616 = vrot.lane.b32.xlu1 %v608_v26, %s7456_s0  ;;  %622 = vrot.lane.b32.xlu0 %v613_v23, %s7456_s0  ;;  %v13367_v26 = vrot.slane %v7960_v2, 2  ;;  %v611_v23 = vsel %vm272_vm3, %v609_v60, %v610_v53  ;;  %v688_v12 = vmul.f32 %v7704_v8, %v7618_v30  ;;  %v13671_v4 = vrot.slane %v7692_v5, 1 }
 0x103   :  { %v7982_v0 = vadd.f32 %v461_v46, %v364_v47  ;;  %v13672_v53 = vrot.slane %v7722_v14, 1  ;;  %v657_v46 = vrot.slane %v643_v13, 1  ;;  %v701_v47 = vrot.slane %v689_v22, 1 }
 0x104   :  { %v7988_v50 = vadd.f32 %v13367_v26, %v366_v36  ;;  %v656_v60 = vsel %vm272_vm3, %v653_v59, %v13671_v4  ;;  %v700_v3 = vrot.slane %v688_v12, 1  ;;  %v737_v36 = vmul.f32 %v7724_v15, %v7624_v34 }
 0x105   :  { %13669 = vst [vmem:[#allocation42_spill] sm:$0xff] %v7982_v0  ;;  %v661_v1 = vsel %vm272_vm3, %v658_v31, %v13672_v53  ;;  %v659_v5 = vsel %vm272_vm3, %v657_v46, %v658_v31  ;;  %v736_v22 = vmul.f32 %v7724_v15, %v7618_v30  ;;  %v13673_v13 = vrot.slane %v7716_v11, 1 }
 0x106   :  { %620 = vrot.lane.b32.xlu1 %v611_v23, %s7456_s0  ;;  %662 = vrot.lane.b32.xlu0 %v654_v40, %s7456_s0  ;;  %13670 = vst [vmem:[#allocation43_spill] sm:$0xff] %v7988_v50  ;;  %v692_v40 = vmul.f32 %v7704_v8, %v7638_v43  ;;  %v702_v59 = vsel %vm272_vm3, %v700_v3, %v701_v47  ;;  %v13674_v4 = vrot.slane %v7760_v27, 1  ;;  %v749_v53 = vrot.slane %v737_v36, 2 }
 0x107   :  { %v691_v23 = vmul.f32 %v7704_v8, %v7636_v42  ;;  %v704_v12 = vsel %vm272_vm3, %v701_v47, %v13673_v13  ;;  %v740_v8 = vmul.f32 %v7724_v15, %v7638_v43  ;;  %v785_v46 = vmul.f32 %v7730_v17, %v7624_v34 }
 0x108   :  { %v706_v14 = vrot.slane %v692_v40, 1  ;;  %v739_v40 = vmul.f32 %v7724_v15, %v7636_v42  ;;  %v784_v3 = vmul.f32 %v7730_v17, %v7618_v30  ;;  %v788_v15 = vmul.f32 %v7730_v17, %v7638_v43 }
 0x109   :  { %v754_v27 = vrot.slane %v740_v8, 2  ;;  %v797_v36 = vrot.slane %v785_v46, 2  ;;  %v832_v8 = vmul.f32 %v7732_v18, %v7618_v30  ;;  %v8058_v46 = vstv %s6662_s17  ;;  %s8430_s17 = sld [smem:[#allocation12 + $0x11]] }
 0x10a   :  { %664 = vrot.lane.b32.xlu1 %v656_v60, %s7456_s0  ;;  %670 = vrot.lane.b32.xlu0 %v661_v1, %s7456_s0  ;;  %v709_v31 = vsel %vm272_vm3, %v706_v14, %v13674_v4  ;;  %v705_v60 = vrot.slane %v691_v23, 1  ;;  %v748_v1 = vrot.slane %v736_v22, 2  ;;  %v753_v22 = vrot.slane %v739_v40, 2  ;;  %13678 = vst [vmem:[#allocation45_spill] sm:$0xff] %v8058_v46 }
 0x10b   :  { %v796_v13 = vrot.slane %v784_v3, 2 }
 0x10c   :  { %v707_v11 = vsel %vm272_vm3, %v705_v60, %v706_v14  ;;  %v750_v47 = vsel %vm381_vm4, %v748_v1, %v749_v53  ;;  %v13676_v14 = vrot.slane %v7798_v41, 2  ;;  %v802_v41 = vrot.slane %v788_v15, 2 }
 0x10d   :  { %v798_v4 = vsel %vm381_vm4, %v796_v13, %v797_v36  ;;  %v836_v60 = vmul.f32 %v7732_v18, %v7638_v43  ;;  %v8056_v1 = vstv %s6659_s16  ;;  %v8084_v15 = vstv %s6656_s18  ;;  %s8423_s16 = sld [smem:[#allocation6 + $0x11]] }
 0x10e   :  { %668 = vrot.lane.b32.xlu1 %v659_v5, %s7456_s0  ;;  %710 = vrot.lane.b32.xlu0 %v702_v59, %s7456_s0  ;;  %v13675_v5 = vrot.slane %v7728_v16, 2  ;;  %v757_v23 = vsel %vm381_vm4, %v754_v27, %v13676_v14  ;;  %v755_v16 = vsel %vm381_vm4, %v753_v22, %v754_v27  ;;  %13677 = vst [vmem:[#allocation44_spill] sm:$0xff] %v8056_v1  ;;  %v13680_v27 = vrot.slane %v7839_v62, 2  ;;  %v8080_v62 = vld [vmem:[#allocation2 + $0x68] sm:$0xff]  ;;  %s8448_s18 = sld [smem:[#allocation14 + $0x11]] }
 0x10f   :  { %v835_v22 = vmul.f32 %v7732_v18, %v7636_v42  ;;  %13683 = vst [vmem:[#allocation48_spill] sm:$0xff] %v8084_v15  ;;  %v8245_v33 = vmul.f32 %v8227_v44, %v8080_v62 }
 0x110   :  { %v752_v59 = vsel %vm381_vm4, %v749_v53, %v13675_v5  ;;  %v8052_v53 = vld [vmem:[#allocation2 + $0x20] sm:$0xff]  ;;  %v805_v40 = vsel %vm381_vm4, %v802_v41, %v13680_v27 }
 0x111   :  { %v8072_v14 = vmul.f32 %v8056_v1, %v8052_v53  ;;  %13703 = vst [vmem:[#allocation65_spill] sm:$0xff] %v8245_v33 }
 0x112   :  { %712 = vrot.lane.b32.xlu1 %v704_v12, %s7456_s0  ;;  %718 = vrot.lane.b32.xlu0 %v709_v31, %s7456_s0  ;;  %v833_v12 = vmul.f32 %v7732_v18, %v7624_v34  ;;  %v787_v31 = vmul.f32 %v7730_v17, %v7636_v42  ;;  %v13679_v17 = vrot.slane %v7784_v38, 2  ;;  %v8076_v38 = vmul.f32 %v8058_v46, %v8052_v53 }
 0x113   :  { %13681 = vst [vmem:[#allocation46_spill] sm:$0xff] %v8072_v14  ;;  %v13375_v13 = vrot.slane %v8072_v14, 1  ;;  %v13686_v18 = vrot.slane %v7833_v56, 2  ;;  %v8114_v56 = vmul.f32 %v8056_v1, %v8080_v62 }
 0x114   :  { %v801_v3 = vrot.slane %v787_v31, 2  ;;  %v845_v5 = vrot.slane %v833_v12, 2  ;;  %13682 = vst [vmem:[#allocation47_spill] sm:$0xff] %v8076_v38  ;;  %v13374_v31 = vrot.slane %v8076_v38, 2 }
 0x115   :  { %13688 = vst [vmem:[#allocation51_spill] sm:$0xff] %v8114_v56  ;;  %v13372_v26 = vrot.slane %v8114_v56, 1 }
 0x116   :  { %716 = vrot.lane.b32.xlu1 %v707_v11, %s7456_s0  ;;  %758 = vrot.lane.b32.xlu0 %v750_v47, %s7456_s0  ;;  %v8060_v11 = vld [vmem:[#allocation2 + $0x28] sm:$0x3f]  ;;  %v800_v47 = vsel %vm381_vm4, %v797_v36, %v13679_v17  ;;  %v844_v36 = vrot.slane %v832_v8, 2  ;;  %v848_v8 = vsel %vm381_vm4, %v845_v5, %v13686_v18  ;;  %v13687_v17 = vrot.slane %v7875_v32, 2 }
 0x117   :  { %v8089_v12 = vmul.f32 %v8056_v1, %v8060_v11 }
 0x119   :  { %13684 = vst [vmem:[#allocation49_spill] sm:$0xff] %v8089_v12  ;;  %v13373_v27 = vrot.slane %v8089_v12, 1 }
 0x11a   :  { %760 = vrot.lane.b32.xlu1 %v752_v59, %s7456_s0  ;;  %766 = vrot.lane.b32.xlu0 %v757_v23, %s7456_s0  ;;  %v850_v59 = vrot.slane %v836_v60, 2  ;;  %v8078_v23 = vld [vmem:[#allocation2 + $0x60] sm:$0xff]  ;;  %v8096_v60 = vmul.f32 %v8058_v46, %v8060_v11 }
 0x11b   :  { %v1388_v32 = vsel %vm272_vm3, %v13375_v13, %v13373_v27  ;;  %v1327_v27 = vld [vmem:[#allocation2 + $0x70] sm:$0x3f] }
 0x11c   :  { %13685 = vst [vmem:[#allocation50_spill] sm:$0xff] %v8096_v60  ;;  %v1335_v21 = vmul.f32 %v8084_v15, %v1327_v27 }
 0x11e   :  { %764 = vrot.lane.b32.xlu1 %v755_v16, %s7456_s0  ;;  %806 = vrot.lane.b32.xlu0 %v798_v4, %s7456_s0  ;;  %v803_v16 = vsel %vm381_vm4, %v801_v3, %v802_v41  ;;  %v846_v4 = vsel %vm381_vm4, %v844_v36, %v845_v5  ;;  %v853_v41 = vsel %vm381_vm4, %v850_v59, %v13687_v17  ;;  %v13370_v3 = vrot.slane %v8096_v60, 2 }
 0x11f   :  { %v1375_v36 = vmul.f32 %v8056_v1, %v8078_v23  ;;  %v849_v5 = vrot.slane %v835_v22, 2  ;;  %v1333_v17 = vmul.f32 %v8084_v15, %v8078_v23 }
 0x120   :  { %v1496_v22 = vsel %vm381_vm4, %v13374_v31, %v13370_v3  ;;  %v993_v31 = vstv %s6650_s4  ;;  %s6696_s4 = sld [smem:[#allocation6 + $0x16]] }
 0x121   :  { %v1389_v57 = vrot.slane %v1375_v36, 1  ;;  %v998_v35 = vmul.f32 %v993_v31, %v7638_v43  ;;  %v999_v39 = vmul.f32 %v993_v31, %v7644_v48 }
 0x122   :  { %808 = vrot.lane.b32.xlu1 %v800_v47, %s7456_s0  ;;  %814 = vrot.lane.b32.xlu0 %v805_v40, %s7456_s0  ;;  %v879_v47 = vstv %s6647_s19  ;;  %v1331_v40 = vmul.f32 %v8084_v15, %v8052_v53  ;;  %s6665_s19 = sld [smem:[#allocation6 + $0xa]] }
 0x123   :  { %v1391_v3 = vsel %vm272_vm3, %v1389_v57, %v13372_v26  ;;  %v1014_v54 = vrot.slane %v999_v39, 1  ;;  %v13711_v39 = vrot.slane %v8245_v33, 2  ;;  %v8297_v33 = vstv %s8256_s25  ;;  %s8697_s25 = sld [smem:[#allocation14 + $0x16]] }
 0x124   :  { %v1401_v18 = vadd.f32 %v1388_v32, %v1331_v40  ;;  %v880_v32 = vmul.f32 %v879_v47, %v7618_v30  ;;  %13714 = vst [vmem:[#allocation73_spill] sm:$0xff] %v8297_v33 }
 0x126   :  { %812 = vrot.lane.b32.xlu1 %v803_v16, %s7456_s0  ;;  %854 = vrot.lane.b32.xlu0 %v846_v4, %s7456_s0  ;;  %v1483_v16 = vmul.f32 %v8058_v46, %v8078_v23  ;;  %v8125_v4 = vmul.f32 %v8058_v46, %v8080_v62  ;;  %v8138_v40 = vadd.f32 %v1496_v22, %v1401_v18 }
 0x127   :  { %v881_v18 = vmul.f32 %v879_v47, %v7624_v34  ;;  %v882_v22 = vmul.f32 %v879_v47, %v7626_v37 }
 0x128   :  { %13689 = vst [vmem:[#allocation52_spill] sm:$0xff] %v8125_v4  ;;  %v1497_v49 = vrot.slane %v1483_v16, 2  ;;  %v13371_v20 = vrot.slane %v8125_v4, 2  ;;  %13690 = vst [vmem:[#allocation53_spill] sm:$0xff] %v8138_v40 }
 0x12a   :  { %856 = vrot.lane.b32.xlu1 %v848_v8, %s7456_s0  ;;  %862 = vrot.lane.b32.xlu0 %v853_v41, %s7456_s0  ;;  %v1499_v36 = vsel %vm381_vm4, %v1497_v49, %v13371_v20  ;;  %v851_v8 = vsel %vm381_vm4, %v849_v5, %v850_v59  ;;  %v1403_v41 = vadd.f32 %v1391_v3, %v1333_v17  ;;  %v917_v3 = vstv %s6648_s9  ;;  %s6632_s9 = sld [smem:[#allocation6 + $0x3]] }
 0x12b   :  { %v883_v49 = vmul.f32 %v879_v47, %v7636_v42  ;;  %v884_v59 = vmul.f32 %v879_v47, %v7638_v43 }
 0x12c   :  { %v8150_v16 = vadd.f32 %v1499_v36, %v1403_v41  ;;  %v918_v36 = vmul.f32 %v917_v3, %v7618_v30 }
 0x12e   :  { %860 = vrot.lane.b32.xlu1 %v851_v8, %s7456_s0  ;;  %892 = vrot.lane.b32.xlu0 %v880_v32, %s7457_s20  ;;  %13691 = vst [vmem:[#allocation54_spill] sm:$0xff] %v8150_v16  ;;  %v885_v32 = vmul.f32 %v879_v47, %v7644_v48  ;;  %v1089_v16 = vstv %s6652_s27  ;;  %s8749_s27 = sld [smem:[#allocation12 + $0x19]] }
 0x12f   :  { %v1095_v38 = vmul.f32 %v1089_v16, %v7644_v48 }
 0x130   :  { %v8154_v57 = vpop.permute.xlu0 %490 }
 0x131   :  { %v1110_v14 = vrot.slane %v1095_v38, 1 }
 0x132   :  { %894 = vrot.lane.b32.xlu1 %v881_v18, %s7457_s20  ;;  %896 = vrot.lane.b32.xlu0 %v882_v22, %s7457_s20  ;;  %v919_v18 = vmul.f32 %v917_v3, %v7624_v34  ;;  %v920_v22 = vmul.f32 %v917_v3, %v7626_v37 }
 0x134   :  { %v8162_v5 = vpop.permute.xlu1 %492  ;;  %v8164_v17 = vpop.permute.xlu0 %494 }
 0x136   :  { %898 = vrot.lane.b32.xlu1 %v883_v49, %s7457_s20  ;;  %900 = vrot.lane.b32.xlu0 %v884_v59, %s7457_s20  ;;  %v921_v59 = vmul.f32 %v917_v3, %v7636_v42 }
 0x13a   :  { %902 = vrot.lane.b32.xlu1 %v885_v32, %s7457_s20  ;;  %930 = vrot.lane.b32.xlu0 %v918_v36, %s7457_s20  ;;  %v922_v32 = vmul.f32 %v917_v3, %v7638_v43  ;;  %v955_v36 = vstv %s6649_s21  ;;  %s6635_s21 = sld [smem:[#allocation6 + $0x6]] }
 0x13b   :  { %v959_v2 = vmul.f32 %v955_v36, %v7636_v42  ;;  %v960_v51 = vmul.f32 %v955_v36, %v7638_v43 }
 0x13c   :  { %v8170_v8 = vpop.permute.xlu1 %496  ;;  %v8172_v41 = vpop.permute.xlu0 %498 }
 0x13e   :  { %932 = vrot.lane.b32.xlu1 %v919_v18, %s7457_s20  ;;  %934 = vrot.lane.b32.xlu0 %v920_v22, %s7457_s20  ;;  %v923_v18 = vmul.f32 %v917_v3, %v7644_v48  ;;  %v956_v22 = vmul.f32 %v955_v36, %v7618_v30  ;;  %v995_v3 = vmul.f32 %v993_v31, %v7624_v34 }
 0x140   :  { %v8178_v47 = vpop.permute.xlu1 %500  ;;  %v8180_v49 = vpop.permute.xlu0 %528  ;;  %v1007_v55 = vrot.slane %v995_v3, 1 }
 0x141   :  { %13692 = vst [vmem:[#allocation55_spill] sm:$0xff] %v8180_v49  ;;  %v8202_v49 = vmul.f32 %v8056_v1, %v1327_v27 }
 0x142   :  { %936 = vrot.lane.b32.xlu1 %v921_v59, %s7457_s20  ;;  %938 = vrot.lane.b32.xlu0 %v922_v32, %s7457_s20  ;;  %v957_v32 = vmul.f32 %v955_v36, %v7624_v34 }
 0x143   :  { %13695 = vst [vmem:[#allocation58_spill] sm:$0xff] %v8202_v49 }
 0x144   :  { %v8186_v20 = vpop.permute.xlu1 %530  ;;  %v8188_v26 = vpop.permute.xlu0 %532 }
 0x145   :  { %13693 = vst [vmem:[#allocation56_spill] sm:$0xff] %v8188_v26  ;;  %v958_v26 = vmul.f32 %v955_v36, %v7626_v37 }
 0x146   :  { %940 = vrot.lane.b32.xlu1 %v923_v18, %s7457_s20  ;;  %968 = vrot.lane.b32.xlu0 %v956_v22, %s7457_s20  ;;  %v994_v18 = vmul.f32 %v993_v31, %v7618_v30  ;;  %v8208_v22 = vmul.f32 %v8058_v46, %v1327_v27  ;;  %v8239_v27 = vmul.f32 %v8225_v19, %v8080_v62 }
 0x148   :  { %v8194_v13 = vpop.permute.xlu1 %534  ;;  %v8196_v59 = vpop.permute.xlu0 %536  ;;  %13696 = vst [vmem:[#allocation59_spill] sm:$0xff] %v8208_v22  ;;  %v1006_v10 = vrot.slane %v994_v18, 1  ;;  %v13701_v18 = vrot.slane %v8202_v49, 1  ;;  %13702 = vst [vmem:[#allocation64_spill] sm:$0xff] %v8239_v27 }
 0x149   :  { %13694 = vst [vmem:[#allocation57_spill] sm:$0xff] %v8196_v59 }
 0x14a   :  { %970 = vrot.lane.b32.xlu1 %v957_v32, %s7457_s20  ;;  %972 = vrot.lane.b32.xlu0 %v958_v26, %s7457_s20  ;;  %v996_v26 = vmul.f32 %v993_v31, %v7626_v37  ;;  %v1405_v28 = vadd.f32 %v13701_v18, %v1335_v21 }
 0x14c   :  { %v8212_v59 = vpop.permute.xlu1 %538  ;;  %v8214_v58 = vpop.permute.xlu0 %566  ;;  %v1009_v61 = vrot.slane %v996_v26, 1  ;;  %v1041_v26 = vstv %s8210_s23  ;;  %s8689_s23 = sld [smem:[#allocation12 + $0x9]] }
 0x14d   :  { %13697 = vst [vmem:[#allocation60_spill] sm:$0xff] %v8214_v58  ;;  %v997_v58 = vmul.f32 %v993_v31, %v7636_v42  ;;  %v1043_v24 = vmul.f32 %v1041_v26, %v7624_v34  ;;  %v1044_v25 = vmul.f32 %v1041_v26, %v7626_v37 }
 0x14e   :  { %974 = vrot.lane.b32.xlu1 %v959_v2, %s7457_s20  ;;  %976 = vrot.lane.b32.xlu0 %v960_v51, %s7457_s20  ;;  %v961_v2 = vmul.f32 %v955_v36, %v7644_v48  ;;  %v1008_v51 = vsel %vm272_vm3, %v1006_v10, %v1007_v55  ;;  %v13704_v10 = vrot.slane %v8208_v22, 2 }
 0x14f   :  { %v1011_v36 = vrot.slane %v997_v58, 1  ;;  %v1012_v58 = vrot.slane %v998_v35, 1  ;;  %v13709_v35 = vrot.slane %v8239_v27, 1  ;;  %v8293_v27 = vstv %s8253_s24  ;;  %s8691_s24 = sld [smem:[#allocation12 + $0xa]] }
 0x150   :  { %v8229_v3 = vpop.permute.xlu1 %568  ;;  %v8231_v32 = vpop.permute.xlu0 %570  ;;  %v8251_v21 = vadd.f32 %v13704_v10, %v1405_v28  ;;  %v1519_v28 = vmul.f32 %v8227_v44, %v8078_v23  ;;  %v1010_v10 = vsel %vm272_vm3, %v1007_v55, %v1009_v61  ;;  %13713 = vst [vmem:[#allocation72_spill] sm:$0xff] %v8293_v27 }
 0x151   :  { %13700 = vst [vmem:[#allocation63_spill] sm:$0xff] %v8231_v32 }
 0x152   :  { %978 = vrot.lane.b32.xlu1 %v961_v2, %s7457_s20  ;;  %1016 = vrot.lane.b32.xlu0 %v1008_v51, %s7457_s20  ;;  %13705 = vst [vmem:[#allocation66_spill] sm:$0xff] %v8251_v21  ;;  %v1411_v51 = vmul.f32 %v8225_v19, %v8078_v23  ;;  %v1533_v2 = vrot.slane %v1519_v28, 2  ;;  %v1015_v28 = vsel %vm272_vm3, %v1012_v58, %v1014_v54 }
 0x154   :  { %v8258_v18 = vpop.permute.xlu1 %572  ;;  %v8260_v31 = vpop.permute.xlu0 %574  ;;  %v1425_v32 = vrot.slane %v1411_v51, 1  ;;  %v1013_v51 = vsel %vm272_vm3, %v1011_v36, %v1012_v58  ;;  %v1046_v58 = vmul.f32 %v1041_v26, %v7638_v43 }
 0x155   :  { %13706 = vst [vmem:[#allocation67_spill] sm:$0xff] %v8258_v18  ;;  %13707 = vst [vmem:[#allocation68_spill] sm:$0xff] %v8260_v31  ;;  %v1042_v31 = vmul.f32 %v1041_v26, %v7618_v30 }
 0x156   :  { %1018 = vrot.lane.b32.xlu1 %v1010_v10, %s7457_s20  ;;  %1020 = vrot.lane.b32.xlu0 %v1009_v61, %s7457_s20  ;;  %v8280_v55 = vsel %vm272_vm3, %v1425_v32, %v13709_v35  ;;  %v8285_v61 = vsel %vm381_vm4, %v1533_v2, %v13711_v39  ;;  %v1055_v10 = vrot.slane %v1043_v24, 1  ;;  %v1045_v35 = vmul.f32 %v1041_v26, %v7636_v42 }
 0x157   :  { %13710 = vst [vmem:[#allocation70_spill] sm:$0xff] %v8280_v55  ;;  %13712 = vst [vmem:[#allocation71_spill] sm:$0xff] %v8285_v61  ;;  %v1054_v32 = vrot.slane %v1042_v31, 1  ;;  %v8301_v2 = vmul.f32 %v8293_v27, %v8080_v62  ;;  %v1047_v39 = vmul.f32 %v1041_v26, %v7644_v48  ;;  %v1447_v26 = vmul.f32 %v8293_v27, %v8078_v23 }
 0x158   :  { %v8273_v7 = vpop.permute.xlu1 %576  ;;  %v8275_v9 = vpop.permute.xlu0 %618  ;;  %v1059_v21 = vrot.slane %v1045_v35, 1  ;;  %v1060_v22 = vrot.slane %v1046_v58, 1  ;;  %v1091_v35 = vmul.f32 %v1089_v16, %v7624_v34  ;;  %v8515_v27 = vstv %s8448_s18  ;;  %s8938_s18 = sld [smem:[#allocation14 + $0x18]] }
 0x159   :  { %13708 = vst [vmem:[#allocation69_spill] sm:$0xff] %v8273_v7  ;;  %13715 = vst [vmem:[#allocation74_spill] sm:$0xff] %v8301_v2  ;;  %v1056_v31 = vsel %vm272_vm3, %v1054_v32, %v1055_v10  ;;  %v1062_v32 = vrot.slane %v1047_v39, 1  ;;  %v1461_v60 = vrot.slane %v1447_v26, 1  ;;  %v1090_v39 = vmul.f32 %v1089_v16, %v7618_v30 }
 0x15a   :  { %1022 = vrot.lane.b32.xlu1 %v1013_v51, %s7457_s20  ;;  %1024 = vrot.lane.b32.xlu0 %v1015_v28, %s7457_s20  ;;  %v8311_v51 = vmul.f32 %v8297_v33, %v8080_v62  ;;  %v1057_v28 = vrot.slane %v1044_v25, 1  ;;  %v13721_v25 = vrot.slane %v8301_v2, 1  ;;  %v1061_v49 = vsel %vm272_vm3, %v1059_v21, %v1060_v22  ;;  %13751 = vst [vmem:[#allocation107_spill] sm:$0xff] %v8515_v27 }
 0x15b   :  { %v1063_v26 = vsel %vm272_vm3, %v1060_v22, %v1062_v32  ;;  %v1092_v2 = vmul.f32 %v1089_v16, %v7626_v37  ;;  %v1102_v22 = vrot.slane %v1090_v39, 1  ;;  %v8527_v0 = vmul.f32 %v8515_v27, %v8080_v62 }
 0x15c   :  { %v8303_v36 = vpop.permute.xlu1 %624  ;;  %v8305_v24 = vpop.permute.xlu0 %666  ;;  %13717 = vst [vmem:[#allocation76_spill] sm:$0xff] %v8311_v51 }
 0x15d   :  { %13716 = vst [vmem:[#allocation75_spill] sm:$0xff] %v8305_v24  ;;  %v8332_v24 = vmul.f32 %v8316_v6, %v8052_v53  ;;  %v1105_v12 = vrot.slane %v1092_v2, 1  ;;  %13752 = vst [vmem:[#allocation108_spill] sm:$0xff] %v8527_v0 }
 0x15e   :  { %1026 = vrot.lane.b32.xlu1 %v1014_v54, %s7457_s20  ;;  %1064 = vrot.lane.b32.xlu0 %v1056_v31, %s7457_s20  ;;  %v1555_v54 = vmul.f32 %v8297_v33, %v8078_v23  ;;  %v1058_v31 = vsel %vm272_vm3, %v1055_v10, %v1057_v28  ;;  %v8487_v33 = vstv %s8423_s16  ;;  %s8898_s16 = sld [smem:[#allocation6 + $0x12]] }
 0x15f   :  { %13720 = vst [vmem:[#allocation79_spill] sm:$0xff] %v8332_v24  ;;  %13745 = vst [vmem:[#allocation101_spill] sm:$0xff] %v8487_v33 }
 0x160   :  { %v8321_v40 = vpop.permute.xlu1 %672  ;;  %v8323_v4 = vpop.permute.xlu0 %714  ;;  %v1569_v58 = vrot.slane %v1555_v54, 2  ;;  %v1103_v54 = vrot.slane %v1091_v35, 1  ;;  %v1093_v35 = vmul.f32 %v1089_v16, %v7636_v42 }
 0x161   :  { %13719 = vst [vmem:[#allocation78_spill] sm:$0xff] %v8323_v4  ;;  %v8340_v4 = vsel %vm272_vm3, %v1461_v60, %v13721_v25  ;;  %v8357_v25 = vmul.f32 %v8316_v6, %v8060_v11 }
 0x162   :  { %1066 = vrot.lane.b32.xlu1 %v1058_v31, %s7457_s20  ;;  %1068 = vrot.lane.b32.xlu0 %v1057_v28, %s7457_s20  ;;  %13722 = vst [vmem:[#allocation80_spill] sm:$0xff] %v8340_v4  ;;  %v13724_v31 = vrot.slane %v8311_v51, 2  ;;  %v1104_v60 = vsel %vm272_vm3, %v1102_v22, %v1103_v54  ;;  %v1107_v15 = vrot.slane %v1093_v35, 1  ;;  %v1137_v22 = vstv %s6653_s28  ;;  %s8768_s28 = sld [smem:[#allocation9]] }
 0x163   :  { %13726 = vst [vmem:[#allocation83_spill] sm:$0xff] %v8357_v25  ;;  %v13412_v21 = vrot.slane %v8357_v25, 2  ;;  %v1106_v2 = vsel %vm272_vm3, %v1103_v54, %v1105_v12  ;;  %v1139_v46 = vmul.f32 %v1137_v22, %v7624_v34  ;;  %v8463_v4 = vstv %s8411_s30  ;;  %s8883_s30 = sld [smem:[#allocation12 + $0x15]] }
 0x164   :  { %v8342_v10 = vpop.permute.xlu1 %720  ;;  %v8344_v56 = vpop.permute.xlu0 %762  ;;  %v8351_v28 = vsel %vm381_vm4, %v1569_v58, %v13724_v31  ;;  %v1094_v31 = vmul.f32 %v1089_v16, %v7638_v43  ;;  %13738 = vst [vmem:[#allocation94_spill] sm:$0xff] %v8463_v4 }
 0x165   :  { %13723 = vst [vmem:[#allocation81_spill] sm:$0xff] %v8342_v10  ;;  %13725 = vst [vmem:[#allocation82_spill] sm:$0xff] %v8351_v28  ;;  %v1151_v38 = vrot.slane %v1139_v46, 2  ;;  %v1143_v46 = vmul.f32 %v1137_v22, %v7644_v48  ;;  %v8460_v28 = vstv %s8409_s5  ;;  %s8786_s5 = sld [smem:[#allocation6 + $0x18]] }
 0x166   :  { %1070 = vrot.lane.b32.xlu1 %v1061_v49, %s7457_s20  ;;  %1072 = vrot.lane.b32.xlu0 %v1063_v26, %s7457_s20  ;;  %v13728_v49 = vrot.slane %v8332_v24, 2  ;;  %v1108_v16 = vrot.slane %v1094_v31, 1  ;;  %13737 = vst [vmem:[#allocation93_spill] sm:$0xff] %v8460_v28 }
 0x167   :  { %v1158_v48 = vrot.slane %v1143_v46, 2  ;;  %v8439_v46 = vld [vmem:[#allocation2 + $0x48] sm:$0xff] }
 0x168   :  { %v8362_v51 = vpop.permute.xlu1 %768  ;;  %v8364_v58 = vpop.permute.xlu0 %810  ;;  %v8375_v39 = vsel %vm381_vm4, %v13728_v49, %v13412_v21  ;;  %v1140_v21 = vmul.f32 %v1137_v22, %v7626_v37  ;;  %v1109_v35 = vsel %vm272_vm3, %v1107_v15, %v1108_v16  ;;  %v1111_v54 = vsel %vm272_vm3, %v1108_v16, %v1110_v14 }
 0x169   :  { %13727 = vst [vmem:[#allocation84_spill] sm:$0xff] %v8364_v58  ;;  %13729 = vst [vmem:[#allocation85_spill] sm:$0xff] %v8375_v39  ;;  %v1142_v15 = vmul.f32 %v1137_v22, %v7638_v43 }
 0x16a   :  { %1074 = vrot.lane.b32.xlu1 %v1062_v32, %s7457_s20  ;;  %1112 = vrot.lane.b32.xlu0 %v1104_v60, %s7457_s20  ;;  %v1138_v32 = vmul.f32 %v1137_v22, %v7618_v30  ;;  %v1153_v31 = vrot.slane %v1140_v21, 2 }
 0x16c   :  { %v8379_v26 = vpop.permute.xlu1 %816  ;;  %v8381_v58 = vpop.permute.xlu0 %858  ;;  %v1150_v34 = vrot.slane %v1138_v32, 2  ;;  %v1185_v32 = vstv %s6654_s29  ;;  %s8778_s29 = sld [smem:[#allocation14 + $0x19]] }
 0x16d   :  { %13730 = vst [vmem:[#allocation86_spill] sm:$0xff] %v8379_v26  ;;  %13731 = vst [vmem:[#allocation87_spill] sm:$0xff] %v8381_v58 }
 0x16e   :  { %1114 = vrot.lane.b32.xlu1 %v1106_v2, %s7457_s20  ;;  %1116 = vrot.lane.b32.xlu0 %v1105_v12, %s7457_s20  ;;  %v1152_v37 = vsel %vm381_vm4, %v1150_v34, %v1151_v38  ;;  %v1141_v2 = vmul.f32 %v1137_v22, %v7636_v42  ;;  %v1154_v42 = vsel %vm381_vm4, %v1151_v38, %v1153_v31  ;;  %v8420_v22 = vld [vmem:[#allocation2 + $0x8] sm:$0xff]  ;;  %v8432_v38 = vld [vmem:[#allocation2] sm:$0xff] }
 0x170   :  { %v8388_v49 = vpop.permute.xlu1 %864  ;;  %v8390_v60 = vpop.permute.xlu0 %614  ;;  %v1155_v43 = vrot.slane %v1141_v2, 2 }
 0x171   :  { %13732 = vst [vmem:[#allocation88_spill] sm:$0xff] %v8388_v49 }
 0x172   :  { %1118 = vrot.lane.b32.xlu1 %v1109_v35, %s7457_s20  ;;  %1120 = vrot.lane.b32.xlu0 %v1111_v54, %s7457_s20  ;;  %v1156_v35 = vrot.slane %v1142_v15, 2  ;;  %v8427_v54 = vld [vmem:[#allocation2 + $0x10] sm:$0x3f] }
 0x173   :  { %v1188_v34 = vmul.f32 %v8427_v54, %v1185_v32 }
 0x174   :  { %v8397_v12 = vpop.permute.xlu1 %616  ;;  %v8399_v30 = vpop.permute.xlu0 %622  ;;  %v1157_v1 = vsel %vm381_vm4, %v1155_v43, %v1156_v35  ;;  %v1159_v25 = vsel %vm381_vm4, %v1156_v35, %v1158_v48  ;;  %v8467_v43 = vmul.f32 %v8460_v28, %v8080_v62  ;;  %v8474_v35 = vstv %s8413_s15  ;;  %s8885_s15 = sld [smem:[#allocation12 + $0x18]] }
 0x175   :  { %v1201_v6 = vrot.slane %v1188_v34, 2  ;;  %13741 = vst [vmem:[#allocation97_spill] sm:$0xff] %v8474_v35  ;;  %v8482_v34 = vmul.f32 %v8474_v35, %v8080_v62 }
 0x176   :  { %1122 = vrot.lane.b32.xlu1 %v1110_v14, %s7457_s20  ;;  %1160 = vrot.lane.b32.xlu0 %v1152_v37, %s7457_s20  ;;  %v1187_v14 = vmul.f32 %v8420_v22, %v1185_v32  ;;  %v1186_v37 = vmul.f32 %v8432_v38, %v1185_v32  ;;  %13739 = vst [vmem:[#allocation95_spill] sm:$0xff] %v8467_v43 }
 0x177   :  { %13744 = vst [vmem:[#allocation100_spill] sm:$0xff] %v8482_v34 }
 0x178   :  { %v8415_v21 = vpop.permute.xlu1 %620  ;;  %v8417_v16 = vpop.permute.xlu0 %662  ;;  %v1199_v39 = vrot.slane %v1187_v14, 2  ;;  %v1198_v49 = vrot.slane %v1186_v37, 2 }
 0x179   :  { %13733 = vst [vmem:[#allocation89_spill] sm:$0xff] %v8415_v21  ;;  %13734 = vst [vmem:[#allocation90_spill] sm:$0xff] %v8417_v16  ;;  %v8446_v16 = vstv %s8401_s3  ;;  %s8784_s3 = sld [smem:[#allocation6 + $0x15]] }
 0x17a   :  { %1162 = vrot.lane.b32.xlu1 %v1154_v42, %s7457_s20  ;;  %1164 = vrot.lane.b32.xlu0 %v1153_v31, %s7457_s20  ;;  %v1189_v31 = vmul.f32 %v8439_v46, %v1185_v32  ;;  %v8442_v42 = vld [vmem:[#allocation2 + $0x50] sm:$0xff]  ;;  %v1200_v37 = vsel %vm381_vm4, %v1198_v49, %v1199_v39  ;;  %v1202_v55 = vsel %vm381_vm4, %v1199_v39, %v1201_v6  ;;  %v8499_v49 = vstv %s8430_s17  ;;  %s8914_s17 = sld [smem:[#allocation14 + $0x15]] }
 0x17b   :  { %v1190_v58 = vmul.f32 %v8442_v42, %v1185_v32  ;;  %13747 = vst [vmem:[#allocation103_spill] sm:$0xff] %v8499_v49  ;;  %v2107_v39 = vmul.f32 %v8460_v28, %v8078_v23  ;;  %v1235_v18 = vmul.f32 %v8420_v22, %v8446_v16  ;;  %v1236_v28 = vmul.f32 %v8427_v54, %v8446_v16 }
 0x17c   :  { %v8435_v2 = vpop.permute.xlu1 %664  ;;  %v8437_v15 = vpop.permute.xlu0 %670  ;;  %v1203_v14 = vrot.slane %v1189_v31, 2  ;;  %v1234_v31 = vmul.f32 %v8432_v38, %v8446_v16 }
 0x17d   :  { %13735 = vst [vmem:[#allocation91_spill] sm:$0xff] %v8435_v2  ;;  %13736 = vst [vmem:[#allocation92_spill] sm:$0xff] %v8437_v15  ;;  %v8452_v15 = vld [vmem:[#allocation2 + $0x58] sm:$0x3f]  ;;  %v1204_v10 = vrot.slane %v1190_v58, 2  ;;  %v2155_v58 = vmul.f32 %v8463_v4, %v8078_v23  ;;  %v13753_v2 = vrot.slane %v8467_v43, 1  ;;  %v8668_v43 = vstv %s6696_s4 }
 0x17e   :  { %v8455_v24 = vmul.f32 %v8452_v15, %v1185_v32  ;;  %1166 = vrot.lane.b32.xlu1 %v1157_v1, %s7457_s20  ;;  %1168 = vrot.lane.b32.xlu0 %v1159_v25, %s7457_s20  ;;  %v8471_v32 = vmul.f32 %v8463_v4, %v8080_v62  ;;  %13792 = vst [vmem:[#allocation142_spill] sm:$0xff] %v8668_v43  ;;  %s9053_s4 = sld [smem:[#allocation6 + $0x1a]] }
 0x17f   :  { %v2169_v4 = vrot.slane %v2155_v58, 1  ;;  %v1205_v26 = vsel %vm381_vm4, %v1203_v14, %v1204_v10 }
 0x180   :  { %13740 = vst [vmem:[#allocation96_spill] sm:$0xff] %v8471_v32  ;;  %v8476_v1 = vpop.permute.xlu1 %668  ;;  %v8478_v25 = vpop.permute.xlu0 %710  ;;  %v1206_v61 = vrot.slane %v8455_v24, 2  ;;  %v2203_v24 = vmul.f32 %v8474_v35, %v8078_v23  ;;  %v2251_v35 = vmul.f32 %v8487_v33, %v8078_v23 }
 0x181   :  { %13742 = vst [vmem:[#allocation98_spill] sm:$0xff] %v8476_v1  ;;  %13743 = vst [vmem:[#allocation99_spill] sm:$0xff] %v8478_v25  ;;  %v8496_v25 = vmul.f32 %v8487_v33, %v8080_v62  ;;  %v13758_v1 = vrot.slane %v8482_v34, 1  ;;  %v2347_v33 = vmul.f32 %v8515_v27, %v8078_v23  ;;  %v368_v27 = vstv %s6635_s21  ;;  %s9010_s21 = sld [smem:[#allocation14 + $0x17]] }
 0x182   :  { %1170 = vrot.lane.b32.xlu1 %v1158_v48, %s7457_s20  ;;  %1208 = vrot.lane.b32.xlu0 %v1200_v37, %s7457_s20  ;;  %v8505_v48 = vmul.f32 %v8499_v49, %v8080_v62  ;;  %v1207_v58 = vsel %vm381_vm4, %v1204_v10, %v1206_v61 }
 0x183   :  { %13746 = vst [vmem:[#allocation102_spill] sm:$0xff] %v8496_v25 }
 0x184   :  { %13748 = vst [vmem:[#allocation104_spill] sm:$0xff] %v8505_v48  ;;  %v8509_v37 = vpop.permute.xlu1 %712  ;;  %v8511_v7 = vpop.permute.xlu0 %718 }
 0x185   :  { %13749 = vst [vmem:[#allocation105_spill] sm:$0xff] %v8509_v37  ;;  %13750 = vst [vmem:[#allocation106_spill] sm:$0xff] %v8511_v7  ;;  %v2121_v7 = vrot.slane %v2107_v39, 1  ;;  %v2217_v37 = vrot.slane %v2203_v24, 1  ;;  %v13756_v24 = vrot.slane %v8471_v32, 1 }
 0x186   :  { %1210 = vrot.lane.b32.xlu1 %v1202_v55, %s7457_s20  ;;  %1212 = vrot.lane.b32.xlu0 %v1201_v6, %s7457_s20  ;;  %v2299_v55 = vmul.f32 %v8499_v49, %v8078_v23 }
 0x187   :  { %v8539_v21 = vsel %vm272_vm3, %v2121_v7, %v13753_v2  ;;  %v8551_v14 = vsel %vm272_vm3, %v2169_v4, %v13756_v24  ;;  %v8556_v50 = vsel %vm272_vm3, %v2217_v37, %v13758_v1  ;;  %v2265_v7 = vrot.slane %v2251_v35, 2 }
 0x188   :  { %13754 = vst [vmem:[#allocation109_spill] sm:$0xff] %v8539_v21  ;;  %v8543_v6 = vpop.permute.xlu1 %716  ;;  %v8545_v39 = vpop.permute.xlu0 %758  ;;  %13757 = vst [vmem:[#allocation111_spill] sm:$0xff] %v8551_v14  ;;  %v1247_v2 = vrot.slane %v1235_v18, 2  ;;  %v2313_v49 = vrot.slane %v2299_v55, 2  ;;  %v13760_v4 = vrot.slane %v8496_v25, 2  ;;  %v1246_v24 = vrot.slane %v1234_v31, 2 }
 0x189   :  { %13755 = vst [vmem:[#allocation110_spill] sm:$0xff] %v8543_v6  ;;  %13759 = vst [vmem:[#allocation112_spill] sm:$0xff] %v8556_v50  ;;  %v13762_v1 = vrot.slane %v8505_v48, 2  ;;  %v2361_v35 = vrot.slane %v2347_v33, 2  ;;  %v1249_v21 = vrot.slane %v1236_v28, 2  ;;  %v1239_v31 = vmul.f32 %v8452_v15, %v8446_v16  ;;  %v8661_v25 = vld [vmem:[#allocation2 + $0x80] sm:$0xff] }
 0x18a   :  { %1214 = vrot.lane.b32.xlu1 %v1205_v26, %s7457_s20  ;;  %1216 = vrot.lane.b32.xlu0 %v1207_v58, %s7457_s20  ;;  %v8566_v10 = vsel %vm381_vm4, %v2265_v7, %v13760_v4  ;;  %v1237_v26 = vmul.f32 %v8439_v46, %v8446_v16  ;;  %v1248_v58 = vsel %vm381_vm4, %v1246_v24, %v1247_v2  ;;  %v259_v50 = vstv %s6632_s9  ;;  %s8987_s9 = sld [smem:[#allocation12 + $0x17]] }
 0x18b   :  { %13761 = vst [vmem:[#allocation113_spill] sm:$0xff] %v8566_v10  ;;  %v8571_v18 = vsel %vm381_vm4, %v2313_v49, %v13762_v1  ;;  %v1238_v7 = vmul.f32 %v8442_v42, %v8446_v16  ;;  %v13765_v49 = vrot.slane %v8527_v0, 2  ;;  %v1250_v24 = vsel %vm381_vm4, %v1247_v2, %v1249_v21 }
 0x18c   :  { %13763 = vst [vmem:[#allocation114_spill] sm:$0xff] %v8571_v18  ;;  %v8573_v37 = vpop.permute.xlu1 %760  ;;  %v8575_v55 = vpop.permute.xlu0 %766  ;;  %v1251_v1 = vrot.slane %v1237_v26, 2  ;;  %v1254_v10 = vrot.slane %v1239_v31, 2  ;;  %v261_v14 = vmul.f32 %v8420_v22, %v259_v50  ;;  %v262_v34 = vmul.f32 %v8427_v54, %v259_v50 }
 0x18d   :  { %13764 = vst [vmem:[#allocation115_spill] sm:$0xff] %v8575_v55  ;;  %v8587_v33 = vsel %vm381_vm4, %v2361_v35, %v13765_v49  ;;  %v1252_v18 = vrot.slane %v1238_v7, 2  ;;  %v264_v6 = vmul.f32 %v8442_v42, %v259_v50 }
 0x18e   :  { %13766 = vst [vmem:[#allocation116_spill] sm:$0xff] %v8587_v33  ;;  %1218 = vrot.lane.b32.xlu1 %v1206_v61, %s7457_s20  ;;  %1256 = vrot.lane.b32.xlu0 %v1248_v58, %s7457_s20  ;;  %v8602_v61 = vld [vmem:[#allocation2 + $0x18] sm:$0xff] }
 0x18f   :  { %13771 = vst [vmem:[#allocation121_spill] sm:$0xff] %v8602_v61  ;;  %v1253_v58 = vsel %vm381_vm4, %v1251_v1, %v1252_v18  ;;  %v1255_v49 = vsel %vm381_vm4, %v1252_v18, %v1254_v10 }
 0x190   :  { %v8591_v28 = vpop.permute.xlu1 %764  ;;  %v8593_v4 = vpop.permute.xlu0 %806 }
 0x191   :  { %13767 = vst [vmem:[#allocation117_spill] sm:$0xff] %v8591_v28  ;;  %13768 = vst [vmem:[#allocation118_spill] sm:$0xff] %v8593_v4  ;;  %v8606_v4 = vstv %s6665_s19  ;;  %s8943_s19 = sld [smem:[#allocation6 + $0x17]] }
 0x192   :  { %1258 = vrot.lane.b32.xlu1 %v1250_v24, %s7457_s20  ;;  %1260 = vrot.lane.b32.xlu0 %v1249_v21, %s7457_s20  ;;  %v1588_v21 = vmul.f32 %v8606_v4, %v8602_v61  ;;  %v1589_v31 = vmul.f32 %v8606_v4, %v8052_v53  ;;  %v1590_v24 = vmul.f32 %v8606_v4, %v8060_v11 }
 0x194   :  { %v8598_v16 = vpop.permute.xlu1 %808  ;;  %v8600_v35 = vpop.permute.xlu0 %814 }
 0x195   :  { %13769 = vst [vmem:[#allocation119_spill] sm:$0xff] %v8598_v16  ;;  %13770 = vst [vmem:[#allocation120_spill] sm:$0xff] %v8600_v35 }
 0x196   :  { %1262 = vrot.lane.b32.xlu1 %v1253_v58, %s7457_s20  ;;  %1264 = vrot.lane.b32.xlu0 %v1255_v49, %s7457_s20 }
 0x198   :  { %v8610_v2 = vpop.permute.xlu1 %812  ;;  %v8612_v26 = vpop.permute.xlu0 %854 }
 0x199   :  { %13772 = vst [vmem:[#allocation122_spill] sm:$0xff] %v8610_v2  ;;  %13773 = vst [vmem:[#allocation123_spill] sm:$0xff] %v8612_v26 }
 0x19a   :  { %1266 = vrot.lane.b32.xlu1 %v1254_v10, %s7457_s20  ;;  %1600 = vrot.lane.b32.xlu0 %v1588_v21, %s7456_s0  ;;  %v1591_v10 = vmul.f32 %v8606_v4, %v8078_v23 }
 0x19c   :  { %v8618_v7 = vpop.permute.xlu1 %856  ;;  %v8620_v18 = vpop.permute.xlu0 %862 }
 0x19d   :  { %13774 = vst [vmem:[#allocation124_spill] sm:$0xff] %v8618_v7  ;;  %13775 = vst [vmem:[#allocation125_spill] sm:$0xff] %v8620_v18  ;;  %v370_v7 = vmul.f32 %v8420_v22, %v368_v27 }
 0x19e   :  { %1602 = vrot.lane.b32.xlu1 %v1589_v31, %s7456_s0  ;;  %1604 = vrot.lane.b32.xlu0 %v1590_v24, %s7456_s0 }
 0x1a0   :  { %v8628_v1 = vpop.permute.xlu1 %860  ;;  %v8630_v58 = vpop.permute.xlu0 %892 }
 0x1a1   :  { %13776 = vst [vmem:[#allocation126_spill] sm:$0xff] %v8628_v1  ;;  %13777 = vst [vmem:[#allocation127_spill] sm:$0xff] %v8630_v58  ;;  %v263_v1 = vmul.f32 %v8439_v46, %v259_v50  ;;  %v383_v58 = vrot.slane %v370_v7, 2 }
 0x1a2   :  { %1606 = vrot.lane.b32.xlu1 %v1591_v10, %s7456_s0 }
 0x1a4   :  { %v8635_v49 = vpop.permute.xlu1 %894  ;;  %v8637_v21 = vpop.permute.xlu0 %896 }
 0x1a5   :  { %13778 = vst [vmem:[#allocation128_spill] sm:$0xff] %v8635_v49  ;;  %13779 = vst [vmem:[#allocation129_spill] sm:$0xff] %v8637_v21  ;;  %v279_v21 = vrot.slane %v264_v6, 1  ;;  %v373_v6 = vmul.f32 %v8442_v42, %v368_v27 }
 0x1a8   :  { %v8639_v18 = vpop.permute.xlu1 %898  ;;  %v8641_v26 = vpop.permute.xlu0 %900 }
 0x1a9   :  { %13780 = vst [vmem:[#allocation130_spill] sm:$0xff] %v8639_v18  ;;  %13781 = vst [vmem:[#allocation131_spill] sm:$0xff] %v8641_v26 }
 0x1ac   :  { %v8643_v31 = vpop.permute.xlu1 %902  ;;  %v8645_v24 = vpop.permute.xlu0 %930 }
 0x1ad   :  { %13782 = vst [vmem:[#allocation132_spill] sm:$0xff] %v8643_v31  ;;  %13783 = vst [vmem:[#allocation133_spill] sm:$0xff] %v8645_v24  ;;  %v260_v24 = vmul.f32 %v8432_v38, %v259_v50  ;;  %v371_v31 = vmul.f32 %v8427_v54, %v368_v27 }
 0x1af   :  { %v273_v61 = vrot.slane %v260_v24, 1  ;;  %v278_v24 = vrot.slane %v263_v1, 1 }
 0x1b0   :  { %v8647_v35 = vpop.permute.xlu1 %932  ;;  %v8649_v33 = vpop.permute.xlu0 %934 }
 0x1b1   :  { %13784 = vst [vmem:[#allocation134_spill] sm:$0xff] %v8647_v35  ;;  %13785 = vst [vmem:[#allocation135_spill] sm:$0xff] %v8649_v33  ;;  %v274_v33 = vrot.slane %v261_v14, 1  ;;  %v369_v14 = vmul.f32 %v8432_v38, %v368_v27  ;;  %v276_v35 = vrot.slane %v262_v34, 1  ;;  %v280_v28 = vsel %vm272_vm3, %v278_v24, %v279_v21 }
 0x1b4   :  { %v8651_v23 = vpop.permute.xlu1 %936  ;;  %v8653_v10 = vpop.permute.xlu0 %938 }
 0x1b5   :  { %13786 = vst [vmem:[#allocation136_spill] sm:$0xff] %v8651_v23  ;;  %13787 = vst [vmem:[#allocation137_spill] sm:$0xff] %v8653_v10  ;;  %v275_v23 = vsel %vm272_vm3, %v273_v61, %v274_v33  ;;  %v382_v61 = vrot.slane %v369_v14, 2  ;;  %v385_v14 = vrot.slane %v371_v31, 2  ;;  %v388_v31 = vrot.slane %v373_v6, 2 }
 0x1b8   :  { %v8656_v0 = vpop.permute.xlu1 %940  ;;  %v8658_v48 = vpop.permute.xlu0 %968 }
 0x1b9   :  { %13788 = vst [vmem:[#allocation138_spill] sm:$0xff] %v8656_v0  ;;  %13789 = vst [vmem:[#allocation139_spill] sm:$0xff] %v8658_v48  ;;  %v8674_v48 = vmul.f32 %v8668_v43, %v8661_v25  ;;  %v265_v0 = vmul.f32 %v8452_v15, %v259_v50 }
 0x1bb   :  { %13793 = vst [vmem:[#allocation143_spill] sm:$0xff] %v8674_v48  ;;  %v281_v2 = vrot.slane %v265_v0, 1  ;;  %v13798_v55 = vrot.slane %v8674_v48, 1  ;;  %v386_v48 = vsel %vm381_vm4, %v383_v58, %v385_v14 }
 0x1bc   :  { %v8664_v32 = vpop.permute.xlu1 %970  ;;  %v8666_v10 = vpop.permute.xlu0 %972 }
 0x1bd   :  { %13790 = vst [vmem:[#allocation140_spill] sm:$0xff] %v8664_v32  ;;  %13791 = vst [vmem:[#allocation141_spill] sm:$0xff] %v8666_v10  ;;  %v217_v10 = vstv %s216_s7  ;;  %v8681_v32 = vld [vmem:[#allocation2 + $0x78] sm:$0xff]  ;;  %s9055_s7 = sld [smem:[#allocation12 + $0x1a]] }
 0x1be   :  { %v2813_v49 = vmul.f32 %v8668_v43, %v8681_v32  ;;  %v218_v34 = vmul.f32 %v8432_v38, %v217_v10  ;;  %v220_v50 = vmul.f32 %v8427_v54, %v217_v10  ;;  %v374_v43 = vmul.f32 %v8452_v15, %v368_v27 }
 0x1bf   :  { %v223_v7 = vmul.f32 %v8452_v15, %v217_v10  ;;  %v221_v54 = vmul.f32 %v8439_v46, %v217_v10  ;;  %v8719_v15 = vstv %s8679_s22  ;;  %s9070_s22 = sld [smem:[#allocation14 + $0x1a]] }
 0x1c0   :  { %v8685_v26 = vpop.permute.xlu1 %974  ;;  %v8687_v18 = vpop.permute.xlu0 %976  ;;  %v2827_v1 = vrot.slane %v2813_v49, 1  ;;  %v289_v16 = vadd.f32 %v275_v23, %v218_v34  ;;  %v291_v23 = vadd.f32 %v276_v35, %v220_v50  ;;  %13800 = vst [vmem:[#allocation149_spill] sm:$0xff] %v8719_v15  ;;  %v8724_v24 = vmul.f32 %v8719_v15, %v8661_v25 }
 0x1c1   :  { %13794 = vst [vmem:[#allocation144_spill] sm:$0xff] %v8685_v26  ;;  %13795 = vst [vmem:[#allocation145_spill] sm:$0xff] %v8687_v18  ;;  %v219_v18 = vmul.f32 %v8420_v22, %v217_v10  ;;  %v372_v26 = vmul.f32 %v8439_v46, %v368_v27  ;;  %v277_v22 = vsel %vm272_vm3, %v274_v33, %v276_v35  ;;  %v390_v46 = vrot.slane %v374_v43, 2 }
 0x1c2   :  { %v8714_v49 = vsel %vm272_vm3, %v2827_v1, %v13798_v55  ;;  %v282_v27 = vsel %vm272_vm3, %v279_v21, %v281_v2  ;;  %v222_v33 = vmul.f32 %v8442_v42, %v217_v10  ;;  %13801 = vst [vmem:[#allocation150_spill] sm:$0xff] %v8724_v24  ;;  %v292_v35 = vadd.f32 %v280_v28, %v221_v54 }
 0x1c3   :  { %13799 = vst [vmem:[#allocation148_spill] sm:$0xff] %v8714_v49  ;;  %v387_v34 = vrot.slane %v372_v26, 2  ;;  %v290_v55 = vadd.f32 %v277_v22, %v219_v18  ;;  %v294_v50 = vadd.f32 %v281_v2, %v223_v7  ;;  %v384_v26 = vsel %vm381_vm4, %v382_v61, %v383_v58 }
 0x1c4   :  { %v8705_v38 = vpop.permute.xlu1 %978  ;;  %v8707_v0 = vpop.permute.xlu0 %1016  ;;  %v293_v6 = vadd.f32 %v282_v27, %v222_v33  ;;  %v8734_v49 = vstv %s8689_s23  ;;  %v8737_v42 = vstv %s8691_s24  ;;  %v398_v10 = vadd.f32 %v384_v26, %v289_v16  ;;  %s9191_s23 = sld [smem:[#allocation14 + $0x9]]  ;;  %s9247_s24 = sld [smem:[#allocation14 + $0xa]] }
 0x1c5   :  { %13796 = vst [vmem:[#allocation146_spill] sm:$0xff] %v8705_v38  ;;  %13797 = vst [vmem:[#allocation147_spill] sm:$0xff] %v8707_v0  ;;  %v400_v38 = vadd.f32 %v385_v14, %v291_v23  ;;  %v8741_v0 = vstv %s8697_s25  ;;  %v389_v43 = vsel %vm381_vm4, %v387_v34, %v388_v31  ;;  %v13446_v28 = vrot.slane %v8724_v24, 1  ;;  %s9295_s25 = sld [smem:[#allocation6 + $0xd]] }
 0x1c6   :  { %13802 = vst [vmem:[#allocation151_spill] sm:$0xff] %v8734_v49  ;;  %13803 = vst [vmem:[#allocation152_spill] sm:$0xff] %v8741_v0  ;;  %v8747_v2 = vmul.f32 %v8741_v0, %v8661_v25  ;;  %v2861_v18 = vmul.f32 %v8719_v15, %v8681_v32  ;;  %v399_v61 = vadd.f32 %v386_v48, %v290_v55  ;;  %v9032_v15 = vstv %s8943_s19  ;;  %s11603_s19 = sld [smem:[#allocation11 + $0x17]] }
 0x1c7   :  { %v401_v16 = vadd.f32 %v389_v43, %v292_v35  ;;  %v391_v58 = vsel %vm381_vm4, %v388_v31, %v390_v46  ;;  %v403_v7 = vadd.f32 %v390_v46, %v294_v50  ;;  %v8760_v54 = vmul.f32 %v8734_v49, %v8052_v53 }
 0x1c8   :  { %v8728_v1 = vpop.permute.xlu1 %1018  ;;  %v8730_v21 = vpop.permute.xlu0 %1020  ;;  %13804 = vst [vmem:[#allocation153_spill] sm:$0xff] %v8747_v2  ;;  %v402_v23 = vadd.f32 %v391_v58, %v293_v6  ;;  %v8764_v27 = vmul.f32 %v8606_v4, %v8080_v62  ;;  %v2875_v34 = vrot.slane %v2861_v18, 1  ;;  %v508_v48 = vadd.f32 %v8154_v57, %v398_v10  ;;  %v8820_v58 = vld [vmem:[#allocation2 + $0x28] sm:$0x3f] }
 0x1c9   :  { %v509_v33 = vadd.f32 %v8162_v5, %v399_v61  ;;  %v8772_v31 = vmul.f32 %v8225_v19, %v8052_v53  ;;  %v8776_v55 = vmul.f32 %v8227_v44, %v8052_v53  ;;  %v13445_v62 = vrot.slane %v8747_v2, 1  ;;  %v13824_v61 = vld [vmem:[#allocation91_spill] sm:$0xff] }
 0x1ca   :  { %v8782_v35 = vstv %s8726_s26  ;;  %v8791_v57 = vsel %vm272_vm3, %v2875_v34, %v13446_v28  ;;  %v2909_v5 = vmul.f32 %v8741_v0, %v8681_v32  ;;  %v510_v53 = vadd.f32 %v8164_v17, %v400_v38  ;;  %v2432_v28 = vld [vmem:[#allocation2 + $0x40] sm:$0x3f]  ;;  %s6669_s26 = sld [smem:[#allocation12 + $0xd]] }
 0x1cb   :  { %13805 = vst [vmem:[#allocation154_spill] sm:$0xff] %v8772_v31  ;;  %13806 = vst [vmem:[#allocation155_spill] sm:$0xff] %v8776_v55  ;;  %v511_v46 = vadd.f32 %v8170_v8, %v401_v16  ;;  %v512_v50 = vadd.f32 %v8172_v41, %v402_v23  ;;  %v8804_v10 = vmul.f32 %v8782_v35, %v8661_v25  ;;  %v8862_v16 = vld [vmem:[#allocation2 + $0x38] sm:$0xff]  ;;  %v9028_v0 = vstv %s8938_s18  ;;  %s11886_s18 = sld [smem:[#allocation11]] }
 0x1cc   :  { %v8754_v14 = vpop.permute.xlu1 %1022  ;;  %v8756_v22 = vpop.permute.xlu0 %1024  ;;  %13807 = vst [vmem:[#allocation156_spill] sm:$0xff] %v8782_v35  ;;  %13808 = vst [vmem:[#allocation157_spill] sm:$0xff] %v8791_v57  ;;  %v513_v43 = vadd.f32 %v8178_v47, %v403_v7  ;;  %v547_v18 = vadd.f32 %v8186_v20, %v7810_v52  ;;  %v8811_v17 = vmul.f32 %v8225_v19, %v8060_v11  ;;  %v2923_v8 = vrot.slane %v2909_v5, 1 }
 0x1cd   :  { %13810 = vst [vmem:[#allocation159_spill] sm:$0xff] %v8804_v10  ;;  %v549_v41 = vadd.f32 %v8194_v13, %v7858_v45  ;;  %v551_v38 = vadd.f32 %v8212_v59, %v7881_v29  ;;  %v634_v47 = vadd.f32 %v8275_v9, %v510_v53  ;;  %v8824_v20 = vmul.f32 %v8820_v58, %v8227_v44  ;;  %v13855_v44 = vld [vmem:[#allocation134_spill] sm:$0xff] }
 0x1ce   :  { %13811 = vst [vmem:[#allocation160_spill] sm:$0xff] %v8811_v17  ;;  %v8827_v52 = vstv %s8749_s27  ;;  %v8832_v45 = vsel %vm272_vm3, %v2923_v8, %v13445_v62  ;;  %v637_v29 = vadd.f32 %v8303_v36, %v513_v43  ;;  %v13447_v13 = vrot.slane %v8804_v10, 2  ;;  %13863 = vst [vmem:[#allocation134_spill] sm:$0xff] %v9028_v0  ;;  %s6670_s27 = sld [smem:[#allocation14 + $0xd]] }
 0x1cf   :  { %13812 = vst [vmem:[#allocation161_spill] sm:$0xff] %v8824_v20  ;;  %13813 = vst [vmem:[#allocation162_spill] sm:$0xff] %v8827_v52  ;;  %v8842_v59 = vmul.f32 %v8827_v52, %v8661_v25  ;;  %v2957_v7 = vmul.f32 %v8782_v35, %v8681_v32  ;;  %v8848_v23 = vadd.f32 %v8229_v3, %v7941_v63  ;;  %v8860_v8 = vstv %s8768_s28  ;;  %s6671_s28 = sld [smem:[#allocation6 + $0x10]] }
 0x1d0   :  { %v8798_v26 = vpop.permute.xlu1 %1026  ;;  %v8800_v6 = vpop.permute.xlu0 %1064  ;;  %13814 = vst [vmem:[#allocation163_spill] sm:$0xff] %v8832_v45  ;;  %v8851_v36 = vadd.f32 %v8321_v40, %v551_v38  ;;  %v778_v34 = vadd.f32 %v8344_v56, %v634_v47  ;;  %v8856_v53 = vadd.f32 %v8362_v51, %v637_v29  ;;  %v632_v43 = vadd.f32 %v8390_v60, %v508_v48  ;;  %v13823_v29 = vld [vmem:[#allocation89_spill] sm:$0xff]  ;;  %v13825_v60 = vld [vmem:[#allocation98_spill] sm:$0xff] }
 0x1d1   :  { %13809 = vst [vmem:[#allocation158_spill] sm:$0xff] %v8800_v6  ;;  %13816 = vst [vmem:[#allocation165_spill] sm:$0xff] %v8842_v59  ;;  %v2971_v62 = vrot.slane %v2957_v7, 2  ;;  %v633_v63 = vadd.f32 %v8397_v12, %v509_v33  ;;  %v8866_v3 = vstv %s8778_s29  ;;  %v8869_v40 = vstv %s8784_s3  ;;  %v13836_v45 = vld [vmem:[#allocation122_spill] sm:$0xff]  ;;  %s6672_s29 = sld [smem:[#allocation12 + $0x10]]  ;;  %s11549_s3 = sld [smem:[#allocation11 + $0xb]] }
 0x1d2   :  { %13817 = vst [vmem:[#allocation166_spill] sm:$0xff] %v8866_v3  ;;  %13818 = vst [vmem:[#allocation167_spill] sm:$0xff] %v8869_v40  ;;  %v8872_v56 = vstv %s8786_s5  ;;  %v8881_v48 = vmul.f32 %v8866_v3, %v8661_v25  ;;  %v3005_v33 = vmul.f32 %v8827_v52, %v8681_v32  ;;  %v636_v47 = vadd.f32 %v8399_v30, %v512_v50  ;;  %s11562_s5 = sld [smem:[#allocation11 + $0x15]] }
 0x1d3   :  { %13819 = vst [vmem:[#allocation168_spill] sm:$0xff] %v8872_v56  ;;  %v8890_v12 = vsel %vm381_vm4, %v2971_v62, %v13447_v13  ;;  %v635_v7 = vadd.f32 %v13823_v29, %v511_v46  ;;  %v681_v5 = vadd.f32 %v13824_v61, %v547_v18  ;;  %v8903_v6 = vmul.f32 %v8869_v40, %v8862_v16  ;;  %v13828_v46 = vld [vmem:[#allocation115_spill] sm:$0xff]  ;;  %v13830_v61 = vld [vmem:[#allocation117_spill] sm:$0xff] }
 0x1d4   :  { %v8835_v11 = vpop.permute.xlu1 %1066  ;;  %v8837_v9 = vpop.permute.xlu0 %1068  ;;  %13821 = vst [vmem:[#allocation170_spill] sm:$0xff] %v8881_v48  ;;  %13822 = vst [vmem:[#allocation171_spill] sm:$0xff] %v8890_v12  ;;  %v8907_v62 = vmul.f32 %v8872_v56, %v8862_v16  ;;  %v3019_v13 = vrot.slane %v3005_v33, 2  ;;  %v777_v30 = vadd.f32 %v8573_v37, %v633_v63  ;;  %v780_v50 = vadd.f32 %v13828_v46, %v636_v47  ;;  %v13835_v46 = vld [vmem:[#allocation119_spill] sm:$0xff] }
 0x1d5   :  { %13815 = vst [vmem:[#allocation164_spill] sm:$0xff] %v8837_v9  ;;  %v776_v9 = vadd.f32 %v8545_v39, %v632_v43  ;;  %13826 = vst [vmem:[#allocation89_spill] sm:$0xff] %v8903_v6  ;;  %v8912_v18 = vmul.f32 %v8869_v40, %v2432_v28  ;;  %v3053_v39 = vmul.f32 %v8866_v3, %v8681_v32  ;;  %v13833_v63 = vrot.slane %v8842_v59, 2  ;;  %v13838_v3 = vld [vmem:[#allocation128_spill] sm:$0xff] }
 0x1d6   :  { %13827 = vst [vmem:[#allocation91_spill] sm:$0xff] %v8907_v62  ;;  %v779_v43 = vadd.f32 %v13830_v61, %v635_v7  ;;  %v8925_v37 = vmul.f32 %v8872_v56, %v2432_v28  ;;  %v825_v12 = vadd.f32 %v13835_v46, %v681_v5  ;;  %v13837_v7 = vld [vmem:[#allocation127_spill] sm:$0xff]  ;;  %v13839_v28 = vld [vmem:[#allocation129_spill] sm:$0xff]  ;;  %v8966_v46 = vstv %s8885_s15  ;;  %s6674_s15 = sld [smem:[#allocation6 + $0xb]] }
 0x1d7   :  { %13829 = vst [vmem:[#allocation98_spill] sm:$0xff] %v8912_v18  ;;  %v8930_v47 = vsel %vm381_vm4, %v3019_v13, %v13833_v63  ;;  %v910_v61 = vadd.f32 %v13837_v7, %v776_v9  ;;  %v912_v33 = vadd.f32 %v13839_v28, %v778_v34  ;;  %v3067_v5 = vrot.slane %v3053_v39, 2  ;;  %13845 = vst [vmem:[#allocation173_spill] sm:$0xff] %v8966_v46 }
 0x1d8   :  { %v8874_v38 = vpop.permute.xlu1 %1070  ;;  %v8876_v51 = vpop.permute.xlu0 %1072  ;;  %13832 = vst [vmem:[#allocation117_spill] sm:$0xff] %v8925_v37  ;;  %13834 = vst [vmem:[#allocation172_spill] sm:$0xff] %v8930_v47  ;;  %v8948_v9 = vmul.f32 %v8869_v40, %v8661_v25  ;;  %v8963_v39 = vstv %s8883_s30  ;;  %v13846_v7 = vrot.slane %v8881_v48, 2  ;;  %v8974_v13 = vstv %s8898_s16  ;;  %s7458_s30 = smov 125   ;;  %s6675_s16 = sld [smem:[#allocation12 + $0xb]] }
 0x1d9   :  { %13820 = vst [vmem:[#allocation169_spill] sm:$0xff] %v8876_v51  ;;  %v683_v51 = vadd.f32 %v13825_v60, %v549_v41  ;;  %v2435_v41 = vld [vmem:[#allocation2 + $0x88] sm:$0x3f]  ;;  %13844 = vst [vmem:[#allocation129_spill] sm:$0xff] %v8963_v39  ;;  %v8985_v63 = vmul.f32 %v8966_v46, %v8661_v25  ;;  %v949_v19 = vadd.f32 %v13855_v44, %v825_v12  ;;  %v9000_v35 = vstv %s8914_s17  ;;  %s6676_s17 = sld [smem:[#allocation14 + $0xb]] }
 0x1da   :  { %13840 = vst [vmem:[#allocation119_spill] sm:$0xff] %v8948_v9  ;;  %v8971_v28 = vsel %vm381_vm4, %v3067_v5, %v13846_v7  ;;  %13848 = vst [vmem:[#allocation175_spill] sm:$0xff] %v8974_v13  ;;  %v8977_v59 = vmul.f32 %v8872_v56, %v2435_v41  ;;  %v13853_v5 = vld [vmem:[#allocation131_spill] sm:$0xff]  ;;  %v2439_v44 = vmul.f32 %v8974_v13, %v8862_v16  ;;  %v13860_v12 = vrot.slane %v8903_v6, 1 }
 0x1db   :  { %v8934_v57 = vadd.f32 %v13836_v45, %v683_v51  ;;  %v8955_v51 = vmul.f32 %v8872_v56, %v8661_v25  ;;  %13847 = vst [vmem:[#allocation174_spill] sm:$0xff] %v8971_v28  ;;  %v8981_v45 = vmul.f32 %v8963_v39, %v8661_v25  ;;  %13851 = vst [vmem:[#allocation178_spill] sm:$0xff] %v8985_v63  ;;  %v13854_v28 = vld [vmem:[#allocation132_spill] sm:$0xff]  ;;  %v13864_v16 = vld [vmem:[#allocation147_spill] sm:$0xff] }
 0x1dc   :  { %v8919_v60 = vpop.permute.xlu1 %1074  ;;  %v8921_v29 = vpop.permute.xlu0 %1112  ;;  %13849 = vst [vmem:[#allocation176_spill] sm:$0xff] %v8977_v59  ;;  %v914_v7 = vadd.f32 %v13853_v5, %v780_v50  ;;  %v915_v48 = vadd.f32 %v13854_v28, %v8856_v53  ;;  %v9008_v50 = vmul.f32 %v9000_v35, %v8661_v25  ;;  %v13859_v53 = vrot.slane %v8912_v18, 1  ;;  %13865 = vst [vmem:[#allocation147_spill] sm:$0xff] %v9032_v15 }
 0x1dd   :  { %13831 = vst [vmem:[#allocation115_spill] sm:$0xff] %v8921_v29  ;;  %v911_v29 = vadd.f32 %v13838_v3, %v777_v30  ;;  %v8951_v3 = vmul.f32 %v8869_v40, %v2435_v41  ;;  %13842 = vst [vmem:[#allocation127_spill] sm:$0xff] %v8955_v51  ;;  %v13861_v28 = vrot.slane %v8925_v37, 2  ;;  %v13862_v5 = vrot.slane %v8907_v62, 2 }
 0x1de   :  { %13850 = vst [vmem:[#allocation177_spill] sm:$0xff] %v8981_v45  ;;  %13858 = vst [vmem:[#allocation132_spill] sm:$0xff] %v9008_v50  ;;  %v1034_v18 = vadd.f32 %v13864_v16, %v910_v61  ;;  %v2443_v61 = vmul.f32 %v8974_v13, %v2435_v41  ;;  %v2441_v37 = vmul.f32 %v8974_v13, %v8681_v32  ;;  %v9063_v62 = vstv %s8987_s9  ;;  %s6693_s9 = sld [smem:[#allocation6 + $0x13]] }
 0x1df   :  { %13841 = vst [vmem:[#allocation122_spill] sm:$0xff] %v8951_v3  ;;  %v2604_v2 = vsel %vm381_vm4, %v13862_v5, %v13861_v28  ;;  %v9040_v28 = vmul.f32 %v9032_v15, %v8661_v25  ;;  %v2483_v5 = vmul.f32 %v8869_v40, %v8681_v32  ;;  %v9048_v16 = vadd.f32 %v8728_v1, %v911_v29 }
 0x1e0   :  { %v8957_v34 = vpop.permute.xlu1 %1114  ;;  %v8959_v30 = vpop.permute.xlu0 %1116  ;;  %v1036_v41 = vadd.f32 %v8730_v21, %v912_v33  ;;  %13869 = vst [vmem:[#allocation182_spill] sm:$0xff] %v9063_v62  ;;  %v13872_v33 = vrot.slane %v8948_v9, 1  ;;  %v2627_v13 = vmul.f32 %v8966_v46, %v8681_v32 }
 0x1e1   :  { %13843 = vst [vmem:[#allocation128_spill] sm:$0xff] %v8959_v30  ;;  %v13852_v30 = vld [vmem:[#allocation130_spill] sm:$0xff]  ;;  %13867 = vst [vmem:[#allocation180_spill] sm:$0xff] %v9040_v28  ;;  %v2497_v1 = vrot.slane %v2483_v5, 1  ;;  %v13873_v5 = vrot.slane %v8955_v51, 2  ;;  %v1039_v51 = vadd.f32 %v8798_v26, %v915_v48 }
 0x1e2   :  { %v8990_v47 = vadd.f32 %v13852_v30, %v779_v43  ;;  %13856 = vst [vmem:[#allocation130_spill] sm:$0xff] %v9000_v35  ;;  %v2496_v30 = vsel %vm272_vm3, %v13860_v12, %v13859_v53  ;;  %v9036_v53 = vmul.f32 %v9028_v0, %v8661_v25 }
 0x1e3   :  { %v2509_v12 = vadd.f32 %v2496_v30, %v2439_v44  ;;  %v9068_v44 = vmul.f32 %v9063_v62, %v8661_v25 }
 0x1e4   :  { %v9002_v24 = vpop.permute.xlu1 %1118  ;;  %v9004_v43 = vpop.permute.xlu0 %1120  ;;  %13866 = vst [vmem:[#allocation179_spill] sm:$0xff] %v9036_v53 }
 0x1e5   :  { %13857 = vst [vmem:[#allocation131_spill] sm:$0xff] %v9004_v43  ;;  %v2591_v43 = vmul.f32 %v8872_v56, %v8681_v32  ;;  %v9057_v30 = vadd.f32 %v2604_v2, %v2509_v12  ;;  %13870 = vst [vmem:[#allocation183_spill] sm:$0xff] %v9068_v44  ;;  %v13871_v2 = vrot.slane %v8951_v3, 1  ;;  %v9086_v3 = vstv %s9010_s21  ;;  %s11698_s21 = sld [smem:[#allocation11 + $0xa]] }
 0x1e6   :  { %13874 = vst [vmem:[#allocation184_spill] sm:$0xff] %v9086_v3  ;;  %v3311_v9 = vmul.f32 %v9086_v3, %v8681_v32 }
 0x1e7   :  { %13868 = vst [vmem:[#allocation181_spill] sm:$0xff] %v9057_v30  ;;  %v2605_v29 = vrot.slane %v2591_v43, 2  ;;  %v2513_v12 = vadd.f32 %v13871_v2, %v2443_v61  ;;  %v2519_v30 = vmul.f32 %v8963_v39, %v8681_v32  ;;  %v2499_v43 = vsel %vm272_vm3, %v2497_v1, %v13872_v33 }
 0x1e8   :  { %v9050_v52 = vpop.permute.xlu1 %1122  ;;  %v1161_v10 = vpop.permute.xlu0 %1160  ;;  %v2511_v61 = vadd.f32 %v2499_v43, %v2441_v37  ;;  %v13875_v2 = vrot.slane %v8977_v59, 2  ;;  %v1038_v1 = vadd.f32 %v8756_v22, %v914_v7  ;;  %v1083_v22 = vadd.f32 %v8835_v11, %v949_v19 }
 0x1e9   :  { %v2607_v6 = vsel %vm381_vm4, %v2605_v29, %v13873_v5  ;;  %v2533_v21 = vrot.slane %v2519_v30, 1  ;;  %v9095_v29 = vmul.f32 %v9086_v3, %v8661_v25  ;;  %v2641_v5 = vrot.slane %v2627_v13, 2 }
 0x1ea   :  { %v9090_v39 = vadd.f32 %v13875_v2, %v2513_v12  ;;  %v9099_v37 = vadd.f32 %v2607_v6, %v2511_v61  ;;  %v13879_v12 = vrot.slane %v8981_v45, 1  ;;  %v13881_v30 = vrot.slane %v8985_v63, 2 }
 0x1eb   :  { %13877 = vst [vmem:[#allocation186_spill] sm:$0xff] %v9095_v29  ;;  %v9114_v6 = vstv %s9053_s4  ;;  %v2663_v19 = vmul.f32 %v9028_v0, %v8681_v32  ;;  %v3215_v61 = vmul.f32 %v9032_v15, %v8681_v32  ;;  %v9136_v2 = vstv %s9070_s22  ;;  %s11703_s4 = sld [smem:[#allocation11 + $0xf]]  ;;  %s12004_s22 = sld [smem:[#allocation11 + $0x2b]] }
 0x1ec   :  { %v1163_v56 = vpop.permute.xlu1 %1162  ;;  %v1165_v40 = vpop.permute.xlu0 %1164  ;;  %13876 = vst [vmem:[#allocation185_spill] sm:$0xff] %v9090_v39  ;;  %13878 = vst [vmem:[#allocation187_spill] sm:$0xff] %v9099_v37  ;;  %v9104_v43 = vsel %vm272_vm3, %v2533_v21, %v13879_v12  ;;  %v9111_v13 = vsel %vm381_vm4, %v2641_v5, %v13881_v30  ;;  %v2555_v21 = vmul.f32 %v9000_v35, %v8681_v32  ;;  %v13889_v63 = vrot.slane %v9008_v50, 1 }
 0x1ed   :  { %v1180_v33 = vadd.f32 %v1165_v40, %v1036_v41  ;;  %13880 = vst [vmem:[#allocation188_spill] sm:$0xff] %v9104_v43  ;;  %v1178_v40 = vadd.f32 %v1161_v10, %v1034_v18  ;;  %13882 = vst [vmem:[#allocation189_spill] sm:$0xff] %v9111_v13  ;;  %v9117_v41 = vstv %s9055_s7  ;;  %v9127_v11 = vmul.f32 %v9114_v6, %v8661_v25  ;;  %s11713_s7 = sld [smem:[#allocation11 + $0x14]] }
 0x1ee   :  { %13883 = vst [vmem:[#allocation190_spill] sm:$0xff] %v9114_v6  ;;  %13884 = vst [vmem:[#allocation191_spill] sm:$0xff] %v9117_v41  ;;  %v9131_v18 = vmul.f32 %v9117_v41, %v8661_v25  ;;  %v2677_v5 = vrot.slane %v2663_v19, 2  ;;  %v3263_v12 = vmul.f32 %v9063_v62, %v8681_v32  ;;  %v3229_v10 = vrot.slane %v3215_v61, 1  ;;  %v9611_v62 = vld [vmem:[#allocation2 + $0x65] sm:$0xff] }
 0x1ef   :  { %v1284_v7 = vadd.f32 %v8860_v8, %v1180_v33  ;;  %13885 = vst [vmem:[#allocation192_spill] sm:$0xff] %v9127_v11  ;;  %13887 = vst [vmem:[#allocation194_spill] sm:$0xff] %v9136_v2  ;;  %v2569_v33 = vrot.slane %v2555_v21, 1  ;;  %v9145_v37 = vmul.f32 %v9136_v2, %v8661_v25  ;;  %v13891_v19 = vrot.slane %v9036_v53, 2 }
 0x1f0   :  { %v1167_v26 = vpop.permute.xlu1 %1166  ;;  %v1169_v48 = vpop.permute.xlu0 %1168  ;;  %13886 = vst [vmem:[#allocation193_spill] sm:$0xff] %v9131_v18  ;;  %v13893_v61 = vrot.slane %v9040_v28, 1  ;;  %v3325_v50 = vrot.slane %v3311_v9, 1  ;;  %v13897_v9 = vrot.slane %v9095_v29, 1 }
 0x1f1   :  { %1298 = vrot.lane.b32.xlu0 %v1284_v7, %s7457_s20  ;;  %v1282_v7 = vadd.f32 %v8860_v8, %v1178_v40  ;;  %v1182_v30 = vadd.f32 %v1169_v48, %v1038_v1  ;;  %13888 = vst [vmem:[#allocation195_spill] sm:$0xff] %v9145_v37  ;;  %v9150_v21 = vsel %vm272_vm3, %v2569_v33, %v13889_v63  ;;  %v3277_v1 = vrot.slane %v3263_v12, 1  ;;  %v13899_v48 = vld [vmem:[#allocation136_spill] sm:$0xff] }
 0x1f2   :  { %13890 = vst [vmem:[#allocation196_spill] sm:$0xff] %v9150_v21  ;;  %v9155_v45 = vsel %vm381_vm4, %v2677_v5, %v13891_v19  ;;  %v9162_v25 = vsel %vm272_vm3, %v3229_v10, %v13893_v61  ;;  %v13895_v33 = vrot.slane %v9068_v44, 1  ;;  %v1179_v5 = vadd.f32 %v1163_v56, %v9048_v16 }
 0x1f3   :  { %13892 = vst [vmem:[#allocation197_spill] sm:$0xff] %v9155_v45  ;;  %13894 = vst [vmem:[#allocation198_spill] sm:$0xff] %v9162_v25  ;;  %v1286_v12 = vadd.f32 %v8860_v8, %v1182_v30  ;;  %v3455_v63 = vmul.f32 %v9136_v2, %v8681_v32  ;;  %v951_v56 = vadd.f32 %v13899_v48, %v8934_v57  ;;  %v13903_v57 = vrot.slane %v9131_v18, 2 }
 0x1f4   :  { %v1171_v39 = vpop.permute.xlu1 %1170  ;;  %v9168_v53 = vsel %vm272_vm3, %v3277_v1, %v13895_v33  ;;  %v13484_v1 = vrot.slane %v9145_v37, 2  ;;  %v1037_v16 = vadd.f32 %v8754_v14, %v8990_v47  ;;  %v1283_v48 = vadd.f32 %v8860_v8, %v1179_v5  ;;  %v9569_v37 = vld [vmem:[#allocation2 + $0x4d] sm:$0xff] }
 0x1f5   :  { %v1183_v40 = vadd.f32 %v1171_v39, %v1039_v51  ;;  %1294 = vrot.lane.b32.xlu0 %v1282_v7, %s7457_s20  ;;  %13896 = vst [vmem:[#allocation199_spill] sm:$0xff] %v9168_v53  ;;  %v3359_v51 = vmul.f32 %v9114_v6, %v8681_v32  ;;  %v3407_v39 = vmul.f32 %v9117_v41, %v8681_v32  ;;  %v13901_v32 = vrot.slane %v9127_v11, 2  ;;  %v9507_v53 = vld [vmem:[#allocation2 + $0xd] sm:$0x3f]  ;;  %v9581_v11 = vld [vmem:[#allocation2 + $0x63] sm:$0xff] }
 0x1f6   :  { %v9180_v7 = vsel %vm272_vm3, %v3325_v50, %v13897_v9  ;;  %v3469_v47 = vrot.slane %v3455_v63, 2  ;;  %v9209_v9 = vld [vmem:[#allocation2 + $0x60] sm:$0xff]  ;;  %v13905_v63 = vrot.slane %v8811_v17, 1 }
 0x1f7   :  { %v1287_v10 = vadd.f32 %v8860_v8, %v1183_v40  ;;  %13898 = vst [vmem:[#allocation200_spill] sm:$0xff] %v9180_v7  ;;  %v3373_v61 = vrot.slane %v3359_v51, 2  ;;  %v3421_v33 = vrot.slane %v3407_v39, 2  ;;  %v13900_v40 = vld [vmem:[#allocation86_spill] sm:$0xff] }
 0x1f8   :  { %v1211_v19 = vpop.permute.xlu1 %1210  ;;  %v829_v51 = vadd.f32 %v13900_v40, %v8851_v36  ;;  %v1347_v36 = vmul.f32 %v9209_v9, %v8734_v49  ;;  %v9505_v17 = vld [vmem:[#allocation2 + $0x5] sm:$0xff] }
 0x1f9   :  { %v1227_v30 = vadd.f32 %v1211_v19, %v1083_v22  ;;  %1304 = vrot.lane.b32.xlu1 %v1287_v10, %s7457_s20  ;;  %1302 = vrot.lane.b32.xlu0 %v1286_v12, %s7457_s20  ;;  %v9199_v39 = vsel %vm381_vm4, %v3373_v61, %v13901_v32  ;;  %v9204_v14 = vsel %vm381_vm4, %v3421_v33, %v13903_v57  ;;  %v9213_v61 = vld [vmem:[#allocation2 + $0x70] sm:$0x3f]  ;;  %v13910_v32 = vld [vmem:[#allocation42_spill] sm:$0xff]  ;;  %v13911_v57 = vld [vmem:[#allocation67_spill] sm:$0xff] }
 0x1fa   :  { %13902 = vst [vmem:[#allocation136_spill] sm:$0xff] %v9199_v39  ;;  %13904 = vst [vmem:[#allocation86_spill] sm:$0xff] %v9204_v14  ;;  %v1085_v22 = vadd.f32 %v8874_v38, %v951_v56  ;;  %v1181_v12 = vadd.f32 %v1167_v26, %v1037_v16  ;;  %v1349_v33 = vmul.f32 %v9213_v61, %v8734_v49  ;;  %v13906_v38 = vrot.slane %v8772_v31, 1  ;;  %v13908_v26 = vld [vmem:[#allocation105_spill] sm:$0xff]  ;;  %v13909_v16 = vld [vmem:[#allocation138_spill] sm:$0xff] }
 0x1fb   :  { %v1351_v10 = vadd.f32 %v8760_v54, %v1227_v30  ;;  %v9225_v54 = vsel %vm381_vm4, %v3469_v47, %v13484_v1  ;;  %v729_v56 = vadd.f32 %v13908_v26, %v8848_v23  ;;  %v953_v30 = vadd.f32 %v13909_v16, %v829_v51  ;;  %v13915_v51 = vld [vmem:[#allocation124_spill] sm:$0xff]  ;;  %v9519_v31 = vld [vmem:[#allocation2 + $0x3c] sm:$0x3f]  ;;  %v9593_v6 = vld [vmem:[#allocation2 + $0x64] sm:$0xff] }
 0x1fc   :  { %v1215_v19 = vpop.permute.xlu1 %1214  ;;  %v1424_v5 = vsel %vm272_vm3, %v13906_v38, %v13905_v63  ;;  %13907 = vst [vmem:[#allocation201_spill] sm:$0xff] %v9225_v54  ;;  %v587_v50 = vadd.f32 %v13911_v57, %v13910_v32  ;;  %v13912_v63 = vld [vmem:[#allocation121_spill] sm:$0xff]  ;;  %v13913_v47 = vrot.slane %v8824_v20, 2  ;;  %v13914_v1 = vrot.slane %v8776_v55, 2  ;;  %v13917_v32 = vld [vmem:[#allocation72_spill] sm:$0xff] }
 0x1fd   :  { %v1229_v40 = vadd.f32 %v1215_v19, %v1085_v22  ;;  %1296 = vrot.lane.b32.xlu1 %v1283_v48, %s7457_s20  ;;  %1608 = vrot.lane.b32.xlu0 %v8764_v27, %s7456_s0  ;;  %v1626_v38 = vmul.f32 %v8737_v42, %v13912_v63  ;;  %v1437_v14 = vadd.f32 %v1424_v5, %v1351_v10  ;;  %v9251_v5 = vld [vmem:[#allocation2 + $0x20] sm:$0xff]  ;;  %v13926_v54 = vld [vmem:[#allocation73_spill] sm:$0xff] }
 0x1fe   :  { %v1532_v23 = vsel %vm381_vm4, %v13914_v1, %v13913_v47  ;;  %v873_v22 = vadd.f32 %v13915_v51, %v729_v56  ;;  %v1087_v48 = vadd.f32 %v8919_v60, %v953_v30  ;;  %v1285_v27 = vadd.f32 %v8860_v8, %v1181_v12  ;;  %v13920_v8 = vld [vmem:[#allocation110_spill] sm:$0xff] }
 0x1ff   :  { %v1353_v19 = vadd.f32 %v1347_v36, %v1229_v40  ;;  %v1593_v16 = vmul.f32 %v9213_v61, %v8606_v4  ;;  %v9249_v10 = vadd.f32 %v1532_v23, %v1437_v14  ;;  %v9255_v1 = vmul.f32 %v9251_v5, %v13917_v32  ;;  %v13921_v36 = vld [vmem:[#allocation140_spill] sm:$0xff]  ;;  %v13923_v14 = vld [vmem:[#allocation43_spill] sm:$0xff]  ;;  %v13924_v40 = vld [vmem:[#allocation69_spill] sm:$0xff] }
 0x200   :  { %v1219_v26 = vpop.permute.xlu1 %1218  ;;  %v9259_v60 = vmul.f32 %v8820_v58, %v13917_v32  ;;  %v731_v12 = vadd.f32 %v13920_v8, %v587_v50  ;;  %v987_v56 = vadd.f32 %v13921_v36, %v873_v22  ;;  %v9264_v4 = vstv %s9191_s23  ;;  %v13925_v23 = vld [vmem:[#allocation70_spill] sm:$0xff]  ;;  %s6695_s23 = sld [smem:[#allocation14 + $0x13]] }
 0x201   :  { %13916 = vst [vmem:[#allocation105_spill] sm:$0xff] %v9249_v10  ;;  %13918 = vst [vmem:[#allocation138_spill] sm:$0xff] %v9255_v1  ;;  %v1231_v30 = vadd.f32 %v1219_v26, %v1087_v48  ;;  %1300 = vrot.lane.b32.xlu1 %v1285_v27, %s7457_s20  ;;  %1638 = vrot.lane.b32.xlu0 %v1626_v38, %s7456_s0  ;;  %v589_v57 = vadd.f32 %v13924_v40, %v13923_v14  ;;  %v13928_v22 = vld [vmem:[#allocation126_spill] sm:$0xff]  ;;  %v13931_v14 = vld [vmem:[#allocation71_spill] sm:$0xff] }
 0x202   :  { %13919 = vst [vmem:[#allocation42_spill] sm:$0xff] %v9259_v60  ;;  %13922 = vst [vmem:[#allocation67_spill] sm:$0xff] %v9264_v4  ;;  %v1628_v47 = vmul.f32 %v8820_v58, %v8737_v42  ;;  %v1439_v51 = vadd.f32 %v13925_v23, %v1353_v19  ;;  %v9275_v50 = vmul.f32 %v9251_v5, %v13926_v54  ;;  %v13933_v23 = vld [vmem:[#allocation81_spill] sm:$0xff]  ;;  %v13936_v40 = vld [vmem:[#allocation146_spill] sm:$0xff] }
 0x203   :  { %v875_v48 = vadd.f32 %v13928_v22, %v731_v12  ;;  %v1131_v26 = vadd.f32 %v8957_v34, %v987_v56  ;;  %v9279_v8 = vadd.f32 %v1349_v33, %v1231_v30  ;;  %v9283_v38 = vmul.f32 %v8820_v58, %v13926_v54  ;;  %v13934_v12 = vld [vmem:[#allocation144_spill] sm:$0xff]  ;;  %v9300_v30 = vld [vmem:[#allocation2 + $0x68] sm:$0xff] }
 0x204   :  { %13927 = vst [vmem:[#allocation121_spill] sm:$0xff] %v9275_v50  ;;  %v1359_v27 = vmul.f32 %v9251_v5, %v9264_v4  ;;  %v1259_v36 = vpop.permute.xlu1 %1258  ;;  %v9288_v19 = vadd.f32 %v13931_v14, %v1439_v51  ;;  %v733_v39 = vadd.f32 %v13933_v23, %v589_v57  ;;  %v1627_v56 = vmul.f32 %v9251_v5, %v8737_v42 }
 0x205   :  { %13929 = vst [vmem:[#allocation124_spill] sm:$0xff] %v9279_v8  ;;  %13930 = vst [vmem:[#allocation110_spill] sm:$0xff] %v9283_v38  ;;  %v989_v22 = vadd.f32 %v13934_v12, %v875_v48  ;;  %v1275_v34 = vadd.f32 %v1259_v36, %v1131_v26  ;;  %1610 = vrot.lane.b32.xlu1 %v1593_v16, %s7456_s0  ;;  %1642 = vrot.lane.b32.xlu0 %v1628_v47, %s7456_s0  ;;  %v13935_v48 = vld [vmem:[#allocation88_spill] sm:$0xff]  ;;  %v13486_v47 = vrot.slane %v9283_v38, 2 }
 0x206   :  { %13932 = vst [vmem:[#allocation140_spill] sm:$0xff] %v9288_v19  ;;  %v1630_v57 = vmul.f32 %v9300_v30, %v8737_v42  ;;  %v877_v26 = vadd.f32 %v13935_v48, %v733_v39  ;;  %v1361_v14 = vmul.f32 %v9209_v9, %v9264_v4  ;;  %v1663_v12 = vstv %s9247_s24  ;;  %s6685_s24 = sld [smem:[#allocation12 + $0x12]] }
 0x207   :  { %v1133_v16 = vadd.f32 %v9002_v24, %v989_v22  ;;  %v1365_v36 = vadd.f32 %v1359_v27, %v1275_v34  ;;  %v13937_v39 = vrot.slane %v9259_v60, 1  ;;  %v13938_v24 = vrot.slane %v9255_v1, 1  ;;  %v9500_v60 = vld [vmem:[#allocation2 + $0x1c] sm:$0xff] }
 0x208   :  { %v1263_v23 = vpop.permute.xlu1 %1262  ;;  %v991_v33 = vadd.f32 %v13936_v40, %v877_v26  ;;  %v1629_v22 = vmul.f32 %v9209_v9, %v8737_v42  ;;  %v1664_v40 = vmul.f32 %v1663_v12, %v13912_v63  ;;  %v7171_v55 = vpack.i.bf16 %v9507_v53, %v9505_v17 }
 0x209   :  { %v1277_v59 = vadd.f32 %v1263_v23, %v1133_v16  ;;  %1640 = vrot.lane.b32.xlu1 %v1627_v56, %s7456_s0  ;;  %1646 = vrot.lane.b32.xlu0 %v1630_v57, %s7456_s0  ;;  %v1460_v27 = vsel %vm272_vm3, %v13938_v24, %v13937_v39  ;;  %v13939_v56 = vrot.slane %v9275_v50, 2  ;;  %v1363_v23 = vmul.f32 %v9213_v61, %v9264_v4 }
 0x20a   :  { %v1473_v34 = vadd.f32 %v1460_v27, %v1365_v36  ;;  %v1135_v48 = vadd.f32 %v9050_v52, %v991_v33  ;;  %v1701_v52 = vstv %s9295_s25  ;;  %v1666_v24 = vmul.f32 %v8820_v58, %v1663_v12  ;;  %s10562_s25 = sld [smem:[#allocation6 + $0x14]] }
 0x20b   :  { %v1367_v51 = vadd.f32 %v1361_v14, %v1277_v59  ;;  %v1568_v57 = vsel %vm381_vm4, %v13939_v56, %v13486_v47  ;;  %v13941_v59 = vld [vmem:[#allocation80_spill] sm:$0xff]  ;;  %v1631_v14 = vmul.f32 %v9213_v61, %v8737_v42  ;;  %v1702_v27 = vmul.f32 %v1701_v52, %v13912_v63  ;;  %v13943_v56 = vld [vmem:[#allocation82_spill] sm:$0xff] }
 0x20c   :  { %v1267_v26 = vpop.permute.xlu1 %1266  ;;  %v9328_v16 = vadd.f32 %v1568_v57, %v1473_v34  ;;  %v1703_v34 = vmul.f32 %v9251_v5, %v1701_v52  ;;  %v1667_v57 = vmul.f32 %v9209_v9, %v1663_v12 }
 0x20d   :  { %v1279_v39 = vadd.f32 %v1267_v26, %v1135_v48  ;;  %1644 = vrot.lane.b32.xlu1 %v1629_v22, %s7456_s0  ;;  %1676 = vrot.lane.b32.xlu0 %v1664_v40, %s7456_s0  ;;  %v1475_v33 = vadd.f32 %v13941_v59, %v1367_v51  ;;  %v1665_v51 = vmul.f32 %v9251_v5, %v1663_v12  ;;  %v1714_v40 = vrot.slane %v1702_v27, 1 }
 0x20e   :  { %13940 = vst [vmem:[#allocation43_spill] sm:$0xff] %v9328_v16  ;;  %v1668_v22 = vmul.f32 %v9300_v30, %v1663_v12  ;;  %v1715_v42 = vrot.slane %v1703_v34, 1  ;;  %v1704_v26 = vmul.f32 %v8820_v58, %v1701_v52  ;;  %v1707_v59 = vmul.f32 %v9213_v61, %v1701_v52 }
 0x20f   :  { %v9336_v36 = vadd.f32 %v1363_v23, %v1279_v39  ;;  %v9344_v48 = vadd.f32 %v13943_v56, %v1475_v33  ;;  %v1706_v39 = vmul.f32 %v9300_v30, %v1701_v52  ;;  %v1749_v33 = vstv %s6669_s26  ;;  %s10594_s26 = sld [smem:[#allocation14 + $0x12]] }
 0x210   :  { %v1716_v23 = vsel %vm272_vm3, %v1714_v40, %v1715_v42  ;;  %v1705_v27 = vmul.f32 %v9209_v9, %v1701_v52  ;;  %v1722_v56 = vrot.slane %v1707_v59, 1  ;;  %v1752_v52 = vmul.f32 %v8820_v58, %v1749_v33 }
 0x211   :  { %13942 = vst [vmem:[#allocation69_spill] sm:$0xff] %v9336_v36  ;;  %13944 = vst [vmem:[#allocation70_spill] sm:$0xff] %v9344_v48  ;;  %1648 = vrot.lane.b32.xlu1 %v1631_v14, %s7456_s0  ;;  %1680 = vrot.lane.b32.xlu0 %v1666_v24, %s7456_s0  ;;  %v1669_v14 = vmul.f32 %v9213_v61, %v1663_v12  ;;  %v1717_v24 = vrot.slane %v1704_v26, 1  ;;  %v1720_v34 = vrot.slane %v1706_v39, 1 }
 0x212   :  { %v1719_v40 = vrot.slane %v1705_v27, 1  ;;  %v1755_v27 = vmul.f32 %v9213_v61, %v1749_v33 }
 0x214   :  { %v1721_v39 = vsel %vm272_vm3, %v1719_v40, %v1720_v34 }
 0x215   :  { %1678 = vrot.lane.b32.xlu1 %v1665_v51, %s7456_s0  ;;  %1684 = vrot.lane.b32.xlu0 %v1668_v22, %s7456_s0  ;;  %v1750_v51 = vmul.f32 %v1749_v33, %v13912_v63  ;;  %v1751_v22 = vmul.f32 %v9251_v5, %v1749_v33 }
 0x217   :  { %v1762_v12 = vrot.slane %v1750_v51, 1  ;;  %v1763_v26 = vrot.slane %v1751_v22, 1  ;;  %v1753_v51 = vmul.f32 %v9209_v9, %v1749_v33 }
 0x219   :  { %1682 = vrot.lane.b32.xlu1 %v1667_v57, %s7456_s0  ;;  %1724 = vrot.lane.b32.xlu0 %v1716_v23, %s7456_s0  ;;  %v1718_v57 = vsel %vm272_vm3, %v1715_v42, %v1717_v24  ;;  %v1723_v23 = vsel %vm272_vm3, %v1720_v34, %v1722_v56  ;;  %v1764_v59 = vsel %vm272_vm3, %v1762_v12, %v1763_v26  ;;  %v1797_v42 = vstv %s6670_s27  ;;  %s10699_s27 = sld [smem:[#allocation12 + $0x14]] }
 0x21a   :  { %v1799_v34 = vmul.f32 %v9251_v5, %v1797_v42  ;;  %v1803_v47 = vmul.f32 %v9213_v61, %v1797_v42 }
 0x21d   :  { %1686 = vrot.lane.b32.xlu1 %v1669_v14, %s7456_s0  ;;  %1728 = vrot.lane.b32.xlu0 %v1717_v24, %s7456_s0  ;;  %v1754_v14 = vmul.f32 %v9300_v30, %v1749_v33  ;;  %v1765_v24 = vrot.slane %v1752_v52, 1  ;;  %v1811_v52 = vrot.slane %v1799_v34, 1  ;;  %v1800_v33 = vmul.f32 %v8820_v58, %v1797_v42 }
 0x21e   :  { %v1818_v34 = vrot.slane %v1803_v47, 1 }
 0x21f   :  { %v1768_v22 = vrot.slane %v1754_v14, 1  ;;  %v1766_v40 = vsel %vm272_vm3, %v1763_v26, %v1765_v24  ;;  %v1845_v26 = vstv %s6671_s28  ;;  %s6704_s28 = sld [smem:[#allocation14 + $0x14]] }
 0x220   :  { %v1848_v47 = vmul.f32 %v8820_v58, %v1845_v26 }
 0x221   :  { %1726 = vrot.lane.b32.xlu1 %v1718_v57, %s7456_s0  ;;  %1732 = vrot.lane.b32.xlu0 %v1723_v23, %s7456_s0  ;;  %v1770_v57 = vrot.slane %v1755_v27, 1  ;;  %v1798_v23 = vmul.f32 %v1797_v42, %v13912_v63  ;;  %v1802_v27 = vmul.f32 %v9300_v30, %v1797_v42 }
 0x223   :  { %v1771_v12 = vsel %vm272_vm3, %v1768_v22, %v1770_v57 }
 0x225   :  { %1730 = vrot.lane.b32.xlu1 %v1721_v39, %s7456_s0  ;;  %1772 = vrot.lane.b32.xlu0 %v1764_v59, %s7456_s0  ;;  %v1767_v39 = vrot.slane %v1753_v51, 1  ;;  %v1810_v59 = vrot.slane %v1798_v23, 1  ;;  %v1801_v51 = vmul.f32 %v9209_v9, %v1797_v42  ;;  %v1816_v23 = vrot.slane %v1802_v27, 1 }
 0x226   :  { %v1850_v27 = vmul.f32 %v9300_v30, %v1845_v26 }
 0x227   :  { %v1769_v14 = vsel %vm272_vm3, %v1767_v39, %v1768_v22  ;;  %v1847_v22 = vmul.f32 %v9251_v5, %v1845_v26 }
 0x229   :  { %1734 = vrot.lane.b32.xlu1 %v1722_v56, %s7456_s0  ;;  %1776 = vrot.lane.b32.xlu0 %v1765_v24, %s7456_s0  ;;  %v1812_v56 = vsel %vm272_vm3, %v1810_v59, %v1811_v52  ;;  %v1813_v24 = vrot.slane %v1800_v33, 1  ;;  %v1819_v59 = vsel %vm272_vm3, %v1816_v23, %v1818_v34  ;;  %v1815_v33 = vrot.slane %v1801_v51, 1 }
 0x22a   :  { %v1859_v42 = vrot.slane %v1847_v22, 2  ;;  %v1861_v51 = vrot.slane %v1848_v47, 2  ;;  %v1864_v22 = vrot.slane %v1850_v27, 2 }
 0x22b   :  { %v1814_v39 = vsel %vm272_vm3, %v1811_v52, %v1813_v24  ;;  %v1851_v52 = vmul.f32 %v9213_v61, %v1845_v26 }
 0x22d   :  { %1774 = vrot.lane.b32.xlu1 %v1766_v40, %s7456_s0  ;;  %1780 = vrot.lane.b32.xlu0 %v1771_v12, %s7456_s0  ;;  %v1846_v40 = vmul.f32 %v1845_v26, %v13912_v63  ;;  %v9395_v12 = vpop.permute.xlu0 %1208 }
 0x22e   :  { %13945 = vst [vmem:[#allocation126_spill] sm:$0xff] %v9395_v12  ;;  %v9557_v12 = vld [vmem:[#allocation2 + $0x35] sm:$0xff] }
 0x231   :  { %1778 = vrot.lane.b32.xlu1 %v1769_v14, %s7456_s0  ;;  %1820 = vrot.lane.b32.xlu0 %v1812_v56, %s7456_s0  ;;  %v1858_v14 = vrot.slane %v1846_v40, 2  ;;  %v9403_v63 = vpop.permute.xlu0 %1212  ;;  %v1849_v40 = vmul.f32 %v9209_v9, %v1845_v26 }
 0x232   :  { %13946 = vst [vmem:[#allocation71_spill] sm:$0xff] %v9403_v63  ;;  %v9545_v63 = vld [vmem:[#allocation2 + $0x1d] sm:$0xff] }
 0x233   :  { %v1860_v56 = vsel %vm381_vm4, %v1858_v14, %v1859_v42 }
 0x235   :  { %1782 = vrot.lane.b32.xlu1 %v1770_v57, %s7456_s0  ;;  %1824 = vrot.lane.b32.xlu0 %v1813_v24, %s7456_s0  ;;  %v1817_v57 = vsel %vm272_vm3, %v1815_v33, %v1816_v23  ;;  %v1893_v24 = vstv %s6672_s29  ;;  %v9417_v14 = vpop.permute.xlu0 %1216  ;;  %s11511_s29 = sld [smem:[#allocation9 + $0x2]] }
 0x236   :  { %v1895_v33 = vmul.f32 %v9251_v5, %v1893_v24  ;;  %13947 = vst [vmem:[#allocation81_spill] sm:$0xff] %v9417_v14  ;;  %v1896_v5 = vmul.f32 %v8820_v58, %v1893_v24  ;;  %v1898_v38 = vmul.f32 %v9300_v30, %v1893_v24 }
 0x238   :  { %v1907_v27 = vrot.slane %v1895_v33, 2  ;;  %v1897_v33 = vmul.f32 %v9209_v9, %v1893_v24 }
 0x239   :  { %1822 = vrot.lane.b32.xlu1 %v1814_v39, %s7456_s0  ;;  %1828 = vrot.lane.b32.xlu0 %v1819_v59, %s7456_s0  ;;  %v1866_v39 = vrot.slane %v1851_v52, 2  ;;  %v9413_v59 = vld [vmem:[#allocation2 + $0x18] sm:$0xff]  ;;  %v9425_v52 = vpop.permute.xlu0 %1256 }
 0x23a   :  { %v1894_v23 = vmul.f32 %v9413_v59, %v1893_v24  ;;  %13948 = vst [vmem:[#allocation144_spill] sm:$0xff] %v9425_v52  ;;  %v1911_v30 = vrot.slane %v1897_v33, 2  ;;  %v9469_v33 = vld [vmem:[#allocation2 + $0x33] sm:$0xff] }
 0x23b   :  { %v1867_v47 = vsel %vm381_vm4, %v1864_v22, %v1866_v39  ;;  %v9535_v52 = vld [vmem:[#allocation2 + $0x54] sm:$0x3f] }
 0x23c   :  { %v1906_v26 = vrot.slane %v1894_v23, 2 }
 0x23d   :  { %1826 = vrot.lane.b32.xlu1 %v1817_v57, %s7456_s0  ;;  %1868 = vrot.lane.b32.xlu0 %v1860_v56, %s7456_s0  ;;  %v1862_v57 = vsel %vm381_vm4, %v1859_v42, %v1861_v51  ;;  %v1863_v56 = vrot.slane %v1849_v40, 2  ;;  %v1899_v42 = vmul.f32 %v9213_v61, %v1893_v24  ;;  %v1912_v40 = vrot.slane %v1898_v38, 2  ;;  %v13952_v24 = vld [vmem:[#allocation79_spill] sm:$0xff] }
 0x23f   :  { %v1865_v7 = vsel %vm381_vm4, %v1863_v56, %v1864_v22  ;;  %v1914_v23 = vrot.slane %v1899_v42, 2  ;;  %v1913_v38 = vsel %vm381_vm4, %v1911_v30, %v1912_v40  ;;  %v13953_v56 = vrot.slane %v13952_v24, 2  ;;  %v9461_v42 = vld [vmem:[#allocation2 + $0x23] sm:$0x3f] }
 0x240   :  { %v9479_v30 = vld [vmem:[#allocation2 + $0x4] sm:$0xff] }
 0x241   :  { %1830 = vrot.lane.b32.xlu1 %v1818_v34, %s7456_s0  ;;  %1872 = vrot.lane.b32.xlu0 %v1861_v51, %s7456_s0  ;;  %v1908_v34 = vsel %vm381_vm4, %v1906_v26, %v1907_v27  ;;  %v1909_v51 = vrot.slane %v1896_v5, 2  ;;  %v9451_v26 = vld [vmem:[#allocation2 + $0xb] sm:$0x3f] }
 0x243   :  { %v1910_v61 = vsel %vm381_vm4, %v1907_v27, %v1909_v51  ;;  %v9455_v27 = vld [vmem:[#allocation2 + $0x3] sm:$0xff] }
 0x244   :  { %v7121_v5 = vpack.i.bf16 %v9451_v26, %v9455_v27 }
 0x245   :  { %1870 = vrot.lane.b32.xlu1 %v1862_v57, %s7456_s0  ;;  %1876 = vrot.lane.b32.xlu0 %v1867_v47, %s7456_s0  ;;  %v13949_v57 = vld [vmem:[#allocation77_spill] sm:$0xff]  ;;  %v9437_v47 = vpop.permute.xlu0 %1260 }
 0x246   :  { %v1942_v58 = vmul.f32 %v9413_v59, %v13949_v57  ;;  %13950 = vst [vmem:[#allocation88_spill] sm:$0xff] %v9437_v47  ;;  %v9533_v47 = vld [vmem:[#allocation2 + $0x4c] sm:$0xff] }
 0x248   :  { %v1954_v22 = vrot.slane %v1942_v58, 2  ;;  %v9471_v58 = vld [vmem:[#allocation2 + $0x3b] sm:$0x3f] }
 0x249   :  { %1874 = vrot.lane.b32.xlu1 %v1865_v7, %s7456_s0  ;;  %1916 = vrot.lane.b32.xlu0 %v1908_v34, %s7456_s0  ;;  %v1915_v7 = vsel %vm381_vm4, %v1912_v40, %v1914_v23  ;;  %v9445_v9 = vpop.permute.xlu0 %1264  ;;  %v9459_v34 = vld [vmem:[#allocation2 + $0x1b] sm:$0xff] }
 0x24a   :  { %13951 = vst [vmem:[#allocation146_spill] sm:$0xff] %v9445_v9  ;;  %v7131_v40 = vpack.i.bf16 %v9461_v42, %v9459_v34 }
 0x24d   :  { %1878 = vrot.lane.b32.xlu1 %v1866_v39, %s7456_s0  ;;  %1920 = vrot.lane.b32.xlu0 %v1909_v51, %s7456_s0  ;;  %v1956_v39 = vsel %vm381_vm4, %v1954_v22, %v13953_v56  ;;  %v9463_v51 = vpop.permute.xlu0 %1600  ;;  %v9483_v22 = vpop.permute.xlu1 %1602  ;;  %v9490_v56 = vld [vmem:[#allocation2 + $0x4b] sm:$0xff] }
 0x24e   :  { %13954 = vst [vmem:[#allocation80_spill] sm:$0xff] %v9483_v22 }
 0x251   :  { %1918 = vrot.lane.b32.xlu1 %v1910_v61, %s7456_s0  ;;  %1924 = vrot.lane.b32.xlu0 %v1915_v7, %s7456_s0  ;;  %v9475_v61 = vpop.permute.xlu0 %1604  ;;  %v7141_v7 = vpack.i.bf16 %v9471_v58, %v9469_v33 }
 0x255   :  { %1922 = vrot.lane.b32.xlu1 %v1913_v38, %s7456_s0  ;;  %1964 = vrot.lane.b32.xlu0 %v1956_v39, %s7456_s0  ;;  %v9492_v39 = vld [vmem:[#allocation2 + $0x53] sm:$0x3f] }
 0x256   :  { %v7161_v20 = vpack.i.bf16 %v9492_v39, %v9490_v56 }
 0x259   :  { %1926 = vrot.lane.b32.xlu1 %v1914_v23, %s7456_s0  ;;  %7122 = vrot.lane.b32.xlu0 %v7121_v5, %s7457_s20  ;;  %v9481_v23 = vld [vmem:[#allocation2 + $0xc] sm:$0x3f] }
 0x25a   :  { %v7136_v24 = vpack.i.bf16 %v9481_v23, %v9479_v30 }
 0x25d   :  { %7117 = vrot.lane.b32.xlu1 %v7121_v5, %s7456_s0  ;;  %7132 = vrot.lane.b32.xlu0 %v7131_v40, %s7457_s20  ;;  %v9496_v5 = vpop.permute.xlu1 %1606 }
 0x25e   :  { %13955 = vst [vmem:[#allocation82_spill] sm:$0xff] %v9496_v5 }
 0x261   :  { %7127 = vrot.lane.b32.xlu1 %v7131_v40, %s7456_s0  ;;  %7142 = vrot.lane.b32.xlu0 %v7141_v7, %s7456_s0 }
 0x263   :  { %v1299_v38 = vpop.permute.xlu0 %1298 }
 0x264   :  { %1317 = vst.msk [vmem:[#allocation15 + $0xe] sm:$0x3] %vm1316_vm5, %v1299_v38  ;;  %v9503_v38 = vld [vmem:[#allocation2 + $0x24] sm:$0x3f] }
 0x265   :  { %7137 = vrot.lane.b32.xlu1 %v7136_v24, %s7456_s0  ;;  %7152 = vrot.lane.b32.xlu0 %v7141_v7, %s7457_s20  ;;  %v7156_v1 = vpack.i.bf16 %v9503_v38, %v9500_v60 }
 0x267   :  { %v1295_v40 = vpop.permute.xlu0 %1294 }
 0x268   :  { %1313 = vst.msk [vmem:[#allocation15 - $0x2] sm:$0xfc] %vm1312_vm6, %v1295_v40  ;;  %v9517_v40 = vld [vmem:[#allocation2 + $0x34] sm:$0xff] }
 0x269   :  { %7147 = vrot.lane.b32.xlu1 %v7136_v24, %s7457_s20  ;;  %7162 = vrot.lane.b32.xlu0 %v7161_v20, %s7456_s0  ;;  %v7181_v9 = vpack.i.bf16 %v9519_v31, %v9517_v40 }
 0x26b   :  { %v1305_v7 = vpop.permute.xlu1 %1304  ;;  %v1303_v50 = vpop.permute.xlu0 %1302 }
 0x26c   :  { %1320 = vst.msk [vmem:[#allocation15 + $0x3e] sm:$0x3] %vm1316_vm5, %v1305_v7 }
 0x26d   :  { %1319 = vst.msk [vmem:[#allocation15 + $0x36] sm:$0xff] %vm1314_vm7, %v1303_v50  ;;  %7157 = vrot.lane.b32.xlu1 %v7156_v1, %s7456_s0  ;;  %7172 = vrot.lane.b32.xlu0 %v7171_v55, %s7456_s0 }
 0x26f   :  { %v1297_v24 = vpop.permute.xlu1 %1296  ;;  %v9523_v4 = vpop.permute.xlu0 %1608 }
 0x270   :  { %13956 = vst [vmem:[#allocation77_spill] sm:$0xff] %v9523_v4  ;;  %1315 = vst.msk [vmem:[#allocation15 + $0x6] sm:$0xff] %vm1314_vm7, %v1297_v24 }
 0x271   :  { %7167 = vrot.lane.b32.xlu1 %v7156_v1, %s7457_s20  ;;  %7182 = vrot.lane.b32.xlu0 %v7181_v9, %s7456_s0  ;;  %v7201_v1 = vpack.i.bf16 %v9535_v52, %v9533_v47 }
 0x273   :  { %v1301_v50 = vpop.permute.xlu1 %1300  ;;  %v9530_v7 = vpop.permute.xlu0 %1638 }
 0x274   :  { %13957 = vst [vmem:[#allocation79_spill] sm:$0xff] %v9530_v7  ;;  %1318 = vst.msk [vmem:[#allocation15 + $0x2e] sm:$0xfc] %vm1312_vm6, %v1301_v50  ;;  %v9547_v7 = vld [vmem:[#allocation2 + $0x25] sm:$0x3f] }
 0x275   :  { %7177 = vrot.lane.b32.xlu1 %v7161_v20, %s7457_s20  ;;  %7192 = vrot.lane.b32.xlu0 %v7181_v9, %s7457_s20  ;;  %v7196_v9 = vpack.i.bf16 %v9547_v7, %v9545_v63 }
 0x277   :  { %v9539_v14 = vpop.permute.xlu1 %1610  ;;  %v9541_v24 = vpop.permute.xlu0 %1642 }
 0x278   :  { %13958 = vst [vmem:[#allocation202_spill] sm:$0xff] %v9539_v14  ;;  %13959 = vst [vmem:[#allocation203_spill] sm:$0xff] %v9541_v24  ;;  %v9559_v24 = vld [vmem:[#allocation2 + $0x3d] sm:$0x3f] }
 0x279   :  { %7187 = vrot.lane.b32.xlu1 %v7171_v55, %s7457_s20  ;;  %7202 = vrot.lane.b32.xlu0 %v7201_v1, %s7456_s0  ;;  %v7221_v49 = vpack.i.bf16 %v9559_v24, %v9557_v12 }
 0x27b   :  { %v9551_v50 = vpop.permute.xlu1 %1640  ;;  %v9553_v20 = vpop.permute.xlu0 %1646 }
 0x27c   :  { %13960 = vst [vmem:[#allocation204_spill] sm:$0xff] %v9551_v50  ;;  %13961 = vst [vmem:[#allocation205_spill] sm:$0xff] %v9553_v20  ;;  %v9571_v20 = vld [vmem:[#allocation2 + $0x55] sm:$0x3f] }
 0x27d   :  { %7197 = vrot.lane.b32.xlu1 %v7196_v9, %s7456_s0  ;;  %7212 = vrot.lane.b32.xlu0 %v7201_v1, %s7457_s20  ;;  %v7231_v1 = vpack.i.bf16 %v9571_v20, %v9569_v37 }
 0x27f   :  { %v9563_v25 = vpop.permute.xlu1 %1644  ;;  %v9565_v55 = vpop.permute.xlu0 %1676 }
 0x280   :  { %13962 = vst [vmem:[#allocation206_spill] sm:$0xff] %v9563_v25  ;;  %13963 = vst [vmem:[#allocation207_spill] sm:$0xff] %v9565_v55  ;;  %v9583_v55 = vld [vmem:[#allocation2 + $0x6b] sm:$0x3f] }
 0x281   :  { %7207 = vrot.lane.b32.xlu1 %v7196_v9, %s7457_s20  ;;  %7222 = vrot.lane.b32.xlu0 %v7221_v49, %s7457_s20  ;;  %v7241_v29 = vpack.i.bf16 %v9583_v55, %v9581_v11 }
 0x283   :  { %v9575_v18 = vpop.permute.xlu1 %1648  ;;  %v9577_v2 = vpop.permute.xlu0 %1680 }
 0x284   :  { %13964 = vst [vmem:[#allocation208_spill] sm:$0xff] %v9575_v18  ;;  %13965 = vst [vmem:[#allocation209_spill] sm:$0xff] %v9577_v2  ;;  %v9595_v2 = vld [vmem:[#allocation2 + $0x6c] sm:$0x3f] }
 0x285   :  { %7217 = vrot.lane.b32.xlu1 %v7221_v49, %s7456_s0  ;;  %7232 = vrot.lane.b32.xlu0 %v7231_v1, %s7457_s20  ;;  %v7251_v3 = vpack.i.bf16 %v9595_v2, %v9593_v6 }
 0x287   :  { %v9587_v41 = vpop.permute.xlu1 %1678  ;;  %v9589_v9 = vpop.permute.xlu0 %1684 }
 0x288   :  { %13966 = vst [vmem:[#allocation210_spill] sm:$0xff] %v9587_v41  ;;  %13967 = vst [vmem:[#allocation211_spill] sm:$0xff] %v9589_v9 }
 0x289   :  { %7227 = vrot.lane.b32.xlu1 %v7231_v1, %s7456_s0  ;;  %7242 = vrot.lane.b32.xlu0 %v7241_v29, %s7457_s20  ;;  %v9613_v1 = vld [vmem:[#allocation2 + $0x6d] sm:$0x3f] }
 0x28a   :  { %v7256_v21 = vpack.i.bf16 %v9613_v1, %v9611_v62 }
 0x28b   :  { %v9599_v44 = vpop.permute.xlu1 %1682  ;;  %v9601_v49 = vpop.permute.xlu0 %1724 }
 0x28c   :  { %13968 = vst [vmem:[#allocation212_spill] sm:$0xff] %v9599_v44 }
 0x28d   :  { %7237 = vrot.lane.b32.xlu1 %v7241_v29, %s7456_s0  ;;  %7252 = vrot.lane.b32.xlu0 %v7251_v3, %s7457_s20 }
 0x28f   :  { %v9607_v9 = vpop.permute.xlu1 %1686  ;;  %v9609_v28 = vpop.permute.xlu0 %1728 }
 0x290   :  { %13969 = vst [vmem:[#allocation213_spill] sm:$0xff] %v9607_v9 }
 0x291   :  { %7247 = vrot.lane.b32.xlu1 %v7251_v3, %s7456_s0 }
 0x293   :  { %v9616_v15 = vpop.permute.xlu1 %1726  ;;  %v9618_v45 = vpop.permute.xlu0 %1732 }
 0x294   :  { %13970 = vst [vmem:[#allocation214_spill] sm:$0xff] %v9616_v15  ;;  %13971 = vst [vmem:[#allocation215_spill] sm:$0xff] %v9618_v45 }
 0x295   :  { %7257 = vrot.lane.b32.xlu1 %v7256_v21, %s7456_s0 }
 0x297   :  { %v9623_v29 = vpop.permute.xlu1 %1730  ;;  %v9625_v13 = vpop.permute.xlu0 %1772 }
 0x298   :  { %13972 = vst [vmem:[#allocation216_spill] sm:$0xff] %v9623_v29  ;;  %13973 = vst [vmem:[#allocation217_spill] sm:$0xff] %v9625_v13 }
 0x299   :  { %7267 = vrot.lane.b32.xlu1 %v7256_v21, %s7457_s20 }
 0x29b   :  { %v9628_v0 = vpop.permute.xlu1 %1734  ;;  %v9630_v9 = vpop.permute.xlu0 %1776 }
 0x29c   :  { %13974 = vst [vmem:[#allocation218_spill] sm:$0xff] %v9628_v0  ;;  %13975 = vst [vmem:[#allocation219_spill] sm:$0xff] %v9630_v9 }
 0x29f   :  { %v9632_v3 = vpop.permute.xlu1 %1774  ;;  %v9634_v43 = vpop.permute.xlu0 %1780 }
 0x2a0   :  { %13976 = vst [vmem:[#allocation220_spill] sm:$0xff] %v9632_v3  ;;  %13977 = vst [vmem:[#allocation221_spill] sm:$0xff] %v9634_v43 }
 0x2a3   :  { %v9636_v35 = vpop.permute.xlu1 %1778  ;;  %v9638_v44 = vpop.permute.xlu0 %1820 }
 0x2a4   :  { %13978 = vst [vmem:[#allocation222_spill] sm:$0xff] %v9636_v35  ;;  %13979 = vst [vmem:[#allocation223_spill] sm:$0xff] %v9638_v44 }
 0x2a7   :  { %v9640_v48 = vpop.permute.xlu1 %1782  ;;  %v9642_v36 = vpop.permute.xlu0 %1824 }
 0x2a8   :  { %13980 = vst [vmem:[#allocation224_spill] sm:$0xff] %v9640_v48  ;;  %13981 = vst [vmem:[#allocation225_spill] sm:$0xff] %v9642_v36 }
 0x2ab   :  { %v9644_v41 = vpop.permute.xlu1 %1822  ;;  %v9646_v13 = vpop.permute.xlu0 %1828 }
 0x2ac   :  { %13982 = vst [vmem:[#allocation226_spill] sm:$0xff] %v9644_v41  ;;  %13983 = vst [vmem:[#allocation227_spill] sm:$0xff] %v9646_v13 }
 0x2af   :  { %v9648_v21 = vpop.permute.xlu1 %1826  ;;  %v9650_v16 = vpop.permute.xlu0 %1868 }
 0x2b0   :  { %13984 = vst [vmem:[#allocation228_spill] sm:$0xff] %v9648_v21 }
 0x2b3   :  { %v9652_v9 = vpop.permute.xlu1 %1830  ;;  %v9654_v18 = vpop.permute.xlu0 %1872 }
 0x2b4   :  { %13985 = vst [vmem:[#allocation229_spill] sm:$0xff] %v9652_v9  ;;  %13986 = vst [vmem:[#allocation230_spill] sm:$0xff] %v9654_v18 }
 0x2b7   :  { %v9656_v43 = vpop.permute.xlu1 %1870  ;;  %v9658_v46 = vpop.permute.xlu0 %1876 }
 0x2b8   :  { %13987 = vst [vmem:[#allocation231_spill] sm:$0xff] %v9656_v43  ;;  %13988 = vst [vmem:[#allocation232_spill] sm:$0xff] %v9658_v46 }
 0x2bb   :  { %v9660_v44 = vpop.permute.xlu1 %1874  ;;  %v9662_v48 = vpop.permute.xlu0 %1916 }
 0x2bc   :  { %13989 = vst [vmem:[#allocation233_spill] sm:$0xff] %v9660_v44  ;;  %13990 = vst [vmem:[#allocation234_spill] sm:$0xff] %v9662_v48 }
 0x2bf   :  { %v9664_v36 = vpop.permute.xlu1 %1878  ;;  %v9666_v41 = vpop.permute.xlu0 %1920 }
 0x2c0   :  { %13991 = vst [vmem:[#allocation235_spill] sm:$0xff] %v9664_v36  ;;  %13992 = vst [vmem:[#allocation236_spill] sm:$0xff] %v9666_v41 }
 0x2c3   :  { %v9668_v13 = vpop.permute.xlu1 %1918  ;;  %v9670_v21 = vpop.permute.xlu0 %1924 }
 0x2c4   :  { %13993 = vst [vmem:[#allocation237_spill] sm:$0xff] %v9668_v13  ;;  %13994 = vst [vmem:[#allocation238_spill] sm:$0xff] %v9670_v21 }
 0x2c7   :  { %v9672_v35 = vpop.permute.xlu1 %1922  ;;  %v9674_v9 = vpop.permute.xlu0 %1964 }
 0x2c8   :  { %13995 = vst [vmem:[#allocation239_spill] sm:$0xff] %v9672_v35  ;;  %13996 = vst [vmem:[#allocation240_spill] sm:$0xff] %v9674_v9 }
 0x2cb   :  { %v9676_v25 = vpop.permute.xlu1 %1926  ;;  %v7123_v19 = vpop.permute.xlu0 %7122 }
 0x2cc   :  { %13997 = vst [vmem:[#allocation241_spill] sm:$0xff] %v9676_v25  ;;  %v7125_v21 = vunpack.i.h.bf16 %v7123_v19  ;;  %v7124_v32 = vunpack.i.l.bf16 %v7123_v19 }
 0x2cf   :  { %v7118_v3 = vpop.permute.xlu1 %7117  ;;  %v7133_v8 = vpop.permute.xlu0 %7132 }
 0x2d0   :  { %v7120_v48 = vunpack.i.h.bf16 %v7118_v3  ;;  %v7119_v0 = vunpack.i.l.bf16 %v7118_v3 }
 0x2d2   :  { %v3655_v41 = vmax.f32 %v9451_v26, %v7120_v48  ;;  %v3654_v13 = vmax.f32 %v9455_v27, %v7119_v0  ;;  %v7135_v27 = vunpack.i.h.bf16 %v7133_v8 }
 0x2d3   :  { %v7128_v50 = vpop.permute.xlu1 %7127  ;;  %v7143_v10 = vpop.permute.xlu0 %7142 }
 0x2d4   :  { %v7130_v35 = vunpack.i.h.bf16 %v7128_v50  ;;  %v7129_v44 = vunpack.i.l.bf16 %v7128_v50  ;;  %v3702_v25 = vmax.f32 %v3654_v13, %v7124_v32  ;;  %v3703_v29 = vmax.f32 %v3655_v41, %v7125_v21 }
 0x2d5   :  { %v7134_v50 = vunpack.i.l.bf16 %v7133_v8  ;;  %v7145_v45 = vunpack.i.h.bf16 %v7143_v10  ;;  %v7144_v18 = vunpack.i.l.bf16 %v7143_v10 }
 0x2d6   :  { %v3657_v15 = vmax.f32 %v9461_v42, %v7130_v35  ;;  %v3656_v3 = vmax.f32 %v9459_v34, %v7129_v44  ;;  %v3726_v48 = vmax.f32 %v3702_v25, %v9479_v30  ;;  %v3727_v0 = vmax.f32 %v3703_v29, %v9481_v23 }
 0x2d7   :  { %v7138_v36 = vpop.permute.xlu1 %7137  ;;  %v7153_v54 = vpop.permute.xlu0 %7152  ;;  %v3659_v25 = vmax.f32 %v9471_v58, %v7145_v45  ;;  %v3658_v30 = vmax.f32 %v9469_v33, %v7144_v18 }
 0x2d8   :  { %v7140_v43 = vunpack.i.h.bf16 %v7138_v36  ;;  %v7139_v5 = vunpack.i.l.bf16 %v7138_v36  ;;  %v3704_v32 = vmax.f32 %v3656_v3, %v7134_v50  ;;  %v3705_v36 = vmax.f32 %v3657_v15, %v7135_v27 }
 0x2d9   :  { %v7155_v34 = vunpack.i.h.bf16 %v7153_v54  ;;  %v7154_v4 = vunpack.i.l.bf16 %v7153_v54 }
 0x2da   :  { %v3786_v13 = vmax.f32 %v3726_v48, %v7139_v5  ;;  %v3787_v41 = vmax.f32 %v3727_v0, %v7140_v43  ;;  %v3728_v10 = vmax.f32 %v3704_v32, %v9500_v60  ;;  %v3729_v43 = vmax.f32 %v3705_v36, %v9503_v38 }
 0x2db   :  { %v7148_v9 = vpop.permute.xlu1 %7147  ;;  %v7163_v14 = vpop.permute.xlu0 %7162  ;;  %v3707_v45 = vmax.f32 %v3659_v25, %v7155_v34 }
 0x2dc   :  { %v7150_v26 = vunpack.i.h.bf16 %v7148_v9  ;;  %v7149_v19 = vunpack.i.l.bf16 %v7148_v9  ;;  %v7165_v23 = vunpack.i.h.bf16 %v7163_v14  ;;  %v7164_v9 = vunpack.i.l.bf16 %v7163_v14 }
 0x2dd   :  { %v3731_v36 = vmax.f32 %v3707_v45, %v9519_v31  ;;  %v9697_v31 = vld [vmem:[%s13327_s1] sm:$0xff] }
 0x2de   :  { %v3834_v42 = vmax.f32 %v3786_v13, %v7149_v19  ;;  %v3835_v44 = vmax.f32 %v3787_v41, %v7150_v26  ;;  %v3706_v26 = vmax.f32 %v3658_v30, %v7154_v4  ;;  %v3661_v14 = vmax.f32 %v9492_v39, %v7165_v23  ;;  %6949 = vmatprep.mubr.msk.f32.mxu0 %vm3587_vm8, %v9697_v31 }
 0x2df   :  { %v7158_v22 = vpop.permute.xlu1 %7157  ;;  %v7173_v46 = vpop.permute.xlu0 %7172  ;;  %v3660_v33 = vmax.f32 %v9490_v56, %v7164_v9 }
 0x2e0   :  { %v7160_v29 = vunpack.i.h.bf16 %v7158_v22  ;;  %v7159_v8 = vunpack.i.l.bf16 %v7158_v22  ;;  %v7175_v3 = vunpack.i.h.bf16 %v7173_v46  ;;  %v7174_v48 = vunpack.i.l.bf16 %v7173_v46 }
 0x2e1   :  { %v3858_v0 = vmax.f32 %v3834_v42, %v9505_v17  ;;  %v3859_v54 = vmax.f32 %v3835_v44, %v9507_v53  ;;  %v3730_v4 = vmax.f32 %v3706_v26, %v9517_v40 }
 0x2e2   :  { %v3788_v19 = vmax.f32 %v3728_v10, %v7159_v8  ;;  %v3789_v38 = vmax.f32 %v3729_v43, %v7160_v29 }
 0x2e3   :  { %v7168_v21 = vpop.permute.xlu1 %7167  ;;  %v7183_v35 = vpop.permute.xlu0 %7182  ;;  %v3918_v41 = vmax.f32 %v3858_v0, %v7174_v48  ;;  %v3919_v17 = vmax.f32 %v3859_v54, %v7175_v3 }
 0x2e4   :  { %v7170_v22 = vunpack.i.h.bf16 %v7168_v21  ;;  %v7169_v60 = vunpack.i.l.bf16 %v7168_v21  ;;  %v7185_v27 = vunpack.i.h.bf16 %v7183_v35  ;;  %v7184_v50 = vunpack.i.l.bf16 %v7183_v35 }
 0x2e6   :  { %v3836_v44 = vmax.f32 %v3788_v19, %v7169_v60  ;;  %v3837_v56 = vmax.f32 %v3789_v38, %v7170_v22  ;;  %v3790_v25 = vmax.f32 %v3730_v4, %v7184_v50  ;;  %v3791_v30 = vmax.f32 %v3731_v36, %v7185_v27 }
 0x2e7   :  { %v7178_v5 = vpop.permute.xlu1 %7177  ;;  %v7193_v15 = vpop.permute.xlu0 %7192 }
 0x2e8   :  { %v7180_v58 = vunpack.i.h.bf16 %v7178_v5  ;;  %v7179_v18 = vunpack.i.l.bf16 %v7178_v5  ;;  %v7195_v23 = vunpack.i.h.bf16 %v7193_v15  ;;  %v7194_v35 = vunpack.i.l.bf16 %v7193_v15 }
 0x2e9   :  { %v3860_v0 = vmax.f32 %v3836_v44, %v9545_v63  ;;  %v3861_v15 = vmax.f32 %v3837_v56, %v9547_v7 }
 0x2ea   :  { %v3708_v42 = vmax.f32 %v3660_v33, %v7179_v18  ;;  %v3709_v39 = vmax.f32 %v3661_v14, %v7180_v58  ;;  %v3838_v54 = vmax.f32 %v3790_v25, %v7194_v35  ;;  %v3839_v26 = vmax.f32 %v3791_v30, %v7195_v23 }
 0x2eb   :  { %v7188_v13 = vpop.permute.xlu1 %7187  ;;  %v7203_v46 = vpop.permute.xlu0 %7202 }
 0x2ec   :  { %v7190_v32 = vunpack.i.h.bf16 %v7188_v13  ;;  %v7189_v53 = vunpack.i.l.bf16 %v7188_v13  ;;  %v7205_v8 = vunpack.i.h.bf16 %v7203_v46  ;;  %v7204_v10 = vunpack.i.l.bf16 %v7203_v46 }
 0x2ed   :  { %v3732_v40 = vmax.f32 %v3708_v42, %v9533_v47  ;;  %v3733_v3 = vmax.f32 %v3709_v39, %v9535_v52 }
 0x2ee   :  { %v3966_v34 = vmax.f32 %v3918_v41, %v7189_v53  ;;  %v3967_v21 = vmax.f32 %v3919_v17, %v7190_v32  ;;  %v3862_v41 = vmax.f32 %v3838_v54, %v9557_v12  ;;  %v3863_v17 = vmax.f32 %v3839_v26, %v9559_v24 }
 0x2ef   :  { %v7198_v9 = vpop.permute.xlu1 %7197  ;;  %v7213_v29 = vpop.permute.xlu0 %7212  ;;  %v3792_v60 = vmax.f32 %v3732_v40, %v7204_v10  ;;  %v3793_v63 = vmax.f32 %v3733_v3, %v7205_v8  ;;  %v9711_v10 = vld [vmem:[#allocation2 + $0x7b] sm:$0xff] }
 0x2f0   :  { %v7200_v43 = vunpack.i.h.bf16 %v7198_v9  ;;  %v7199_v5 = vunpack.i.l.bf16 %v7198_v9  ;;  %v7261_v48 = vpack.i.bf16 %v3967_v21, %v3966_v34  ;;  %v7215_v45 = vunpack.i.h.bf16 %v7213_v29 }
 0x2f1   :  { %v7214_v58 = vunpack.i.l.bf16 %v7213_v29 }
 0x2f2   :  { %7262 = vrot.lane.b32.xlu0 %v7261_v48, %s7458_s30  ;;  %v3920_v14 = vmax.f32 %v3860_v0, %v7199_v5  ;;  %v3921_v52 = vmax.f32 %v3861_v15, %v7200_v43  ;;  %v3841_v27 = vmax.f32 %v3793_v63, %v7215_v45  ;;  %v9713_v43 = vld [vmem:[#allocation2 + $0x83] sm:$0x3f] }
 0x2f3   :  { %v7208_v18 = vpop.permute.xlu1 %7207  ;;  %v7223_v47 = vpop.permute.xlu0 %7222  ;;  %v3840_v38 = vmax.f32 %v3792_v60, %v7214_v58  ;;  %v7286_v0 = vpack.i.bf16 %v9713_v43, %v9711_v10  ;;  %v9720_v58 = vld [vmem:[#allocation2 + $0x7c] sm:$0xff] }
 0x2f4   :  { %v7210_v33 = vunpack.i.h.bf16 %v7208_v18  ;;  %v7209_v22 = vunpack.i.l.bf16 %v7208_v18  ;;  %v7225_v4 = vunpack.i.h.bf16 %v7223_v47  ;;  %v7224_v36 = vunpack.i.l.bf16 %v7223_v47  ;;  %v9722_v18 = vld [vmem:[#allocation2 + $0x84] sm:$0x3f] }
 0x2f5   :  { %v3864_v56 = vmax.f32 %v3840_v38, %v9569_v37  ;;  %v3865_v34 = vmax.f32 %v3841_v27, %v9571_v20  ;;  %v9732_v38 = vld [vmem:[#allocation2 + $0x85] sm:$0x3f] }
 0x2f6   :  { %v3968_v19 = vmax.f32 %v3920_v14, %v7209_v22  ;;  %v3969_v7 = vmax.f32 %v3921_v52, %v7210_v33  ;;  %v7296_v22 = vpack.i.bf16 %v9722_v18, %v9720_v58 }
 0x2f7   :  { %v7218_v50 = vpop.permute.xlu1 %7217  ;;  %v7233_v32 = vpop.permute.xlu0 %7232 }
 0x2f8   :  { %v7220_v13 = vunpack.i.h.bf16 %v7218_v50  ;;  %v7219_v46 = vunpack.i.l.bf16 %v7218_v50  ;;  %v7271_v53 = vpack.i.bf16 %v3969_v7, %v3968_v19  ;;  %v7235_v12 = vunpack.i.h.bf16 %v7233_v32  ;;  %v9730_v7 = vld [vmem:[#allocation2 + $0x7d] sm:$0xff] }
 0x2f9   :  { %v7234_v35 = vunpack.i.l.bf16 %v7233_v32 }
 0x2fa   :  { %v3922_v42 = vmax.f32 %v3862_v41, %v7219_v46  ;;  %v3923_v39 = vmax.f32 %v3863_v17, %v7220_v13  ;;  %7272 = vrot.lane.b32.xlu0 %v7271_v53, %s7458_s30 }
 0x2fb   :  { %v7228_v44 = vpop.permute.xlu1 %7227  ;;  %v7243_v29 = vpop.permute.xlu0 %7242 }
 0x2fc   :  { %v3970_v21 = vmax.f32 %v3922_v42, %v7224_v36  ;;  %v3971_v25 = vmax.f32 %v3923_v39, %v7225_v4  ;;  %v7230_v30 = vunpack.i.h.bf16 %v7228_v44  ;;  %v7229_v23 = vunpack.i.l.bf16 %v7228_v44 }
 0x2fd   :  { %v7245_v20 = vunpack.i.h.bf16 %v7243_v29  ;;  %v7244_v15 = vunpack.i.l.bf16 %v7243_v29  ;;  %v13998_v29 = vld [vmem:[#allocation85_spill] sm:$0xff] }
 0x2fe   :  { %v3924_v24 = vmax.f32 %v3864_v56, %v7229_v23  ;;  %v3925_v9 = vmax.f32 %v3865_v34, %v7230_v30  ;;  %v7276_v8 = vpack.i.bf16 %v3971_v25, %v3970_v21  ;;  %v9742_v34 = vld [vmem:[#allocation2 + $0x60] sm:$0xff]  ;;  %v9746_v25 = vld [vmem:[#allocation2 + $0x68] sm:$0xff] }
 0x2ff   :  { %v7238_v5 = vpop.permute.xlu1 %7237  ;;  %v7253_v33 = vpop.permute.xlu0 %7252  ;;  %v1945_v21 = vmul.f32 %v9742_v34, %v13949_v57 }
 0x300   :  { %v3972_v40 = vmax.f32 %v3924_v24, %v7234_v35  ;;  %v3973_v3 = vmax.f32 %v3925_v9, %v7235_v12  ;;  %v7240_v37 = vunpack.i.h.bf16 %v7238_v5  ;;  %v7239_v48 = vunpack.i.l.bf16 %v7238_v5  ;;  %7277 = vrot.lane.b32.xlu1 %v7276_v8, %s7458_s30  ;;  %v9751_v24 = vld [vmem:[#allocation2 + $0x70] sm:$0x3f] }
 0x301   :  { %v7255_v27 = vunpack.i.h.bf16 %v7253_v33  ;;  %v7254_v50 = vunpack.i.l.bf16 %v7253_v33  ;;  %v1959_v12 = vrot.slane %v1945_v21, 2  ;;  %v1947_v9 = vmul.f32 %v9751_v24, %v13949_v57 }
 0x302   :  { %v3663_v54 = vmax.f32 %v9583_v55, %v7240_v37  ;;  %v3662_v26 = vmax.f32 %v9581_v11, %v7239_v48  ;;  %v7281_v45 = vpack.i.bf16 %v3973_v3, %v3972_v40  ;;  %v13999_v40 = vld [vmem:[#allocation83_spill] sm:$0xff]  ;;  %v1989_v48 = vstv %s6674_s15  ;;  %s11564_s15 = sld [smem:[#allocation11 + $0x11]] }
 0x303   :  { %v7248_v47 = vpop.permute.xlu1 %7247  ;;  %v1962_v5 = vrot.slane %v1947_v9, 2  ;;  %v14000_v3 = vrot.slane %v13999_v40, 2 }
 0x304   :  { %v3710_v14 = vmax.f32 %v3662_v26, %v7244_v15  ;;  %v3711_v52 = vmax.f32 %v3663_v54, %v7245_v20  ;;  %7287 = vrot.lane.b32.xlu1 %v7286_v0, %s7456_s0  ;;  %7282 = vrot.lane.b32.xlu0 %v7281_v45, %s7458_s30  ;;  %v7250_v60 = vunpack.i.h.bf16 %v7248_v47  ;;  %v7249_v55 = vunpack.i.l.bf16 %v7248_v47  ;;  %v9767_v20 = vld [vmem:[#allocation2 + $0x20] sm:$0xff]  ;;  %v9772_v15 = vld [vmem:[#allocation2 + $0x28] sm:$0x3f] }
 0x305   :  { %v1992_v54 = vmul.f32 %v9772_v15, %v1989_v48  ;;  %v1993_v26 = vmul.f32 %v9742_v34, %v1989_v48  ;;  %v1994_v45 = vmul.f32 %v9746_v25, %v1989_v48  ;;  %v1995_v47 = vmul.f32 %v9751_v24, %v1989_v48 }
 0x306   :  { %v3734_v11 = vmax.f32 %v3710_v14, %v9593_v6  ;;  %v3735_v63 = vmax.f32 %v3711_v52, %v9595_v2  ;;  %v7306_v6 = vpack.i.bf16 %v9732_v38, %v9730_v7  ;;  %v9780_v14 = vstv %s6675_s16  ;;  %s11586_s16 = sld [smem:[#allocation11 + $0xd]] }
 0x307   :  { %v7258_v19 = vpop.permute.xlu1 %7257  ;;  %v2028_v52 = vmul.f32 %v9413_v59, %v9780_v14  ;;  %v2030_v33 = vmul.f32 %v9772_v15, %v9780_v14 }
 0x308   :  { %v3794_v13 = vmax.f32 %v3734_v11, %v7249_v55  ;;  %v3795_v46 = vmax.f32 %v3735_v63, %v7250_v60  ;;  %7297 = vrot.lane.b32.xlu1 %v7296_v22, %s7456_s0  ;;  %7292 = vrot.lane.b32.xlu0 %v7286_v0, %s7457_s20  ;;  %v7260_v2 = vunpack.i.h.bf16 %v7258_v19  ;;  %v7259_v53 = vunpack.i.l.bf16 %v7258_v19  ;;  %v14001_v63 = vld [vmem:[#allocation93_spill] sm:$0xff] }
 0x309   :  { %v1991_v0 = vmul.f32 %v9767_v20, %v1989_v48  ;;  %v9792_v60 = vstv %s6676_s17  ;;  %v2104_v19 = vmul.f32 %v9413_v59, %v14001_v63  ;;  %s11875_s17 = sld [smem:[#allocation11 + $0xc]] }
 0x30a   :  { %v3842_v41 = vmax.f32 %v3794_v13, %v7254_v50  ;;  %v3843_v17 = vmax.f32 %v3795_v46, %v7255_v27  ;;  %v2066_v55 = vmul.f32 %v9413_v59, %v9792_v60  ;;  %v2068_v11 = vmul.f32 %v9772_v15, %v9792_v60 }
 0x30b   :  { %v7268_v32 = vpop.permute.xlu1 %7267  ;;  %v9804_v27 = vmul.f32 %v9767_v20, %v14001_v63  ;;  %v2070_v50 = vmul.f32 %v9746_v25, %v9792_v60  ;;  %v2116_v13 = vrot.slane %v2104_v19, 1 }
 0x30c   :  { %v3866_v4 = vmax.f32 %v3842_v41, %v9611_v62  ;;  %v3867_v36 = vmax.f32 %v3843_v17, %v9613_v1  ;;  %7307 = vrot.lane.b32.xlu1 %v7306_v6, %s7456_s0  ;;  %7302 = vrot.lane.b32.xlu0 %v7296_v22, %s7457_s20  ;;  %v7270_v44 = vunpack.i.h.bf16 %v7268_v32  ;;  %v7269_v56 = vunpack.i.l.bf16 %v7268_v32 }
 0x30d   :  { %v1946_v62 = vmul.f32 %v9746_v25, %v13949_v57  ;;  %v1990_v57 = vmul.f32 %v9413_v59, %v1989_v48  ;;  %v2032_v22 = vmul.f32 %v9746_v25, %v9780_v14  ;;  %v2117_v46 = vrot.slane %v9804_v27, 1 }
 0x30e   :  { %v3926_v42 = vmax.f32 %v3866_v4, %v7259_v53  ;;  %v3927_v39 = vmax.f32 %v3867_v36, %v7260_v2  ;;  %v9813_v41 = vmul.f32 %v9772_v15, %v14001_v63  ;;  %v14002_v53 = vld [vmem:[#allocation94_spill] sm:$0xff] }
 0x30f   :  { %v1960_v35 = vrot.slane %v1946_v62, 2  ;;  %v2118_v17 = vsel %vm272_vm3, %v2116_v13, %v2117_v46  ;;  %v2152_v4 = vmul.f32 %v9413_v59, %v14002_v53  ;;  %v9829_v36 = vmul.f32 %v9767_v20, %v14002_v53 }
 0x310   :  { %v3974_v30 = vmax.f32 %v3926_v42, %v7269_v56  ;;  %v3975_v1 = vmax.f32 %v3927_v39, %v7270_v44  ;;  %7312 = vrot.lane.b32.xlu0 %v7306_v6, %s7457_s20  ;;  %v9820_v6 = vmul.f32 %v9751_v24, %v14001_v63  ;;  %v2119_v32 = vrot.slane %v9813_v41, 1  ;;  %v14003_v42 = vld [vmem:[#allocation95_spill] sm:$0xff] }
 0x311   :  { %v1961_v8 = vsel %vm381_vm4, %v1959_v12, %v1960_v35  ;;  %v1963_v37 = vsel %vm381_vm4, %v1960_v35, %v1962_v5  ;;  %v14004_v39 = vrot.slane %v14003_v42, 1  ;;  %v2164_v56 = vrot.slane %v2152_v4, 1  ;;  %v14005_v35 = vld [vmem:[#allocation97_spill] sm:$0xff]  ;;  %v14028_v41 = vld [vmem:[#allocation111_spill] sm:$0xff] }
 0x312   :  { %v7316_v23 = vpack.i.bf16 %v3975_v1, %v3974_v30  ;;  %v2124_v2 = vrot.slane %v9820_v6, 1  ;;  %v2165_v21 = vrot.slane %v9829_v36, 1  ;;  %v9843_v62 = vmul.f32 %v9772_v15, %v14002_v53 }
 0x313   :  { %v9850_v1 = vmul.f32 %v9751_v24, %v14002_v53  ;;  %v2200_v9 = vmul.f32 %v9413_v59, %v14005_v35  ;;  %v9873_v48 = vmul.f32 %v9772_v15, %v14005_v35 }
 0x314   :  { %7317 = vrot.lane.b32.xlu1 %v7316_v23, %s7458_s30  ;;  %1966 = vrot.lane.b32.xlu0 %v13998_v29, %s7456_s0  ;;  %v2125_v44 = vsel %vm272_vm3, %v14004_v39, %v2124_v2  ;;  %v2166_v30 = vsel %vm272_vm3, %v2164_v56, %v2165_v21  ;;  %v2167_v23 = vrot.slane %v9843_v62, 1  ;;  %v9859_v29 = vmul.f32 %v9767_v20, %v14005_v35 }
 0x315   :  { %v2172_v12 = vrot.slane %v9850_v1, 1  ;;  %v14033_v1 = vld [vmem:[#allocation112_spill] sm:$0xff] }
 0x316   :  { %v2168_v27 = vsel %vm272_vm3, %v2165_v21, %v2167_v23  ;;  %v14030_v36 = vrot.slane %v9859_v29, 1 }
 0x318   :  { %1968 = vrot.lane.b32.xlu1 %v14000_v3, %s7456_s0  ;;  %1970 = vrot.lane.b32.xlu0 %v1961_v8, %s7456_s0  ;;  %v14006_v8 = vld [vmem:[#allocation96_spill] sm:$0xff]  ;;  %v2212_v3 = vrot.slane %v2200_v9, 1 }
 0x31c   :  { %1972 = vrot.lane.b32.xlu1 %v1963_v37, %s7456_s0  ;;  %1974 = vrot.lane.b32.xlu0 %v1962_v5, %s7456_s0  ;;  %v14007_v5 = vrot.slane %v14006_v8, 1  ;;  %v13530_v37 = vrot.slane %v9859_v29, 1 }
 0x31e   :  { %v2173_v40 = vsel %vm272_vm3, %v14007_v5, %v2172_v12 }
 0x320   :  { %2002 = vrot.lane.b32.xlu1 %v1990_v57, %s7457_s20  ;;  %2004 = vrot.lane.b32.xlu0 %v1991_v0, %s7457_s20  ;;  %v2214_v57 = vsel %vm272_vm3, %v2212_v3, %v13530_v37  ;;  %v9880_v0 = vmul.f32 %v9751_v24, %v14005_v35  ;;  %v14013_v35 = vld [vmem:[#allocation103_spill] sm:$0xff] }
 0x321   :  { %v2296_v9 = vmul.f32 %v9413_v59, %v14013_v35  ;;  %v9933_v8 = vmul.f32 %v9767_v20, %v14013_v35 }
 0x324   :  { %2006 = vrot.lane.b32.xlu1 %v1992_v54, %s7457_s20  ;;  %2008 = vrot.lane.b32.xlu0 %v1993_v26, %s7457_s20  ;;  %v2215_v54 = vrot.slane %v9873_v48, 1  ;;  %v13529_v26 = vrot.slane %v9880_v0, 1  ;;  %v14036_v48 = vld [vmem:[#allocation46_spill] sm:$0xff] }
 0x326   :  { %v2216_v21 = vsel %vm272_vm3, %v14030_v36, %v2215_v54  ;;  %v14047_v36 = vld [vmem:[#allocation49_spill] sm:$0xff] }
 0x328   :  { %2010 = vrot.lane.b32.xlu1 %v1994_v45, %s7457_s20  ;;  %2012 = vrot.lane.b32.xlu0 %v1995_v47, %s7457_s20  ;;  %v14008_v45 = vld [vmem:[#allocation101_spill] sm:$0xff] }
 0x329   :  { %v2248_v47 = vmul.f32 %v9413_v59, %v14008_v45  ;;  %v9915_v42 = vmul.f32 %v9751_v24, %v14008_v45 }
 0x32b   :  { %v13526_v56 = vrot.slane %v9915_v42, 2 }
 0x32c   :  { %2040 = vrot.lane.b32.xlu0 %v2028_v52, %s7457_s20  ;;  %v9889_v52 = vmul.f32 %v9767_v20, %v14008_v45 }
 0x32e   :  { %v13527_v63 = vrot.slane %v9889_v52, 2 }
 0x330   :  { %2044 = vrot.lane.b32.xlu0 %v2030_v33, %s7457_s20  ;;  %v14009_v33 = vld [vmem:[#allocation100_spill] sm:$0xff] }
 0x334   :  { %2048 = vrot.lane.b32.xlu0 %v2032_v22, %s7457_s20  ;;  %v14010_v22 = vrot.slane %v14009_v33, 1  ;;  %v13525_v33 = vrot.slane %v9933_v8, 2 }
 0x338   :  { %2078 = vrot.lane.b32.xlu0 %v2066_v55, %s7457_s20  ;;  %v2221_v55 = vsel %vm272_vm3, %v14010_v22, %v13529_v26 }
 0x33c   :  { %2082 = vrot.lane.b32.xlu0 %v2068_v11, %s7457_s20  ;;  %v2260_v11 = vrot.slane %v2248_v47, 2  ;;  %v2308_v47 = vrot.slane %v2296_v9, 2 }
 0x33e   :  { %v2262_v53 = vsel %vm381_vm4, %v2260_v11, %v13527_v63  ;;  %v9953_v11 = vmul.f32 %v9772_v15, %v14013_v35 }
 0x340   :  { %2086 = vrot.lane.b32.xlu0 %v2070_v50, %s7457_s20 }
 0x344   :  { %2126 = vrot.lane.b32.xlu0 %v2118_v17, %s7457_s20  ;;  %v9903_v17 = vmul.f32 %v9772_v15, %v14008_v45 }
 0x348   :  { %2130 = vrot.lane.b32.xlu0 %v2119_v32, %s7457_s20 }
 0x34c   :  { %2134 = vrot.lane.b32.xlu0 %v2125_v44, %s7457_s20  ;;  %v13528_v44 = vrot.slane %v9903_v17, 2 }
 0x350   :  { %2174 = vrot.lane.b32.xlu0 %v2166_v30, %s7457_s20  ;;  %v9927_v30 = vld [vmem:[%s13327_s1 + $0x8] sm:$0x7]  ;;  %s6683_s1 = sld [smem:[#allocation9 + $0x1]] }
 0x354   :  { %2178 = vrot.lane.b32.xlu0 %v2167_v23, %s7457_s20 }
 0x358   :  { %2182 = vrot.lane.b32.xlu0 %v2173_v40, %s7457_s20 }
 0x35c   :  { %2222 = vrot.lane.b32.xlu0 %v2214_v57, %s7457_s20  ;;  %v14014_v57 = vld [vmem:[#allocation102_spill] sm:$0xff] }
 0x35d   :  { %v14015_v45 = vrot.slane %v14014_v57, 2  ;;  %v14016_v57 = vld [vmem:[#allocation107_spill] sm:$0xff] }
 0x35f   :  { %v2269_v59 = vsel %vm381_vm4, %v14015_v45, %v13526_v56 }
 0x360   :  { %2226 = vrot.lane.b32.xlu0 %v2215_v54, %s7457_s20  ;;  %v14038_v54 = vld [vmem:[#allocation48_spill] sm:$0xff] }
 0x364   :  { %2230 = vrot.lane.b32.xlu0 %v2221_v55, %s7457_s20  ;;  %v7263_v19 = vpop.permute.xlu0 %7262 }
 0x365   :  { %v7265_v50 = vunpack.i.h.bf16 %v7263_v19  ;;  %v7264_v13 = vunpack.i.l.bf16 %v7263_v19  ;;  %v9957_v19 = vmul.f32 %v9751_v24, %v14013_v35 }
 0x367   :  { %v7029_v39 = vpack.c.bf16 %v7265_v50, %v7264_v13  ;;  %v2316_v35 = vrot.slane %v9957_v19, 2 }
 0x368   :  { %2270 = vrot.lane.b32.xlu0 %v2262_v53, %s7457_s20  ;;  %v2310_v53 = vsel %vm381_vm4, %v2308_v47, %v13525_v33 }
 0x369   :  { %7031 = vmatprep.subr.msk.bf16.mxu0 %vm9909_vm10, %v7029_v39 }
 0x36a   :  { %7034 = vmatpush3.bf16.msk.msra.mxu0 %vm9909_vm10, %v7029_v39 }
 0x36c   :  { %2274 = vrot.lane.b32.xlu0 %v13528_v44, %s7457_s20  ;;  %v7273_v5 = vpop.permute.xlu0 %7272 }
 0x36d   :  { %v7275_v40 = vunpack.i.h.bf16 %v7273_v5  ;;  %v7274_v3 = vunpack.i.l.bf16 %v7273_v5  ;;  %6950 = vmatmul.mubr.msk.f32.vlgmr.msra.gmra.mrb[0].mxu0 %vm3587_vm8, %v9927_v30 }
 0x36e   :  { %6963 = vmatprep.mubr.msk.f32.mxu0 %vm3587_vm8, %v9697_v31 }
 0x36f   :  { %v7041_v22 = vpack.c.bf16 %v7275_v40, %v7274_v3  ;;  %v13531_v40 = vrot.slane %v9953_v11, 2  ;;  %v9969_v3 = vld [vmem:[#allocation2 + $0x18] sm:$0xff] }
 0x370   :  { %2278 = vrot.lane.b32.xlu0 %v2269_v59, %s7457_s20  ;;  %v2344_v45 = vmul.f32 %v9969_v3, %v14016_v57  ;;  %v9975_v59 = vmul.f32 %v9767_v20, %v14016_v57 }
 0x371   :  { %7043 = vmatprep.subr.msk.bf16.mxu0 %vm9909_vm10, %v7041_v22 }
 0x372   :  { %v7278_v55 = vpop.permute.xlu1 %7277  ;;  %7046 = vmatpush3.bf16.msk.msra.mxu0 %vm9909_vm10, %v7041_v22  ;;  %v2356_v56 = vrot.slane %v2344_v45, 2  ;;  %v13532_v63 = vrot.slane %v9975_v59, 2  ;;  %v14071_v19 = vrot.slane %v9975_v59, 2  ;;  %v10241_v59 = vld [vmem:[#allocation2 + $0x40] sm:$0x3f] }
 0x373   :  { %v7280_v50 = vunpack.i.h.bf16 %v7278_v55  ;;  %v7279_v13 = vunpack.i.l.bf16 %v7278_v55 }
 0x374   :  { %2318 = vrot.lane.b32.xlu0 %v2310_v53, %s7457_s20 }
 0x375   :  { %v7053_v39 = vpack.c.bf16 %v7280_v50, %v7279_v13  ;;  %6964 = vmatmul.mubr.msk.f32.vlgmr.msra.gmra.mrb[2].mxu0 %vm3587_vm8, %v9927_v30 }
 0x376   :  { %v7288_v9 = vpop.permute.xlu1 %7287  ;;  %v7283_v5 = vpop.permute.xlu0 %7282  ;;  %6977 = vmatprep.mubr.msk.f32.mxu0 %vm3587_vm8, %v9697_v31 }
 0x377   :  { %v7290_v47 = vunpack.i.h.bf16 %v7288_v9  ;;  %v7289_v22 = vunpack.i.l.bf16 %v7288_v9  ;;  %v7285_v55 = vunpack.i.h.bf16 %v7283_v5  ;;  %v7284_v50 = vunpack.i.l.bf16 %v7283_v5  ;;  %7055 = vmatprep.subr.msk.bf16.mxu0 %vm9909_vm10, %v7053_v39  ;;  %v14017_v9 = vld [vmem:[#allocation104_spill] sm:$0xff] }
 0x378   :  { %2322 = vrot.lane.b32.xlu0 %v13531_v40, %s7457_s20  ;;  %7058 = vmatpush3.bf16.msk.msra.mxu0 %vm9909_vm10, %v7053_v39  ;;  %v14018_v33 = vrot.slane %v14017_v9, 2 }
 0x379   :  { %v7065_v13 = vpack.c.bf16 %v7285_v55, %v7284_v50  ;;  %v3665_v44 = vmax.f32 %v9713_v43, %v7290_v47  ;;  %v3664_v26 = vmax.f32 %v9711_v10, %v7289_v22  ;;  %v2358_v43 = vsel %vm381_vm4, %v2356_v56, %v13532_v63 }
 0x37a   :  { %v7293_v53 = vpop.permute.xlu0 %7292  ;;  %v2317_v5 = vsel %vm381_vm4, %v14018_v33, %v2316_v35  ;;  %v7298_v39 = vpop.permute.xlu1 %7297  ;;  %v10008_v47 = vmul.f32 %v9772_v15, %v14016_v57  ;;  %v10012_v22 = vmul.f32 %v9751_v24, %v14016_v57 }
 0x37b   :  { %v7295_v37 = vunpack.i.h.bf16 %v7293_v53  ;;  %v7294_v40 = vunpack.i.l.bf16 %v7293_v53  ;;  %7067 = vmatprep.subr.msk.bf16.mxu0 %vm9909_vm10, %v7065_v13  ;;  %6978 = vmatmul.mubr.msk.f32.vlgmr.msra.gmra.mrb[4].mxu0 %vm3587_vm8, %v9927_v30  ;;  %v7300_v55 = vunpack.i.h.bf16 %v7298_v39  ;;  %v7299_v50 = vunpack.i.l.bf16 %v7298_v39 }
 0x37c   :  { %2326 = vrot.lane.b32.xlu0 %v2317_v5, %s7457_s20  ;;  %7070 = vmatpush3.bf16.msk.msra.mxu0 %vm9909_vm10, %v7065_v13  ;;  %v13533_v9 = vrot.slane %v10008_v47, 2 }
 0x37d   :  { %v3713_v33 = vmax.f32 %v3665_v44, %v7295_v37  ;;  %v3712_v45 = vmax.f32 %v3664_v26, %v7294_v40  ;;  %6991 = vmatprep.mubr.msk.f32.mxu0 %vm3587_vm8, %v9697_v31 }
 0x37e   :  { %v7303_v10 = vpop.permute.xlu0 %7302  ;;  %v7308_v57 = vpop.permute.xlu1 %7307 }
 0x37f   :  { %v3737_v37 = vmax.f32 %v3713_v33, %v9722_v18  ;;  %v3736_v26 = vmax.f32 %v3712_v45, %v9720_v58  ;;  %6992 = vmatmul.mubr.msk.f32.vlgmr.msra.gmra.mrb[6].mxu0 %vm3587_vm8, %v9927_v30  ;;  %v7305_v44 = vunpack.i.h.bf16 %v7303_v10  ;;  %v7304_v56 = vunpack.i.l.bf16 %v7303_v10 }
 0x380   :  { %2366 = vrot.lane.b32.xlu0 %v2358_v43, %s7457_s20  ;;  %7005 = vmatprep.mubr.msk.f32.mxu0 %vm3587_vm8, %v9697_v31  ;;  %v2364_v18 = vrot.slane %v10012_v22, 2  ;;  %v7310_v39 = vunpack.i.h.bf16 %v7308_v57  ;;  %v7309_v33 = vunpack.i.l.bf16 %v7308_v57 }
 0x381   :  { %v3796_v40 = vmax.f32 %v3736_v26, %v7299_v50  ;;  %v3797_v13 = vmax.f32 %v3737_v37, %v7300_v55  ;;  %v14019_v26 = vld [vmem:[#allocation108_spill] sm:$0xff] }
 0x382   :  { %v7313_v53 = vpop.permute.xlu0 %7312 }
 0x383   :  { %v3844_v5 = vmax.f32 %v3796_v40, %v7304_v56  ;;  %v3845_v58 = vmax.f32 %v3797_v13, %v7305_v44  ;;  %v7315_v43 = vunpack.i.h.bf16 %v7313_v53  ;;  %v7314_v55 = vunpack.i.l.bf16 %v7313_v53 }
 0x384   :  { %2370 = vrot.lane.b32.xlu0 %v13533_v9, %s7457_s20  ;;  %v14020_v56 = vrot.slane %v14019_v26, 2 }
 0x385   :  { %v3868_v45 = vmax.f32 %v3844_v5, %v9730_v7  ;;  %v3869_v10 = vmax.f32 %v3845_v58, %v9732_v38 }
 0x386   :  { %v7318_v50 = vpop.permute.xlu1 %7317  ;;  %v10028_v37 = vpop.permute.xlu0 %1966  ;;  %v2365_v44 = vsel %vm381_vm4, %v14020_v56, %v2364_v18  ;;  %v14025_v56 = vld [vmem:[#allocation109_spill] sm:$0xff] }
 0x387   :  { %v3928_v40 = vmax.f32 %v3868_v45, %v7309_v33  ;;  %v3929_v13 = vmax.f32 %v3869_v10, %v7310_v39  ;;  %v7320_v63 = vunpack.i.h.bf16 %v7318_v50  ;;  %v7319_v9 = vunpack.i.l.bf16 %v7318_v50 }
 0x388   :  { %2374 = vrot.lane.b32.xlu0 %v2365_v44, %s7457_s20  ;;  %v2029_v39 = vmul.f32 %v9767_v20, %v9780_v14  ;;  %v2033_v45 = vmul.f32 %v9751_v24, %v9780_v14 }
 0x389   :  { %v3976_v7 = vmax.f32 %v3928_v40, %v7314_v55  ;;  %v3977_v57 = vmax.f32 %v3929_v13, %v7315_v43  ;;  %v7077_v38 = vpack.c.bf16 %v7320_v63, %v7319_v9  ;;  %v2031_v9 = vmul.f32 %v9742_v34, %v9780_v14 }
 0x38a   :  { %v10036_v5 = vpop.permute.xlu0 %1970  ;;  %v2069_v55 = vmul.f32 %v9742_v34, %v9792_v60  ;;  %v2071_v14 = vmul.f32 %v9751_v24, %v9792_v60  ;;  %v10119_v13 = vpop.permute.xlu1 %1968 }
 0x38b   :  { %7079 = vmatprep.subr.msk.bf16.mxu0 %vm9909_vm10, %v7077_v38  ;;  %v7321_v53 = vpack.i.bf16 %v3977_v57, %v3976_v7  ;;  %14032 = vst [vmem:[#allocation101_spill] sm:$0xff] %v10119_v13 }
 0x38c   :  { %7082 = vmatpush3.bf16.msk.msra.mxu0 %vm9909_vm10, %v7077_v38  ;;  %v14037_v38 = vrot.slane %v14036_v48, 1 }
 0x38d   :  { %7322 = vrot.lane.b32.xlu1 %v7321_v53, %s7458_s30  ;;  %v1330_v53 = vmul.f32 %v9969_v3, %v14038_v54 }
 0x38e   :  { %v10043_v58 = vpop.permute.xlu0 %1974 }
 0x38f   :  { %7006 = vmatmul.mubr.msk.f32.vlgmr.msra.gmra.mrb[8].mxu0 %vm3587_vm8, %v9927_v30 }
 0x390   :  { %7019 = vmatprep.mubr.msk.f32.mxu0 %vm3587_vm8, %v9697_v31  ;;  %v2067_v31 = vmul.f32 %v9767_v20, %v9792_v60  ;;  %v2120_v20 = vsel %vm272_vm3, %v2117_v46, %v2119_v32 }
 0x391   :  { %2042 = vrot.lane.b32.xlu1 %v2029_v39, %s7457_s20  ;;  %v14039_v39 = vrot.slane %v9880_v0, 1 }
 0x392   :  { %v10052_v63 = vpop.permute.xlu0 %2004 }
 0x395   :  { %2046 = vrot.lane.b32.xlu1 %v2031_v9, %s7457_s20 }
 0x396   :  { %v10057_v33 = vpop.permute.xlu0 %2008 }
 0x399   :  { %2050 = vrot.lane.b32.xlu1 %v2033_v45, %s7457_s20  ;;  %v10135_v45 = vpop.permute.xlu1 %1972 }
 0x39a   :  { %v10062_v10 = vpop.permute.xlu0 %2012  ;;  %14040 = vst [vmem:[#allocation103_spill] sm:$0xff] %v10135_v45 }
 0x39d   :  { %2080 = vrot.lane.b32.xlu1 %v2067_v31, %s7457_s20  ;;  %v2003_v48 = vpop.permute.xlu1 %2002 }
 0x39e   :  { %v10067_v43 = vpop.permute.xlu0 %2040 }
 0x39f   :  { %14021 = vst [vmem:[#allocation85_spill] sm:$0xff] %v10067_v43  ;;  %v14106_v43 = vld [vmem:[#allocation233_spill] sm:$0xff] }
 0x3a1   :  { %2084 = vrot.lane.b32.xlu1 %v2069_v55, %s7457_s20 }
 0x3a2   :  { %v10072_v50 = vpop.permute.xlu0 %2044 }
 0x3a3   :  { %14022 = vst [vmem:[#allocation83_spill] sm:$0xff] %v10072_v50 }
 0x3a5   :  { %2088 = vrot.lane.b32.xlu1 %v2071_v14, %s7457_s20  ;;  %v1332_v14 = vmul.f32 %v9772_v15, %v14038_v54  ;;  %v1334_v15 = vmul.f32 %v9746_v25, %v14038_v54  ;;  %v14057_v54 = vld [vmem:[#allocation59_spill] sm:$0xff] }
 0x3a6   :  { %v10077_v26 = vpop.permute.xlu0 %2048 }
 0x3a7   :  { %14023 = vst [vmem:[#allocation93_spill] sm:$0xff] %v10077_v26 }
 0x3a9   :  { %2128 = vrot.lane.b32.xlu1 %v2120_v20, %s7457_s20  ;;  %v14042_v20 = vrot.slane %v9903_v17, 2  ;;  %v14049_v17 = vld [vmem:[#allocation58_spill] sm:$0xff] }
 0x3aa   :  { %v10085_v34 = vpop.permute.xlu0 %2078 }
 0x3ab   :  { %14024 = vst [vmem:[#allocation94_spill] sm:$0xff] %v10085_v34  ;;  %v14098_v34 = vld [vmem:[#allocation159_spill] sm:$0xff] }
 0x3ac   :  { %v14099_v26 = vrot.slane %v14098_v34, 2 }
 0x3ad   :  { %2132 = vrot.lane.b32.xlu1 %v14025_v56, %s7457_s20  ;;  %v14043_v56 = vrot.slane %v9889_v52, 2  ;;  %v14051_v52 = vld [vmem:[#allocation51_spill] sm:$0xff] }
 0x3ae   :  { %v10089_v44 = vpop.permute.xlu0 %2082 }
 0x3af   :  { %14026 = vst [vmem:[#allocation95_spill] sm:$0xff] %v10089_v44 }
 0x3b1   :  { %2136 = vrot.lane.b32.xlu1 %v2124_v2, %s7457_s20  ;;  %v14029_v2 = vld [vmem:[#allocation44_spill] sm:$0xff] }
 0x3b2   :  { %v10094_v60 = vpop.permute.xlu0 %2086  ;;  %v1372_v62 = vmul.f32 %v9969_v3, %v14029_v2 }
 0x3b3   :  { %14027 = vst [vmem:[#allocation97_spill] sm:$0xff] %v10094_v60  ;;  %v14096_v60 = vld [vmem:[#allocation82_spill] sm:$0xff] }
 0x3b4   :  { %v1384_v40 = vrot.slane %v1372_v62, 1 }
 0x3b5   :  { %2176 = vrot.lane.b32.xlu1 %v2168_v27, %s7457_s20  ;;  %v2264_v27 = vsel %vm381_vm4, %v14043_v56, %v14042_v20  ;;  %v14058_v20 = vrot.slane %v14057_v54, 2  ;;  %v14059_v56 = vld [vmem:[#allocation52_spill] sm:$0xff] }
 0x3b6   :  { %v2127_v46 = vpop.permute.xlu0 %2126  ;;  %v1386_v29 = vsel %vm272_vm3, %v1384_v40, %v14037_v38 }
 0x3b7   :  { %v1400_v55 = vadd.f32 %v1386_v29, %v1330_v53  ;;  %v14053_v29 = vld [vmem:[#allocation113_spill] sm:$0xff] }
 0x3b9   :  { %2180 = vrot.lane.b32.xlu1 %v14028_v41, %s7457_s20 }
 0x3ba   :  { %v2131_v32 = vpop.permute.xlu0 %2130 }
 0x3bd   :  { %2184 = vrot.lane.b32.xlu1 %v2172_v12, %s7457_s20  ;;  %v14034_v12 = vld [vmem:[#allocation45_spill] sm:$0xff] }
 0x3be   :  { %v10107_v6 = vpop.permute.xlu0 %2134  ;;  %v1480_v7 = vmul.f32 %v9969_v3, %v14034_v12  ;;  %v14044_v3 = vld [vmem:[#allocation47_spill] sm:$0xff]  ;;  %v14052_v12 = vrot.slane %v14051_v52, 1 }
 0x3bf   :  { %v14045_v0 = vrot.slane %v14044_v3, 2 }
 0x3c0   :  { %v1492_v9 = vrot.slane %v1480_v7, 2 }
 0x3c1   :  { %2224 = vrot.lane.b32.xlu1 %v2216_v21, %s7457_s20  ;;  %v14048_v21 = vrot.slane %v14047_v36, 1 }
 0x3c2   :  { %v10117_v23 = vpop.permute.xlu0 %2174  ;;  %v1494_v41 = vsel %vm381_vm4, %v1492_v9, %v14045_v0 }
 0x3c3   :  { %14031 = vst [vmem:[#allocation96_spill] sm:$0xff] %v10117_v23  ;;  %v1508_v62 = vadd.f32 %v1494_v41, %v1400_v55  ;;  %v1402_v40 = vadd.f32 %v14048_v21, %v1332_v14  ;;  %v14061_v41 = vrot.slane %v9915_v42, 2  ;;  %v10190_v42 = vstv %s6683_s1  ;;  %v14095_v23 = vld [vmem:[#allocation54_spill] sm:$0xff]  ;;  %s11605_s1 = sld [smem:[#allocation11 + $0x13]] }
 0x3c4   :  { %v1621_v44 = vadd.f32 %v14096_v60, %v14095_v23  ;;  %v14103_v60 = vld [vmem:[#allocation216_spill] sm:$0xff] }
 0x3c5   :  { %2228 = vrot.lane.b32.xlu1 %v14033_v1, %s7457_s20  ;;  %v14050_v1 = vrot.slane %v14049_v17, 1  ;;  %v1618_v38 = vadd.f32 %v9463_v51, %v1508_v62  ;;  %v2007_v62 = vpop.permute.xlu1 %2006  ;;  %v14064_v17 = vrot.slane %v9933_v8, 2 }
 0x3c6   :  { %v10125_v57 = vpop.permute.xlu0 %2178  ;;  %v1745_v23 = vadd.f32 %v14103_v60, %v1621_v44 }
 0x3c7   :  { %14035 = vst [vmem:[#allocation100_spill] sm:$0xff] %v10125_v57  ;;  %v1393_v7 = vsel %vm272_vm3, %v14052_v12, %v14050_v1  ;;  %v1742_v25 = vadd.f32 %v9601_v49, %v1618_v38 }
 0x3c8   :  { %v1404_v14 = vadd.f32 %v1393_v7, %v1334_v15  ;;  %v14063_v15 = vrot.slane %v9953_v11, 2  ;;  %v14068_v11 = vld [vmem:[#allocation232_spill] sm:$0xff] }
 0x3c9   :  { %2232 = vrot.lane.b32.xlu1 %v14039_v39, %s7457_s20  ;;  %v14055_v39 = vld [vmem:[#allocation50_spill] sm:$0xff]  ;;  %v1886_v0 = vadd.f32 %v9650_v16, %v1742_v25 }
 0x3ca   :  { %v10137_v31 = vpop.permute.xlu0 %2182  ;;  %v14056_v9 = vrot.slane %v14055_v39, 2  ;;  %v2312_v1 = vsel %vm381_vm4, %v14064_v17, %v14063_v15  ;;  %v14066_v16 = vld [vmem:[#allocation230_spill] sm:$0xff] }
 0x3cb   :  { %14041 = vst [vmem:[#allocation102_spill] sm:$0xff] %v10137_v31  ;;  %v14069_v25 = vld [vmem:[#allocation114_spill] sm:$0xff] }
 0x3cc   :  { %v1510_v55 = vadd.f32 %v14056_v9, %v1402_v40  ;;  %v2020_v40 = vadd.f32 %v2003_v48, %v1886_v0  ;;  %v2011_v9 = vpop.permute.xlu1 %2010  ;;  %v10246_v17 = vld [vmem:[#allocation2 + $0x80] sm:$0xff] }
 0x3cd   :  { %2272 = vrot.lane.b32.xlu1 %v2264_v27, %s7457_s20  ;;  %v14060_v27 = vrot.slane %v14059_v56, 2 }
 0x3ce   :  { %v10150_v2 = vpop.permute.xlu0 %2222  ;;  %v1620_v51 = vadd.f32 %v9475_v61, %v1510_v55  ;;  %v14065_v61 = vld [vmem:[#allocation77_spill] sm:$0xff]  ;;  %v2144_v7 = vadd.f32 %v2127_v46, %v2020_v40  ;;  %v3980_v46 = vld [vmem:[%s13328_s2] sm:$0xff]  ;;  %v14072_v40 = vld [vmem:[#allocation116_spill] sm:$0xff] }
 0x3cf   :  { %14046 = vst [vmem:[#allocation107_spill] sm:$0xff] %v10150_v2  ;;  %v1501_v3 = vsel %vm381_vm4, %v14060_v27, %v14058_v20  ;;  %v3981_v20 = vld [vmem:[%s13328_s2 + $0x8] sm:$0x3f]  ;;  %s6694_s2 = sld [smem:[#allocation12 + $0x13]]  ;;  %v14092_v2 = vld [vmem:[#allocation80_spill] sm:$0xff] }
 0x3d0   :  { %v1512_v21 = vadd.f32 %v1501_v3, %v1404_v14  ;;  %v1744_v49 = vadd.f32 %v9609_v28, %v1620_v51 }
 0x3d1   :  { %2276 = vrot.lane.b32.xlu1 %v14053_v29, %s7457_s20  ;;  %v14067_v29 = vld [vmem:[#allocation215_spill] sm:$0xff] }
 0x3d2   :  { %v10164_v53 = vpop.permute.xlu0 %2226  ;;  %v1622_v52 = vadd.f32 %v14065_v61, %v1512_v21  ;;  %v1888_v12 = vadd.f32 %v14066_v16, %v1744_v49  ;;  %v10228_v21 = vld [vmem:[#allocation2 + $0x30] sm:$0xff]  ;;  %v10230_v49 = vstv %s6693_s9  ;;  %v10261_v16 = vstv %s6695_s23  ;;  %s11672_s9 = sld [smem:[#allocation11 + $0x2e]]  ;;  %s12020_s23 = sld [smem:[#allocation11 + $0x30]] }
 0x3d3   :  { %14054 = vst [vmem:[#allocation104_spill] sm:$0xff] %v10164_v53  ;;  %v2698_v15 = vmul.f32 %v10241_v59, %v10230_v49  ;;  %v14091_v53 = vld [vmem:[#allocation53_spill] sm:$0xff] }
 0x3d4   :  { %v1746_v39 = vadd.f32 %v14067_v29, %v1622_v52  ;;  %v2022_v28 = vadd.f32 %v2007_v62, %v1888_v12  ;;  %v2772_v29 = vmul.f32 %v10261_v16, %v10228_v21  ;;  %v1619_v31 = vadd.f32 %v14092_v2, %v14091_v53  ;;  %v14097_v2 = vld [vmem:[#allocation231_spill] sm:$0xff] }
 0x3d5   :  { %2280 = vrot.lane.b32.xlu1 %v14061_v41, %s7457_s20  ;;  %v10250_v61 = vstv %s6694_s2  ;;  %s6739_s2 = sld [smem:[#allocation11 + $0xe]] }
 0x3d6   :  { %v10179_v36 = vpop.permute.xlu0 %2230  ;;  %v1890_v55 = vadd.f32 %v14068_v11, %v1746_v39  ;;  %v2146_v8 = vadd.f32 %v2131_v32, %v2022_v28  ;;  %v10204_v32 = vpack.c.bf16 %v3981_v20, %v3980_v46  ;;  %v2734_v22 = vmul.f32 %v10250_v61, %v10228_v21 }
 0x3d7   :  { %14062 = vst [vmem:[#allocation108_spill] sm:$0xff] %v10179_v36  ;;  %v2738_v52 = vmul.f32 %v10246_v17, %v10250_v61 }
 0x3d8   :  { %v2024_v56 = vadd.f32 %v2011_v9, %v1890_v55  ;;  %7037 = vmatprep.subr.msk.bf16.mxu1 %vm9909_vm10, %v10204_v32  ;;  %v14073_v9 = vld [vmem:[#allocation142_spill] sm:$0xff]  ;;  %v10277_v55 = vld [vmem:[#allocation2 + $0x38] sm:$0xff] }
 0x3d9   :  { %2320 = vrot.lane.b32.xlu1 %v2312_v1, %s7457_s20  ;;  %7040 = vmatpush3.bf16.msk.msra.mxu1 %vm9909_vm10, %v10204_v32  ;;  %v2700_v1 = vmul.f32 %v10246_v17, %v10230_v49  ;;  %v2810_v11 = vmul.f32 %v14073_v9, %v10228_v21 }
 0x3da   :  { %v2271_v38 = vpop.permute.xlu0 %2270  ;;  %v2148_v3 = vadd.f32 %v10107_v6, %v2024_v56  ;;  %7049 = vmatprep.subr.msk.bf16.mxu1 %vm9909_vm10, %v10204_v32  ;;  %v14070_v6 = vrot.slane %v10008_v47, 2  ;;  %v2696_v47 = vmul.f32 %v10230_v49, %v10228_v21  ;;  %v10296_v56 = vmul.f32 %v10241_v59, %v14073_v9 }
 0x3db   :  { %v2288_v48 = vadd.f32 %v2271_v38, %v2144_v7 }
 0x3dd   :  { %v2392_v14 = vadd.f32 %v10190_v42, %v2288_v48  ;;  %2324 = vrot.lane.b32.xlu1 %v14069_v25, %s7457_s20  ;;  %v2774_v48 = vmul.f32 %v10241_v59, %v10261_v16  ;;  %v2776_v25 = vmul.f32 %v10246_v17, %v10261_v16 }
 0x3de   :  { %v2275_v54 = vpop.permute.xlu0 %2274 }
 0x3df   :  { %v2290_v27 = vadd.f32 %v2275_v54, %v2146_v8  ;;  %2404 = vrot.lane.b32.xlu0 %v2392_v14, %s7457_s20  ;;  %v10281_v8 = vmul.f32 %v10277_v55, %v14073_v9  ;;  %v2822_v54 = vrot.slane %v2810_v11, 1 }
 0x3e1   :  { %v2394_v51 = vadd.f32 %v10190_v42, %v2290_v27  ;;  %2328 = vrot.lane.b32.xlu1 %v2316_v35, %s7457_s20  ;;  %v2360_v35 = vsel %vm381_vm4, %v14071_v19, %v14070_v6  ;;  %v13539_v46 = vrot.slane %v10281_v8, 1  ;;  %v14074_v6 = vld [vmem:[#allocation149_spill] sm:$0xff] }
 0x3e2   :  { %v2279_v0 = vpop.permute.xlu0 %2278  ;;  %v2858_v19 = vmul.f32 %v14074_v6, %v10228_v21 }
 0x3e3   :  { %v2292_v41 = vadd.f32 %v2279_v0, %v2148_v3  ;;  %2408 = vrot.lane.b32.xlu0 %v2394_v51, %s7457_s20  ;;  %v2824_v27 = vsel %vm272_vm3, %v2822_v54, %v13539_v46  ;;  %v10301_v3 = vld [vmem:[#allocation2 + $0x88] sm:$0x3f]  ;;  %v13540_v0 = vrot.slane %v10296_v56, 1  ;;  %v14079_v54 = vld [vmem:[#allocation150_spill] sm:$0xff] }
 0x3e5   :  { %v2396_v62 = vadd.f32 %v10190_v42, %v2292_v41  ;;  %2368 = vrot.lane.b32.xlu1 %v2360_v35, %s7457_s20  ;;  %v10316_v35 = vmul.f32 %v10277_v55, %v14074_v6 }
 0x3e6   :  { %v10399_v46 = vpop.permute.xlu0 %2318 }
 0x3e7   :  { %2412 = vrot.lane.b32.xlu0 %v2396_v62, %s7457_s20  ;;  %14086 = vst [vmem:[#allocation112_spill] sm:$0xff] %v10399_v46 }
 0x3e9   :  { %2372 = vrot.lane.b32.xlu1 %v14072_v40, %s7457_s20  ;;  %v14075_v40 = vld [vmem:[#allocation143_spill] sm:$0xff] }
 0x3eb   :  { %2708 = vrot.lane.b32.xlu0 %v2696_v47, %s7456_s0  ;;  %v14076_v47 = vrot.slane %v14075_v40, 1 }
 0x3ed   :  { %2376 = vrot.lane.b32.xlu1 %v2364_v18, %s7457_s20  ;;  %v2736_v18 = vmul.f32 %v10241_v59, %v10250_v61 }
 0x3ef   :  { %2712 = vrot.lane.b32.xlu0 %v2698_v15, %s7456_s0 }
 0x3f3   :  { %2716 = vrot.lane.b32.xlu0 %v2700_v1, %s7456_s0  ;;  %v2870_v1 = vrot.slane %v2858_v19, 1 }
 0x3f7   :  { %2746 = vrot.lane.b32.xlu0 %v2734_v22, %s7456_s0  ;;  %v13535_v22 = vrot.slane %v10316_v35, 1 }
 0x3fb   :  { %2750 = vrot.lane.b32.xlu0 %v2736_v18, %s7456_s0 }
 0x3ff   :  { %2754 = vrot.lane.b32.xlu0 %v2738_v52, %s7456_s0  ;;  %v7323_v12 = vpop.permute.xlu1 %7322  ;;  %v10334_v52 = vmul.f32 %v10241_v59, %v14074_v6 }
 0x400   :  { %v7325_v7 = vunpack.i.h.bf16 %v7323_v12  ;;  %v7324_v38 = vunpack.i.l.bf16 %v7323_v12  ;;  %v2872_v12 = vsel %vm272_vm3, %v2870_v1, %v13535_v22 }
 0x402   :  { %v7089_v39 = vpack.c.bf16 %v7325_v7, %v7324_v38  ;;  %v10341_v7 = vmul.f32 %v10301_v3, %v14074_v6 }
 0x403   :  { %2784 = vrot.lane.b32.xlu0 %v2772_v29, %s7456_s0  ;;  %v10267_v28 = vpop.permute.xlu1 %2042  ;;  %v13537_v29 = vrot.slane %v10334_v52, 1 }
 0x404   :  { %7091 = vmatprep.subr.msk.bf16.mxu0 %vm9909_vm10, %v7089_v39 }
 0x405   :  { %7094 = vmatpush3.bf16.msk.msra.mxu0 %vm9909_vm10, %v7089_v39  ;;  %v13534_v39 = vrot.slane %v10341_v7, 1 }
 0x407   :  { %2788 = vrot.lane.b32.xlu0 %v2774_v48, %s7456_s0  ;;  %v10284_v14 = vpop.permute.xlu1 %2046  ;;  %v14077_v48 = vld [vmem:[#allocation152_spill] sm:$0xff] }
 0x408   :  { %7020 = vmatmul.mubr.msk.f32.vlgmr.msra.gmra.mrb[10].mxu0 %vm3587_vm8, %v9927_v30  ;;  %v10305_v30 = vmul.f32 %v10301_v3, %v14073_v9  ;;  %v2906_v9 = vmul.f32 %v14077_v48, %v10228_v21  ;;  %v10350_v11 = vmul.f32 %v10277_v55, %v14077_v48 }
 0x40a   :  { %v13538_v41 = vrot.slane %v10305_v30, 1  ;;  %14078 = vst [vmem:[#allocation109_spill] sm:$0xff] %v10350_v11  ;;  %v2918_v19 = vrot.slane %v2906_v9, 1  ;;  %v13536_v40 = vrot.slane %v10350_v11, 1 }
 0x40b   :  { %2792 = vrot.lane.b32.xlu0 %v2776_v25, %s7456_s0  ;;  %v10292_v20 = vpop.permute.xlu1 %2050 }
 0x40c   :  { %v2831_v15 = vsel %vm272_vm3, %v14076_v47, %v13538_v41  ;;  %v2920_v1 = vsel %vm272_vm3, %v2918_v19, %v13536_v40  ;;  %v14084_v19 = vld [vmem:[#allocation153_spill] sm:$0xff] }
 0x40f   :  { %2832 = vrot.lane.b32.xlu0 %v2824_v27, %s7456_s0  ;;  %v10308_v51 = vpop.permute.xlu1 %2080  ;;  %v14080_v27 = vrot.slane %v14079_v54, 1 }
 0x411   :  { %v2879_v6 = vsel %vm272_vm3, %v14080_v27, %v13534_v39 }
 0x413   :  { %2836 = vrot.lane.b32.xlu0 %v13540_v0, %s7456_s0  ;;  %v10321_v62 = vpop.permute.xlu1 %2084 }
 0x417   :  { %2840 = vrot.lane.b32.xlu0 %v2831_v15, %s7456_s0  ;;  %v10330_v18 = vpop.permute.xlu1 %2088  ;;  %v10368_v15 = vmul.f32 %v10241_v59, %v14077_v48 }
 0x419   :  { %v13541_v54 = vrot.slane %v10368_v15, 1 }
 0x41b   :  { %2880 = vrot.lane.b32.xlu0 %v2872_v12, %s7456_s0  ;;  %v2129_v38 = vpop.permute.xlu1 %2128  ;;  %v10375_v12 = vmul.f32 %v10301_v3, %v14077_v48 }
 0x41d   :  { %14081 = vst [vmem:[#allocation111_spill] sm:$0xff] %v10375_v12  ;;  %v13542_v27 = vrot.slane %v10375_v12, 1 }
 0x41f   :  { %2884 = vrot.lane.b32.xlu0 %v13537_v29, %s7456_s0  ;;  %v10355_v25 = vpop.permute.xlu1 %2132 }
 0x423   :  { %2888 = vrot.lane.b32.xlu0 %v2879_v6, %s7456_s0  ;;  %v10364_v47 = vpop.permute.xlu1 %2136  ;;  %v14082_v6 = vld [vmem:[#allocation156_spill] sm:$0xff] }
 0x424   :  { %v2954_v39 = vmul.f32 %v14082_v6, %v10228_v21  ;;  %v10386_v22 = vmul.f32 %v10277_v55, %v14082_v6 }
 0x426   :  { %14083 = vst [vmem:[#allocation44_spill] sm:$0xff] %v10386_v22  ;;  %v2966_v29 = vrot.slane %v2954_v39, 2  ;;  %v13543_v41 = vrot.slane %v10386_v22, 2 }
 0x427   :  { %2928 = vrot.lane.b32.xlu0 %v2920_v1, %s7456_s0  ;;  %v10378_v9 = vpop.permute.xlu1 %2176  ;;  %v14085_v1 = vrot.slane %v14084_v19, 1  ;;  %v10413_v19 = vmul.f32 %v10301_v3, %v14082_v6 }
 0x428   :  { %v2968_v36 = vsel %vm381_vm4, %v2966_v29, %v13543_v41  ;;  %v14094_v41 = vld [vmem:[#allocation214_spill] sm:$0xff] }
 0x429   :  { %v2927_v40 = vsel %vm272_vm3, %v14085_v1, %v13542_v27  ;;  %14088 = vst [vmem:[#allocation46_spill] sm:$0xff] %v10413_v19  ;;  %v10418_v1 = vpop.permute.xlu0 %2322  ;;  %v14090_v27 = vld [vmem:[#allocation162_spill] sm:$0xff]  ;;  %v13545_v29 = vrot.slane %v10413_v19, 2  ;;  %v14111_v19 = vld [vmem:[#allocation73_spill] sm:$0xff] }
 0x42a   :  { %14089 = vst [vmem:[#allocation48_spill] sm:$0xff] %v10418_v1  ;;  %v3002_v46 = vmul.f32 %v14090_v27, %v10228_v21  ;;  %v1743_v1 = vadd.f32 %v14094_v41, %v1619_v31  ;;  %v10458_v34 = vmul.f32 %v10241_v59, %v14090_v27 }
 0x42b   :  { %2932 = vrot.lane.b32.xlu0 %v13541_v54, %s7456_s0  ;;  %v10391_v48 = vpop.permute.xlu1 %2180  ;;  %v10406_v54 = vmul.f32 %v10241_v59, %v14082_v6  ;;  %v10428_v6 = vmul.f32 %v10277_v55, %v14090_v27  ;;  %v2975_v50 = vsel %vm381_vm4, %v14099_v26, %v13545_v29  ;;  %v10462_v26 = vmul.f32 %v10301_v3, %v14090_v27 }
 0x42c   :  { %v3014_v57 = vrot.slane %v3002_v46, 2  ;;  %v1887_v53 = vadd.f32 %v14097_v2, %v1743_v1  ;;  %v14104_v1 = vld [vmem:[#allocation66_spill] sm:$0xff]  ;;  %v14121_v11 = vrot.slane %v10458_v34, 2 }
 0x42d   :  { %14087 = vst [vmem:[#allocation45_spill] sm:$0xff] %v10406_v54  ;;  %14093 = vst [vmem:[#allocation47_spill] sm:$0xff] %v10428_v6  ;;  %v10449_v31 = vpop.permute.xlu0 %2326  ;;  %v14105_v2 = vld [vmem:[#allocation202_spill] sm:$0xff]  ;;  %v14107_v13 = vrot.slane %v10428_v6, 2 }
 0x42e   :  { %14102 = vst [vmem:[#allocation58_spill] sm:$0xff] %v10449_v31  ;;  %v2021_v41 = vadd.f32 %v10052_v63, %v1887_v53  ;;  %v1623_v29 = vadd.f32 %v14105_v2, %v14104_v1  ;;  %v1889_v31 = vadd.f32 %v14106_v43, %v1745_v23  ;;  %v14108_v53 = vld [vmem:[#allocation62_spill] sm:$0xff]  ;;  %v10481_v1 = vmul.f32 %v9751_v24, %v14111_v19 }
 0x42f   :  { %2936 = vrot.lane.b32.xlu0 %v2927_v40, %s7456_s0  ;;  %v10402_v0 = vpop.permute.xlu1 %2184  ;;  %v13544_v40 = vrot.slane %v10406_v54, 2  ;;  %v3016_v44 = vsel %vm381_vm4, %v3014_v57, %v14107_v13  ;;  %v10473_v60 = vmul.f32 %v9751_v24, %v14108_v53  ;;  %v10486_v57 = vstv %s6685_s24  ;;  %v14115_v53 = vld [vmem:[#allocation166_spill] sm:$0xff]  ;;  %s12022_s24 = sld [smem:[#allocation11 + $0x18]] }
 0x430   :  { %v2023_v13 = vadd.f32 %v10057_v33, %v1889_v31  ;;  %14113 = vst [vmem:[#allocation113_spill] sm:$0xff] %v10486_v57  ;;  %v14118_v31 = vld [vmem:[#allocation235_spill] sm:$0xff] }
 0x431   :  { %14109 = vst [vmem:[#allocation51_spill] sm:$0xff] %v10473_v60  ;;  %v10488_v2 = vpop.permute.xlu0 %2366 }
 0x432   :  { %14114 = vst [vmem:[#allocation50_spill] sm:$0xff] %v10488_v2  ;;  %v14119_v2 = vld [vmem:[#allocation124_spill] sm:$0xff] }
 0x433   :  { %2976 = vrot.lane.b32.xlu0 %v2968_v36, %s7456_s0  ;;  %v10416_v39 = vpop.permute.xlu1 %2224 }
 0x437   :  { %2980 = vrot.lane.b32.xlu0 %v13544_v40, %s7456_s0  ;;  %v10433_v36 = vpop.permute.xlu1 %2228  ;;  %v14100_v40 = vld [vmem:[#allocation61_spill] sm:$0xff] }
 0x438   :  { %v10447_v45 = vmul.f32 %v9751_v24, %v14100_v40  ;;  %v14110_v40 = vld [vmem:[#allocation72_spill] sm:$0xff] }
 0x439   :  { %v10477_v27 = vmul.f32 %v9751_v24, %v14110_v40  ;;  %v3050_v24 = vmul.f32 %v14115_v53, %v10228_v21  ;;  %v13554_v40 = vrot.slane %v10473_v60, 2 }
 0x43a   :  { %14101 = vst [vmem:[#allocation49_spill] sm:$0xff] %v10447_v45  ;;  %v14120_v22 = vrot.slane %v10447_v45, 1  ;;  %v14134_v45 = vld [vmem:[#allocation173_spill] sm:$0xff] }
 0x43b   :  { %2984 = vrot.lane.b32.xlu0 %v2975_v50, %s7456_s0  ;;  %v10452_v46 = vpop.permute.xlu1 %2232  ;;  %v2145_v50 = vadd.f32 %v2129_v38, %v2021_v41  ;;  %v14112_v38 = vld [vmem:[#allocation218_spill] sm:$0xff]  ;;  %v3062_v12 = vrot.slane %v3050_v24, 2  ;;  %v10536_v24 = vpop.permute.xlu0 %2370 }
 0x43c   :  { %v1747_v23 = vadd.f32 %v14112_v38, %v1623_v29  ;;  %v14116_v29 = vld [vmem:[#allocation105_spill] sm:$0xff]  ;;  %v14117_v38 = vld [vmem:[#allocation204_spill] sm:$0xff]  ;;  %v1441_v54 = vadd.f32 %v14120_v22, %v14119_v2  ;;  %v14123_v22 = vrot.slane %v10462_v26, 2  ;;  %14129 = vst [vmem:[#allocation59_spill] sm:$0xff] %v10536_v24 }
 0x43d   :  { %v1657_v33 = vadd.f32 %v14117_v38, %v14116_v29  ;;  %v14124_v2 = vld [vmem:[#allocation165_spill] sm:$0xff] }
 0x43e   :  { %v1891_v6 = vadd.f32 %v14118_v31, %v1747_v23  ;;  %v14122_v23 = vld [vmem:[#allocation220_spill] sm:$0xff]  ;;  %v14125_v31 = vrot.slane %v14124_v2, 2  ;;  %v10543_v2 = vld [vmem:[#allocation2 + $0x78] sm:$0xff] }
 0x43f   :  { %3024 = vrot.lane.b32.xlu0 %v3016_v44, %s7456_s0  ;;  %v2273_v43 = vpop.permute.xlu1 %2272  ;;  %v10496_v44 = vmul.f32 %v10277_v55, %v14115_v53  ;;  %v10602_v60 = vpop.permute.xlu0 %2374 }
 0x440   :  { %v2289_v41 = vadd.f32 %v2273_v43, %v2145_v50  ;;  %v6951_v19 = vpop.f32.mrb[0].mxu0  ;;  %v2147_v50 = vadd.f32 %v10355_v25, %v2023_v13  ;;  %v1791_v13 = vadd.f32 %v14122_v23, %v1657_v33  ;;  %v2453_v25 = vmul.f32 %v10277_v55, %v10486_v57  ;;  %14140 = vst [vmem:[#allocation230_spill] sm:$0xff] %v10602_v60 }
 0x441   :  { %v4063_v63 = vpop.f32.mrb[1].mxu0 }
 0x442   :  { %v2393_v43 = vadd.f32 %v10190_v42, %v2289_v41  ;;  %6956 = vmatprep.mubr.msk.f32.mxu1 %vm3587_vm8, %v4063_v63  ;;  %v2025_v41 = vadd.f32 %v10062_v10, %v1891_v6  ;;  %v13555_v63 = vrot.slane %v10496_v44, 2  ;;  %v14126_v10 = vld [vmem:[#allocation140_spill] sm:$0xff]  ;;  %v14127_v6 = vld [vmem:[#allocation206_spill] sm:$0xff] }
 0x443   :  { %3028 = vrot.lane.b32.xlu0 %v14121_v11, %s7456_s0  ;;  %v2277_v29 = vpop.permute.xlu1 %2276  ;;  %6957 = vmatmul.mubr.msk.f32.vlgmr.msra.gmra.mrb[0].mxu1 %vm3587_vm8, %v6951_v19  ;;  %v3023_v11 = vsel %vm381_vm4, %v14125_v31, %v14123_v22  ;;  %v1659_v33 = vadd.f32 %v14127_v6, %v14126_v10  ;;  %v14128_v19 = vld [vmem:[#allocation237_spill] sm:$0xff]  ;;  %v10541_v22 = vmul.f32 %v10241_v59, %v14115_v53 }
 0x444   :  { %v2291_v38 = vadd.f32 %v2277_v29, %v2147_v50  ;;  %2406 = vrot.lane.b32.xlu1 %v2393_v43, %s7457_s20  ;;  %7052 = vmatpush3.bf16.msk.msra.mxu1 %vm9909_vm10, %v10204_v32  ;;  %v1935_v50 = vadd.f32 %v14128_v19, %v1791_v13  ;;  %v2149_v43 = vadd.f32 %v10364_v47, %v2025_v41  ;;  %v14130_v13 = vld [vmem:[#allocation129_spill] sm:$0xff] }
 0x445   :  { %7061 = vmatprep.subr.msk.bf16.mxu1 %vm9909_vm10, %v10204_v32  ;;  %v10547_v47 = vmul.f32 %v10543_v2, %v10486_v57  ;;  %v10551_v41 = vmul.f32 %v10277_v55, %v14130_v13  ;;  %v1549_v31 = vadd.f32 %v13554_v40, %v1441_v54  ;;  %v3064_v24 = vsel %vm381_vm4, %v3062_v12, %v13555_v63 }
 0x446   :  { %v2395_v29 = vadd.f32 %v10190_v42, %v2291_v38  ;;  %v10555_v38 = vmul.f32 %v10241_v59, %v14130_v13  ;;  %v2059_v6 = vadd.f32 %v10267_v28, %v1935_v50  ;;  %v10569_v13 = vmul.f32 %v10301_v3, %v14115_v53  ;;  %v14135_v50 = vld [vmem:[#allocation208_spill] sm:$0xff] }
 0x447   :  { %3032 = vrot.lane.b32.xlu0 %v3023_v11, %s7456_s0  ;;  %v2281_v23 = vpop.permute.xlu1 %2280  ;;  %14131 = vst [vmem:[#allocation52_spill] sm:$0xff] %v10551_v41  ;;  %v14133_v11 = vld [vmem:[#allocation222_spill] sm:$0xff]  ;;  %v10573_v54 = vmul.f32 %v10277_v55, %v14134_v45  ;;  %v10577_v28 = vmul.f32 %v10241_v59, %v14134_v45  ;;  %v2697_v63 = vmul.f32 %v10277_v55, %v10230_v49 }
 0x448   :  { %14132 = vst [vmem:[#allocation77_spill] sm:$0xff] %v10555_v38  ;;  %v1793_v10 = vadd.f32 %v14133_v11, %v1659_v33  ;;  %v2293_v19 = vadd.f32 %v2281_v23, %v2149_v43  ;;  %2410 = vrot.lane.b32.xlu1 %v2395_v29, %s7457_s20  ;;  %v6965_v33 = vpop.f32.mrb[2].mxu0  ;;  %v1661_v43 = vadd.f32 %v14135_v50, %v1549_v31  ;;  %v14136_v29 = vld [vmem:[#allocation239_spill] sm:$0xff]  ;;  %v13563_v31 = vrot.slane %v10555_v38, 1  ;;  %v14139_v50 = vld [vmem:[#allocation210_spill] sm:$0xff] }
 0x449   :  { %v2193_v11 = vadd.f32 %v10378_v9, %v2059_v6  ;;  %v4501_v40 = vpop.f32.mrb[3].mxu0  ;;  %v10588_v45 = vmul.f32 %v10301_v3, %v10486_v57  ;;  %v14137_v9 = vld [vmem:[#allocation224_spill] sm:$0xff]  ;;  %v13558_v6 = vrot.slane %v10541_v22, 2  ;;  %v14148_v38 = vrot.slane %v10569_v13, 2  ;;  %v14149_v57 = vld [vmem:[#allocation170_spill] sm:$0xff] }
 0x44a   :  { %v1937_v23 = vadd.f32 %v14136_v29, %v1793_v10  ;;  %v2397_v12 = vadd.f32 %v10190_v42, %v2293_v19  ;;  %6970 = vmatprep.mubr.msk.f32.mxu1 %vm3587_vm8, %v4501_v40  ;;  %v1795_v10 = vadd.f32 %v14137_v9, %v1661_v43  ;;  %v14138_v19 = vld [vmem:[#allocation43_spill] sm:$0xff]  ;;  %v14144_v9 = vld [vmem:[#allocation226_spill] sm:$0xff] }
 0x44b   :  { %3072 = vrot.lane.b32.xlu0 %v3064_v24, %s7456_s0  ;;  %v2321_v53 = vpop.permute.xlu1 %2320  ;;  %6971 = vmatmul.mubr.msk.f32.vlgmr.msra.gmra.mrb[2].mxu1 %vm3587_vm8, %v6965_v33  ;;  %v1695_v29 = vadd.f32 %v14139_v50, %v14138_v19  ;;  %v14142_v19 = vld [vmem:[#allocation69_spill] sm:$0xff]  ;;  %v14143_v50 = vrot.slane %v10477_v27, 1 }
 0x44c   :  { %v2061_v42 = vadd.f32 %v10284_v14, %v1937_v23  ;;  %v2337_v24 = vadd.f32 %v2321_v53, %v2193_v11  ;;  %2414 = vrot.lane.b32.xlu1 %v2397_v12, %s7457_s20  ;;  %7064 = vmatpush3.bf16.msk.msra.mxu1 %vm9909_vm10, %v10204_v32  ;;  %v14141_v14 = vld [vmem:[#allocation241_spill] sm:$0xff]  ;;  %v2699_v12 = vmul.f32 %v10543_v2, %v10230_v49 }
 0x44d   :  { %v1939_v23 = vadd.f32 %v14141_v14, %v1795_v10  ;;  %7073 = vmatprep.subr.msk.bf16.mxu1 %vm9909_vm10, %v10204_v32  ;;  %v1477_v43 = vadd.f32 %v14143_v50, %v14142_v19  ;;  %v1839_v40 = vadd.f32 %v14144_v9, %v1695_v29  ;;  %v10634_v29 = vstv %s10562_s25  ;;  %v14146_v50 = vld [vmem:[#allocation70_spill] sm:$0xff]  ;;  %s12073_s25 = sld [smem:[#allocation11 + $0x27]] }
 0x44e   :  { %v2195_v33 = vadd.f32 %v10391_v48, %v2061_v42  ;;  %v2459_v11 = vadd.f32 %v2453_v25, %v2337_v24  ;;  %v6979_v53 = vpop.f32.mrb[4].mxu0  ;;  %v2701_v25 = vmul.f32 %v10301_v3, %v10230_v49  ;;  %v14145_v42 = vrot.slane %v10551_v41, 1 }
 0x44f   :  { %3076 = vrot.lane.b32.xlu0 %v13558_v6, %s7456_s0  ;;  %v2325_v48 = vpop.permute.xlu1 %2324  ;;  %v4934_v10 = vpop.f32.mrb[5].mxu0  ;;  %v2063_v14 = vadd.f32 %v10292_v20, %v1939_v23  ;;  %v14147_v6 = vld [vmem:[#allocation212_spill] sm:$0xff]  ;;  %v14150_v41 = vrot.slane %v14149_v57, 2  ;;  %v14153_v23 = vrot.slane %v10573_v54, 2 }
 0x450   :  { %v2532_v24 = vsel %vm272_vm3, %v14145_v42, %v13563_v31  ;;  %v2339_v19 = vadd.f32 %v2325_v48, %v2195_v33  ;;  %2710 = vrot.lane.b32.xlu1 %v2697_v63, %s7456_s0  ;;  %6984 = vmatprep.mubr.msk.f32.mxu1 %vm3587_vm8, %v4934_v10  ;;  %v1697_v49 = vadd.f32 %v14147_v6, %v14146_v50  ;;  %v14151_v31 = vld [vmem:[#allocation130_spill] sm:$0xff]  ;;  %v14152_v63 = vrot.slane %v10577_v28, 2  ;;  %v14156_v10 = vld [vmem:[#allocation228_spill] sm:$0xff] }
 0x451   :  { %v2545_v9 = vadd.f32 %v2532_v24, %v2459_v11  ;;  %v2405_v60 = vpop.permute.xlu0 %2404  ;;  %v3071_v42 = vsel %vm381_vm4, %v14150_v41, %v14148_v38  ;;  %v10646_v20 = vmul.f32 %v10277_v55, %v14151_v31  ;;  %6985 = vmatmul.mubr.msk.f32.vlgmr.msra.gmra.mrb[4].mxu1 %vm3587_vm8, %v6979_v53  ;;  %v1983_v33 = vadd.f32 %v10028_v37, %v1839_v40 }
 0x452   :  { %v2640_v6 = vsel %vm381_vm4, %v14153_v23, %v14152_v63  ;;  %v2197_v11 = vadd.f32 %v10402_v0, %v2063_v14  ;;  %v2461_v57 = vadd.f32 %v10547_v47, %v2339_v19  ;;  %2423 = vst.msk [vmem:[#allocation15 + $0xe] sm:$0xfc] %vm1312_vm6, %v2405_v60  ;;  %v6993_v41 = vpop.f32.mrb[6].mxu0  ;;  %7076 = vmatpush3.bf16.msk.msra.mxu1 %vm9909_vm10, %v10204_v32  ;;  %v14155_v53 = vrot.slane %v10481_v1, 2  ;;  %v14159_v63 = vld [vmem:[#allocation134_spill] sm:$0xff] }
 0x453   :  { %v10661_v38 = vadd.f32 %v2640_v6, %v2545_v9  ;;  %v1841_v24 = vadd.f32 %v14156_v10, %v1697_v49  ;;  %3080 = vrot.lane.b32.xlu0 %v3071_v42, %s7456_s0  ;;  %v2329_v37 = vpop.permute.xlu1 %2328  ;;  %v10669_v0 = vmul.f32 %v10241_v59, %v14151_v31  ;;  %v5372_v60 = vpop.f32.mrb[7].mxu0  ;;  %7085 = vmatprep.subr.msk.bf16.mxu1 %vm9909_vm10, %v10204_v32  ;;  %v10675_v47 = vstv %s10594_s26  ;;  %v14158_v9 = vld [vmem:[#allocation213_spill] sm:$0xff]  ;;  %s12084_s26 = sld [smem:[#allocation11 + $0x2c]] }
 0x454   :  { %v1585_v48 = vadd.f32 %v14155_v53, %v1477_v43  ;;  %v2097_v40 = vadd.f32 %v10308_v51, %v1983_v33  ;;  %v2341_v14 = vadd.f32 %v2329_v37, %v2197_v11  ;;  %2714 = vrot.lane.b32.xlu1 %v2699_v12, %s7456_s0  ;;  %6998 = vmatprep.mubr.msk.f32.mxu1 %vm3587_vm8, %v5372_v60  ;;  %v14157_v43 = vld [vmem:[#allocation188_spill] sm:$0xff]  ;;  %v14161_v11 = vld [vmem:[#allocation189_spill] sm:$0xff] }
 0x455   :  { %14154 = vst [vmem:[#allocation215_spill] sm:$0xff] %v10661_v38  ;;  %v2547_v19 = vadd.f32 %v14157_v43, %v2461_v57  ;;  %v2409_v49 = vpop.permute.xlu0 %2408  ;;  %v3098_v42 = vmul.f32 %v10634_v29, %v10228_v21  ;;  %v10686_v23 = vmul.f32 %v10277_v55, %v14159_v63  ;;  %v10690_v51 = vmul.f32 %v10241_v59, %v14159_v63 }
 0x456   :  { %v1699_v50 = vadd.f32 %v14158_v9, %v1585_v48  ;;  %6999 = vmatmul.mubr.msk.f32.vlgmr.msra.gmra.mrb[6].mxu1 %vm3587_vm8, %v6993_v41  ;;  %v1985_v12 = vadd.f32 %v10036_v5, %v1841_v24  ;;  %v2241_v6 = vadd.f32 %v10416_v39, %v2097_v40  ;;  %v10696_v33 = vadd.f32 %v10588_v45, %v2341_v14  ;;  %v14163_v45 = vld [vmem:[#allocation229_spill] sm:$0xff] }
 0x457   :  { %2425 = vst.msk [vmem:[#allocation15 + $0x1e] sm:$0x3] %vm1316_vm5, %v2409_v49  ;;  %7088 = vmatpush3.bf16.msk.msra.mxu1 %vm9909_vm10, %v10204_v32  ;;  %v10705_v57 = vadd.f32 %v14161_v11, %v2547_v19  ;;  %3110 = vrot.lane.b32.xlu0 %v3098_v42, %s7457_s20  ;;  %v2369_v41 = vpop.permute.xlu1 %2368  ;;  %v13567_v5 = vrot.slane %v10646_v20, 1  ;;  %v13566_v39 = vrot.slane %v10669_v0, 1  ;;  %v2467_v10 = vmul.f32 %v10277_v55, %v10675_v47 }
 0x458   :  { %14160 = vst [vmem:[#allocation232_spill] sm:$0xff] %v10696_v33  ;;  %7097 = vmatprep.subr.msk.bf16.mxu1 %vm9909_vm10, %v10204_v32  ;;  %v1843_v53 = vadd.f32 %v14163_v45, %v1699_v50  ;;  %v2099_v48 = vadd.f32 %v10321_v62, %v1985_v12  ;;  %v2385_v24 = vadd.f32 %v2369_v41, %v2241_v6  ;;  %v13565_v40 = vrot.slane %v10686_v23, 2 }
 0x459   :  { %14162 = vst [vmem:[#allocation114_spill] sm:$0xff] %v10705_v57  ;;  %2718 = vrot.lane.b32.xlu1 %v2701_v25, %s7456_s0  ;;  %v2413_v37 = vpop.permute.xlu0 %2412  ;;  %v3100_v60 = vmul.f32 %v10241_v59, %v10634_v29  ;;  %v13564_v14 = vrot.slane %v10690_v51, 2  ;;  %v2735_v62 = vmul.f32 %v10277_v55, %v10250_v61  ;;  %v2568_v50 = vsel %vm272_vm3, %v13567_v5, %v13566_v39  ;;  %v14194_v5 = vld [vmem:[#allocation183_spill] sm:$0xff] }
 0x45a   :  { %v1987_v43 = vadd.f32 %v10043_v58, %v1843_v53  ;;  %v2243_v19 = vadd.f32 %v10433_v36, %v2099_v48  ;;  %v2473_v9 = vadd.f32 %v2467_v10, %v2385_v24  ;;  %2427 = vst.msk [vmem:[#allocation15 + $0x46] sm:$0xff] %vm1314_vm7, %v2413_v37  ;;  %v2469_v36 = vmul.f32 %v10543_v2, %v10675_v47 }
 0x45b   :  { %3114 = vrot.lane.b32.xlu0 %v3100_v60, %s7457_s20  ;;  %v2373_v25 = vpop.permute.xlu1 %2372  ;;  %v3102_v6 = vmul.f32 %v10246_v17, %v10634_v29  ;;  %v2737_v11 = vmul.f32 %v10543_v2, %v10250_v61  ;;  %v10750_v53 = vstv %s10699_s27  ;;  %v2471_v24 = vmul.f32 %v10301_v3, %v10675_v47  ;;  %v14165_v60 = vld [vmem:[#allocation196_spill] sm:$0xff]  ;;  %s12115_s27 = sld [smem:[#allocation11 + $0x31]] }
 0x45c   :  { %v2101_v58 = vadd.f32 %v10330_v18, %v1987_v43  ;;  %v2387_v49 = vadd.f32 %v2373_v25, %v2243_v19  ;;  %v2581_v42 = vadd.f32 %v2568_v50, %v2473_v9  ;;  %v2676_v18 = vsel %vm381_vm4, %v13565_v40, %v13564_v14  ;;  %v14167_v50 = vld [vmem:[#allocation197_spill] sm:$0xff] }
 0x45d   :  { %2748 = vrot.lane.b32.xlu1 %v2735_v62, %s7456_s0  ;;  %v10737_v12 = vpop.permute.xlu0 %2708  ;;  %v2739_v62 = vmul.f32 %v10301_v3, %v10250_v61  ;;  %v2773_v61 = vmul.f32 %v10277_v55, %v10261_v16 }
 0x45e   :  { %v2245_v41 = vadd.f32 %v10452_v46, %v2101_v58  ;;  %v2475_v45 = vadd.f32 %v2469_v36, %v2387_v49  ;;  %v10752_v48 = vadd.f32 %v2676_v18, %v2581_v42  ;;  %v3136_v46 = vmul.f32 %v10750_v53, %v10228_v21 }
 0x45f   :  { %3118 = vrot.lane.b32.xlu0 %v3102_v6, %s7457_s20  ;;  %v2377_v10 = vpop.permute.xlu1 %2376  ;;  %v3138_v42 = vmul.f32 %v10241_v59, %v10750_v53  ;;  %v2775_v18 = vmul.f32 %v10543_v2, %v10261_v16 }
 0x460   :  { %14164 = vst [vmem:[#allocation116_spill] sm:$0xff] %v10752_v48  ;;  %v2389_v37 = vadd.f32 %v2377_v10, %v2245_v41  ;;  %v2583_v43 = vadd.f32 %v14165_v60, %v2475_v45  ;;  %v10791_v41 = vstv %s6704_s28  ;;  %v2777_v45 = vmul.f32 %v10301_v3, %v10261_v16  ;;  %s6786_s28 = sld [smem:[#allocation11 + $0x3d]] }
 0x461   :  { %2752 = vrot.lane.b32.xlu1 %v2737_v11, %s7456_s0  ;;  %v10759_v19 = vpop.permute.xlu0 %2712  ;;  %v3140_v11 = vmul.f32 %v10246_v17, %v10750_v53  ;;  %v14174_v16 = vrot.slane %v10296_v56, 1 }
 0x462   :  { %v10763_v9 = vadd.f32 %v2471_v24, %v2389_v37  ;;  %v7007_v25 = vpop.f32.mrb[8].mxu0  ;;  %v10768_v58 = vadd.f32 %v14167_v50, %v2583_v43  ;;  %v3176_v24 = vmul.f32 %v10241_v59, %v10791_v41  ;;  %v14173_v37 = vld [vmem:[#allocation147_spill] sm:$0xff]  ;;  %v3178_v50 = vmul.f32 %v10246_v17, %v10791_v41 }
 0x463   :  { %3148 = vrot.lane.b32.xlu0 %v3136_v46, %s7457_s20  ;;  %v5805_v36 = vpop.f32.mrb[9].mxu0  ;;  %v3212_v60 = vmul.f32 %v14173_v37, %v10228_v21  ;;  %v10811_v43 = vmul.f32 %v10277_v55, %v14173_v37  ;;  %v14175_v46 = vrot.slane %v10281_v8, 1  ;;  %v10832_v8 = vmul.f32 %v10241_v59, %v14173_v37 }
 0x464   :  { %14166 = vst [vmem:[#allocation142_spill] sm:$0xff] %v10763_v9  ;;  %14168 = vst [vmem:[#allocation149_spill] sm:$0xff] %v10768_v58  ;;  %7012 = vmatprep.mubr.msk.f32.mxu1 %vm3587_vm8, %v5805_v36  ;;  %v10839_v17 = vmul.f32 %v10301_v3, %v14173_v37  ;;  %v14183_v37 = vrot.slane %v10316_v35, 1  ;;  %v14208_v9 = vld [vmem:[#allocation186_spill] sm:$0xff] }
 0x465   :  { %2756 = vrot.lane.b32.xlu1 %v2739_v62, %s7456_s0  ;;  %v10773_v49 = vpop.permute.xlu0 %2716  ;;  %7013 = vmatmul.mubr.msk.f32.vlgmr.msra.gmra.mrb[8].mxu1 %vm3587_vm8, %v7007_v25  ;;  %v2826_v62 = vsel %vm272_vm3, %v14175_v46, %v14174_v16  ;;  %v3224_v36 = vrot.slane %v3212_v60, 1  ;;  %v14181_v60 = vld [vmem:[#allocation182_spill] sm:$0xff]  ;;  %v14209_v48 = vrot.slane %v14208_v9, 1 }
 0x466   :  { %14169 = vst [vmem:[#allocation143_spill] sm:$0xff] %v10773_v49  ;;  %7100 = vmatpush3.bf16.msk.msra.mxu1 %vm9909_vm10, %v10204_v32  ;;  %v3174_v32 = vmul.f32 %v10791_v41, %v10228_v21  ;;  %v3260_v16 = vmul.f32 %v14181_v60, %v10228_v21  ;;  %v10853_v46 = vmul.f32 %v10277_v55, %v14181_v60 }
 0x467   :  { %3152 = vrot.lane.b32.xlu0 %v3138_v42, %s7457_s20  ;;  %v13570_v42 = vrot.slane %v10811_v43, 1 }
 0x468   :  { %v13568_v14 = vrot.slane %v10853_v46, 1 }
 0x469   :  { %2786 = vrot.lane.b32.xlu1 %v2773_v61, %s7456_s0  ;;  %v10785_v6 = vpop.permute.xlu0 %2746  ;;  %v14177_v61 = vld [vmem:[#allocation148_spill] sm:$0xff] }
 0x46a   :  { %14170 = vst [vmem:[#allocation152_spill] sm:$0xff] %v10785_v6 }
 0x46b   :  { %3156 = vrot.lane.b32.xlu0 %v3140_v11, %s7457_s20  ;;  %v3226_v11 = vsel %vm272_vm3, %v3224_v36, %v13570_v42  ;;  %v14184_v36 = vld [vmem:[#allocation180_spill] sm:$0xff] }
 0x46d   :  { %2790 = vrot.lane.b32.xlu1 %v2775_v18, %s7456_s0  ;;  %v10795_v4 = vpop.permute.xlu0 %2750  ;;  %v14179_v18 = vrot.slane %v10305_v30, 1  ;;  %v14182_v30 = vrot.slane %v10334_v52, 1  ;;  %v14186_v52 = vld [vmem:[#allocation157_spill] sm:$0xff] }
 0x46e   :  { %14171 = vst [vmem:[#allocation150_spill] sm:$0xff] %v10795_v4 }
 0x46f   :  { %3186 = vrot.lane.b32.xlu0 %v3174_v32, %s7457_s20 }
 0x471   :  { %2794 = vrot.lane.b32.xlu1 %v2777_v45, %s7456_s0  ;;  %v10803_v10 = vpop.permute.xlu0 %2754  ;;  %v13571_v45 = vrot.slane %v10832_v8, 1 }
 0x472   :  { %14172 = vst [vmem:[#allocation156_spill] sm:$0xff] %v10803_v10 }
 0x473   :  { %3190 = vrot.lane.b32.xlu0 %v3176_v24, %s7457_s20  ;;  %v13569_v24 = vrot.slane %v10839_v17, 1 }
 0x475   :  { %2834 = vrot.lane.b32.xlu1 %v2826_v62, %s7456_s0  ;;  %v10820_v25 = vpop.permute.xlu0 %2784  ;;  %v2874_v62 = vsel %vm272_vm3, %v14183_v37, %v14182_v30  ;;  %v10879_v30 = vmul.f32 %v10241_v59, %v14181_v60 }
 0x476   :  { %14176 = vst [vmem:[#allocation153_spill] sm:$0xff] %v10820_v25  ;;  %v14266_v25 = vld [vmem:[#allocation38_spill] sm:$0xff] }
 0x477   :  { %3194 = vrot.lane.b32.xlu0 %v3178_v50, %s7457_s20 }
 0x479   :  { %2838 = vrot.lane.b32.xlu1 %v14177_v61, %s7456_s0  ;;  %v10828_v56 = vpop.permute.xlu0 %2788  ;;  %v14185_v61 = vrot.slane %v14184_v36, 1 }
 0x47a   :  { %14178 = vst [vmem:[#allocation162_spill] sm:$0xff] %v10828_v56 }
 0x47b   :  { %3234 = vrot.lane.b32.xlu0 %v3226_v11, %s7457_s20  ;;  %v3233_v11 = vsel %vm272_vm3, %v14185_v61, %v13569_v24  ;;  %v13573_v61 = vrot.slane %v10879_v30, 1 }
 0x47d   :  { %2842 = vrot.lane.b32.xlu1 %v14179_v18, %s7456_s0  ;;  %v10845_v32 = vpop.permute.xlu0 %2792  ;;  %v3272_v18 = vrot.slane %v3260_v16, 1  ;;  %v10886_v16 = vmul.f32 %v10301_v3, %v14181_v60  ;;  %v14191_v60 = vld [vmem:[#allocation109_spill] sm:$0xff] }
 0x47e   :  { %14180 = vst [vmem:[#allocation53_spill] sm:$0xff] %v10845_v32  ;;  %v14263_v32 = vld [vmem:[#allocation29_spill] sm:$0xff] }
 0x47f   :  { %3238 = vrot.lane.b32.xlu0 %v13571_v45, %s7457_s20  ;;  %v3274_v37 = vsel %vm272_vm3, %v3272_v18, %v13568_v14  ;;  %v14195_v14 = vrot.slane %v14194_v5, 1 }
 0x481   :  { %2882 = vrot.lane.b32.xlu1 %v2874_v62, %s7456_s0  ;;  %v10864_v50 = vpop.permute.xlu0 %2832  ;;  %v14187_v62 = vrot.slane %v10341_v7, 1  ;;  %v14190_v7 = vrot.slane %v10368_v15, 1  ;;  %v14196_v15 = vld [vmem:[#allocation163_spill] sm:$0xff] }
 0x483   :  { %3242 = vrot.lane.b32.xlu0 %v3233_v11, %s7457_s20  ;;  %v13572_v11 = vrot.slane %v10886_v16, 1 }
 0x485   :  { %2886 = vrot.lane.b32.xlu1 %v14186_v52, %s7456_s0  ;;  %v10875_v35 = vpop.permute.xlu0 %2836  ;;  %v14189_v52 = vld [vmem:[#allocation184_spill] sm:$0xff]  ;;  %v3281_v24 = vsel %vm272_vm3, %v14195_v14, %v13572_v11  ;;  %v14198_v14 = vld [vmem:[#allocation111_spill] sm:$0xff]  ;;  %v14201_v11 = vld [vmem:[#allocation190_spill] sm:$0xff] }
 0x486   :  { %v3308_v40 = vmul.f32 %v14189_v52, %v10228_v21  ;;  %v10900_v18 = vmul.f32 %v10277_v55, %v14189_v52 }
 0x487   :  { %3282 = vrot.lane.b32.xlu0 %v3274_v37, %s7457_s20  ;;  %v14192_v37 = vrot.slane %v14191_v60, 1 }
 0x488   :  { %v3320_v42 = vrot.slane %v3308_v40, 1  ;;  %v13574_v45 = vrot.slane %v10900_v18, 1  ;;  %v10933_v40 = vmul.f32 %v10301_v3, %v14189_v52 }
 0x489   :  { %2890 = vrot.lane.b32.xlu1 %v14187_v62, %s7456_s0  ;;  %v10892_v36 = vpop.permute.xlu0 %2840  ;;  %v2922_v62 = vsel %vm272_vm3, %v14192_v37, %v14190_v7  ;;  %v10926_v7 = vmul.f32 %v10241_v59, %v14189_v52  ;;  %v14202_v52 = vld [vmem:[#allocation45_spill] sm:$0xff] }
 0x48a   :  { %14188 = vst [vmem:[#allocation80_spill] sm:$0xff] %v10892_v36  ;;  %v3322_v5 = vsel %vm272_vm3, %v3320_v42, %v13574_v45  ;;  %v10947_v42 = vmul.f32 %v10277_v55, %v14201_v11  ;;  %v14207_v58 = vrot.slane %v10933_v40, 1 }
 0x48b   :  { %3286 = vrot.lane.b32.xlu0 %v13573_v61, %s7457_s20  ;;  %v3356_v61 = vmul.f32 %v14201_v11, %v10228_v21 }
 0x48c   :  { %v3329_v57 = vsel %vm272_vm3, %v14209_v48, %v14207_v58  ;;  %v13576_v33 = vrot.slane %v10947_v42, 2  ;;  %v10980_v48 = vmul.f32 %v10301_v3, %v14201_v11 }
 0x48d   :  { %2930 = vrot.lane.b32.xlu1 %v2922_v62, %s7456_s0  ;;  %v10911_v39 = vpop.permute.xlu0 %2880  ;;  %v13575_v62 = vrot.slane %v10926_v7, 1  ;;  %v3368_v38 = vrot.slane %v3356_v61, 2 }
 0x48e   :  { %14193 = vst [vmem:[#allocation214_spill] sm:$0xff] %v10911_v39 }
 0x48f   :  { %3290 = vrot.lane.b32.xlu0 %v3281_v24, %s7457_s20  ;;  %v14199_v24 = vrot.slane %v14198_v14, 1  ;;  %v14204_v14 = vld [vmem:[#allocation44_spill] sm:$0xff]  ;;  %v3370_v9 = vsel %vm381_vm4, %v3368_v38, %v13576_v33 }
 0x491   :  { %2934 = vrot.lane.b32.xlu1 %v14196_v15, %s7456_s0  ;;  %v10922_v60 = vpop.permute.xlu0 %2884 }
 0x492   :  { %14197 = vst [vmem:[#allocation54_spill] sm:$0xff] %v10922_v60 }
 0x493   :  { %3330 = vrot.lane.b32.xlu0 %v3322_v5, %s7457_s20  ;;  %v14203_v5 = vrot.slane %v14202_v52, 2  ;;  %v14210_v52 = vld [vmem:[#allocation171_spill] sm:$0xff] }
 0x495   :  { %2938 = vrot.lane.b32.xlu1 %v14199_v24, %s7456_s0  ;;  %v10939_v37 = vpop.permute.xlu0 %2888  ;;  %v14205_v24 = vrot.slane %v14204_v14, 2 }
 0x496   :  { %14200 = vst [vmem:[#allocation82_spill] sm:$0xff] %v10939_v37 }
 0x497   :  { %3334 = vrot.lane.b32.xlu0 %v13575_v62, %s7457_s20  ;;  %v2970_v45 = vsel %vm381_vm4, %v14205_v24, %v14203_v5  ;;  %v13577_v24 = vrot.slane %v10980_v48, 2 }
 0x499   :  { %2978 = vrot.lane.b32.xlu1 %v2970_v45, %s7456_s0  ;;  %v10958_v15 = vpop.permute.xlu0 %2928  ;;  %v10973_v45 = vmul.f32 %v10241_v59, %v14201_v11  ;;  %v14216_v11 = vrot.slane %v10458_v34, 2  ;;  %v14221_v34 = vld [vmem:[#allocation172_spill] sm:$0xff] }
 0x49a   :  { %14206 = vst [vmem:[#allocation231_spill] sm:$0xff] %v10958_v15 }
 0x49b   :  { %3338 = vrot.lane.b32.xlu0 %v3329_v57, %s7457_s20  ;;  %v14212_v57 = vld [vmem:[#allocation46_spill] sm:$0xff]  ;;  %v13579_v5 = vrot.slane %v10973_v45, 2 }
 0x49c   :  { %v14213_v58 = vrot.slane %v14212_v57, 2 }
 0x49d   :  { %2982 = vrot.lane.b32.xlu1 %v14210_v52, %s7456_s0  ;;  %v10969_v14 = vpop.permute.xlu0 %2932  ;;  %v14215_v52 = vld [vmem:[#allocation191_spill] sm:$0xff] }
 0x49e   :  { %14211 = vst [vmem:[#allocation159_spill] sm:$0xff] %v10969_v14  ;;  %v3404_v62 = vmul.f32 %v14215_v52, %v10228_v21  ;;  %v10994_v38 = vmul.f32 %v10277_v55, %v14215_v52 }
 0x49f   :  { %3378 = vrot.lane.b32.xlu0 %v3370_v9, %s7457_s20  ;;  %v14217_v9 = vld [vmem:[#allocation47_spill] sm:$0xff] }
 0x4a0   :  { %v14218_v57 = vrot.slane %v14217_v9, 2  ;;  %v3416_v37 = vrot.slane %v3404_v62, 2  ;;  %v13578_v60 = vrot.slane %v10994_v38, 2  ;;  %v11027_v62 = vmul.f32 %v10301_v3, %v14215_v52 }
 0x4a1   :  { %2986 = vrot.lane.b32.xlu1 %v14213_v58, %s7456_s0  ;;  %v10986_v61 = vpop.permute.xlu0 %2936 }
 0x4a2   :  { %14214 = vst [vmem:[#allocation216_spill] sm:$0xff] %v10986_v61  ;;  %v3018_v58 = vsel %vm381_vm4, %v14218_v57, %v14216_v11  ;;  %v14219_v61 = vld [vmem:[#allocation192_spill] sm:$0xff]  ;;  %v11020_v11 = vmul.f32 %v10241_v59, %v14215_v52  ;;  %14223 = vst [vmem:[#allocation202_spill] sm:$0xff] %v11027_v62  ;;  %v14228_v52 = vrot.slane %v10496_v44, 2 }
 0x4a3   :  { %3382 = vrot.lane.b32.xlu0 %v13579_v5, %s7457_s20  ;;  %v14220_v14 = vrot.slane %v14219_v61, 2  ;;  %v3418_v61 = vsel %vm381_vm4, %v3416_v37, %v13578_v60 }
 0x4a4   :  { %v13584_v57 = vrot.slane %v11020_v11, 2 }
 0x4a5   :  { %3026 = vrot.lane.b32.xlu1 %v3018_v58, %s7456_s0  ;;  %v11005_v33 = vpop.permute.xlu0 %2976  ;;  %v3377_v15 = vsel %vm381_vm4, %v14220_v14, %v13577_v24  ;;  %v13580_v58 = vrot.slane %v11027_v62, 2  ;;  %v14253_v62 = vld [vmem:[#allocation21_spill] sm:$0xff] }
 0x4a7   :  { %3386 = vrot.lane.b32.xlu0 %v3377_v15, %s7457_s20  ;;  %v14224_v15 = vrot.slane %v10462_v26, 2  ;;  %v14227_v26 = vrot.slane %v10541_v22, 2  ;;  %v14232_v22 = vld [vmem:[#allocation174_spill] sm:$0xff] }
 0x4a9   :  { %3030 = vrot.lane.b32.xlu1 %v14221_v34, %s7456_s0  ;;  %v11016_v9 = vpop.permute.xlu0 %2980  ;;  %v14226_v34 = vld [vmem:[#allocation194_spill] sm:$0xff] }
 0x4aa   :  { %14222 = vst [vmem:[#allocation66_spill] sm:$0xff] %v11016_v9  ;;  %v3452_v24 = vmul.f32 %v14226_v34, %v10228_v21  ;;  %v11041_v37 = vmul.f32 %v10277_v55, %v14226_v34  ;;  %v14230_v21 = vld [vmem:[#allocation193_spill] sm:$0xff]  ;;  %v14264_v9 = vld [vmem:[#allocation40_spill] sm:$0xff] }
 0x4ab   :  { %3426 = vrot.lane.b32.xlu0 %v3418_v61, %s7457_s20  ;;  %v3066_v61 = vsel %vm381_vm4, %v14228_v52, %v14227_v26  ;;  %v14231_v60 = vrot.slane %v14230_v21, 2  ;;  %v11067_v26 = vmul.f32 %v10241_v59, %v14226_v34 }
 0x4ac   :  { %v13581_v39 = vrot.slane %v11041_v37, 2 }
 0x4ad   :  { %3034 = vrot.lane.b32.xlu1 %v14224_v15, %s7456_s0  ;;  %v11033_v14 = vpop.permute.xlu0 %2984  ;;  %v3425_v5 = vsel %vm381_vm4, %v14231_v60, %v13580_v58  ;;  %v11074_v60 = vmul.f32 %v10301_v3, %v14226_v34  ;;  %v13583_v59 = vrot.slane %v11067_v26, 2  ;;  %v3101_v58 = vmul.f32 %v10543_v2, %v10634_v29 }
 0x4ae   :  { %14225 = vst [vmem:[#allocation233_spill] sm:$0xff] %v11033_v14  ;;  %v3464_v14 = vrot.slane %v3452_v24, 2 }
 0x4af   :  { %3430 = vrot.lane.b32.xlu0 %v13584_v57, %s7457_s20  ;;  %14234 = vst [vmem:[#allocation105_spill] sm:$0xff] %v11074_v60  ;;  %v7349_v57 = vld [vmem:[#allocation2] sm:$0xff] }
 0x4b0   :  { %v442_v56 = vmul.f32 %v7349_v57, %v14263_v32 }
 0x4b1   :  { %3074 = vrot.lane.b32.xlu1 %v3066_v61, %s7456_s0  ;;  %v11052_v15 = vpop.permute.xlu0 %3024  ;;  %v3466_v61 = vsel %vm381_vm4, %v3464_v14, %v13581_v39  ;;  %v3099_v14 = vmul.f32 %v10277_v55, %v10634_v29  ;;  %v3103_v39 = vmul.f32 %v10301_v3, %v10634_v29 }
 0x4b2   :  { %14229 = vst [vmem:[#allocation218_spill] sm:$0xff] %v11052_v15  ;;  %v14256_v15 = vld [vmem:[#allocation31_spill] sm:$0xff] }
 0x4b3   :  { %3434 = vrot.lane.b32.xlu0 %v3425_v5, %s7457_s20  ;;  %v14235_v5 = vrot.slane %v10569_v13, 2 }
 0x4b5   :  { %3078 = vrot.lane.b32.xlu1 %v14232_v22, %s7456_s0  ;;  %v11063_v44 = vpop.permute.xlu0 %3028  ;;  %v13582_v22 = vrot.slane %v11074_v60, 2 }
 0x4b6   :  { %14233 = vst [vmem:[#allocation166_spill] sm:$0xff] %v11063_v44  ;;  %v2407_v52 = vpop.permute.xlu1 %2406 }
 0x4b7   :  { %2424 = vst.msk [vmem:[#allocation15 + $0x16] sm:$0xff] %vm1314_vm7, %v2407_v52  ;;  %3474 = vrot.lane.b32.xlu0 %v3466_v61, %s7457_s20  ;;  %v14238_v52 = vld [vmem:[#allocation195_spill] sm:$0xff] }
 0x4b8   :  { %v14239_v61 = vrot.slane %v14238_v52, 2 }
 0x4b9   :  { %3082 = vrot.lane.b32.xlu1 %v14235_v5, %s7456_s0  ;;  %v11081_v24 = vpop.permute.xlu0 %3032 }
 0x4ba   :  { %14236 = vst [vmem:[#allocation204_spill] sm:$0xff] %v11081_v24  ;;  %v2411_v21 = vpop.permute.xlu1 %2410  ;;  %v3473_v5 = vsel %vm381_vm4, %v14239_v61, %v13582_v22  ;;  %v3139_v22 = vmul.f32 %v10543_v2, %v10750_v53 }
 0x4bb   :  { %2426 = vst.msk [vmem:[#allocation15 + $0x3e] sm:$0xfc] %vm1312_vm6, %v2411_v21  ;;  %3478 = vrot.lane.b32.xlu0 %v13583_v59, %s7457_s20  ;;  %v3141_v59 = vmul.f32 %v10301_v3, %v10750_v53 }
 0x4bd   :  { %3112 = vrot.lane.b32.xlu1 %v3099_v14, %s7457_s20  ;;  %v11092_v13 = vpop.permute.xlu0 %3072 }
 0x4be   :  { %14237 = vst [vmem:[#allocation235_spill] sm:$0xff] %v11092_v13  ;;  %v2415_v34 = vpop.permute.xlu1 %2414 }
 0x4bf   :  { %2428 = vst.msk [vmem:[#allocation15 + $0x4e] sm:$0x3] %vm1316_vm5, %v2415_v34  ;;  %3482 = vrot.lane.b32.xlu0 %v3473_v5, %s7457_s20  ;;  %v3137_v34 = vmul.f32 %v10277_v55, %v10750_v53 }
 0x4c1   :  { %3116 = vrot.lane.b32.xlu1 %v3101_v58, %s7457_s20  ;;  %v11104_v21 = vpop.permute.xlu0 %3076 }
 0x4c2   :  { %14240 = vst [vmem:[#allocation124_spill] sm:$0xff] %v11104_v21  ;;  %v11106_v14 = vpop.permute.xlu1 %2710 }
 0x4c3   :  { %14241 = vst [vmem:[#allocation220_spill] sm:$0xff] %v11106_v14 }
 0x4c5   :  { %3120 = vrot.lane.b32.xlu1 %v3103_v39, %s7457_s20  ;;  %v11111_v52 = vpop.permute.xlu0 %3080 }
 0x4c6   :  { %14242 = vst [vmem:[#allocation165_spill] sm:$0xff] %v11111_v52  ;;  %v11113_v61 = vpop.permute.xlu1 %2714 }
 0x4c7   :  { %14243 = vst [vmem:[#allocation140_spill] sm:$0xff] %v11113_v61  ;;  %v14247_v61 = vld [vmem:[#allocation20_spill] sm:$0xff] }
 0x4c8   :  { %v297_v14 = vmul.f32 %v7349_v57, %v14247_v61  ;;  %v406_v61 = vmul.f32 %v7349_v57, %v14253_v62  ;;  %v7351_v62 = vld [vmem:[#allocation2 + $0x50] sm:$0xff] }
 0x4c9   :  { %3150 = vrot.lane.b32.xlu1 %v3137_v34, %s7457_s20  ;;  %v11118_v5 = vpop.permute.xlu0 %3110  ;;  %v14248_v34 = vld [vmem:[#allocation27_spill] sm:$0xff] }
 0x4ca   :  { %v333_v52 = vmul.f32 %v7349_v57, %v14248_v34  ;;  %v309_v60 = vrot.slane %v297_v14, 1  ;;  %v14255_v34 = vld [vmem:[#allocation26_spill] sm:$0xff] }
 0x4cb   :  { %v11120_v58 = vpop.permute.xlu1 %2718  ;;  %v232_v44 = vmul.f32 %v7349_v57, %v14255_v34 }
 0x4cc   :  { %14244 = vst [vmem:[#allocation206_spill] sm:$0xff] %v11120_v58  ;;  %v345_v24 = vrot.slane %v333_v52, 1  ;;  %v14261_v52 = vld [vmem:[#allocation33_spill] sm:$0xff] }
 0x4cd   :  { %3154 = vrot.lane.b32.xlu1 %v3139_v22, %s7457_s20  ;;  %v11125_v29 = vpop.permute.xlu0 %3114  ;;  %v3175_v22 = vmul.f32 %v10277_v55, %v10791_v41  ;;  %v14258_v55 = vld [vmem:[#allocation28_spill] sm:$0xff] }
 0x4ce   :  { %14245 = vst [vmem:[#allocation237_spill] sm:$0xff] %v11125_v29  ;;  %v14257_v29 = vrot.slane %v14256_v15, 1  ;;  %v14259_v14 = vrot.slane %v14258_v55, 1  ;;  %v14265_v15 = vrot.slane %v14264_v9, 1  ;;  %v14267_v55 = vrot.slane %v14266_v25, 1  ;;  %v14272_v25 = vld [vmem:[#allocation35_spill] sm:$0xff] }
 0x4cf   :  { %v11127_v39 = vpop.permute.xlu1 %2748  ;;  %v14273_v49 = vrot.slane %v14272_v25, 1 }
 0x4d0   :  { %14246 = vst [vmem:[#allocation222_spill] sm:$0xff] %v11127_v39  ;;  %v14251_v39 = vld [vmem:[#allocation22_spill] sm:$0xff] }
 0x4d1   :  { %3158 = vrot.lane.b32.xlu1 %v3141_v59, %s7457_s20  ;;  %v11134_v58 = vpop.permute.xlu0 %3118  ;;  %v14252_v13 = vrot.slane %v14251_v39, 1  ;;  %v14262_v39 = vrot.slane %v14261_v52, 1  ;;  %v14269_v52 = vld [vmem:[#allocation24_spill] sm:$0xff] }
 0x4d2   :  { %14249 = vst [vmem:[#allocation208_spill] sm:$0xff] %v11134_v58  ;;  %v7350_v58 = vld [vmem:[#allocation2 + $0x10] sm:$0x3f] }
 0x4d3   :  { %v11136_v21 = vpop.permute.xlu1 %2752  ;;  %v311_v53 = vsel %vm272_vm3, %v309_v60, %v14252_v13  ;;  %v3177_v60 = vmul.f32 %v10543_v2, %v10791_v41  ;;  %v236_v13 = vmul.f32 %v7351_v62, %v14255_v34 }
 0x4d4   :  { %14250 = vst [vmem:[#allocation239_spill] sm:$0xff] %v11136_v21  ;;  %v234_v21 = vmul.f32 %v7350_v58, %v14255_v34  ;;  %v418_v34 = vrot.slane %v406_v61, 2 }
 0x4d5   :  { %3188 = vrot.lane.b32.xlu1 %v3175_v22, %s7457_s20  ;;  %v11145_v59 = vpop.permute.xlu0 %3148  ;;  %v318_v22 = vsel %vm272_vm3, %v14259_v14, %v14257_v29  ;;  %v354_v29 = vsel %vm272_vm3, %v14267_v55, %v14265_v15  ;;  %v325_v14 = vadd.f32 %v311_v53, %v232_v44 }
 0x4d6   :  { %14254 = vst [vmem:[#allocation224_spill] sm:$0xff] %v11145_v59  ;;  %v347_v59 = vsel %vm272_vm3, %v345_v24, %v14262_v39  ;;  %v14270_v24 = vrot.slane %v14269_v52, 1  ;;  %v329_v32 = vadd.f32 %v318_v22, %v236_v13  ;;  %v14279_v13 = vld [vmem:[#allocation30_spill] sm:$0xff]  ;;  %v14285_v52 = vld [vmem:[#allocation41_spill] sm:$0xff] }
 0x4d7   :  { %v11154_v36 = vpop.permute.xlu1 %2756  ;;  %v14280_v55 = vrot.slane %v14279_v13, 2  ;;  %v14294_v13 = vld [vmem:[#allocation56_spill] sm:$0xff] }
 0x4d8   :  { %14260 = vst [vmem:[#allocation43_spill] sm:$0xff] %v11154_v36  ;;  %v14268_v36 = vld [vmem:[#allocation37_spill] sm:$0xff]  ;;  %v327_v39 = vadd.f32 %v14270_v24, %v234_v21  ;;  %v14277_v21 = vld [vmem:[#allocation32_spill] sm:$0xff] }
 0x4d9   :  { %v246_v10 = vmul.f32 %v7349_v57, %v14268_v36  ;;  %v248_v2 = vmul.f32 %v7350_v58, %v14268_v36  ;;  %v250_v4 = vmul.f32 %v7351_v62, %v14268_v36  ;;  %3192 = vrot.lane.b32.xlu1 %v3177_v60, %s7457_s20  ;;  %v11174_v6 = vpop.permute.xlu0 %3152  ;;  %v3179_v57 = vmul.f32 %v10301_v3, %v10791_v41  ;;  %v14275_v36 = vld [vmem:[#allocation23_spill] sm:$0xff] }
 0x4da   :  { %14271 = vst [vmem:[#allocation210_spill] sm:$0xff] %v11174_v6  ;;  %v14276_v58 = vrot.slane %v14275_v36, 2  ;;  %v454_v60 = vrot.slane %v442_v56, 2  ;;  %v14278_v22 = vrot.slane %v14277_v21, 2  ;;  %v14287_v56 = vld [vmem:[#allocation39_spill] sm:$0xff] }
 0x4db   :  { %v361_v9 = vadd.f32 %v347_v59, %v246_v10  ;;  %v363_v15 = vadd.f32 %v14273_v49, %v248_v2  ;;  %v365_v44 = vadd.f32 %v354_v29, %v250_v4  ;;  %v11178_v53 = vpop.permute.xlu1 %2786  ;;  %v14281_v49 = vld [vmem:[#allocation25_spill] sm:$0xff]  ;;  %v14283_v2 = vld [vmem:[#allocation34_spill] sm:$0xff] }
 0x4dc   :  { %14274 = vst [vmem:[#allocation241_spill] sm:$0xff] %v11178_v53  ;;  %v420_v61 = vsel %vm381_vm4, %v418_v34, %v14276_v58  ;;  %v427_v10 = vsel %vm381_vm4, %v14280_v55, %v14278_v22  ;;  %v14282_v4 = vrot.slane %v14281_v49, 2  ;;  %v14284_v3 = vrot.slane %v14283_v2, 2  ;;  %v14290_v58 = vld [vmem:[#allocation36_spill] sm:$0xff] }
 0x4dd   :  { %v434_v62 = vadd.f32 %v420_v61, %v325_v14  ;;  %3196 = vrot.lane.b32.xlu1 %v3179_v57, %s7457_s20  ;;  %v438_v29 = vadd.f32 %v427_v10, %v329_v32  ;;  %v14286_v34 = vrot.slane %v14285_v52, 2  ;;  %v14288_v14 = vrot.slane %v14287_v56, 2  ;;  %v11201_v25 = vpop.permute.xlu0 %3156  ;;  %v14302_v56 = vld [vmem:[#allocation90_spill] sm:$0xff] }
 0x4de   :  { %v436_v59 = vadd.f32 %v14282_v4, %v327_v39  ;;  %v456_v41 = vsel %vm381_vm4, %v454_v60, %v14284_v3  ;;  %14289 = vst [vmem:[#allocation69_spill] sm:$0xff] %v11201_v25  ;;  %v14291_v61 = vrot.slane %v14290_v58, 2  ;;  %v14293_v39 = vld [vmem:[#allocation55_spill] sm:$0xff]  ;;  %v14295_v60 = vld [vmem:[#allocation57_spill] sm:$0xff]  ;;  %v14296_v49 = vrot.slane %v10832_v8, 1  ;;  %v14298_v3 = vld [vmem:[#allocation60_spill] sm:$0xff] }
 0x4df   :  { %v463_v24 = vsel %vm381_vm4, %v14288_v14, %v14286_v34  ;;  %v470_v36 = vadd.f32 %v456_v41, %v361_v9  ;;  %v11205_v22 = vpop.permute.xlu1 %2790  ;;  %v546_v32 = vadd.f32 %v14293_v39, %v434_v62  ;;  %v550_v10 = vadd.f32 %v14295_v60, %v438_v29  ;;  %v14299_v41 = vld [vmem:[#allocation63_spill] sm:$0xff]  ;;  %v14303_v14 = vld [vmem:[#allocation92_spill] sm:$0xff]  ;;  %v14305_v8 = vld [vmem:[#allocation78_spill] sm:$0xff] }
 0x4e0   :  { %v472_v57 = vadd.f32 %v14291_v61, %v363_v15  ;;  %v474_v21 = vadd.f32 %v463_v24, %v365_v44  ;;  %14292 = vst [vmem:[#allocation226_spill] sm:$0xff] %v11205_v22  ;;  %v548_v55 = vadd.f32 %v14294_v13, %v436_v59  ;;  %v14297_v4 = vrot.slane %v10811_v43, 1  ;;  %v14300_v15 = vld [vmem:[#allocation68_spill] sm:$0xff]  ;;  %v14301_v34 = vld [vmem:[#allocation75_spill] sm:$0xff]  ;;  %v14309_v13 = vld [vmem:[#allocation106_spill] sm:$0xff] }
 0x4e1   :  { %v584_v9 = vadd.f32 %v14298_v3, %v470_v36  ;;  %v680_v59 = vadd.f32 %v14302_v56, %v546_v32  ;;  %v684_v29 = vadd.f32 %v14303_v14, %v550_v10  ;;  %v11222_v24 = vpop.permute.xlu0 %3186  ;;  %v14306_v58 = vld [vmem:[#allocation99_spill] sm:$0xff]  ;;  %v14308_v36 = vld [vmem:[#allocation84_spill] sm:$0xff]  ;;  %v14315_v14 = vld [vmem:[#allocation198_spill] sm:$0xff] }
 0x4e2   :  { %v3228_v2 = vsel %vm272_vm3, %v14297_v4, %v14296_v49  ;;  %v586_v52 = vadd.f32 %v14299_v41, %v472_v57  ;;  %v588_v44 = vadd.f32 %v14300_v15, %v474_v21  ;;  %v682_v62 = vadd.f32 %v14301_v34, %v548_v55  ;;  %14304 = vst [vmem:[#allocation70_spill] sm:$0xff] %v11222_v24  ;;  %v14310_v49 = vld [vmem:[#allocation118_spill] sm:$0xff]  ;;  %v14311_v4 = vld [vmem:[#allocation120_spill] sm:$0xff]  ;;  %v14312_v32 = vld [vmem:[#allocation87_spill] sm:$0xff] }
 0x4e3   :  { %3236 = vrot.lane.b32.xlu1 %v3228_v2, %s7457_s20  ;;  %v728_v61 = vadd.f32 %v14306_v58, %v584_v9  ;;  %v11226_v39 = vpop.permute.xlu1 %2794  ;;  %v824_v21 = vadd.f32 %v14310_v49, %v680_v59  ;;  %v828_v55 = vadd.f32 %v14311_v4, %v684_v29  ;;  %v7021_v2 = vpop.f32.mrb[10].mxu0  ;;  %v14313_v10 = vld [vmem:[#allocation123_spill] sm:$0xff]  ;;  %v7352_v15 = vld [vmem:[#allocation2 + $0x18] sm:$0xff] }
 0x4e4   :  { %v730_v43 = vadd.f32 %v14305_v8, %v586_v52  ;;  %14307 = vst [vmem:[#allocation212_spill] sm:$0xff] %v11226_v39  ;;  %v826_v57 = vadd.f32 %v14308_v36, %v682_v62  ;;  %v732_v60 = vadd.f32 %v14309_v13, %v588_v44  ;;  %v14314_v34 = vld [vmem:[#allocation151_spill] sm:$0xff]  ;;  %v6238_v62 = vpop.f32.mrb[11].mxu0  ;;  %v14316_v44 = vld [vmem:[#allocation125_spill] sm:$0xff] }
 0x4e5   :  { %v872_v41 = vadd.f32 %v14313_v10, %v728_v61  ;;  %v1344_v52 = vmul.f32 %v7352_v15, %v14314_v34  ;;  %v7353_v56 = vld [vmem:[#allocation2 + $0x28] sm:$0x3f]  ;;  %v14317_v59 = vld [vmem:[#allocation133_spill] sm:$0xff]  ;;  %v11242_v49 = vpop.permute.xlu0 %3190  ;;  %7026 = vmatprep.mubr.msk.f32.mxu1 %vm3587_vm8, %v6238_v62 }
 0x4e6   :  { %v874_v3 = vadd.f32 %v14312_v32, %v730_v43  ;;  %v1346_v9 = vmul.f32 %v7353_v56, %v14314_v34  ;;  %v876_v8 = vadd.f32 %v14316_v44, %v732_v60  ;;  %v948_v58 = vadd.f32 %v14317_v59, %v824_v21  ;;  %v14318_v29 = vld [vmem:[#allocation135_spill] sm:$0xff]  ;;  %v14319_v13 = vld [vmem:[#allocation137_spill] sm:$0xff]  ;;  %14320 = vst [vmem:[#allocation170_spill] sm:$0xff] %v11242_v49  ;;  %v14327_v21 = vld [vmem:[#allocation158_spill] sm:$0xff] }
 0x4e7   :  { %3240 = vrot.lane.b32.xlu1 %v14315_v14, %s7457_s20  ;;  %v950_v36 = vadd.f32 %v14318_v29, %v826_v57  ;;  %v952_v43 = vadd.f32 %v14319_v13, %v828_v55  ;;  %v14321_v61 = vld [vmem:[#allocation139_spill] sm:$0xff]  ;;  %v14322_v32 = vld [vmem:[#allocation141_spill] sm:$0xff]  ;;  %v14324_v14 = vld [vmem:[#allocation62_spill] sm:$0xff]  ;;  %v11249_v24 = vpop.permute.xlu1 %2834  ;;  %7027 = vmatmul.mubr.msk.f32.vlgmr.msra.gmra.mrb[10].mxu1 %vm3587_vm8, %v7021_v2 }
 0x4e8   :  { %v986_v4 = vadd.f32 %v14321_v61, %v872_v41  ;;  %v988_v10 = vadd.f32 %v14322_v32, %v874_v3  ;;  %v14323_v39 = vld [vmem:[#allocation61_spill] sm:$0xff]  ;;  %v1516_v53 = vmul.f32 %v7352_v15, %v14324_v14  ;;  %14325 = vst [vmem:[#allocation130_spill] sm:$0xff] %v11249_v24  ;;  %v1082_v55 = vadd.f32 %v14327_v21, %v948_v58  ;;  %v14328_v44 = vld [vmem:[#allocation164_spill] sm:$0xff]  ;;  %v14330_v13 = vld [vmem:[#allocation115_spill] sm:$0xff] }
 0x4e9   :  { %v1408_v22 = vmul.f32 %v7352_v15, %v14323_v39  ;;  %v14326_v60 = vld [vmem:[#allocation145_spill] sm:$0xff]  ;;  %v1084_v59 = vadd.f32 %v14328_v44, %v950_v36  ;;  %v14331_v61 = vld [vmem:[#allocation128_spill] sm:$0xff]  ;;  %v14334_v24 = vrot.slane %v10839_v17, 1  ;;  %v14335_v2 = vld [vmem:[#allocation131_spill] sm:$0xff] }
 0x4ea   :  { %v990_v57 = vadd.f32 %v14326_v60, %v876_v8  ;;  %v14329_v29 = vld [vmem:[#allocation169_spill] sm:$0xff]  ;;  %v1130_v41 = vadd.f32 %v14330_v13, %v986_v4  ;;  %v1132_v3 = vadd.f32 %v14331_v61, %v988_v10  ;;  %v14332_v32 = vld [vmem:[#allocation72_spill] sm:$0xff]  ;;  %v14336_v60 = vld [vmem:[#allocation126_spill] sm:$0xff] }
 0x4eb   :  { %v1086_v62 = vadd.f32 %v14329_v29, %v952_v43  ;;  %v1444_v39 = vmul.f32 %v7352_v15, %v14332_v32  ;;  %v14333_v49 = vld [vmem:[#allocation73_spill] sm:$0xff]  ;;  %3244 = vrot.lane.b32.xlu1 %v14334_v24, %s7457_s20  ;;  %v1226_v58 = vadd.f32 %v14336_v60, %v1082_v55  ;;  %v14337_v21 = vld [vmem:[#allocation71_spill] sm:$0xff]  ;;  %v11267_v29 = vpop.permute.xlu0 %3194  ;;  %v14340_v4 = vld [vmem:[#allocation144_spill] sm:$0xff]  ;;  %v1420_v32 = vrot.slane %v1408_v22, 1  ;;  %v11271_v25 = vpop.permute.xlu1 %2838 }
 0x4ec   :  { %v1552_v14 = vmul.f32 %v7352_v15, %v14333_v49  ;;  %v1134_v8 = vadd.f32 %v14335_v2, %v990_v57  ;;  %v1228_v36 = vadd.f32 %v14337_v21, %v1084_v59  ;;  %v14338_v44 = vld [vmem:[#allocation81_spill] sm:$0xff]  ;;  %14339 = vst [vmem:[#allocation228_spill] sm:$0xff] %v11267_v29  ;;  %v1274_v10 = vadd.f32 %v14340_v4, %v1130_v41  ;;  %v14341_v13 = vld [vmem:[#allocation88_spill] sm:$0xff]  ;;  %v7354_v17 = vld [vmem:[#allocation2 + $0x68] sm:$0xff] }
 0x4ed   :  { %v1230_v43 = vadd.f32 %v14338_v44, %v1086_v62  ;;  %v1276_v61 = vadd.f32 %v14341_v13, %v1132_v3  ;;  %v1528_v49 = vrot.slane %v1516_v53, 2  ;;  %14342 = vst [vmem:[#allocation188_spill] sm:$0xff] %v11271_v25  ;;  %v1348_v24 = vmul.f32 %v7354_v17, %v14314_v34  ;;  %v14343_v57 = vld [vmem:[#allocation146_spill] sm:$0xff]  ;;  %v11275_v55 = vld [vmem:[#allocation2 + $0x30] sm:$0xff]  ;;  %v14344_v59 = vld [vmem:[#allocation167_spill] sm:$0xff] }
 0x4ee   :  { %v1278_v2 = vadd.f32 %v14343_v57, %v1134_v8  ;;  %v2480_v62 = vmul.f32 %v11275_v55, %v14344_v59  ;;  %v14345_v60 = vrot.slane %v10879_v30, 1  ;;  %v14346_v41 = vrot.slane %v10853_v46, 1  ;;  %v14347_v22 = vld [vmem:[#allocation67_spill] sm:$0xff]  ;;  %v14348_v46 = vld [vmem:[#allocation154_spill] sm:$0xff] }
 0x4ef   :  { %v1358_v53 = vmul.f32 %v7352_v15, %v14347_v22  ;;  %v1360_v21 = vmul.f32 %v7353_v56, %v14347_v22  ;;  %v1456_v44 = vrot.slane %v1444_v39, 1  ;;  %v1564_v4 = vrot.slane %v1552_v14, 2  ;;  %v11288_v59 = vpop.permute.xlu0 %3234  ;;  %v14350_v15 = vld [vmem:[#allocation155_spill] sm:$0xff]  ;;  %v11296_v39 = vpop.permute.xlu1 %2842 }
 0x4f0   :  { %v3276_v3 = vsel %vm272_vm3, %v14346_v41, %v14345_v60  ;;  %v1350_v34 = vadd.f32 %v1344_v52, %v1226_v58  ;;  %v1352_v8 = vadd.f32 %v1346_v9, %v1228_v36  ;;  %v1354_v13 = vadd.f32 %v1348_v24, %v1230_v43  ;;  %14352 = vst [vmem:[#allocation213_spill] sm:$0xff] %v11296_v39  ;;  %v14353_v52 = vld [vmem:[#allocation49_spill] sm:$0xff]  ;;  %v14355_v58 = vld [vmem:[#allocation64_spill] sm:$0xff] }
 0x4f1   :  { %3284 = vrot.lane.b32.xlu1 %v3276_v3, %s7457_s20  ;;  %v1362_v57 = vmul.f32 %v7354_v17, %v14347_v22  ;;  %v1364_v30 = vadd.f32 %v1358_v53, %v1274_v10  ;;  %v1366_v25 = vadd.f32 %v1360_v21, %v1276_v61  ;;  %v14349_v29 = vrot.slane %v14348_v46, 1  ;;  %v14357_v17 = vld [vmem:[#allocation51_spill] sm:$0xff]  ;;  %v14359_v61 = vld [vmem:[#allocation65_spill] sm:$0xff]  ;;  %v14366_v46 = vld [vmem:[#allocation74_spill] sm:$0xff] }
 0x4f2   :  { %v14351_v41 = vrot.slane %v14350_v15, 2  ;;  %v14354_v9 = vrot.slane %v14353_v52, 1  ;;  %v14356_v36 = vrot.slane %v14355_v58, 1  ;;  %v14358_v10 = vrot.slane %v14357_v17, 2  ;;  %v14363_v53 = vld [vmem:[#allocation121_spill] sm:$0xff]  ;;  %v14368_v52 = vld [vmem:[#allocation168_spill] sm:$0xff] }
 0x4f3   :  { %v1422_v60 = vsel %vm272_vm3, %v1420_v32, %v14349_v29  ;;  %v1368_v14 = vadd.f32 %v1362_v57, %v1278_v2  ;;  %v14360_v24 = vrot.slane %v14359_v61, 2  ;;  %v2492_v29 = vrot.slane %v2480_v62, 1  ;;  %v14361_v32 = vld [vmem:[#allocation138_spill] sm:$0xff]  ;;  %v14369_v58 = vld [vmem:[#allocation199_spill] sm:$0xff] }
 0x4f4   :  { %v1530_v56 = vsel %vm381_vm4, %v1528_v49, %v14351_v41  ;;  %v1429_v43 = vsel %vm272_vm3, %v14356_v36, %v14354_v9  ;;  %v14362_v22 = vrot.slane %v14361_v32, 1  ;;  %v14364_v21 = vrot.slane %v14363_v53, 2  ;;  %v14370_v36 = vld [vmem:[#allocation160_spill] sm:$0xff]  ;;  %v11330_v32 = vpop.permute.xlu0 %3238  ;;  %v14376_v53 = vld [vmem:[#allocation42_spill] sm:$0xff] }
 0x4f5   :  { %v1537_v3 = vsel %vm381_vm4, %v14360_v24, %v14358_v10  ;;  %v14365_v57 = vrot.slane %v10477_v27, 1  ;;  %v14367_v15 = vrot.slane %v14366_v46, 1  ;;  %v2588_v9 = vmul.f32 %v11275_v55, %v14368_v52  ;;  %3288 = vrot.lane.b32.xlu1 %v14369_v58, %s7457_s20  ;;  %14375 = vst [vmem:[#allocation134_spill] sm:$0xff] %v11330_v32  ;;  %v14378_v46 = vld [vmem:[#allocation113_spill] sm:$0xff] }
 0x4f6   :  { %v1458_v49 = vsel %vm272_vm3, %v1456_v44, %v14362_v22  ;;  %v1566_v2 = vsel %vm381_vm4, %v1564_v4, %v14364_v21  ;;  %v1436_v62 = vadd.f32 %v1422_v60, %v1350_v34  ;;  %v14371_v17 = vrot.slane %v14370_v36, 1  ;;  %v14373_v4 = vld [vmem:[#allocation76_spill] sm:$0xff]  ;;  %v7356_v34 = vld [vmem:[#allocation2 + $0x40] sm:$0x3f] }
 0x4f7   :  { %v1465_v41 = vsel %vm272_vm3, %v14367_v15, %v14365_v57  ;;  %v1440_v10 = vadd.f32 %v1429_v43, %v1354_v13  ;;  %v14372_v61 = vrot.slane %v10481_v1, 2  ;;  %v14374_v24 = vrot.slane %v14373_v4, 2  ;;  %v11341_v13 = vpop.permute.xlu1 %2882  ;;  %v7357_v60 = vld [vmem:[#allocation2 + $0x80] sm:$0xff] }
 0x4f8   :  { %v1438_v44 = vadd.f32 %v14371_v17, %v1352_v8  ;;  %v1472_v22 = vadd.f32 %v1458_v49, %v1364_v30  ;;  %v14377_v21 = vrot.slane %v14376_v53, 1  ;;  %v11336_v15 = vmul.f32 %v11275_v55, %v14378_v46  ;;  %14379 = vst [vmem:[#allocation189_spill] sm:$0xff] %v11341_v13  ;;  %v14382_v17 = vld [vmem:[#allocation175_spill] sm:$0xff] }
 0x4f9   :  { %v1573_v27 = vsel %vm381_vm4, %v14374_v24, %v14372_v61  ;;  %v11339_v8 = vmul.f32 %v7356_v34, %v14378_v46  ;;  %v1476_v1 = vadd.f32 %v1465_v41, %v1368_v14  ;;  %v11344_v43 = vmul.f32 %v7357_v60, %v14378_v46  ;;  %v14384_v24 = vld [vmem:[#allocation161_spill] sm:$0xff] }
 0x4fa   :  { %v1474_v57 = vadd.f32 %v14377_v21, %v1366_v25  ;;  %v11348_v30 = vmul.f32 %v11275_v55, %v10675_v47  ;;  %v14380_v25 = vld [vmem:[#allocation89_spill] sm:$0xff]  ;;  %v11354_v58 = vmul.f32 %v7356_v34, %v10675_v47  ;;  %v11357_v36 = vmul.f32 %v7357_v60, %v10675_v47  ;;  %v14386_v47 = vld [vmem:[#allocation110_spill] sm:$0xff] }
 0x4fb   :  { %v14381_v49 = vrot.slane %v14380_v25, 1  ;;  %v2438_v14 = vmul.f32 %v11275_v55, %v14382_v17  ;;  %v2600_v41 = vrot.slane %v2588_v9, 2  ;;  %v14383_v61 = vrot.slane %v10886_v16, 1  ;;  %v11367_v25 = vpop.permute.xlu0 %3242  ;;  %v11371_v32 = vpop.permute.xlu1 %2886 }
 0x4fc   :  { %v1544_v4 = vadd.f32 %v1530_v56, %v1436_v62  ;;  %v14385_v53 = vrot.slane %v14384_v24, 2  ;;  %v1548_v46 = vadd.f32 %v1537_v3, %v1440_v10  ;;  %v14387_v13 = vrot.slane %v14386_v47, 2  ;;  %14388 = vst [vmem:[#allocation229_spill] sm:$0xff] %v11371_v32  ;;  %v14391_v62 = vld [vmem:[#allocation79_spill] sm:$0xff] }
 0x4fd   :  { %v2494_v52 = vsel %vm272_vm3, %v2492_v29, %v14381_v49  ;;  %3292 = vrot.lane.b32.xlu1 %v14383_v61, %s7457_s20  ;;  %v2440_v29 = vmul.f32 %v7356_v34, %v14382_v17  ;;  %v1580_v49 = vadd.f32 %v1566_v2, %v1472_v22  ;;  %v14389_v9 = vrot.slane %v10926_v7, 1  ;;  %v14392_v3 = vld [vmem:[#allocation203_spill] sm:$0xff]  ;;  %v14393_v34 = vld [vmem:[#allocation205_spill] sm:$0xff] }
 0x4fe   :  { %v1546_v21 = vadd.f32 %v14385_v53, %v1438_v44  ;;  %v1582_v39 = vadd.f32 %v14387_v13, %v1474_v57  ;;  %v2508_v6 = vadd.f32 %v2494_v52, %v2438_v14  ;;  %v14390_v16 = vrot.slane %v10900_v18, 1  ;;  %v14394_v2 = vld [vmem:[#allocation207_spill] sm:$0xff]  ;;  %v14395_v53 = vld [vmem:[#allocation209_spill] sm:$0xff] }
 0x4ff   :  { %v1656_v44 = vadd.f32 %v14391_v62, %v1544_v4  ;;  %v1660_v61 = vadd.f32 %v14393_v34, %v1548_v46  ;;  %v1584_v24 = vadd.f32 %v1573_v27, %v1476_v1  ;;  %v1694_v22 = vadd.f32 %v14394_v2, %v1580_v49  ;;  %v14396_v13 = vld [vmem:[#allocation91_spill] sm:$0xff]  ;;  %v14399_v4 = vld [vmem:[#allocation217_spill] sm:$0xff]  ;;  %v11392_v1 = vpop.permute.xlu0 %3282  ;;  %v11403_v2 = vpop.permute.xlu1 %2890 }
 0x500   :  { %v3324_v56 = vsel %vm272_vm3, %v14390_v16, %v14389_v9  ;;  %v1658_v10 = vadd.f32 %v14392_v3, %v1546_v21  ;;  %v1696_v57 = vadd.f32 %v14395_v53, %v1582_v39  ;;  %v14397_v52 = vrot.slane %v14396_v13, 2  ;;  %v14398_v18 = vld [vmem:[#allocation211_spill] sm:$0xff]  ;;  %v14401_v46 = vld [vmem:[#allocation221_spill] sm:$0xff]  ;;  %14408 = vst [vmem:[#allocation196_spill] sm:$0xff] %v11403_v2  ;;  %v14410_v53 = vld [vmem:[#allocation234_spill] sm:$0xff] }
 0x501   :  { %v2442_v7 = vmul.f32 %v7357_v60, %v14382_v17  ;;  %3332 = vrot.lane.b32.xlu1 %v3324_v56, %s7457_s20  ;;  %v1698_v47 = vadd.f32 %v14398_v18, %v1584_v24  ;;  %v1790_v9 = vadd.f32 %v14399_v4, %v1656_v44  ;;  %v14400_v21 = vld [vmem:[#allocation219_spill] sm:$0xff]  ;;  %v1794_v27 = vadd.f32 %v14401_v46, %v1660_v61  ;;  %v14403_v62 = vld [vmem:[#allocation225_spill] sm:$0xff]  ;;  %v14411_v13 = vld [vmem:[#allocation236_spill] sm:$0xff] }
 0x502   :  { %v2602_v14 = vsel %vm381_vm4, %v2600_v41, %v14397_v52  ;;  %v1792_v16 = vadd.f32 %v14400_v21, %v1658_v10  ;;  %v14402_v49 = vld [vmem:[#allocation223_spill] sm:$0xff]  ;;  %v1840_v3 = vadd.f32 %v14403_v62, %v1696_v57  ;;  %v14404_v41 = vld [vmem:[#allocation122_spill] sm:$0xff]  ;;  %v14413_v4 = vld [vmem:[#allocation240_spill] sm:$0xff] }
 0x503   :  { %v1838_v39 = vadd.f32 %v14402_v49, %v1694_v22  ;;  %v11396_v34 = vadd.f32 %v2602_v14, %v2508_v6  ;;  %v14405_v60 = vrot.slane %v14404_v41, 1  ;;  %v14406_v17 = vld [vmem:[#allocation119_spill] sm:$0xff]  ;;  %v1934_v61 = vadd.f32 %v14410_v53, %v1790_v9  ;;  %v14412_v18 = vld [vmem:[#allocation238_spill] sm:$0xff]  ;;  %v14414_v6 = vld [vmem:[#allocation101_spill] sm:$0xff] }
 0x504   :  { %v14407_v56 = vrot.slane %v14406_v17, 1  ;;  %v14409_v44 = vld [vmem:[#allocation227_spill] sm:$0xff]  ;;  %v1936_v52 = vadd.f32 %v14411_v13, %v1792_v16  ;;  %v1938_v22 = vadd.f32 %v14412_v18, %v1794_v27  ;;  %v1984_v14 = vadd.f32 %v14414_v6, %v1840_v3  ;;  %v14415_v21 = vld [vmem:[#allocation98_spill] sm:$0xff]  ;;  %v14417_v62 = vld [vmem:[#allocation129_spill] sm:$0xff] }
 0x505   :  { %v1842_v10 = vadd.f32 %v14409_v44, %v1698_v47  ;;  %v1982_v57 = vadd.f32 %v14413_v4, %v1838_v39  ;;  %v14416_v46 = vrot.slane %v14415_v21, 1  ;;  %v2516_v41 = vmul.f32 %v11275_v55, %v14417_v62  ;;  %v14419_v47 = vld [vmem:[#allocation103_spill] sm:$0xff]  ;;  %v14420_v9 = vld [vmem:[#allocation85_spill] sm:$0xff]  ;;  %v11421_v39 = vpop.permute.xlu0 %3286  ;;  %v14423_v3 = vld [vmem:[#allocation94_spill] sm:$0xff] }
 0x506   :  { %v2501_v24 = vsel %vm272_vm3, %v14407_v56, %v14405_v60  ;;  %v14418_v60 = vld [vmem:[#allocation200_spill] sm:$0xff]  ;;  %v2058_v56 = vadd.f32 %v14420_v9, %v1934_v61  ;;  %v14421_v16 = vld [vmem:[#allocation83_spill] sm:$0xff]  ;;  %v14422_v27 = vld [vmem:[#allocation93_spill] sm:$0xff] }
 0x507   :  { %v2510_v49 = vadd.f32 %v14416_v46, %v2440_v29  ;;  %3336 = vrot.lane.b32.xlu1 %v14418_v60, %s7457_s20  ;;  %v1986_v17 = vadd.f32 %v14419_v47, %v1842_v10  ;;  %v2060_v44 = vadd.f32 %v14421_v16, %v1936_v52  ;;  %v2062_v53 = vadd.f32 %v14422_v27, %v1938_v22  ;;  %v14424_v18 = vld [vmem:[#allocation95_spill] sm:$0xff]  ;;  %v14425_v6 = vld [vmem:[#allocation176_spill] sm:$0xff]  ;;  %v11430_v10 = vpop.permute.xlu1 %2930  ;;  %v14430_v61 = vld [vmem:[#allocation97_spill] sm:$0xff] }
 0x508   :  { %v2096_v13 = vadd.f32 %v14423_v3, %v1982_v57  ;;  %v2098_v29 = vadd.f32 %v14424_v18, %v1984_v14  ;;  %v2512_v4 = vadd.f32 %v2501_v24, %v2442_v7  ;;  %v14426_v21 = vrot.slane %v14425_v6, 2  ;;  %v14427_v46 = vld [vmem:[#allocation127_spill] sm:$0xff]  ;;  %14429 = vst [vmem:[#allocation197_spill] sm:$0xff] %v11430_v10  ;;  %v14431_v52 = vld [vmem:[#allocation96_spill] sm:$0xff]  ;;  %v14433_v27 = vld [vmem:[#allocation102_spill] sm:$0xff] }
 0x509   :  { %v14428_v2 = vrot.slane %v14427_v46, 2  ;;  %v2100_v47 = vadd.f32 %v14430_v61, %v1986_v17  ;;  %v2192_v9 = vadd.f32 %v14431_v52, %v2058_v56  ;;  %v14432_v22 = vld [vmem:[#allocation100_spill] sm:$0xff]  ;;  %v2196_v32 = vadd.f32 %v14433_v27, %v2062_v53  ;;  %v14434_v57 = vld [vmem:[#allocation107_spill] sm:$0xff]  ;;  %v14441_v52 = vld [vmem:[#allocation50_spill] sm:$0xff] }
 0x50a   :  { %v2194_v16 = vadd.f32 %v14432_v22, %v2060_v44  ;;  %v2240_v3 = vadd.f32 %v14434_v57, %v2096_v13  ;;  %v14435_v14 = vld [vmem:[#allocation104_spill] sm:$0xff]  ;;  %v7358_v24 = vld [vmem:[#allocation2 + $0x88] sm:$0x3f]  ;;  %v14436_v17 = vrot.slane %v10933_v40, 1  ;;  %v14440_v13 = vld [vmem:[#allocation58_spill] sm:$0xff] }
 0x50b   :  { %v2609_v60 = vsel %vm381_vm4, %v14428_v2, %v14426_v21  ;;  %v2242_v7 = vadd.f32 %v14435_v14, %v2098_v29  ;;  %v11439_v18 = vmul.f32 %v7358_v24, %v14417_v62  ;;  %v2552_v2 = vmul.f32 %v11275_v55, %v14151_v31  ;;  %v14437_v56 = vld [vmem:[#allocation108_spill] sm:$0xff]  ;;  %v11450_v29 = vpop.permute.xlu0 %3290  ;;  %v14442_v22 = vld [vmem:[#allocation59_spill] sm:$0xff]  ;;  %v14443_v57 = vld [vmem:[#allocation173_spill] sm:$0xff] }
 0x50c   :  { %3340 = vrot.lane.b32.xlu1 %v14436_v17, %s7457_s20  ;;  %v2244_v6 = vadd.f32 %v14437_v56, %v2100_v47  ;;  %v14438_v44 = vld [vmem:[#allocation112_spill] sm:$0xff]  ;;  %v2340_v61 = vadd.f32 %v14440_v13, %v2196_v32  ;;  %v2384_v62 = vadd.f32 %v14441_v52, %v2240_v3  ;;  %v2624_v14 = vmul.f32 %v11275_v55, %v14443_v57  ;;  %v11459_v17 = vpop.permute.xlu1 %2934  ;;  %v14446_v47 = vld [vmem:[#allocation230_spill] sm:$0xff] }
 0x50d   :  { %v2336_v21 = vadd.f32 %v14438_v44, %v2192_v9  ;;  %v14439_v53 = vld [vmem:[#allocation48_spill] sm:$0xff]  ;;  %v2386_v27 = vadd.f32 %v14442_v22, %v2242_v7  ;;  %v11457_v40 = vmul.f32 %v7358_v24, %v14151_v31  ;;  %14445 = vst [vmem:[#allocation148_spill] sm:$0xff] %v11459_v17  ;;  %v2660_v32 = vmul.f32 %v11275_v55, %v14159_v63  ;;  %v14449_v44 = vld [vmem:[#allocation117_spill] sm:$0xff] }
 0x50e   :  { %v2338_v46 = vadd.f32 %v14439_v53, %v2194_v16  ;;  %v2388_v9 = vadd.f32 %v14446_v47, %v2244_v6  ;;  %v11463_v16 = vmul.f32 %v7358_v24, %v14443_v57  ;;  %v14447_v3 = vrot.slane %v10973_v45, 2 }
 0x50f   :  { %14444 = vst [vmem:[#allocation147_spill] sm:$0xff] %v11457_v40  ;;  %v14448_v7 = vrot.slane %v10947_v42, 2  ;;  %v14450_v53 = vrot.slane %v14449_v44, 2  ;;  %v2528_v13 = vrot.slane %v2516_v41, 1  ;;  %v13590_v52 = vrot.slane %v11439_v18, 1  ;;  %v11482_v57 = vpop.permute.xlu0 %3330 }
 0x510   :  { %v11476_v6 = vmul.f32 %v7358_v24, %v14159_v63  ;;  %v2458_v22 = vadd.f32 %v11336_v15, %v2336_v21  ;;  %v2460_v55 = vadd.f32 %v11339_v8, %v2338_v46  ;;  %v2462_v45 = vadd.f32 %v11344_v43, %v2340_v61  ;;  %v11487_v63 = vpop.permute.xlu1 %2938 }
 0x511   :  { %v3372_v56 = vsel %vm381_vm4, %v14448_v7, %v14447_v3  ;;  %v2618_v31 = vadd.f32 %v14450_v53, %v2510_v49  ;;  %v2564_v42 = vrot.slane %v2552_v2, 1  ;;  %v2472_v47 = vadd.f32 %v11348_v30, %v2384_v62  ;;  %14452 = vst [vmem:[#allocation180_spill] sm:$0xff] %v11487_v63  ;;  %v14453_v2 = vld [vmem:[#allocation52_spill] sm:$0xff]  ;;  %v14458_v62 = vld [vmem:[#allocation77_spill] sm:$0xff] }
 0x512   :  { %14451 = vst [vmem:[#allocation182_spill] sm:$0xff] %v11476_v6  ;;  %3380 = vrot.lane.b32.xlu1 %v3372_v56, %s7457_s20  ;;  %v2474_v49 = vadd.f32 %v11354_v58, %v2386_v27  ;;  %v2620_v41 = vadd.f32 %v2609_v60, %v2512_v4  ;;  %v13588_v3 = vrot.slane %v11457_v40, 1  ;;  %v2476_v24 = vadd.f32 %v11357_v36, %v2388_v9  ;;  %v14455_v58 = vld [vmem:[#allocation177_spill] sm:$0xff]  ;;  %v14457_v36 = vld [vmem:[#allocation136_spill] sm:$0xff] }
 0x513   :  { %v2636_v7 = vrot.slane %v2624_v14, 2  ;;  %v13589_v15 = vrot.slane %v11463_v16, 2  ;;  %v2672_v8 = vrot.slane %v2660_v32, 2  ;;  %v2726_v43 = vadd.f32 %v10737_v12, %v11396_v34  ;;  %v11509_v32 = vpop.permute.xlu0 %3334 }
 0x514   :  { %v14454_v21 = vrot.slane %v14453_v2, 1  ;;  %v14456_v4 = vrot.slane %v14455_v58, 1  ;;  %v13587_v46 = vrot.slane %v11476_v6, 2  ;;  %v14459_v27 = vrot.slane %v14458_v62, 1 }
 0x515   :  { %v14460_v34 = vrot.slane %v10646_v20, 1  ;;  %v14461_v44 = vrot.slane %v10669_v0, 1  ;;  %v14464_v20 = vrot.slane %v10573_v54, 2 }
 0x516   :  { %v2530_v30 = vsel %vm272_vm3, %v2528_v13, %v14454_v21  ;;  %v2537_v60 = vsel %vm272_vm3, %v14456_v4, %v13590_v52  ;;  %3384 = vrot.lane.b32.xlu1 %v14457_v36, %s7457_s20  ;;  %v2546_v14 = vadd.f32 %v14459_v27, %v2460_v55  ;;  %v14462_v13 = vld [vmem:[#allocation132_spill] sm:$0xff]  ;;  %v2850_v55 = vadd.f32 %v10864_v50, %v2726_v43  ;;  %v14468_v50 = vld [vmem:[#allocation179_spill] sm:$0xff] }
 0x517   :  { %v2544_v61 = vadd.f32 %v2530_v30, %v2458_v22  ;;  %v2548_v12 = vadd.f32 %v2537_v60, %v2462_v45  ;;  %v2566_v9 = vsel %vm272_vm3, %v2564_v42, %v14460_v34  ;;  %v2582_v53 = vadd.f32 %v14461_v44, %v2474_v49  ;;  %v11521_v45 = vpop.permute.xlu1 %2978  ;;  %v11553_v27 = vpop.permute.xlu0 %3338 }
 0x518   :  { %v2580_v56 = vadd.f32 %v2566_v9, %v2472_v47  ;;  %v14463_v22 = vrot.slane %v14462_v13, 1  ;;  %v2638_v42 = vsel %vm381_vm4, %v2636_v7, %v14464_v20  ;;  %v14465_v47 = vld [vmem:[#allocation178_spill] sm:$0xff]  ;;  %v14467_v49 = vrot.slane %v10686_v23, 2  ;;  %v14478_v9 = vld [vmem:[#allocation152_spill] sm:$0xff] }
 0x519   :  { %v14466_v21 = vrot.slane %v14465_v47, 2  ;;  %v2728_v4 = vadd.f32 %v10759_v19, %v2618_v31  ;;  %v14469_v43 = vrot.slane %v14468_v50, 2  ;;  %v2994_v7 = vadd.f32 %v11005_v33, %v2850_v55  ;;  %v14479_v13 = vld [vmem:[#allocation150_spill] sm:$0xff]  ;;  %v14480_v55 = vld [vmem:[#allocation156_spill] sm:$0xff] }
 0x51a   :  { %v2573_v2 = vsel %vm272_vm3, %v14463_v22, %v13588_v3  ;;  %v2674_v30 = vsel %vm381_vm4, %v2672_v8, %v14467_v49  ;;  %v14470_v60 = vrot.slane %v10980_v48, 2  ;;  %v14471_v36 = vrot.slane %v11020_v11, 2 }
 0x51b   :  { %v2645_v0 = vsel %vm381_vm4, %v14466_v21, %v13589_v15  ;;  %v2584_v58 = vadd.f32 %v2573_v2, %v2476_v24  ;;  %v2681_v54 = vsel %vm381_vm4, %v14469_v43, %v13587_v46  ;;  %v14472_v23 = vrot.slane %v10994_v38, 2  ;;  %v14484_v21 = vld [vmem:[#allocation53_spill] sm:$0xff]  ;;  %v14487_v43 = vld [vmem:[#allocation54_spill] sm:$0xff] }
 0x51c   :  { %3388 = vrot.lane.b32.xlu1 %v14470_v60, %s7457_s20  ;;  %v2652_v19 = vadd.f32 %v2638_v42, %v2544_v61  ;;  %v14473_v31 = vrot.slane %v10577_v28, 2  ;;  %v2656_v62 = vadd.f32 %v2645_v0, %v2548_v12  ;;  %v14474_v33 = vrot.slane %v11067_v26, 2  ;;  %v11570_v12 = vpop.permute.xlu1 %2982  ;;  %v14477_v26 = vld [vmem:[#allocation143_spill] sm:$0xff] }
 0x51d   :  { %v3420_v24 = vsel %vm381_vm4, %v14472_v23, %v14471_v36  ;;  %v14475_v48 = vrot.slane %v11041_v37, 2  ;;  %v2688_v38 = vadd.f32 %v2674_v30, %v2580_v56  ;;  %v14476_v11 = vrot.slane %v10690_v51, 2  ;;  %v14481_v56 = vld [vmem:[#allocation153_spill] sm:$0xff]  ;;  %v14482_v51 = vld [vmem:[#allocation66_spill] sm:$0xff] }
 0x51e   :  { %v2654_v8 = vadd.f32 %v14473_v31, %v2546_v14  ;;  %v2852_v28 = vadd.f32 %v10875_v35, %v2728_v4  ;;  %v3128_v14 = vadd.f32 %v11118_v5, %v2994_v7  ;;  %v2730_v37 = vadd.f32 %v14477_v26, %v2620_v41  ;;  %v14483_v35 = vld [vmem:[#allocation162_spill] sm:$0xff]  ;;  %v14485_v41 = vld [vmem:[#allocation80_spill] sm:$0xff]  ;;  %v3379_v4 = vpop.permute.xlu0 %3378  ;;  %v14488_v7 = vld [vmem:[#allocation237_spill] sm:$0xff] }
 0x51f   :  { %v11560_v34 = vsel %vm381_vm4, %v14475_v48, %v14474_v33  ;;  %v2690_v61 = vadd.f32 %v14476_v11, %v2582_v53  ;;  %v2764_v44 = vadd.f32 %v14478_v9, %v2652_v19  ;;  %v2692_v2 = vadd.f32 %v2681_v54, %v2584_v58  ;;  %v14486_v58 = vld [vmem:[#allocation214_spill] sm:$0xff]  ;;  %v14490_v19 = vld [vmem:[#allocation231_spill] sm:$0xff]  ;;  %v14497_v9 = vld [vmem:[#allocation208_spill] sm:$0xff] }
 0x520   :  { %v2766_v22 = vadd.f32 %v14479_v13, %v2654_v8  ;;  %v2768_v20 = vadd.f32 %v14480_v55, %v2656_v62  ;;  %v2802_v42 = vadd.f32 %v14481_v56, %v2688_v38  ;;  %v2996_v53 = vadd.f32 %v14482_v51, %v2852_v28  ;;  %3428 = vrot.lane.b32.xlu1 %v3420_v24, %s7457_s20  ;;  %v11591_v36 = vpop.permute.xlu1 %2986  ;;  %v14489_v23 = vld [vmem:[#allocation82_spill] sm:$0xff]  ;;  %v14491_v8 = vld [vmem:[#allocation233_spill] sm:$0xff]  ;;  %v14493_v48 = vld [vmem:[#allocation159_spill] sm:$0xff] }
 0x521   :  { %v3252_v47 = vadd.f32 %v11288_v59, %v3128_v14  ;;  %v2804_v5 = vadd.f32 %v14483_v35, %v2690_v61  ;;  %v2806_v0 = vadd.f32 %v14484_v21, %v2692_v2  ;;  %v2854_v49 = vadd.f32 %v14485_v41, %v2730_v37  ;;  %v14494_v11 = vld [vmem:[#allocation218_spill] sm:$0xff]  ;;  %v14501_v21 = vld [vmem:[#allocation224_spill] sm:$0xff] }
 0x522   :  { %v11584_v30 = vstv %s11511_s29  ;;  %v2898_v50 = vadd.f32 %v14486_v58, %v2764_v44  ;;  %v2900_v54 = vadd.f32 %v14487_v43, %v2766_v22  ;;  %v3130_v60 = vadd.f32 %v14488_v7, %v2996_v53  ;;  %v14495_v28 = vld [vmem:[#allocation134_spill] sm:$0xff]  ;;  %v3383_v13 = vpop.permute.xlu0 %3382  ;;  %v14500_v53 = vld [vmem:[#allocation204_spill] sm:$0xff]  ;;  %s11831_s29 = sld [smem:[#allocation11 + $0x10]] }
 0x523   :  { %v3396_v59 = vadd.f32 %v3379_v4, %v3252_v47  ;;  %v2902_v24 = vadd.f32 %v14489_v23, %v2768_v20  ;;  %v11595_v31 = vadd.f32 %v14490_v19, %v2802_v42  ;;  %v2998_v62 = vadd.f32 %v14491_v8, %v2854_v49  ;;  %v14496_v37 = vld [vmem:[#allocation86_spill] sm:$0xff]  ;;  %v14498_v20 = vld [vmem:[#allocation216_spill] sm:$0xff]  ;;  %v11637_v4 = vpop.f32.mrb[0].mxu1 }
 0x524   :  { %v11601_v33 = vstv %s13334_s8  ;;  %v11608_v38 = vadd.f32 %v14493_v48, %v2804_v5  ;;  %v3042_v61 = vadd.f32 %v14494_v11, %v2898_v50  ;;  %v3254_v14 = vadd.f32 %v14495_v28, %v3130_v60  ;;  %3432 = vrot.lane.b32.xlu1 %v14496_v37, %s7457_s20  ;;  %v14499_v42 = vld [vmem:[#allocation166_spill] sm:$0xff]  ;;  %v11633_v5 = vpop.permute.xlu1 %3026  ;;  %s11639_s8 = sld [smem:[#allocation11 + $0x24]]  ;;  %v11645_v43 = vpop.f32.mrb[1].mxu1 }
 0x525   :  { %14492 = vst [vmem:[#allocation157_spill] sm:$0xff] %v11601_v33  ;;  %v3500_v26 = vadd.f32 %v11584_v30, %v3396_v59  ;;  %v3132_v44 = vadd.f32 %v14497_v9, %v2998_v62  ;;  %v11617_v22 = vstv %s11549_s3  ;;  %v11620_v2 = vstv %s11562_s5  ;;  %v14502_v58 = vld [vmem:[#allocation202_spill] sm:$0xff]  ;;  %14504 = vst [vmem:[#allocation184_spill] sm:$0xff] %v11645_v43  ;;  %s11839_s3 = sld [smem:[#allocation11 + $0x29]]  ;;  %s11842_s5 = sld [smem:[#allocation11 + $0x25]] }
 0x526   :  { %v11623_v55 = vstv %s11564_s15  ;;  %v11626_v56 = vadd.f32 %v14498_v20, %v2806_v0  ;;  %v3044_v51 = vadd.f32 %v14499_v42, %v2900_v54  ;;  %v11630_v47 = vadd.f32 %v14500_v53, %v2902_v24  ;;  %v14505_v60 = vld [vmem:[#allocation210_spill] sm:$0xff]  ;;  %v3387_v23 = vpop.permute.xlu0 %3386  ;;  %s11845_s15 = sld [smem:[#allocation11 + $0x7]] }
 0x527   :  { %v3398_v35 = vadd.f32 %v3383_v13, %v3254_v14  ;;  %3512 = vrot.lane.b32.xlu0 %v3500_v26, %s7457_s20  ;;  %v3166_v41 = vadd.f32 %v14501_v21, %v3042_v61  ;;  %v3256_v49 = vadd.f32 %v11367_v25, %v3132_v44  ;;  %v14503_v50 = vrot.slane %v14502_v58, 2 }
 0x528   :  { %v4222_v54 = vmul.f32 %v11637_v4, %v11617_v22  ;;  %v4248_v25 = vmul.f32 %v11637_v4, %v11620_v2  ;;  %v4291_v7 = vmul.f32 %v11637_v4, %v11623_v55  ;;  %v3168_v59 = vadd.f32 %v14505_v60, %v3044_v51  ;;  %v11662_v48 = vpop.permute.xlu1 %3030 }
 0x529   :  { %v3502_v0 = vadd.f32 %v11584_v30, %v3398_v35  ;;  %3436 = vrot.lane.b32.xlu1 %v14503_v50, %s7457_s20  ;;  %v4221_v24 = vmul.f32 %v11617_v22, %v11645_v43  ;;  %v4247_v19 = vmul.f32 %v11620_v2, %v11645_v43  ;;  %v11659_v8 = vstv %s11586_s16  ;;  %s11867_s16 = sld [smem:[#allocation11 + $0x2a]] }
 0x52a   :  { %v3400_v62 = vadd.f32 %v3387_v23, %v3256_v49  ;;  %v4226_v11 = vrot.slane %v4222_v54, 2  ;;  %v4252_v61 = vrot.slane %v4248_v25, 4  ;;  %v4290_v28 = vmul.f32 %v11623_v55, %v11645_v43  ;;  %v3427_v51 = vpop.permute.xlu0 %3426 }
 0x52b   :  { %3516 = vrot.lane.b32.xlu0 %v3502_v0, %s7457_s20  ;;  %v4225_v14 = vrot.slane %v4221_v24, 2  ;;  %v4251_v26 = vrot.slane %v4247_v19, 4  ;;  %v11667_v37 = vstv %s11603_s19  ;;  %v11670_v9 = vstv %s11605_s1  ;;  %v14507_v24 = vld [vmem:[#allocation201_spill] sm:$0xff]  ;;  %s11888_s19 = sld [smem:[#allocation11 + $0x5]]  ;;  %s11931_s1 = sld [smem:[#allocation11 + $0x2f]] }
 0x52c   :  { %v3300_v44 = vadd.f32 %v11392_v1, %v3166_v41  ;;  %v3504_v13 = vadd.f32 %v11584_v30, %v3400_v62  ;;  %v4294_v20 = vrot.slane %v4290_v28, 3  ;;  %v4295_v42 = vrot.slane %v4291_v7, 3  ;;  %v11701_v7 = vpop.f32.mrb[2].mxu1  ;;  %v14509_v28 = vld [vmem:[#allocation69_spill] sm:$0xff] }
 0x52d   :  { %3476 = vrot.lane.b32.xlu1 %v11560_v34, %s7457_s20  ;;  %v11679_v53 = vsel %vm381_vm4, %v4225_v14, %v4226_v11  ;;  %v11682_v35 = vsel %vm4196_vm12, %v4251_v26, %v4252_v61  ;;  %v4333_v21 = vmul.f32 %v11659_v8, %v11645_v43  ;;  %v4334_v1 = vmul.f32 %v11637_v4, %v11659_v8  ;;  %v11689_v34 = vpop.permute.xlu1 %3034  ;;  %v11711_v11 = vpop.f32.mrb[3].mxu1 }
 0x52e   :  { %v3444_v41 = vadd.f32 %v3427_v51, %v3300_v44  ;;  %14506 = vst [vmem:[#allocation109_spill] sm:$0xff] %v11689_v34  ;;  %v11692_v49 = vsel %vm4184_vm13, %v4294_v20, %v4295_v42  ;;  %v4359_v0 = vmul.f32 %v11667_v37, %v11645_v43  ;;  %v4360_v58 = vmul.f32 %v11637_v4, %v11667_v37  ;;  %v3431_v26 = vpop.permute.xlu0 %3430 }
 0x52f   :  { %3520 = vrot.lane.b32.xlu0 %v3504_v13, %s7457_s20  ;;  %v3302_v50 = vadd.f32 %v11421_v39, %v3168_v59  ;;  %v4337_v54 = vrot.slane %v4333_v21, 2  ;;  %v4338_v25 = vrot.slane %v4334_v1, 2  ;;  %v11706_v60 = vstv %s11639_s8  ;;  %v14508_v59 = vld [vmem:[#allocation235_spill] sm:$0xff]  ;;  %s11945_s8 = sld [smem:[#allocation11 + $0x16]] }
 0x530   :  { %v3539_v23 = vadd.f32 %v11601_v33, %v3444_v41  ;;  %v4363_v19 = vrot.slane %v4359_v0, 4  ;;  %v4364_v62 = vrot.slane %v4360_v58, 4  ;;  %v4402_v39 = vmul.f32 %v11670_v9, %v11645_v43 }
 0x531   :  { %3480 = vrot.lane.b32.xlu1 %v14507_v24, %s7457_s20  ;;  %v3090_v61 = vadd.f32 %v14508_v59, %v11595_v31  ;;  %v3170_v14 = vadd.f32 %v14509_v28, %v11630_v47  ;;  %v11722_v44 = vsel %vm381_vm4, %v4337_v54, %v4338_v25  ;;  %v4403_v13 = vmul.f32 %v11637_v4, %v11670_v9  ;;  %v11730_v42 = vpop.permute.xlu1 %3074  ;;  %v11747_v25 = vpop.f32.mrb[4].mxu1 }
 0x532   :  { %3546 = vst.msk [vmem:[%s13339_s13] sm:$0xff] %vm3545_vm11, %v3539_v23  ;;  %v3446_v20 = vadd.f32 %v3431_v26, %v3302_v50  ;;  %14510 = vst [vmem:[#allocation183_spill] sm:$0xff] %v11730_v42  ;;  %v11733_v31 = vsel %vm4196_vm12, %v4363_v19, %v4364_v62  ;;  %v4406_v51 = vrot.slane %v4402_v39, 3  ;;  %v4654_v47 = vmul.f32 %v11706_v60, %v11711_v11  ;;  %v14511_v50 = vld [vmem:[#allocation105_spill] sm:$0xff]  ;;  %v14513_v19 = vld [vmem:[#allocation124_spill] sm:$0xff]  ;;  %v3435_v39 = vpop.permute.xlu0 %3434  ;;  %v11760_v28 = vpop.f32.mrb[5].mxu1 }
 0x533   :  { %v3304_v21 = vadd.f32 %v11450_v29, %v3170_v14  ;;  %v4407_v1 = vrot.slane %v4403_v13, 3  ;;  %v4655_v41 = vmul.f32 %v11701_v7, %v11706_v60  ;;  %v11741_v0 = vstv %s11672_s9  ;;  %v14515_v13 = vld [vmem:[#allocation70_spill] sm:$0xff]  ;;  %s11956_s9 = sld [smem:[#allocation11 + $0x3]] }
 0x534   :  { %v3541_v58 = vadd.f32 %v11601_v33, %v3446_v20  ;;  %v14512_v54 = vrot.slane %v14511_v50, 2  ;;  %v4658_v23 = vrot.slane %v4654_v47, 2  ;;  %v4680_v24 = vmul.f32 %v11741_v0, %v11711_v11 }
 0x535   :  { %v4681_v29 = vmul.f32 %v11701_v7, %v11741_v0  ;;  %v3092_v62 = vadd.f32 %v14513_v19, %v11608_v38  ;;  %v11758_v59 = vstv %s13336_s10  ;;  %v11763_v14 = vsel %vm4184_vm13, %v4406_v51, %v4407_v1  ;;  %v11770_v47 = vpop.permute.xlu1 %3078  ;;  %v14517_v19 = vld [vmem:[#allocation170_spill] sm:$0xff]  ;;  %s11792_s10 = sld [smem:[#allocation11 + $0x1]] }
 0x536   :  { %3484 = vrot.lane.b32.xlu1 %v14512_v54, %s7457_s20  ;;  %14514 = vst [vmem:[#allocation163_spill] sm:$0xff] %v11758_v59  ;;  %v4659_v26 = vrot.slane %v4655_v41, 2  ;;  %v3204_v20 = vadd.f32 %v14515_v13, %v3090_v61  ;;  %3549 = vst.msk [vmem:[%s13339_s13 + $0x10] sm:$0xf] %vm3548_vm14, %v3541_v58  ;;  %v3448_v38 = vadd.f32 %v3435_v39, %v3304_v21  ;;  %v4684_v50 = vrot.slane %v4680_v24, 4  ;;  %v11784_v41 = vpop.f32.mrb[6].mxu1  ;;  %v3475_v24 = vpop.permute.xlu0 %3474 }
 0x537   :  { %14516 = vst [vmem:[#allocation111_spill] sm:$0xff] %v11770_v47  ;;  %v4685_v54 = vrot.slane %v4681_v29, 4  ;;  %v3206_v46 = vadd.f32 %v14517_v19, %v3092_v62  ;;  %v11774_v3 = vstv %s11698_s21  ;;  %v11777_v15 = vstv %s11703_s4  ;;  %v11806_v62 = vpop.f32.mrb[7].mxu1  ;;  %s11985_s21 = sld [smem:[#allocation11 + $0x12]]  ;;  %s11987_s4 = sld [smem:[#allocation11 + $0x26]] }
 0x538   :  { %v11780_v51 = vsel %vm381_vm4, %v4658_v23, %v4659_v26  ;;  %v3348_v61 = vadd.f32 %v11482_v57, %v3204_v20  ;;  %v3543_v1 = vadd.f32 %v11601_v33, %v3448_v38  ;;  %v11787_v21 = vstv %s11713_s7  ;;  %s11995_s7 = sld [smem:[#allocation11 + $0x9]] }
 0x539   :  { %14518 = vst [vmem:[#allocation190_spill] sm:$0xff] %v11780_v51  ;;  %v11790_v58 = vsel %vm4196_vm12, %v4684_v50, %v4685_v54  ;;  %v11796_v29 = vmul.f32 %v11784_v41, %v11774_v3  ;;  %v11800_v23 = vmul.f32 %v11784_v41, %v11777_v15  ;;  %v11804_v57 = vmul.f32 %v11784_v41, %v11787_v21  ;;  %v11814_v13 = vpop.permute.xlu1 %3082  ;;  %v14521_v50 = vld [vmem:[#allocation165_spill] sm:$0xff] }
 0x53a   :  { %14519 = vst [vmem:[#allocation45_spill] sm:$0xff] %v11790_v58  ;;  %v5526_v39 = vmul.f32 %v11784_v41, %v11617_v22  ;;  %3551 = vst.msk [vmem:[%s13339_s13 + $0x20] sm:$0xff] %vm3545_vm11, %v3543_v1  ;;  %v3492_v26 = vadd.f32 %v3475_v24, %v3348_v61  ;;  %v5525_v20 = vmul.f32 %v11806_v62, %v11617_v22  ;;  %v14522_v1 = vld [vmem:[#allocation228_spill] sm:$0xff]  ;;  %v12002_v40 = vstv %s11945_s8  ;;  %s12407_s8 = sld [smem:[#allocation11 + $0x3f]] }
 0x53b   :  { %14520 = vst [vmem:[#allocation44_spill] sm:$0xff] %v11814_v13  ;;  %v5551_v38 = vmul.f32 %v11806_v62, %v11620_v2  ;;  %v3094_v54 = vadd.f32 %v14521_v50, %v11626_v56  ;;  %v3350_v19 = vadd.f32 %v11509_v32, %v3206_v46  ;;  %v5552_v61 = vmul.f32 %v11784_v41, %v11620_v2  ;;  %v3479_v13 = vpop.permute.xlu0 %3478 }
 0x53c   :  { %v3555_v52 = vadd.f32 %v11758_v59, %v3492_v26  ;;  %v5529_v58 = vrot.slane %v5525_v20, 2  ;;  %v5530_v51 = vrot.slane %v5526_v39, 2  ;;  %v5594_v22 = vmul.f32 %v11806_v62, %v11623_v55 }
 0x53d   :  { %v3208_v24 = vadd.f32 %v14522_v1, %v3094_v54  ;;  %v5555_v47 = vrot.slane %v5551_v38, 4  ;;  %v5595_v63 = vmul.f32 %v11784_v41, %v11623_v55  ;;  %v3494_v46 = vadd.f32 %v3479_v13, %v3350_v19  ;;  %v11834_v32 = vpop.permute.xlu1 %3112 }
 0x53e   :  { %3567 = vrot.lane.b32.xlu0 %v3555_v52, %s7458_s30  ;;  %v11837_v2 = vsel %vm381_vm4, %v5529_v58, %v5530_v51  ;;  %v5556_v56 = vrot.slane %v5552_v61, 4  ;;  %v5598_v26 = vrot.slane %v5594_v22, 3  ;;  %v5637_v51 = vmul.f32 %v11806_v62, %v11659_v8 }
 0x53f   :  { %v3352_v39 = vadd.f32 %v11553_v27, %v3208_v24  ;;  %v5599_v20 = vrot.slane %v5595_v63, 3  ;;  %v3557_v55 = vadd.f32 %v11758_v59, %v3494_v46  ;;  %v5638_v58 = vmul.f32 %v11784_v41, %v11659_v8  ;;  %v3483_v13 = vpop.permute.xlu0 %3482 }
 0x540   :  { %v11848_v52 = vsel %vm4196_vm12, %v5555_v47, %v5556_v56  ;;  %v13591_v38 = vstv %s11792_s10  ;;  %v5663_v63 = vmul.f32 %v11806_v62, %v11667_v37  ;;  %v5664_v50 = vmul.f32 %v11784_v41, %v11667_v37 }
 0x541   :  { %v11856_v27 = vsel %vm4184_vm13, %v5598_v26, %v5599_v20  ;;  %v3496_v47 = vadd.f32 %v3483_v13, %v3352_v39  ;;  %v11863_v54 = vpop.permute.xlu1 %3116  ;;  %v5641_v19 = vrot.slane %v5637_v51, 2  ;;  %v5642_v8 = vrot.slane %v5638_v58, 2 }
 0x542   :  { %3571 = vrot.lane.b32.xlu0 %v3557_v55, %s7458_s30  ;;  %v5706_v61 = vmul.f32 %v11806_v62, %v11670_v9  ;;  %v5667_v1 = vrot.slane %v5663_v63, 4  ;;  %v5668_v24 = vrot.slane %v5664_v50, 4  ;;  %v5707_v46 = vmul.f32 %v11784_v41, %v11670_v9 }
 0x543   :  { %v3559_v22 = vadd.f32 %v11758_v59, %v3496_v47  ;;  %v11871_v37 = vsel %vm381_vm4, %v5641_v19, %v5642_v8  ;;  %v4204_v39 = vmul.f32 %v13591_v38, %v11645_v43  ;;  %v11884_v20 = vstv %s11831_s29  ;;  %v11907_v19 = vpop.f32.mrb[8].mxu1  ;;  %s6787_s29 = sld [smem:[#allocation11 + $0x42]] }
 0x544   :  { %v5710_v56 = vrot.slane %v5706_v61, 3  ;;  %v11881_v26 = vsel %vm4196_vm12, %v5667_v1, %v5668_v24  ;;  %v5711_v9 = vrot.slane %v5707_v46, 3  ;;  %v11894_v51 = vstv %s11839_s3  ;;  %v11909_v1 = vpop.f32.mrb[9].mxu1  ;;  %s12198_s3 = sld [smem:[#allocation11 + $0x1f]] }
 0x545   :  { %v11891_v55 = vpop.permute.xlu1 %3120  ;;  %v4234_v58 = vmul.f32 %v11884_v20, %v11645_v43  ;;  %v4235_v13 = vmul.f32 %v11637_v4, %v11884_v20  ;;  %v11901_v63 = vstv %s11842_s5  ;;  %v13597_v50 = vstv %s11845_s15  ;;  %s6788_s5 = sld [smem:[#allocation11 + $0x47]] }
 0x546   :  { %3575 = vrot.lane.b32.xlu0 %v3559_v22, %s7458_s30  ;;  %14523 = vst [vmem:[#allocation186_spill] sm:$0xff] %v11901_v63  ;;  %v11905_v47 = vsel %vm4184_vm13, %v5710_v56, %v5711_v9  ;;  %v5972_v24 = vmul.f32 %v11907_v19, %v11894_v51  ;;  %v4710_v22 = vmul.f32 %v11901_v63, %v11711_v11 }
 0x547   :  { %14524 = vst [vmem:[#allocation171_spill] sm:$0xff] %v11905_v47  ;;  %v4238_v8 = vrot.slane %v4234_v58, 3  ;;  %v4239_v61 = vrot.slane %v4235_v13, 3  ;;  %v4711_v46 = vmul.f32 %v11701_v7, %v11901_v63  ;;  %v5971_v56 = vmul.f32 %v11894_v51, %v11909_v1 }
 0x548   :  { %v11926_v58 = vstv %s11867_s16  ;;  %v4268_v13 = vmul.f32 %v13597_v50, %v11645_v43  ;;  %v5976_v59 = vrot.slane %v5972_v24, 3  ;;  %v4714_v17 = vrot.slane %v4710_v22, 2  ;;  %s6792_s16 = sld [smem:[#allocation11 + $0x43]] }
 0x549   :  { %v11917_v38 = vpop.permute.xlu1 %3150  ;;  %v11923_v9 = vsel %vm4184_vm13, %v4238_v8, %v4239_v61  ;;  %14526 = vst [vmem:[#allocation191_spill] sm:$0xff] %v11926_v58  ;;  %v4715_v63 = vrot.slane %v4711_v46, 2  ;;  %v5975_v42 = vrot.slane %v5971_v56, 3  ;;  %v4724_v6 = vmul.f32 %v11701_v7, %v11926_v58 }
 0x54a   :  { %4206 = vrot.lane.b32.xlu0 %v4204_v39, %s7456_s0  ;;  %14525 = vst [vmem:[#allocation46_spill] sm:$0xff] %v11923_v9  ;;  %v4723_v39 = vmul.f32 %v11926_v58, %v11711_v11  ;;  %v11941_v61 = vstv %s11875_s17  ;;  %v13602_v9 = vstv %s11886_s18  ;;  %v4170_v10 = vmul.f32 %v11637_v4, %v11774_v3  ;;  %s12320_s17 = sld [smem:[#allocation11 + $0x1a]] }
 0x54b   :  { %v11938_v8 = vsel %vm381_vm4, %v4714_v17, %v4715_v63  ;;  %v11952_v22 = vsel %vm4184_vm13, %v5975_v42, %v5976_v59  ;;  %v4728_v56 = vrot.slane %v4724_v6, 3  ;;  %v4277_v17 = vmul.f32 %v11941_v61, %v11645_v43 }
 0x54c   :  { %14527 = vst [vmem:[#allocation47_spill] sm:$0xff] %v11938_v8  ;;  %14528 = vst [vmem:[#allocation192_spill] sm:$0xff] %v11952_v22  ;;  %v4727_v46 = vrot.slane %v4723_v39, 3  ;;  %v4270_v63 = vrot.slane %v4268_v13, 1  ;;  %v4278_v50 = vmul.f32 %v11637_v4, %v11941_v61  ;;  %v4193_v6 = vmul.f32 %v11637_v4, %v11787_v21 }
 0x54d   :  { %v11947_v24 = vpop.permute.xlu1 %3154  ;;  %v4281_v59 = vrot.slane %v4277_v17, 2  ;;  %v4158_v13 = vmul.f32 %v13602_v9, %v11645_v43  ;;  %v4174_v8 = vrot.slane %v4170_v10, 2  ;;  %v14530_v58 = vstv %s11888_s19 }
 0x54e   :  { %4228 = vrot.lane.b32.xlu0 %v11679_v53, %s7456_s0  ;;  %v4181_v53 = vmul.f32 %v11637_v4, %v11777_v15  ;;  %v11965_v42 = vsel %vm4184_vm13, %v4727_v46, %v4728_v56  ;;  %v4282_v39 = vrot.slane %v4278_v50, 2  ;;  %v4162_v47 = vmul.f32 %v14530_v58, %v11645_v43 }
 0x54f   :  { %14529 = vst [vmem:[#allocation172_spill] sm:$0xff] %v11965_v42  ;;  %v4198_v46 = vrot.slane %v4193_v6, 4  ;;  %v4169_v56 = vmul.f32 %v11774_v3, %v11645_v43  ;;  %v4180_v17 = vmul.f32 %v11777_v15, %v11645_v43  ;;  %v4192_v10 = vmul.f32 %v11787_v21, %v11645_v43 }
 0x550   :  { %v4186_v22 = vrot.slane %v4181_v53, 3  ;;  %v11990_v50 = vsel %vm381_vm4, %v4281_v59, %v4282_v39  ;;  %v4164_v58 = vrot.slane %v4162_v47, 1 }
 0x551   :  { %v11975_v33 = vpop.permute.xlu1 %3158  ;;  %14532 = vst [vmem:[#allocation193_spill] sm:$0xff] %v11990_v50  ;;  %v4173_v53 = vrot.slane %v4169_v56, 2  ;;  %v4185_v6 = vrot.slane %v4180_v17, 3  ;;  %v4197_v9 = vrot.slane %v4192_v10, 4  ;;  %v4303_v50 = vmul.f32 %v12002_v40, %v11645_v43 }
 0x552   :  { %14531 = vst [vmem:[#allocation194_spill] sm:$0xff] %v11975_v33  ;;  %4254 = vrot.lane.b32.xlu0 %v11682_v35, %s7456_s0  ;;  %v11993_v35 = vstv %s11931_s1  ;;  %v4166_v33 = vadd.f32 %v4164_v58, %v4158_v13  ;;  %v13604_v13 = vstv %s11956_s9 }
 0x553   :  { %14533 = vst [vmem:[#allocation174_spill] sm:$0xff] %v11993_v35  ;;  %v4736_v42 = vmul.f32 %v11993_v35, %v11711_v11  ;;  %v4737_v34 = vmul.f32 %v11701_v7, %v11993_v35  ;;  %v4175_v59 = vsel %vm381_vm4, %v4173_v53, %v4174_v8  ;;  %v4187_v39 = vsel %vm4184_vm13, %v4185_v6, %v4186_v22 }
 0x554   :  { %v4199_v56 = vsel %vm4196_vm12, %v4197_v9, %v4198_v46  ;;  %v4177_v10 = vadd.f32 %v4175_v59, %v4166_v33  ;;  %v4307_v53 = vrot.slane %v4303_v50, 4  ;;  %v12035_v46 = vstv %s11987_s4  ;;  %s12420_s4 = sld [smem:[#allocation11 + $0x6]] }
 0x555   :  { %v12006_v47 = vpop.permute.xlu1 %3188  ;;  %v4740_v17 = vrot.slane %v4736_v42, 4  ;;  %v4741_v58 = vrot.slane %v4737_v34, 4  ;;  %v4316_v34 = vmul.f32 %v13604_v13, %v11645_v43  ;;  %v12032_v42 = vstv %s11985_s21  ;;  %14536 = vst [vmem:[#allocation27_spill] sm:$0xff] %v12035_v46  ;;  %s6750_s21 = sld [smem:[#allocation11 + $0x23]] }
 0x556   :  { %4271 = vrot.lane.b32.xlu0 %v4270_v63, %s7457_s20  ;;  %v4304_v63 = vmul.f32 %v11637_v4, %v12002_v40  ;;  %v4189_v8 = vadd.f32 %v4187_v39, %v4177_v10  ;;  %v4346_v6 = vmul.f32 %v12032_v42, %v11645_v43  ;;  %v13607_v59 = vstv %s11995_s7 }
 0x557   :  { %v12018_v22 = vsel %vm4196_vm12, %v4740_v17, %v4741_v58  ;;  %v4766_v17 = vmul.f32 %v12035_v46, %v11711_v11  ;;  %v4767_v58 = vmul.f32 %v11701_v7, %v12035_v46  ;;  %v4380_v13 = vmul.f32 %v13607_v59, %v11645_v43 }
 0x558   :  { %14534 = vst [vmem:[#allocation195_spill] sm:$0xff] %v12018_v22  ;;  %v4308_v9 = vrot.slane %v4304_v63, 4  ;;  %v12037_v50 = vadd.f32 %v4199_v56, %v4189_v8  ;;  %v4350_v10 = vrot.slane %v4346_v6, 3  ;;  %v12052_v63 = vstv %s12004_s22  ;;  %s12437_s22 = sld [smem:[#allocation11 + $0x44]] }
 0x559   :  { %v12024_v33 = vpop.permute.xlu1 %3192  ;;  %14539 = vst [vmem:[#allocation26_spill] sm:$0xff] %v12052_v63  ;;  %v4771_v6 = vrot.slane %v4767_v58, 2  ;;  %v12079_v59 = vstv %s12020_s23  ;;  %s12727_s23 = sld [smem:[#allocation11 + $0x33]] }
 0x55a   :  { %14535 = vst [vmem:[#allocation20_spill] sm:$0xff] %v12024_v33  ;;  %4297 = vrot.lane.b32.xlu0 %v11692_v49, %s7457_s20  ;;  %14537 = vst [vmem:[#allocation22_spill] sm:$0xff] %v12037_v50  ;;  %v12043_v39 = vsel %vm4196_vm12, %v4307_v53, %v4308_v9  ;;  %v4347_v49 = vmul.f32 %v11637_v4, %v12032_v42  ;;  %v4770_v53 = vrot.slane %v4766_v17, 2 }
 0x55b   :  { %14538 = vst [vmem:[#allocation21_spill] sm:$0xff] %v12043_v39  ;;  %v4779_v9 = vmul.f32 %v12052_v63, %v11711_v11  ;;  %v4780_v50 = vmul.f32 %v11701_v7, %v12052_v63  ;;  %v12064_v39 = vstv %s6739_s2  ;;  %14543 = vst [vmem:[#allocation29_spill] sm:$0xff] %v12079_v59  ;;  %v12082_v63 = vstv %s12022_s24  ;;  %s12449_s24 = sld [smem:[#allocation11 + $0x20]]  ;;  %s12645_s2 = sld [smem:[#allocation11 + $0x22]] }
 0x55c   :  { %v4351_v8 = vrot.slane %v4347_v49, 3  ;;  %v4390_v49 = vmul.f32 %v11637_v4, %v12064_v39  ;;  %v12076_v17 = vsel %vm381_vm4, %v4770_v53, %v4771_v6  ;;  %v4793_v53 = vmul.f32 %v11701_v7, %v12079_v59 }
 0x55d   :  { %v12054_v56 = vpop.permute.xlu1 %3196  ;;  %v4783_v46 = vrot.slane %v4779_v9, 3  ;;  %14542 = vst [vmem:[#allocation33_spill] sm:$0xff] %v12076_v17  ;;  %v4784_v58 = vrot.slane %v4780_v50, 3  ;;  %v4415_v6 = vmul.f32 %v12082_v63, %v11645_v43  ;;  %v4416_v17 = vmul.f32 %v11637_v4, %v12082_v63 }
 0x55e   :  { %14540 = vst [vmem:[#allocation31_spill] sm:$0xff] %v12054_v56  ;;  %4318 = vrot.lane.b32.xlu0 %v4316_v34, %s7458_s30  ;;  %v12067_v22 = vsel %vm4184_vm13, %v4350_v10, %v4351_v8  ;;  %v4389_v34 = vmul.f32 %v12064_v39, %v11645_v43  ;;  %v4394_v9 = vrot.slane %v4390_v49, 2  ;;  %v4797_v49 = vrot.slane %v4793_v53, 4 }
 0x55f   :  { %14541 = vst [vmem:[#allocation28_spill] sm:$0xff] %v12067_v22  ;;  %v4792_v22 = vmul.f32 %v12079_v59, %v11711_v11  ;;  %v12095_v50 = vsel %vm4184_vm13, %v4783_v46, %v4784_v58  ;;  %v4419_v35 = vrot.slane %v4415_v6, 4  ;;  %v4420_v56 = vrot.slane %v4416_v17, 4 }
 0x560   :  { %v4393_v8 = vrot.slane %v4389_v34, 2  ;;  %14544 = vst [vmem:[#allocation40_spill] sm:$0xff] %v12095_v50  ;;  %v4382_v46 = vrot.slane %v4380_v13, 1  ;;  %v5538_v4 = vmul.f32 %v11806_v62, %v11884_v20  ;;  %v12125_v6 = vstv %s12073_s25  ;;  %s12513_s25 = sld [smem:[#allocation11 + $0x2]] }
 0x561   :  { %v12086_v10 = vpop.permute.xlu1 %3236  ;;  %v4796_v34 = vrot.slane %v4792_v22, 4  ;;  %v5539_v22 = vmul.f32 %v11784_v41, %v11884_v20  ;;  %14549 = vst [vmem:[#allocation35_spill] sm:$0xff] %v12125_v6  ;;  %v4823_v20 = vmul.f32 %v11701_v7, %v12125_v6  ;;  %v14553_v59 = vstv %s11888_s19  ;;  %s6803_s19 = sld [smem:[#allocation11 + $0x4a]] }
 0x562   :  { %4340 = vrot.lane.b32.xlu0 %v11722_v44, %s7458_s30  ;;  %v12102_v44 = vsel %vm381_vm4, %v4393_v8, %v4394_v9  ;;  %v14547_v8 = vstv %s11792_s10  ;;  %v12121_v9 = vsel %vm4196_vm12, %v4419_v35, %v4420_v56  ;;  %v5542_v13 = vrot.slane %v5538_v4, 3  ;;  %s7460_s10 = smov 124  }
 0x563   :  { %14545 = vst [vmem:[#allocation38_spill] sm:$0xff] %v12102_v44  ;;  %v12109_v58 = vsel %vm4196_vm12, %v4796_v34, %v4797_v49  ;;  %v5508_v17 = vmul.f32 %v11806_v62, %v14547_v8  ;;  %14548 = vst [vmem:[#allocation24_spill] sm:$0xff] %v12121_v9  ;;  %v5543_v53 = vrot.slane %v5539_v22, 3  ;;  %v5491_v34 = vrot.slane %v11800_v23, 3 }
 0x564   :  { %14546 = vst [vmem:[#allocation37_spill] sm:$0xff] %v12109_v58  ;;  %v4822_v49 = vmul.f32 %v12125_v6, %v11711_v11  ;;  %v12133_v58 = vstv %s12084_s26  ;;  %v5581_v56 = vmul.f32 %v11806_v62, %v11941_v61  ;;  %v5502_v4 = vrot.slane %v11804_v57, 4  ;;  %s6801_s26 = sld [smem:[#allocation11 + $0x40]] }
 0x565   :  { %v12104_v33 = vpop.permute.xlu1 %3240  ;;  %14550 = vst [vmem:[#allocation23_spill] sm:$0xff] %v12133_v58  ;;  %v4835_v23 = vmul.f32 %v12133_v58, %v11711_v11  ;;  %v4836_v35 = vmul.f32 %v11701_v7, %v12133_v58  ;;  %v4827_v9 = vrot.slane %v4823_v20, 2  ;;  %v5468_v43 = vmul.f32 %v11806_v62, %v14553_v59 }
 0x566   :  { %4366 = vrot.lane.b32.xlu0 %v11733_v31, %s7458_s30  ;;  %v5480_v31 = vrot.slane %v11796_v29, 2  ;;  %v12139_v29 = vsel %vm4184_vm13, %v5542_v13, %v5543_v53  ;;  %v4826_v22 = vrot.slane %v4822_v49, 2  ;;  %v5585_v53 = vrot.slane %v5581_v56, 2 }
 0x567   :  { %14551 = vst [vmem:[#allocation32_spill] sm:$0xff] %v12139_v29  ;;  %v4839_v44 = vrot.slane %v4835_v23, 3  ;;  %v4840_v13 = vrot.slane %v4836_v35, 3  ;;  %v14552_v29 = vstv %s11886_s18  ;;  %v5475_v57 = vmul.f32 %v11774_v3, %v11806_v62  ;;  %s6793_s18 = sld [smem:[#allocation11 + $0x48]] }
 0x568   :  { %v5464_v50 = vmul.f32 %v11806_v62, %v14552_v29  ;;  %v12154_v6 = vsel %vm381_vm4, %v4826_v22, %v4827_v9  ;;  %v5486_v20 = vmul.f32 %v11777_v15, %v11806_v62  ;;  %v5497_v9 = vmul.f32 %v11787_v21, %v11806_v62 }
 0x569   :  { %v12135_v8 = vpop.permute.xlu1 %3244  ;;  %v12173_v29 = vstv %s12115_s27  ;;  %v5470_v3 = vrot.slane %v5468_v43, 1  ;;  %v5479_v23 = vrot.slane %v5475_v57, 2  ;;  %v5607_v22 = vmul.f32 %v11806_v62, %v12002_v40  ;;  %s6844_s27 = sld [smem:[#allocation11 + $0x2d]] }
 0x56a   :  { %4383 = vrot.lane.b32.xlu0 %v4382_v46, %s7460_s10  ;;  %v5582_v46 = vmul.f32 %v11784_v41, %v11941_v61  ;;  %v12166_v61 = vsel %vm4184_vm13, %v4839_v44, %v4840_v13  ;;  %v5490_v35 = vrot.slane %v5486_v20, 3  ;;  %v5501_v56 = vrot.slane %v5497_v9, 4 }
 0x56b   :  { %v4849_v44 = vmul.f32 %v11701_v7, %v12173_v29  ;;  %v5472_v15 = vadd.f32 %v5470_v3, %v5464_v50  ;;  %v5481_v21 = vsel %vm381_vm4, %v5479_v23, %v5480_v31  ;;  %v5608_v43 = vmul.f32 %v11784_v41, %v12002_v40 }
 0x56c   :  { %v5586_v58 = vrot.slane %v5582_v46, 2  ;;  %v5492_v46 = vsel %vm4184_vm13, %v5490_v35, %v5491_v34  ;;  %v5503_v13 = vsel %vm4196_vm12, %v5501_v56, %v5502_v4  ;;  %v5611_v50 = vrot.slane %v5607_v22, 4 }
 0x56d   :  { %v12161_v49 = vpop.permute.xlu1 %3284  ;;  %v4853_v57 = vrot.slane %v4849_v44, 4  ;;  %v5483_v20 = vadd.f32 %v5481_v21, %v5472_v15  ;;  %v5612_v9 = vrot.slane %v5608_v43, 4  ;;  %v14554_v3 = vstv %s11845_s15  ;;  %s6791_s15 = sld [smem:[#allocation11 + $0x3e]] }
 0x56e   :  { %4409 = vrot.lane.b32.xlu0 %v11763_v14, %s7460_s10  ;;  %v12176_v59 = vsel %vm381_vm4, %v5585_v53, %v5586_v58  ;;  %v4848_v14 = vmul.f32 %v12173_v29, %v11711_v11  ;;  %v5572_v40 = vmul.f32 %v11806_v62, %v14554_v3  ;;  %v5650_v4 = vmul.f32 %v11806_v62, %v12032_v42 }
 0x56f   :  { %v5494_v23 = vadd.f32 %v5492_v46, %v5483_v20  ;;  %v5651_v35 = vmul.f32 %v11784_v41, %v12032_v42  ;;  %v12211_v56 = vstv %s6786_s28  ;;  %v5693_v46 = vmul.f32 %v11806_v62, %v12064_v39  ;;  %s12798_s28 = sld [smem:[#allocation11 + $0x34]] }
 0x570   :  { %v4852_v53 = vrot.slane %v4848_v14, 4  ;;  %v5087_v44 = vmul.f32 %v12211_v56, %v11760_v28  ;;  %v5654_v15 = vrot.slane %v5650_v4, 3  ;;  %v5088_v22 = vmul.f32 %v11747_v25, %v12211_v56 }
 0x571   :  { %v12187_v58 = vpop.permute.xlu1 %3288  ;;  %v12213_v14 = vadd.f32 %v5503_v13, %v5494_v23  ;;  %v5655_v21 = vrot.slane %v5651_v35, 3  ;;  %v5694_v42 = vmul.f32 %v11784_v41, %v12064_v39  ;;  %v12230_v20 = vstv %s6787_s29  ;;  %v14557_v35 = vld [vmem:[#allocation181_spill] sm:$0xff]  ;;  %s12531_s29 = sld [smem:[#allocation11 + $0x8]] }
 0x572   :  { %5510 = vrot.lane.b32.xlu0 %v5508_v17, %s7456_s0  ;;  %v12193_v31 = vsel %vm4196_vm12, %v4852_v53, %v4853_v57  ;;  %v12201_v17 = vsel %vm4196_vm12, %v5611_v50, %v5612_v9  ;;  %v5091_v43 = vrot.slane %v5087_v44, 2  ;;  %v5092_v57 = vrot.slane %v5088_v22, 2  ;;  %v14558_v44 = vld [vmem:[#allocation220_spill] sm:$0xff] }
 0x573   :  { %14555 = vst [vmem:[#allocation30_spill] sm:$0xff] %v12213_v14  ;;  %v12228_v53 = vsel %vm4184_vm13, %v5654_v15, %v5655_v21  ;;  %v5719_v50 = vmul.f32 %v11806_v62, %v12082_v63  ;;  %v5100_v9 = vmul.f32 %v12230_v20, %v11760_v28  ;;  %v5101_v39 = vmul.f32 %v11747_v25, %v12230_v20 }
 0x574   :  { %14556 = vst [vmem:[#allocation25_spill] sm:$0xff] %v12228_v53  ;;  %v5697_v3 = vrot.slane %v5693_v46, 2  ;;  %v5720_v23 = vmul.f32 %v11784_v41, %v12082_v63  ;;  %v2727_v15 = vadd.f32 %v14558_v44, %v14557_v35  ;;  %v13620_v21 = vstv %s12198_s3  ;;  %v14561_v63 = vld [vmem:[#allocation130_spill] sm:$0xff] }
 0x575   :  { %v12203_v34 = vpop.permute.xlu1 %3292  ;;  %v5723_v4 = vrot.slane %v5719_v50, 4  ;;  %v5104_v22 = vrot.slane %v5100_v9, 3  ;;  %v5105_v14 = vrot.slane %v5101_v39, 3  ;;  %v12257_v41 = vmul.f32 %v13620_v21, %v11711_v11 }
 0x576   :  { %5532 = vrot.lane.b32.xlu0 %v11837_v2, %s7456_s0  ;;  %v5574_v2 = vrot.slane %v5572_v40, 1  ;;  %v12239_v40 = vsel %vm381_vm4, %v5091_v43, %v5092_v57  ;;  %v12252_v43 = vstv %s6788_s5  ;;  %v2851_v57 = vadd.f32 %v14561_v63, %v2727_v15  ;;  %v14566_v15 = vld [vmem:[#allocation232_spill] sm:$0xff]  ;;  %s12542_s5 = sld [smem:[#allocation11 + $0x1c]] }
 0x577   :  { %14560 = vst [vmem:[#allocation41_spill] sm:$0xff] %v12257_v41  ;;  %v12261_v50 = vsel %vm4184_vm13, %v5104_v22, %v5105_v14  ;;  %v5113_v9 = vmul.f32 %v12252_v43, %v11760_v28  ;;  %v14567_v14 = vrot.slane %v11439_v18, 1  ;;  %v14568_v41 = vstv %s11956_s9  ;;  %s12614_s9 = sld [smem:[#allocation11 + $0x4]] }
 0x578   :  { %14562 = vst [vmem:[#allocation39_spill] sm:$0xff] %v12261_v50  ;;  %v2995_v35 = vadd.f32 %v11521_v45, %v2851_v57  ;;  %v4668_v45 = vmul.f32 %v11701_v7, %v11894_v51  ;;  %v14569_v57 = vld [vmem:[#allocation188_spill] sm:$0xff]  ;;  %v14573_v50 = vld [vmem:[#allocation222_spill] sm:$0xff] }
 0x579   :  { %v12223_v13 = vpop.permute.xlu1 %3332  ;;  %v5117_v44 = vrot.slane %v5113_v9, 4  ;;  %v2549_v22 = vadd.f32 %v14567_v14, %v14566_v15  ;;  %v14571_v15 = vld [vmem:[#allocation206_spill] sm:$0xff] }
 0x57a   :  { %5558 = vrot.lane.b32.xlu0 %v11848_v52, %s7456_s0  ;;  %v5698_v52 = vrot.slane %v5694_v42, 2  ;;  %v5724_v42 = vrot.slane %v5720_v23, 4 }
 0x57c   :  { %v12250_v46 = vsel %vm381_vm4, %v5697_v3, %v5698_v52  ;;  %v12268_v39 = vsel %vm4196_vm12, %v5723_v4, %v5724_v42  ;;  %v14564_v3 = vld [vmem:[#allocation187_spill] sm:$0xff]  ;;  %v14565_v52 = vld [vmem:[#allocation140_spill] sm:$0xff]  ;;  %v5620_v4 = vmul.f32 %v11806_v62, %v14568_v41  ;;  %v4667_v42 = vmul.f32 %v11894_v51, %v11711_v11 }
 0x57d   :  { %v12246_v53 = vpop.permute.xlu1 %3336  ;;  %14559 = vst [vmem:[#allocation34_spill] sm:$0xff] %v12250_v46  ;;  %14563 = vst [vmem:[#allocation36_spill] sm:$0xff] %v12268_v39  ;;  %v2729_v23 = vadd.f32 %v14565_v52, %v14564_v3  ;;  %v4672_v52 = vrot.slane %v4668_v45, 3  ;;  %v14572_v46 = vld [vmem:[#allocation215_spill] sm:$0xff]  ;;  %v14576_v45 = vstv %s11995_s7  ;;  %s12432_s7 = sld [smem:[#allocation11 + $0x1b]] }
 0x57e   :  { %5575 = vrot.lane.b32.xlu0 %v5574_v2, %s7457_s20  ;;  %v5114_v2 = vmul.f32 %v11747_v25, %v12252_v43  ;;  %v4671_v3 = vrot.slane %v4667_v42, 3  ;;  %v2765_v51 = vadd.f32 %v14573_v50, %v14572_v46  ;;  %v14578_v46 = vld [vmem:[#allocation239_spill] sm:$0xff] }
 0x57f   :  { %v2853_v9 = vadd.f32 %v14569_v57, %v2729_v23  ;;  %v14574_v23 = vrot.slane %v11463_v16, 2  ;;  %v14579_v16 = vld [vmem:[#allocation189_spill] sm:$0xff] }
 0x580   :  { %v5118_v21 = vrot.slane %v5114_v2, 4  ;;  %v3129_v2 = vadd.f32 %v11834_v32, %v2995_v35  ;;  %v14575_v35 = vld [vmem:[#allocation213_spill] sm:$0xff] }
 0x581   :  { %v12276_v63 = vpop.permute.xlu1 %3340  ;;  %v2997_v41 = vadd.f32 %v11570_v12, %v2853_v9  ;;  %v2657_v57 = vadd.f32 %v14574_v23, %v2549_v22  ;;  %v14577_v9 = vld [vmem:[#allocation114_spill] sm:$0xff]  ;;  %v2899_v22 = vadd.f32 %v14579_v16, %v2765_v51  ;;  %v14582_v51 = vld [vmem:[#allocation196_spill] sm:$0xff] }
 0x582   :  { %5601 = vrot.lane.b32.xlu0 %v11856_v27, %s7457_s20  ;;  %v12290_v18 = vsel %vm4196_vm12, %v5117_v44, %v5118_v21  ;;  %v14570_v27 = vld [vmem:[#allocation185_spill] sm:$0xff]  ;;  %v3253_v39 = vadd.f32 %v12086_v10, %v3129_v2  ;;  %v12302_v21 = vsel %vm4184_vm13, %v4671_v3, %v4672_v52  ;;  %v5684_v10 = vmul.f32 %v11806_v62, %v14576_v45  ;;  %v14580_v2 = vld [vmem:[#allocation43_spill] sm:$0xff] }
 0x583   :  { %v2731_v14 = vadd.f32 %v14571_v15, %v14570_v27  ;;  %v3131_v42 = vadd.f32 %v11863_v54, %v2997_v41  ;;  %v2767_v50 = vadd.f32 %v14578_v46, %v14577_v9  ;;  %v14581_v15 = vld [vmem:[#allocation229_spill] sm:$0xff]  ;;  %v5958_v41 = vmul.f32 %v11909_v1, %v11706_v60 }
 0x584   :  { %v5985_v9 = vmul.f32 %v11907_v19, %v11741_v0 }
 0x585   :  { %v3381_v32 = vpop.permute.xlu1 %3380  ;;  %v2855_v44 = vadd.f32 %v14575_v35, %v2731_v14  ;;  %v3255_v52 = vadd.f32 %v12104_v33, %v3131_v42  ;;  %v2901_v54 = vadd.f32 %v14581_v15, %v2767_v50  ;;  %v12330_v35 = vstv %s6791_s15  ;;  %s12544_s15 = sld [smem:[#allocation11 + $0x21]] }
 0x586   :  { %5622 = vrot.lane.b32.xlu0 %v5620_v4, %s7458_s30  ;;  %v3397_v12 = vadd.f32 %v3381_v32, %v3253_v39  ;;  %v2769_v4 = vadd.f32 %v14580_v2, %v2657_v57  ;;  %v3043_v39 = vadd.f32 %v11633_v5, %v2899_v22  ;;  %v5686_v5 = vrot.slane %v5684_v10, 1 }
 0x587   :  { %v2999_v3 = vadd.f32 %v11591_v36, %v2855_v44  ;;  %v5959_v36 = vmul.f32 %v11907_v19, %v11706_v60  ;;  %v5143_v60 = vmul.f32 %v12330_v35, %v11760_v28  ;;  %v3045_v22 = vadd.f32 %v11662_v48, %v2901_v54 }
 0x588   :  { %v3501_v27 = vadd.f32 %v11584_v30, %v3397_v12  ;;  %v2903_v33 = vadd.f32 %v14582_v51, %v2769_v4  ;;  %v3167_v32 = vadd.f32 %v11917_v38, %v3043_v39  ;;  %v12340_v38 = vstv %s6792_s16  ;;  %s12889_s16 = sld [smem:[#allocation11 + $0x3a]] }
 0x589   :  { %v3385_v14 = vpop.permute.xlu1 %3384  ;;  %v3133_v23 = vadd.f32 %v11891_v55, %v2999_v3  ;;  %v5963_v44 = vrot.slane %v5959_v36, 2  ;;  %v5144_v55 = vmul.f32 %v11747_v25, %v12330_v35  ;;  %v5147_v50 = vrot.slane %v5143_v60, 2 }
 0x58a   :  { %5644 = vrot.lane.b32.xlu0 %v11871_v37, %s7458_s30  ;;  %v3399_v57 = vadd.f32 %v3385_v14, %v3255_v52  ;;  %3514 = vrot.lane.b32.xlu1 %v3501_v27, %s7457_s20  ;;  %v5962_v37 = vrot.slane %v5958_v41, 2  ;;  %v5157_v2 = vmul.f32 %v11747_v25, %v12340_v38  ;;  %v5989_v3 = vrot.slane %v5985_v9, 4 }
 0x58b   :  { %v3257_v42 = vadd.f32 %v12135_v8, %v3133_v23  ;;  %v5984_v8 = vmul.f32 %v11909_v1, %v11741_v0  ;;  %v5148_v16 = vrot.slane %v5144_v55, 2  ;;  %v3301_v52 = vadd.f32 %v12161_v49, %v3167_v32  ;;  %v14583_v23 = vld [vmem:[#allocation116_spill] sm:$0xff]  ;;  %v14585_v32 = vld [vmem:[#allocation142_spill] sm:$0xff] }
 0x58c   :  { %v3503_v12 = vadd.f32 %v11584_v30, %v3399_v57  ;;  %v12343_v10 = vsel %vm381_vm4, %v5962_v37, %v5963_v44  ;;  %v13625_v14 = vstv %s12320_s17  ;;  %v5161_v41 = vrot.slane %v5157_v2, 3  ;;  %v14584_v57 = vld [vmem:[#allocation241_spill] sm:$0xff]  ;;  %v14586_v37 = vld [vmem:[#allocation147_spill] sm:$0xff] }
 0x58d   :  { %v5988_v4 = vrot.slane %v5984_v8, 4  ;;  %v12358_v27 = vsel %vm381_vm4, %v5147_v50, %v5148_v16  ;;  %v12362_v36 = vstv %s6793_s18  ;;  %v3169_v54 = vadd.f32 %v11947_v24, %v3045_v22  ;;  %v14590_v16 = vld [vmem:[#allocation171_spill] sm:$0xff]  ;;  %v14591_v22 = vld [vmem:[#allocation197_spill] sm:$0xff]  ;;  %s6782_s18 = sld [smem:[#allocation11 + $0x41]] }
 0x58e   :  { %v3389_v45 = vpop.permute.xlu1 %3388  ;;  %5670 = vrot.lane.b32.xlu0 %v11881_v26, %s7458_s30  ;;  %3518 = vrot.lane.b32.xlu1 %v3503_v12, %s7457_s20  ;;  %v5156_v26 = vmul.f32 %v12340_v38, %v11760_v28  ;;  %v5170_v51 = vmul.f32 %v11747_v25, %v12362_v36  ;;  %v14587_v44 = vrot.slane %v14586_v37, 1  ;;  %v14588_v12 = vld [vmem:[#allocation109_spill] sm:$0xff] }
 0x58f   :  { %v3401_v46 = vadd.f32 %v3389_v45, %v3257_v42  ;;  %v12365_v48 = vsel %vm4196_vm12, %v5988_v4, %v5989_v3  ;;  %v3047_v60 = vadd.f32 %v14588_v12, %v2903_v33  ;;  %v3303_v55 = vadd.f32 %v12187_v58, %v3169_v54  ;;  %v14589_v45 = vld [vmem:[#allocation157_spill] sm:$0xff]  ;;  %v14592_v4 = vld [vmem:[#allocation194_spill] sm:$0xff] }
 0x590   :  { %v5160_v15 = vrot.slane %v5156_v26, 3  ;;  %v2585_v42 = vadd.f32 %v14587_v44, %v14585_v32  ;;  %v4637_v26 = vmul.f32 %v13625_v14, %v11711_v11  ;;  %v14596_v54 = vld [vmem:[#allocation226_spill] sm:$0xff] }
 0x591   :  { %v3505_v0 = vadd.f32 %v11584_v30, %v3401_v46  ;;  %v5169_v30 = vmul.f32 %v12362_v36, %v11760_v28  ;;  %v5174_v46 = vrot.slane %v5170_v51, 4  ;;  %v3171_v33 = vadd.f32 %v14592_v4, %v3047_v60  ;;  %v14598_v32 = vld [vmem:[#allocation186_spill] sm:$0xff]  ;;  %v14600_v60 = vld [vmem:[#allocation148_spill] sm:$0xff]  ;;  %v14603_v4 = vld [vmem:[#allocation111_spill] sm:$0xff] }
 0x592   :  { %v3429_v39 = vpop.permute.xlu1 %3428  ;;  %5687 = vrot.lane.b32.xlu0 %v5686_v5, %s7460_s10  ;;  %v2803_v5 = vadd.f32 %v14584_v57, %v14583_v23  ;;  %v12380_v24 = vsel %vm4184_vm13, %v5160_v15, %v5161_v41  ;;  %v14595_v41 = vld [vmem:[#allocation149_spill] sm:$0xff]  ;;  %v6014_v37 = vmul.f32 %v11909_v1, %v14598_v32  ;;  %v6015_v44 = vmul.f32 %v11907_v19, %v14598_v32 }
 0x593   :  { %v3445_v49 = vadd.f32 %v3429_v39, %v3301_v52  ;;  %3522 = vrot.lane.b32.xlu1 %v3505_v0, %s7457_s20  ;;  %v5173_v9 = vrot.slane %v5169_v30, 4  ;;  %v14593_v52 = vld [vmem:[#allocation182_spill] sm:$0xff]  ;;  %v14597_v30 = vld [vmem:[#allocation183_spill] sm:$0xff]  ;;  %v3305_v23 = vadd.f32 %v12203_v34, %v3171_v33 }
 0x594   :  { %v2947_v2 = vadd.f32 %v14591_v22, %v2803_v5  ;;  %v14594_v0 = vrot.slane %v14593_v52, 2  ;;  %v14602_v22 = vld [vmem:[#allocation180_spill] sm:$0xff] }
 0x595   :  { %v3540_v8 = vadd.f32 %v14589_v45, %v3445_v49  ;;  %v12396_v3 = vsel %vm4196_vm12, %v5173_v9, %v5174_v46  ;;  %v2805_v49 = vadd.f32 %v14596_v54, %v14595_v41  ;;  %v14601_v46 = vstv %s12198_s3  ;;  %s6802_s3 = sld [smem:[#allocation11 + $0x45]] }
 0x596   :  { %v3433_v50 = vpop.permute.xlu1 %3432  ;;  %5713 = vrot.lane.b32.xlu0 %v14590_v16, %s7460_s10  ;;  %v2693_v15 = vadd.f32 %v14594_v0, %v2585_v42  ;;  %v3091_v51 = vadd.f32 %v14597_v30, %v2947_v2  ;;  %v14599_v42 = vld [vmem:[#allocation212_spill] sm:$0xff]  ;;  %v6018_v16 = vrot.slane %v6014_v37, 2  ;;  %v14604_v0 = vld [vmem:[#allocation190_spill] sm:$0xff] }
 0x597   :  { %3547 = vst.msk [vmem:[%s13339_s13 + $0x8] sm:$0xff] %vm3545_vm11, %v3540_v8  ;;  %v3447_v58 = vadd.f32 %v3433_v50, %v3303_v55  ;;  %v2949_v55 = vadd.f32 %v14600_v60, %v2805_v49  ;;  %v5949_v50 = vmul.f32 %v14601_v46, %v11909_v1  ;;  %v14607_v49 = vld [vmem:[#allocation20_spill] sm:$0xff]  ;;  %v14610_v46 = vld [vmem:[#allocation45_spill] sm:$0xff] }
 0x598   :  { %v2807_v12 = vadd.f32 %v14599_v42, %v2693_v15  ;;  %v3205_v34 = vadd.f32 %v12006_v47, %v3091_v51  ;;  %v14608_v42 = vld [vmem:[#allocation163_spill] sm:$0xff] }
 0x599   :  { %v3513_v39 = vpop.permute.xlu0 %3512  ;;  %v3542_v57 = vadd.f32 %v14589_v45, %v3447_v58  ;;  %v3093_v33 = vadd.f32 %v14603_v4, %v2949_v55 }
 0x59a   :  { %3531 = vst.msk [vmem:[#allocation15 + $0x1e] sm:$0xfc] %vm1312_vm6, %v3513_v39  ;;  %4639 = vrot.lane.b32.xlu0 %v4637_v26, %s7456_s0  ;;  %v6019_v26 = vrot.slane %v6015_v44, 2  ;;  %v2951_v2 = vadd.f32 %v14602_v22, %v2807_v12  ;;  %v3349_v47 = vadd.f32 %v12223_v13, %v3205_v34  ;;  %v14605_v39 = vld [vmem:[#allocation191_spill] sm:$0xff] }
 0x59b   :  { %v3437_v5 = vpop.permute.xlu1 %3436  ;;  %3550 = vst.msk [vmem:[%s13339_s13 + $0x18] sm:$0xff] %vm3545_vm11, %v3542_v57  ;;  %v6027_v41 = vmul.f32 %v11909_v1, %v14605_v39  ;;  %v6028_v13 = vmul.f32 %v11907_v19, %v14605_v39  ;;  %v3207_v30 = vadd.f32 %v14607_v49, %v3093_v33  ;;  %v5951_v57 = vrot.slane %v5949_v50, 1  ;;  %v14609_v34 = vld [vmem:[#allocation31_spill] sm:$0xff] }
 0x59c   :  { %v3449_v8 = vadd.f32 %v3437_v5, %v3305_v23  ;;  %v12435_v15 = vsel %vm381_vm4, %v6018_v16, %v6019_v26  ;;  %v12452_v5 = vstv %s12407_s8  ;;  %s12937_s8 = sld [smem:[#allocation11 + $0x3b]] }
 0x59d   :  { %v3517_v9 = vpop.permute.xlu0 %3516  ;;  %v6031_v32 = vrot.slane %v6027_v41, 3  ;;  %v6032_v37 = vrot.slane %v6028_v13, 3  ;;  %v3351_v44 = vadd.f32 %v12246_v53, %v3207_v30  ;;  %v5199_v60 = vmul.f32 %v12452_v5, %v11760_v28  ;;  %v14611_v53 = vld [vmem:[#allocation174_spill] sm:$0xff] }
 0x59e   :  { %v3544_v58 = vadd.f32 %v14589_v45, %v3449_v8  ;;  %3533 = vst.msk [vmem:[#allocation15 + $0x2e] sm:$0x3] %vm1316_vm5, %v3517_v9  ;;  %4661 = vrot.lane.b32.xlu0 %v14604_v0, %s7456_s0  ;;  %v14606_v45 = vld [vmem:[#allocation44_spill] sm:$0xff]  ;;  %v5200_v55 = vmul.f32 %v11747_v25, %v12452_v5  ;;  %v6040_v16 = vmul.f32 %v11909_v1, %v14611_v53 }
 0x59f   :  { %v3477_v52 = vpop.permute.xlu1 %3476  ;;  %v3095_v54 = vadd.f32 %v14606_v45, %v2951_v2  ;;  %v12465_v50 = vsel %vm4184_vm13, %v6031_v32, %v6032_v37  ;;  %v6041_v26 = vmul.f32 %v11907_v19, %v14611_v53  ;;  %v13629_v2 = vstv %s12420_s4  ;;  %v14612_v37 = vld [vmem:[#allocation184_spill] sm:$0xff] }
 0x5a0   :  { %3552 = vst.msk [vmem:[%s13339_s13 + $0x28] sm:$0xf] %vm3548_vm14, %v3544_v58  ;;  %v3493_v51 = vadd.f32 %v3477_v52, %v3349_v47  ;;  %s6798_s13 = sld [smem:[#allocation11 + $0x49]]  ;;  %v5203_v4 = vrot.slane %v5199_v60, 2  ;;  %v5204_v33 = vrot.slane %v5200_v55, 2  ;;  %v12475_v58 = vstv %s12437_s22  ;;  %s12643_s22 = sld [smem:[#allocation11 + $0x1d]] }
 0x5a1   :  { %v3521_v23 = vpop.permute.xlu0 %3520  ;;  %v3209_v8 = vadd.f32 %v14609_v34, %v3095_v54  ;;  %v6044_v52 = vrot.slane %v6040_v16, 4  ;;  %v6045_v0 = vrot.slane %v6041_v26, 4  ;;  %v5212_v13 = vmul.f32 %v12475_v58, %v11760_v28 }
 0x5a2   :  { %v3556_v12 = vadd.f32 %v14608_v42, %v3493_v51  ;;  %3535 = vst.msk [vmem:[#allocation15 + $0x56] sm:$0xff] %vm1314_vm7, %v3521_v23  ;;  %4687 = vrot.lane.b32.xlu0 %v14610_v46, %s7456_s0  ;;  %v12479_v41 = vsel %vm381_vm4, %v5203_v4, %v5204_v33  ;;  %v5213_v45 = vmul.f32 %v11747_v25, %v12475_v58  ;;  %v13621_v51 = vstv %s12449_s24  ;;  %v14615_v4 = vld [vmem:[#allocation27_spill] sm:$0xff] }
 0x5a3   :  { %v3481_v9 = vpop.permute.xlu1 %3480  ;;  %v3353_v47 = vadd.f32 %v12276_v63, %v3209_v8  ;;  %v13623_v63 = vstv %s12432_s7  ;;  %v12488_v49 = vsel %vm4196_vm12, %v6044_v52, %v6045_v0  ;;  %v5216_v23 = vrot.slane %v5212_v13, 3  ;;  %v14614_v8 = vld [vmem:[#allocation192_spill] sm:$0xff] }
 0x5a4   :  { %v3495_v22 = vadd.f32 %v3481_v9, %v3351_v44  ;;  %3569 = vrot.lane.b32.xlu1 %v3556_v12, %s7458_s30  ;;  %v5217_v32 = vrot.slane %v5213_v45, 3  ;;  %v4212_v44 = vmul.f32 %v13629_v2, %v14612_v37  ;;  %v4693_v9 = vmul.f32 %v13623_v63, %v11711_v11  ;;  %v14628_v63 = vld [vmem:[#allocation35_spill] sm:$0xff] }
 0x5a5   :  { %v4701_v46 = vmul.f32 %v13621_v51, %v11711_v11  ;;  %v6070_v33 = vmul.f32 %v11909_v1, %v14615_v4  ;;  %v13628_v13 = vstv %s12513_s25  ;;  %v6127_v14 = vmul.f32 %v11907_v19, %v14628_v63 }
 0x5a6   :  { %v3558_v39 = vadd.f32 %v14608_v42, %v3495_v22  ;;  %5952 = vrot.lane.b32.xlu0 %v5951_v57, %s7456_s0  ;;  %v12495_v12 = vstv %s6798_s13  ;;  %v12499_v57 = vsel %vm4184_vm13, %v5216_v23, %v5217_v32  ;;  %v4214_v16 = vrot.slane %v4212_v44, 1  ;;  %v14617_v32 = vld [vmem:[#allocation46_spill] sm:$0xff]  ;;  %s12745_s13 = sld [smem:[#allocation11 + $0x19]] }
 0x5a7   :  { %14613 = vst [vmem:[#allocation55_spill] sm:$0xff] %v12495_v12  ;;  %v5225_v55 = vmul.f32 %v12495_v12, %v11760_v28  ;;  %v5226_v34 = vmul.f32 %v11747_v25, %v12495_v12  ;;  %v4703_v22 = vrot.slane %v4701_v46, 1  ;;  %v6074_v0 = vrot.slane %v6070_v33, 2 }
 0x5a8   :  { %v3485_v54 = vpop.permute.xlu1 %3484  ;;  %3573 = vrot.lane.b32.xlu1 %v3558_v39, %s7458_s30 }
 0x5a9   :  { %v3497_v30 = vadd.f32 %v3485_v54, %v3353_v47  ;;  %v5230_v53 = vrot.slane %v5226_v34, 4  ;;  %v6071_v47 = vmul.f32 %v11907_v19, %v14615_v4  ;;  %v14616_v54 = vld [vmem:[#allocation26_spill] sm:$0xff] }
 0x5aa   :  { %5978 = vrot.lane.b32.xlu0 %v14614_v8, %s7456_s0  ;;  %v6084_v23 = vmul.f32 %v11907_v19, %v14616_v54  ;;  %v4260_v8 = vmul.f32 %v13628_v13, %v14612_v37 }
 0x5ab   :  { %v3560_v60 = vadd.f32 %v14608_v42, %v3497_v30  ;;  %v5229_v42 = vrot.slane %v5225_v55, 4  ;;  %v6075_v39 = vrot.slane %v6071_v47, 2  ;;  %v6083_v30 = vmul.f32 %v11909_v1, %v14616_v54 }
 0x5ac   :  { %v6088_v34 = vrot.slane %v6084_v23, 3 }
 0x5ad   :  { %3577 = vrot.lane.b32.xlu1 %v3560_v60, %s7458_s30  ;;  %v12517_v26 = vsel %vm4196_vm12, %v5229_v42, %v5230_v53  ;;  %v12534_v45 = vsel %vm381_vm4, %v6074_v0, %v6075_v39  ;;  %v12546_v60 = vstv %s6801_s26  ;;  %v6087_v55 = vrot.slane %v6083_v30, 3  ;;  %v14619_v42 = vld [vmem:[#allocation47_spill] sm:$0xff]  ;;  %s6843_s26 = sld [smem:[#allocation11 + $0x28]] }
 0x5ae   :  { %4695 = vrot.lane.b32.xlu0 %v4693_v9, %s7457_s20  ;;  %14618 = vst [vmem:[#allocation56_spill] sm:$0xff] %v12546_v60  ;;  %v5255_v9 = vmul.f32 %v12546_v60, %v11760_v28  ;;  %v5256_v46 = vmul.f32 %v11747_v25, %v12546_v60  ;;  %v12569_v0 = vstv %s6802_s3  ;;  %s12887_s3 = sld [smem:[#allocation11 + $0x35]] }
 0x5af   :  { %v12562_v53 = vsel %vm4184_vm13, %v6087_v55, %v6088_v34  ;;  %14621 = vst [vmem:[#allocation57_spill] sm:$0xff] %v12569_v0  ;;  %v5268_v23 = vmul.f32 %v12569_v0, %v11760_v28  ;;  %v13627_v55 = vstv %s12531_s29 }
 0x5b0   :  { %v3568_v52 = vpop.permute.xlu0 %3567  ;;  %v5259_v33 = vrot.slane %v5255_v9, 2  ;;  %v5260_v47 = vrot.slane %v5256_v46, 2  ;;  %v13622_v9 = vstv %s12542_s5  ;;  %v13624_v46 = vstv %s12544_s15 }
 0x5b1   :  { %4215 = vrot.lane.b32.xlu1 %v4214_v16, %s7456_s0  ;;  %3586 = vst.msk [vmem:[%s13340_s14 - $0x3] sm:$0xf8] %vm3585_vm15, %v3568_v52  ;;  %v14620_v16 = vld [vmem:[#allocation29_spill] sm:$0xff] }
 0x5b2   :  { %4704 = vrot.lane.b32.xlu0 %v4703_v22, %s7457_s20  ;;  %v6096_v22 = vmul.f32 %v11909_v1, %v14620_v16  ;;  %v6097_v4 = vmul.f32 %v11907_v19, %v14620_v16  ;;  %v12576_v30 = vsel %vm381_vm4, %v5259_v33, %v5260_v47  ;;  %v4324_v33 = vmul.f32 %v13627_v55, %v14612_v37  ;;  %v14633_v55 = vld [vmem:[#allocation40_spill] sm:$0xff] }
 0x5b4   :  { %v3572_v44 = vpop.permute.xlu0 %3571  ;;  %v6100_v39 = vrot.slane %v6096_v22, 4  ;;  %v6101_v54 = vrot.slane %v6097_v4, 4  ;;  %v12594_v4 = vstv %s6803_s19  ;;  %v4326_v51 = vrot.slane %v4324_v33, 1  ;;  %s6783_s19 = sld [smem:[#allocation11 + $0x46]] }
 0x5b5   :  { %4241 = vrot.lane.b32.xlu1 %v14617_v32, %s7456_s0  ;;  %3590 = vst.msk [vmem:[%s13340_s14 + $0xd] sm:$0x1] %vm3589_vm0, %v3572_v44  ;;  %v5269_v32 = vmul.f32 %v11747_v25, %v12569_v0  ;;  %v14622_v44 = vld [vmem:[#allocation172_spill] sm:$0xff]  ;;  %14625 = vst [vmem:[#allocation63_spill] sm:$0xff] %v12594_v4  ;;  %v13626_v33 = vstv %s12614_s9 }
 0x5b6   :  { %4717 = vrot.lane.b32.xlu0 %v14619_v42, %s7457_s20  ;;  %v12586_v34 = vsel %vm4196_vm12, %v6100_v39, %v6101_v54  ;;  %v5272_v42 = vrot.slane %v5268_v23, 3  ;;  %v5282_v39 = vmul.f32 %v11747_v25, %v12594_v4  ;;  %v14626_v54 = vld [vmem:[#allocation195_spill] sm:$0xff]  ;;  %v4749_v23 = vmul.f32 %v13622_v9, %v11711_v11 }
 0x5b7   :  { %14623 = vst [vmem:[#allocation60_spill] sm:$0xff] %v12586_v34  ;;  %v5273_v16 = vrot.slane %v5269_v32, 3  ;;  %v4757_v32 = vmul.f32 %v13624_v46, %v11711_v11  ;;  %v6126_v46 = vmul.f32 %v11909_v1, %v14628_v63  ;;  %v4372_v63 = vmul.f32 %v13626_v33, %v14612_v37  ;;  %v14632_v37 = vld [vmem:[#allocation23_spill] sm:$0xff] }
 0x5b8   :  { %v3576_v52 = vpop.permute.xlu0 %3575  ;;  %v6153_v33 = vmul.f32 %v11907_v19, %v12173_v29 }
 0x5b9   :  { %4262 = vrot.lane.b32.xlu1 %v4260_v8, %s7457_s20  ;;  %3592 = vst.msk [vmem:[%s13340_s14 + $0x15] sm:$0xff] %vm3587_vm8, %v3576_v52  ;;  %v14624_v8 = vld [vmem:[#allocation193_spill] sm:$0xff]  ;;  %v12600_v47 = vsel %vm4184_vm13, %v5272_v42, %v5273_v16  ;;  %v5281_v52 = vmul.f32 %v12594_v4, %v11760_v28  ;;  %v5286_v42 = vrot.slane %v5282_v39, 4  ;;  %v4759_v9 = vrot.slane %v4757_v32, 1  ;;  %v14634_v4 = vld [vmem:[#allocation38_spill] sm:$0xff] }
 0x5ba   :  { %4730 = vrot.lane.b32.xlu0 %v14622_v44, %s7457_s20  ;;  %v14627_v44 = vld [vmem:[#allocation21_spill] sm:$0xff]  ;;  %v6130_v39 = vrot.slane %v6126_v46, 2  ;;  %v6157_v60 = vrot.slane %v6153_v33, 4  ;;  %v14637_v33 = vld [vmem:[#allocation24_spill] sm:$0xff] }
 0x5bc   :  { %v12592_v22 = vpop.permute.xlu0 %4206 }
 0x5bd   :  { %4284 = vrot.lane.b32.xlu1 %v14624_v8, %s7457_s20  ;;  %v5285_v8 = vrot.slane %v5281_v52, 4 }
 0x5be   :  { %4743 = vrot.lane.b32.xlu0 %v14626_v54, %s7457_s20 }
 0x5bf   :  { %v12621_v54 = vsel %vm4196_vm12, %v5285_v8, %v5286_v42 }
 0x5c0   :  { %v12618_v16 = vpop.permute.xlu0 %4228 }
 0x5c1   :  { %4310 = vrot.lane.b32.xlu1 %v14627_v44, %s7457_s20  ;;  %v6131_v44 = vrot.slane %v6127_v14, 2  ;;  %v14631_v14 = vld [vmem:[#allocation33_spill] sm:$0xff] }
 0x5c2   :  { %4751 = vrot.lane.b32.xlu0 %v4749_v23, %s7458_s30  ;;  %v14630_v23 = vld [vmem:[#allocation28_spill] sm:$0xff] }
 0x5c3   :  { %v12634_v8 = vsel %vm381_vm4, %v6130_v39, %v6131_v44  ;;  %v6139_v39 = vmul.f32 %v11909_v1, %v14632_v37  ;;  %v6140_v44 = vmul.f32 %v11907_v19, %v14632_v37 }
 0x5c4   :  { %v12629_v52 = vpop.permute.xlu0 %4254  ;;  %14629 = vst [vmem:[#allocation68_spill] sm:$0xff] %v12634_v8 }
 0x5c5   :  { %4327 = vrot.lane.b32.xlu1 %v4326_v51, %s7458_s30  ;;  %v12650_v51 = vstv %s6750_s21  ;;  %v6143_v37 = vrot.slane %v6139_v39, 3  ;;  %v6144_v8 = vrot.slane %v6140_v44, 3  ;;  %v13638_v39 = vstv %s12645_s2 }
 0x5c6   :  { %4760 = vrot.lane.b32.xlu0 %v4759_v9, %s7458_s30  ;;  %v4604_v46 = vmul.f32 %v12650_v51, %v11711_v11  ;;  %v4605_v42 = vmul.f32 %v11701_v7, %v12650_v51 }
 0x5c8   :  { %v12638_v32 = vpop.permute.xlu0 %4271  ;;  %v4608_v13 = vrot.slane %v4604_v46, 2  ;;  %v4609_v2 = vrot.slane %v4605_v42, 2  ;;  %v14635_v46 = vstv %s12420_s4  ;;  %s12715_s4 = sld [smem:[#allocation11 + $0x38]] }
 0x5c9   :  { %4353 = vrot.lane.b32.xlu1 %v14630_v23, %s7458_s30  ;;  %v12662_v23 = vpop.f32.mrb[10].mxu1  ;;  %v5516_v42 = vmul.f32 %v11806_v62, %v14635_v46 }
 0x5ca   :  { %4773 = vrot.lane.b32.xlu0 %v14631_v14, %s7458_s30  ;;  %v6152_v14 = vmul.f32 %v11909_v1, %v12173_v29  ;;  %v12677_v12 = vsel %vm381_vm4, %v4608_v13, %v4609_v2  ;;  %v12680_v29 = vsel %vm4184_vm13, %v6143_v37, %v6144_v8  ;;  %v4813_v13 = vmul.f32 %v13638_v39, %v11711_v11 }
 0x5cb   :  { %v5518_v8 = vrot.slane %v5516_v42, 1  ;;  %v6392_v46 = vmul.f32 %v12662_v23, %v12211_v56  ;;  %v14638_v42 = vld [vmem:[#allocation32_spill] sm:$0xff] }
 0x5cc   :  { %v12652_v9 = vpop.permute.xlu0 %4297  ;;  %v6156_v0 = vrot.slane %v6152_v14, 4 }
 0x5cd   :  { %4374 = vrot.lane.b32.xlu1 %v4372_v63, %s7460_s10  ;;  %v12664_v63 = vpop.f32.mrb[11].mxu1 }
 0x5ce   :  { %4786 = vrot.lane.b32.xlu0 %v14633_v55, %s7458_s30  ;;  %v13640_v55 = vstv %s12643_s22  ;;  %v12688_v44 = vsel %vm4196_vm12, %v6156_v0, %v6157_v60  ;;  %v4815_v0 = vrot.slane %v4813_v13, 1  ;;  %v6391_v37 = vmul.f32 %v12664_v63, %v12211_v56 }
 0x5cf   :  { %v4805_v2 = vmul.f32 %v13640_v55, %v11711_v11  ;;  %v6404_v13 = vmul.f32 %v12664_v63, %v12230_v20  ;;  %v6405_v56 = vmul.f32 %v12662_v23, %v12230_v20  ;;  %v6417_v20 = vmul.f32 %v12664_v63, %v12252_v43 }
 0x5d0   :  { %v12674_v34 = vpop.permute.xlu0 %4318 }
 0x5d1   :  { %4396 = vrot.lane.b32.xlu1 %v14634_v4, %s7460_s10  ;;  %v14636_v4 = vld [vmem:[#allocation37_spill] sm:$0xff] }
 0x5d2   :  { %4799 = vrot.lane.b32.xlu0 %v14636_v4, %s7458_s30  ;;  %v6395_v4 = vrot.slane %v6391_v37, 2  ;;  %v6408_v37 = vrot.slane %v6404_v13, 3 }
 0x5d4   :  { %v12694_v14 = vpop.permute.xlu0 %4340 }
 0x5d5   :  { %4422 = vrot.lane.b32.xlu1 %v14637_v33, %s7460_s10  ;;  %v6396_v33 = vrot.slane %v6392_v46, 2  ;;  %v6409_v46 = vrot.slane %v6405_v56, 3 }
 0x5d6   :  { %4807 = vrot.lane.b32.xlu0 %v4805_v2, %s7460_s10 }
 0x5d7   :  { %v12718_v2 = vsel %vm381_vm4, %v6395_v4, %v6396_v33  ;;  %v12735_v33 = vsel %vm4184_vm13, %v6408_v37, %v6409_v46  ;;  %v14643_v37 = vstv %s12531_s29  ;;  %s12800_s29 = sld [smem:[#allocation11 + $0x39]] }
 0x5d8   :  { %v12704_v60 = vpop.permute.xlu0 %4366  ;;  %14639 = vst [vmem:[#allocation75_spill] sm:$0xff] %v12718_v2  ;;  %14641 = vst [vmem:[#allocation90_spill] sm:$0xff] %v12735_v33 }
 0x5d9   :  { %5519 = vrot.lane.b32.xlu1 %v5518_v8, %s7456_s0  ;;  %v14640_v8 = vstv %s12513_s25  ;;  %s12747_s25 = sld [smem:[#allocation11 + $0x1e]] }
 0x5da   :  { %4816 = vrot.lane.b32.xlu0 %v4815_v0, %s7460_s10  ;;  %v5564_v0 = vmul.f32 %v11806_v62, %v14640_v8  ;;  %v13639_v8 = vstv %s12715_s4 }
 0x5dc   :  { %v12713_v39 = vpop.permute.xlu0 %4383 }
 0x5dd   :  { %5545 = vrot.lane.b32.xlu1 %v14638_v42, %s7456_s0  ;;  %v6418_v42 = vmul.f32 %v12662_v23, %v12252_v43 }
 0x5de   :  { %4829 = vrot.lane.b32.xlu0 %v12154_v6, %s7460_s10  ;;  %v6421_v6 = vrot.slane %v6417_v20, 4 }
 0x5df   :  { %v6422_v13 = vrot.slane %v6418_v42, 4 }
 0x5e0   :  { %v12732_v4 = vpop.permute.xlu0 %4409 }
 0x5e1   :  { %5566 = vrot.lane.b32.xlu1 %v5564_v0, %s7457_s20  ;;  %v12753_v43 = vsel %vm4196_vm12, %v6421_v6, %v6422_v13  ;;  %v13641_v0 = vstv %s12727_s23  ;;  %v13642_v13 = vstv %s12745_s13 }
 0x5e2   :  { %4842 = vrot.lane.b32.xlu0 %v12166_v61, %s7460_s10  ;;  %14642 = vst [vmem:[#allocation92_spill] sm:$0xff] %v12753_v43  ;;  %v5628_v61 = vmul.f32 %v11806_v62, %v14643_v37  ;;  %v5070_v20 = vmul.f32 %v13641_v0, %v11760_v28  ;;  %v13643_v37 = vstv %s12747_s25  ;;  %v12784_v55 = vmul.f32 %v11909_v1, %v13642_v13  ;;  %v14646_v0 = vld [vmem:[#allocation25_spill] sm:$0xff] }
 0x5e3   :  { %v14649_v43 = vstv %s12614_s9 }
 0x5e4   :  { %v12749_v56 = vpop.permute.xlu0 %5510  ;;  %v5630_v42 = vrot.slane %v5628_v61, 1  ;;  %14644 = vst [vmem:[#allocation78_spill] sm:$0xff] %v12784_v55  ;;  %v12789_v61 = vmul.f32 %v11909_v1, %v13643_v37 }
 0x5e5   :  { %5588 = vrot.lane.b32.xlu1 %v12176_v59, %s7457_s20  ;;  %v5078_v59 = vmul.f32 %v13639_v8, %v11760_v28  ;;  %v6448_v8 = vmul.f32 %v12662_v23, %v12330_v35 }
 0x5e6   :  { %4855 = vrot.lane.b32.xlu0 %v12193_v31, %s7460_s10  ;;  %14645 = vst [vmem:[#allocation99_spill] sm:$0xff] %v12789_v61 }
 0x5e7   :  { %v5080_v6 = vrot.slane %v5078_v59, 1  ;;  %v5908_v59 = vmul.f32 %v11909_v1, %v12650_v51 }
 0x5e8   :  { %v12766_v46 = vpop.permute.xlu0 %5532 }
 0x5e9   :  { %5614 = vrot.lane.b32.xlu1 %v12201_v17, %s7457_s20  ;;  %v6447_v17 = vmul.f32 %v12664_v63, %v12330_v35  ;;  %v5912_v13 = vrot.slane %v5908_v59, 2 }
 0x5ea   :  { %5072 = vrot.lane.b32.xlu0 %v5070_v20, %s7456_s0  ;;  %v5909_v20 = vmul.f32 %v11907_v19, %v12650_v51  ;;  %v5676_v51 = vmul.f32 %v11806_v62, %v14649_v43 }
 0x5eb   :  { %v6451_v35 = vrot.slane %v6447_v17, 2 }
 0x5ec   :  { %v12775_v31 = vpop.permute.xlu0 %5558  ;;  %v5913_v37 = vrot.slane %v5909_v20, 2 }
 0x5ed   :  { %5631 = vrot.lane.b32.xlu1 %v5630_v42, %s7458_s30  ;;  %v6452_v42 = vrot.slane %v6448_v8, 2  ;;  %v5918_v8 = vstv %s6843_s26 }
 0x5ee   :  { %5081 = vrot.lane.b32.xlu0 %v5080_v6, %s7456_s0  ;;  %v12811_v6 = vsel %vm381_vm4, %v5912_v13, %v5913_v37  ;;  %v5919_v17 = vmul.f32 %v5918_v8, %v11909_v1  ;;  %v5920_v59 = vmul.f32 %v11907_v19, %v5918_v8 }
 0x5ef   :  { %v12805_v61 = vsel %vm381_vm4, %v6451_v35, %v6452_v42  ;;  %14650 = vst [vmem:[#allocation118_spill] sm:$0xff] %v12811_v6  ;;  %v14653_v6 = vld [vmem:[#allocation34_spill] sm:$0xff] }
 0x5f0   :  { %v12802_v55 = vpop.permute.xlu0 %5575  ;;  %14648 = vst [vmem:[#allocation106_spill] sm:$0xff] %v12805_v61  ;;  %v5923_v13 = vrot.slane %v5919_v17, 3  ;;  %v5924_v37 = vrot.slane %v5920_v59, 3  ;;  %v6460_v17 = vmul.f32 %v12664_v63, %v12340_v38  ;;  %v6461_v59 = vmul.f32 %v12662_v23, %v12340_v38 }
 0x5f1   :  { %5657 = vrot.lane.b32.xlu1 %v14646_v0, %s7458_s30  ;;  %14647 = vst [vmem:[#allocation84_spill] sm:$0xff] %v12802_v55  ;;  %v5929_v0 = vstv %s6844_s27 }
 0x5f2   :  { %5094 = vrot.lane.b32.xlu0 %v12239_v40, %s7456_s0  ;;  %v5930_v20 = vmul.f32 %v5929_v0, %v11909_v1  ;;  %v5931_v62 = vmul.f32 %v11907_v19, %v5929_v0  ;;  %v14652_v40 = vld [vmem:[#allocation39_spill] sm:$0xff]  ;;  %v12829_v33 = vsel %vm4184_vm13, %v5923_v13, %v5924_v37  ;;  %v4627_v13 = vmul.f32 %v11701_v7, %v5929_v0 }
 0x5f3   :  { %14654 = vst [vmem:[#allocation87_spill] sm:$0xff] %v12829_v33  ;;  %v6473_v37 = vmul.f32 %v12664_v63, %v12362_v36  ;;  %v6464_v38 = vrot.slane %v6460_v17, 3 }
 0x5f4   :  { %v12820_v43 = vpop.permute.xlu0 %5601  ;;  %v5934_v35 = vrot.slane %v5930_v20, 4  ;;  %v5935_v42 = vrot.slane %v5931_v62, 4  ;;  %v4615_v20 = vmul.f32 %v5918_v8, %v11711_v11  ;;  %v4626_v62 = vmul.f32 %v5929_v0, %v11711_v11 }
 0x5f5   :  { %5678 = vrot.lane.b32.xlu1 %v5676_v51, %s7460_s10  ;;  %14651 = vst [vmem:[#allocation120_spill] sm:$0xff] %v12820_v43  ;;  %v6477_v33 = vrot.slane %v6473_v37, 4 }
 0x5f6   :  { %5107 = vrot.lane.b32.xlu0 %v14652_v40, %s7456_s0  ;;  %v12832_v2 = vsel %vm4196_vm12, %v5934_v35, %v5935_v42  ;;  %v6474_v35 = vmul.f32 %v12662_v23, %v12362_v36  ;;  %v6465_v42 = vrot.slane %v6461_v59, 3  ;;  %v4619_v40 = vrot.slane %v4615_v20, 3  ;;  %v14660_v20 = vld [vmem:[#allocation41_spill] sm:$0xff] }
 0x5f7   :  { %14655 = vst [vmem:[#allocation123_spill] sm:$0xff] %v12832_v2  ;;  %v4630_v51 = vrot.slane %v4626_v62, 4  ;;  %v4631_v2 = vrot.slane %v4627_v13, 4  ;;  %v14659_v36 = vstv %s12800_s29 }
 0x5f8   :  { %v12834_v19 = vpop.permute.xlu0 %5622  ;;  %v5134_v55 = vmul.f32 %v14659_v36, %v11760_v28 }
 0x5f9   :  { %5700 = vrot.lane.b32.xlu1 %v14653_v6, %s7460_s10  ;;  %14656 = vst [vmem:[#allocation151_spill] sm:$0xff] %v12834_v19  ;;  %v4616_v6 = vmul.f32 %v11701_v7, %v5918_v8  ;;  %v14657_v8 = vld [vmem:[#allocation36_spill] sm:$0xff]  ;;  %v6478_v7 = vrot.slane %v6474_v35, 4  ;;  %v14658_v19 = vstv %s12798_s28  ;;  %v12868_v62 = vsel %vm4196_vm12, %v4630_v51, %v4631_v2 }
 0x5fa   :  { %5120 = vrot.lane.b32.xlu0 %v12290_v18, %s7456_s0  ;;  %v5126_v43 = vmul.f32 %v14658_v19, %v11760_v28  ;;  %v12861_v18 = vsel %vm4184_vm13, %v6464_v38, %v6465_v42  ;;  %v14661_v51 = vstv %s12320_s17  ;;  %v5189_v38 = vstv %s12889_s16  ;;  %s6781_s17 = sld [smem:[#allocation11 + $0x3c]] }
 0x5fb   :  { %v4620_v61 = vrot.slane %v4616_v6, 3  ;;  %v4647_v6 = vrot.slane %v14660_v20, 1  ;;  %v12871_v13 = vsel %vm4196_vm12, %v6477_v33, %v6478_v7  ;;  %v5941_v35 = vmul.f32 %v11909_v1, %v14661_v51 }
 0x5fc   :  { %v12852_v0 = vpop.permute.xlu0 %5644  ;;  %v3515_v59 = vpop.permute.xlu1 %3514 }
 0x5fd   :  { %5726 = vrot.lane.b32.xlu1 %v14657_v8, %s7460_s10  ;;  %v12864_v17 = vsel %vm4184_vm13, %v4619_v40, %v4620_v61  ;;  %3532 = vst.msk [vmem:[#allocation15 + $0x26] sm:$0xff] %vm1314_vm7, %v3515_v59  ;;  %v5136_v61 = vrot.slane %v5134_v55, 1  ;;  %v14662_v40 = vstv %s12432_s7  ;;  %v14663_v8 = vstv %s12449_s24  ;;  %s12935_s24 = sld [smem:[#allocation11 + $0x36]] }
 0x5fe   :  { %5128 = vrot.lane.b32.xlu0 %v5126_v43, %s7457_s20  ;;  %v5181_v43 = vstv %s12887_s3  ;;  %v6005_v7 = vmul.f32 %v11909_v1, %v14663_v8 }
 0x5ff   :  { %v5182_v42 = vmul.f32 %v5181_v43, %v11760_v28 }
 0x600   :  { %v12876_v19 = vpop.permute.xlu0 %5670  ;;  %v3519_v37 = vpop.permute.xlu1 %3518  ;;  %v6007_v59 = vrot.slane %v6005_v7, 1 }
 0x601   :  { %4648 = vrot.lane.b32.xlu1 %v4647_v6, %s7456_s0  ;;  %3534 = vst.msk [vmem:[#allocation15 + $0x4e] sm:$0xfc] %vm1312_vm6, %v3519_v37  ;;  %v12941_v37 = vstv %s6782_s18 }
 0x602   :  { %5137 = vrot.lane.b32.xlu0 %v5136_v61, %s7457_s20  ;;  %v12939_v61 = vstv %s6781_s17 }
 0x603   :  { %v5038_v51 = vmul.f32 %v11747_v25, %v12939_v61 }
 0x604   :  { %v12882_v2 = vpop.permute.xlu0 %5687 }
 0x605   :  { %4674 = vrot.lane.b32.xlu1 %v12302_v21, %s7456_s0  ;;  %v3523_v33 = vpop.permute.xlu1 %3522 }
 0x606   :  { %3536 = vst.msk [vmem:[#allocation15 + $0x5e] sm:$0x3] %vm1316_vm5, %v3523_v33  ;;  %5150 = vrot.lane.b32.xlu0 %v12358_v27, %s7457_s20  ;;  %v5037_v33 = vmul.f32 %v12939_v61, %v11760_v28 }
 0x608   :  { %v12895_v21 = vpop.permute.xlu0 %5713 }
 0x609   :  { %5943 = vrot.lane.b32.xlu1 %v5941_v35, %s7456_s0  ;;  %v5048_v35 = vmul.f32 %v12941_v37, %v11760_v28 }
 0x60a   :  { %5163 = vrot.lane.b32.xlu0 %v12380_v24, %s7457_s20  ;;  %v5190_v24 = vmul.f32 %v5189_v38, %v11760_v28 }
 0x60b   :  { %v5052_v8 = vrot.slane %v5048_v35, 3 }
 0x60c   :  { %v12901_v55 = vpop.permute.xlu0 %4639 }
 0x60d   :  { %5965 = vrot.lane.b32.xlu1 %v12343_v10, %s7456_s0  ;;  %v5997_v10 = vmul.f32 %v11909_v1, %v14662_v40 }
 0x60e   :  { %5176 = vrot.lane.b32.xlu0 %v12396_v3, %s7457_s20  ;;  %v5192_v3 = vrot.slane %v5190_v24, 1  ;;  %v12959_v24 = vstv %s6783_s19 }
 0x610   :  { %v12909_v27 = vpop.permute.xlu0 %4661 }
 0x611   :  { %5991 = vrot.lane.b32.xlu1 %v12365_v48, %s7456_s0 }
 0x612   :  { %5184 = vrot.lane.b32.xlu0 %v5182_v42, %s7458_s30  ;;  %v5049_v42 = vmul.f32 %v11747_v25, %v12941_v37 }
 0x614   :  { %v12925_v48 = vpop.permute.xlu0 %4687  ;;  %v5053_v7 = vrot.slane %v5049_v42, 3 }
 0x615   :  { %5999 = vrot.lane.b32.xlu1 %v5997_v10, %s7457_s20  ;;  %v5042_v10 = vrot.slane %v5038_v51, 2  ;;  %v14664_v51 = vld [vmem:[#allocation22_spill] sm:$0xff] }
 0x616   :  { %v3570_v36 = vpop.permute.xlu1 %3569  ;;  %5193 = vrot.lane.b32.xlu0 %v5192_v3, %s7458_s30  ;;  %v4209_v35 = vadd.f32 %v12592_v22, %v14664_v51  ;;  %v14666_v51 = vstv %s12544_s15 }
 0x617   :  { %3588 = vst.msk [vmem:[%s13340_s14 + $0x5] sm:$0xff] %vm3587_vm8, %v3570_v36  ;;  %v5059_v36 = vmul.f32 %v12959_v24, %v11760_v28 }
 0x618   :  { %v12933_v20 = vpop.permute.xlu0 %5952 }
 0x619   :  { %6008 = vrot.lane.b32.xlu1 %v6007_v59, %s7457_s20  ;;  %v5060_v59 = vmul.f32 %v11747_v25, %v12959_v24  ;;  %v5063_v25 = vrot.slane %v5059_v36, 4 }
 0x61a   :  { %v3574_v6 = vpop.permute.xlu1 %3573  ;;  %5206 = vrot.lane.b32.xlu0 %v12479_v41, %s7458_s30  ;;  %v5041_v41 = vrot.slane %v5037_v33, 2 }
 0x61b   :  { %3591 = vst.msk [vmem:[%s13340_s14 + $0xd] sm:$0xf8] %vm3585_vm15, %v3574_v6  ;;  %v12977_v6 = vsel %vm4184_vm13, %v5052_v8, %v5053_v7  ;;  %v5064_v33 = vrot.slane %v5060_v59, 4 }
 0x61c   :  { %v12961_v40 = vpop.permute.xlu0 %5978 }
 0x61d   :  { %6021 = vrot.lane.b32.xlu1 %v12435_v15, %s7457_s20  ;;  %v12974_v15 = vsel %vm381_vm4, %v5041_v41, %v5042_v10  ;;  %v13644_v41 = vstv %s12935_s24  ;;  %v13645_v10 = vstv %s12937_s8 }
 0x61e   :  { %5219 = vrot.lane.b32.xlu0 %v12499_v57, %s7458_s30  ;;  %v5238_v22 = vmul.f32 %v13644_v41, %v11760_v28  ;;  %v5246_v36 = vmul.f32 %v13645_v10, %v11760_v28 }
 0x61f   :  { %v3578_v3 = vpop.permute.xlu1 %3577 }
 0x620   :  { %3593 = vst.msk [vmem:[%s13340_s14 + $0x1d] sm:$0x1] %vm3589_vm0, %v3578_v3  ;;  %v12983_v42 = vpop.permute.xlu0 %4695  ;;  %v12988_v3 = vsel %vm4196_vm12, %v5063_v25, %v5064_v33  ;;  %v14665_v25 = vstv %s12542_s5  ;;  %s13092_s14 = sld [smem:[#allocation11 + $0x32]]  ;;  %s13094_s5 = sld [smem:[#allocation11 + $0x37]] }
 0x621   :  { %6034 = vrot.lane.b32.xlu1 %v12465_v50, %s7457_s20  ;;  %v6053_v33 = vmul.f32 %v11909_v1, %v14665_v25 }
 0x622   :  { %5232 = vrot.lane.b32.xlu0 %v12517_v26, %s7458_s30  ;;  %v6061_v26 = vmul.f32 %v11909_v1, %v14666_v51 }
 0x623   :  { %v4216_v57 = vpop.permute.xlu1 %4215 }
 0x624   :  { %v4218_v8 = vadd.f32 %v4216_v57, %v4209_v35  ;;  %v12994_v50 = vpop.permute.xlu0 %4704  ;;  %v5248_v57 = vrot.slane %v5246_v36, 1  ;;  %v6063_v41 = vrot.slane %v6061_v26, 1  ;;  %v6516_v26 = vmul.f32 %v12664_v63, %v12475_v58 }
 0x625   :  { %6047 = vrot.lane.b32.xlu1 %v12488_v49, %s7457_s20 }
 0x626   :  { %v4231_v7 = vadd.f32 %v12618_v16, %v4218_v8  ;;  %5240 = vrot.lane.b32.xlu0 %v5238_v22, %s7460_s10 }
 0x627   :  { %v4242_v59 = vpop.permute.xlu1 %4241 }
 0x628   :  { %v4244_v35 = vadd.f32 %v4242_v59, %v4231_v7  ;;  %v13011_v49 = vpop.permute.xlu0 %4717 }
 0x629   :  { %6055 = vrot.lane.b32.xlu1 %v6053_v33, %s7458_s30 }
 0x62a   :  { %v4257_v16 = vadd.f32 %v12629_v52, %v4244_v35  ;;  %5249 = vrot.lane.b32.xlu0 %v5248_v57, %s7460_s10  ;;  %v6517_v35 = vmul.f32 %v12662_v23, %v12475_v58 }
 0x62b   :  { %v4263_v8 = vpop.permute.xlu1 %4262 }
 0x62c   :  { %v4265_v10 = vadd.f32 %v4263_v8, %v4257_v16  ;;  %v13016_v25 = vpop.permute.xlu0 %4730  ;;  %v14668_v8 = vld [vmem:[#allocation60_spill] sm:$0xff] }
 0x62d   :  { %6064 = vrot.lane.b32.xlu1 %v6063_v41, %s7458_s30  ;;  %v6504_v41 = vmul.f32 %v12662_v23, %v12452_v5 }
 0x62e   :  { %v4274_v7 = vadd.f32 %v12638_v32, %v4265_v10  ;;  %5262 = vrot.lane.b32.xlu0 %v12576_v30, %s7460_s10  ;;  %v6503_v32 = vmul.f32 %v12664_v63, %v12452_v5 }
 0x62f   :  { %v4285_v59 = vpop.permute.xlu1 %4284 }
 0x630   :  { %v4287_v22 = vadd.f32 %v4285_v59, %v4274_v7  ;;  %v13023_v52 = vpop.permute.xlu0 %4743  ;;  %v6507_v10 = vrot.slane %v6503_v32, 2  ;;  %v6521_v7 = vrot.slane %v6517_v35, 3  ;;  %v14670_v32 = vstv %s12645_s2  ;;  %v14671_v35 = vld [vmem:[#allocation56_spill] sm:$0xff] }
 0x631   :  { %6077 = vrot.lane.b32.xlu1 %v12534_v45, %s7458_s30 }
 0x632   :  { %v4300_v36 = vadd.f32 %v12652_v9, %v4287_v22  ;;  %5275 = vrot.lane.b32.xlu0 %v12600_v47, %s7460_s10  ;;  %v6508_v9 = vrot.slane %v6504_v41, 2  ;;  %v6117_v41 = vmul.f32 %v11909_v1, %v14670_v32  ;;  %v14673_v32 = vld [vmem:[#allocation63_spill] sm:$0xff] }
 0x633   :  { %v4311_v33 = vpop.permute.xlu1 %4310 }
 0x634   :  { %v4313_v51 = vadd.f32 %v4311_v33, %v4300_v36  ;;  %v13034_v30 = vpop.permute.xlu0 %4751  ;;  %v13044_v5 = vsel %vm381_vm4, %v6507_v10, %v6508_v9  ;;  %v14669_v33 = vstv %s12643_s22 }
 0x635   :  { %6090 = vrot.lane.b32.xlu1 %v12562_v53, %s7458_s30  ;;  %v6520_v53 = vrot.slane %v6516_v26, 3 }
 0x636   :  { %v4321_v45 = vadd.f32 %v12674_v34, %v4313_v51  ;;  %5288 = vrot.lane.b32.xlu0 %v12621_v54, %s7460_s10  ;;  %v14667_v34 = vld [vmem:[#allocation55_spill] sm:$0xff]  ;;  %v6109_v51 = vmul.f32 %v11909_v1, %v14669_v33  ;;  %v6560_v1 = vmul.f32 %v12662_v23, %v14671_v35 }
 0x637   :  { %v4328_v47 = vpop.permute.xlu1 %4327  ;;  %v6529_v57 = vmul.f32 %v12664_v63, %v14667_v34  ;;  %v6530_v59 = vmul.f32 %v12662_v23, %v14667_v34 }
 0x638   :  { %v4330_v16 = vadd.f32 %v4328_v47, %v4321_v45  ;;  %v13052_v22 = vpop.permute.xlu0 %4760  ;;  %v13062_v45 = vsel %vm4184_vm13, %v6520_v53, %v6521_v7  ;;  %v6119_v53 = vrot.slane %v6117_v41, 1  ;;  %v6564_v7 = vrot.slane %v6560_v1, 2  ;;  %v14674_v1 = vld [vmem:[#allocation68_spill] sm:$0xff] }
 0x639   :  { %6103 = vrot.lane.b32.xlu1 %v14668_v8, %s7458_s30  ;;  %v6533_v36 = vrot.slane %v6529_v57, 4  ;;  %v6534_v10 = vrot.slane %v6530_v59, 4  ;;  %v14672_v59 = vld [vmem:[#allocation57_spill] sm:$0xff]  ;;  %v6585_v41 = vmul.f32 %v12664_v63, %v14673_v32 }
 0x63a   :  { %v4343_v58 = vadd.f32 %v12694_v14, %v4330_v16  ;;  %v6559_v16 = vmul.f32 %v12664_v63, %v14671_v35 }
 0x63b   :  { %v4354_v54 = vpop.permute.xlu1 %4353  ;;  %v13066_v26 = vsel %vm4196_vm12, %v6533_v36, %v6534_v10  ;;  %v6573_v36 = vmul.f32 %v12662_v23, %v14672_v59 }
 0x63c   :  { %v4356_v9 = vadd.f32 %v4354_v54, %v4343_v58  ;;  %v13068_v47 = vpop.permute.xlu0 %4773  ;;  %v6563_v8 = vrot.slane %v6559_v16, 2  ;;  %v6572_v58 = vmul.f32 %v12664_v63, %v14672_v59  ;;  %v6589_v16 = vrot.slane %v6585_v41, 4 }
 0x63d   :  { %6111 = vrot.lane.b32.xlu1 %v6109_v51, %s7460_s10 }
 0x63e   :  { %v4369_v14 = vadd.f32 %v12704_v60, %v4356_v9  ;;  %v13084_v33 = vsel %vm381_vm4, %v6563_v8, %v6564_v7  ;;  %v6576_v51 = vrot.slane %v6572_v58, 3  ;;  %v6577_v9 = vrot.slane %v6573_v36, 3 }
 0x63f   :  { %v4375_v34 = vpop.permute.xlu1 %4374  ;;  %v14676_v36 = vstv %s12745_s13 }
 0x640   :  { %v4377_v57 = vadd.f32 %v4375_v34, %v4369_v14  ;;  %v13080_v60 = vpop.permute.xlu0 %4786  ;;  %v6586_v14 = vmul.f32 %v12662_v23, %v14673_v32  ;;  %v14677_v32 = vld [vmem:[#allocation30_spill] sm:$0xff] }
 0x641   :  { %6120 = vrot.lane.b32.xlu1 %v6119_v53, %s7460_s10  ;;  %v5513_v41 = vadd.f32 %v12749_v56, %v14677_v32  ;;  %v6342_v32 = vmul.f32 %v12662_v23, %v12939_v61 }
 0x642   :  { %v4386_v54 = vadd.f32 %v12713_v39, %v4377_v57  ;;  %v13097_v39 = vsel %vm4184_vm13, %v6576_v51, %v6577_v9  ;;  %v6590_v34 = vrot.slane %v6586_v14, 4  ;;  %v14675_v57 = vstv %s12747_s25 }
 0x643   :  { %v4397_v10 = vpop.permute.xlu1 %4396  ;;  %v4597_v8 = vmul.f32 %v14675_v57, %v11711_v11  ;;  %v13646_v57 = vstv %s13092_s14 }
 0x644   :  { %v4399_v35 = vadd.f32 %v4397_v10, %v4386_v54  ;;  %v13099_v53 = vpop.permute.xlu0 %4799  ;;  %v13106_v58 = vsel %vm4196_vm12, %v6589_v16, %v6590_v34  ;;  %v4593_v54 = vmul.f32 %v14676_v36, %v11711_v11  ;;  %v14678_v11 = vstv %s12727_s23 }
 0x645   :  { %6133 = vrot.lane.b32.xlu1 %v14674_v1, %s7460_s10  ;;  %v4599_v10 = vrot.slane %v4597_v8, 1  ;;  %v6374_v1 = vmul.f32 %v12664_v63, %v14678_v11  ;;  %v14679_v34 = vstv %s12715_s4  ;;  %v13134_v36 = vmul.f32 %v12664_v63, %v13646_v57 }
 0x646   :  { %v4412_v7 = vadd.f32 %v12732_v4, %v4399_v35 }
 0x647   :  { %v4423_v59 = vpop.permute.xlu1 %4422 }
 0x648   :  { %v4425_v51 = vadd.f32 %v4423_v59, %v4412_v7  ;;  %v13115_v9 = vpop.permute.xlu0 %4807  ;;  %v5029_v7 = vstv %s13094_s5 }
 0x649   :  { %6146 = vrot.lane.b32.xlu1 %v12680_v29, %s7460_s10  ;;  %v6382_v29 = vmul.f32 %v12664_v63, %v14679_v34 }
 0x64a   :  { %v4594_v4 = vadd.f32 %v4593_v54, %v4425_v51  ;;  %v6341_v51 = vmul.f32 %v12664_v63, %v12939_v61 }
 0x64b   :  { %v5520_v14 = vpop.permute.xlu1 %5519 }
 0x64c   :  { %v4601_v35 = vadd.f32 %v4599_v10, %v4594_v4  ;;  %v5522_v16 = vadd.f32 %v5520_v14, %v5513_v41  ;;  %v13129_v59 = vpop.permute.xlu0 %4816  ;;  %v6363_v4 = vmul.f32 %v12664_v63, %v12959_v24  ;;  %v6345_v14 = vrot.slane %v6341_v51, 2 }
 0x64d   :  { %6159 = vrot.lane.b32.xlu1 %v12688_v44, %s7460_s10  ;;  %v13139_v44 = vmul.f32 %v12664_v63, %v5029_v7 }
 0x64e   :  { %v4612_v56 = vadd.f32 %v12677_v12, %v4601_v35  ;;  %v5535_v8 = vadd.f32 %v12766_v46, %v5522_v16  ;;  %v6352_v12 = vmul.f32 %v12664_v63, %v12941_v37  ;;  %v6353_v46 = vmul.f32 %v12662_v23, %v12941_v37 }
 0x64f   :  { %v5546_v54 = vpop.permute.xlu1 %5545  ;;  %v6346_v35 = vrot.slane %v6342_v32, 2  ;;  %v6364_v37 = vmul.f32 %v12662_v23, %v12959_v24 }
 0x650   :  { %v5548_v41 = vadd.f32 %v5546_v54, %v5535_v8  ;;  %v4623_v10 = vadd.f32 %v12864_v17, %v4612_v56  ;;  %v6356_v16 = vrot.slane %v6352_v12, 3  ;;  %v6357_v11 = vrot.slane %v6353_v46, 3  ;;  %v13154_v34 = vpop.permute.xlu0 %4829 }
 0x651   :  { %6376 = vrot.lane.b32.xlu1 %v6374_v1, %s7456_s0  ;;  %v6367_v8 = vrot.slane %v6363_v4, 4  ;;  %v6384_v56 = vrot.slane %v6382_v29, 1  ;;  %v13160_v54 = vsel %vm381_vm4, %v6345_v14, %v6346_v35  ;;  %v6368_v32 = vrot.slane %v6364_v37, 4  ;;  %v14681_v29 = vld [vmem:[#allocation75_spill] sm:$0xff] }
 0x652   :  { %v5561_v61 = vadd.f32 %v12775_v31, %v5548_v41  ;;  %v4634_v57 = vadd.f32 %v12868_v62, %v4623_v10  ;;  %v13163_v1 = vsel %vm4184_vm13, %v6356_v16, %v6357_v11  ;;  %v14680_v31 = vld [vmem:[#allocation84_spill] sm:$0xff]  ;;  %v14683_v16 = vld [vmem:[#allocation90_spill] sm:$0xff]  ;;  %v14684_v11 = vld [vmem:[#allocation151_spill] sm:$0xff] }
 0x653   :  { %v5567_v17 = vpop.permute.xlu1 %5566  ;;  %v13170_v62 = vsel %vm4196_vm12, %v6367_v8, %v6368_v32  ;;  %v14682_v41 = vld [vmem:[#allocation120_spill] sm:$0xff] }
 0x654   :  { %v5569_v51 = vadd.f32 %v5567_v17, %v5561_v61  ;;  %v13167_v46 = vpop.permute.xlu0 %4842 }
 0x655   :  { %6385 = vrot.lane.b32.xlu1 %v6384_v56, %s7456_s0  ;;  %v14685_v56 = vld [vmem:[#allocation92_spill] sm:$0xff] }
 0x656   :  { %v5578_v12 = vadd.f32 %v14680_v31, %v5569_v51 }
 0x657   :  { %v5589_v23 = vpop.permute.xlu1 %5588 }
 0x658   :  { %v5591_v24 = vadd.f32 %v5589_v23, %v5578_v12  ;;  %v13175_v4 = vpop.permute.xlu0 %4855  ;;  %v14686_v12 = vstv %s12798_s28 }
 0x659   :  { %6398 = vrot.lane.b32.xlu1 %v14681_v29, %s7456_s0  ;;  %v6430_v23 = vmul.f32 %v12664_v63, %v14686_v12 }
 0x65a   :  { %v5604_v10 = vadd.f32 %v14682_v41, %v5591_v24  ;;  %v14687_v24 = vstv %s12800_s29 }
 0x65b   :  { %v5615_v14 = vpop.permute.xlu1 %5614  ;;  %v6438_v29 = vmul.f32 %v12664_v63, %v14687_v24  ;;  %v14690_v24 = vld [vmem:[#allocation78_spill] sm:$0xff] }
 0x65c   :  { %v5617_v35 = vadd.f32 %v5615_v14, %v5604_v10  ;;  %v13180_v37 = vpop.permute.xlu0 %5072 }
 0x65d   :  { %6411 = vrot.lane.b32.xlu1 %v14683_v16, %s7456_s0  ;;  %v6440_v16 = vrot.slane %v6438_v29, 1 }
 0x65e   :  { %v5625_v61 = vadd.f32 %v14684_v11, %v5617_v35 }
 0x65f   :  { %v5632_v8 = vpop.permute.xlu1 %5631 }
 0x660   :  { %v5634_v17 = vadd.f32 %v5632_v8, %v5625_v61  ;;  %v13185_v32 = vpop.permute.xlu0 %5081 }
 0x661   :  { %6424 = vrot.lane.b32.xlu1 %v14685_v56, %s7456_s0  ;;  %v14688_v56 = vld [vmem:[#allocation106_spill] sm:$0xff]  ;;  %s7461_s0 = smov [#allocation15]  }
 0x662   :  { %v5647_v51 = vadd.f32 %v12852_v0, %v5634_v17 }
 0x663   :  { %v5658_v31 = vpop.permute.xlu1 %5657 }
 0x664   :  { %v5660_v41 = vadd.f32 %v5658_v31, %v5647_v51  ;;  %v13195_v14 = vpop.permute.xlu0 %5094 }
 0x665   :  { %6432 = vrot.lane.b32.xlu1 %v6430_v23, %s7457_s20  ;;  %v14689_v23 = vld [vmem:[#allocation99_spill] sm:$0xff] }
 0x666   :  { %v5673_v10 = vadd.f32 %v12876_v19, %v5660_v41  ;;  %v4642_v41 = vadd.f32 %v12901_v55, %v4634_v57  ;;  %v14692_v55 = vld [vmem:[#allocation87_spill] sm:$0xff] }
 0x667   :  { %v5679_v35 = vpop.permute.xlu1 %5678 }
 0x668   :  { %v5681_v11 = vadd.f32 %v5679_v35, %v5673_v10  ;;  %v13199_v61 = vpop.permute.xlu0 %5107 }
 0x669   :  { %6441 = vrot.lane.b32.xlu1 %v6440_v16, %s7457_s20 }
 0x66a   :  { %v5690_v0 = vadd.f32 %v12882_v2, %v5681_v11  ;;  %v5903_v2 = vrot.slane %v14689_v23, 1 }
 0x66b   :  { %v5701_v8 = vpop.permute.xlu1 %5700 }
 0x66c   :  { %v5703_v17 = vadd.f32 %v5701_v8, %v5690_v0  ;;  %v13204_v19 = vpop.permute.xlu0 %5120 }
 0x66d   :  { %6454 = vrot.lane.b32.xlu1 %v14688_v56, %s7457_s20  ;;  %v6494_v56 = vmul.f32 %v12664_v63, %v5189_v38 }
 0x66e   :  { %v5716_v51 = vadd.f32 %v12895_v21, %v5703_v17  ;;  %v14691_v21 = vld [vmem:[#allocation118_spill] sm:$0xff] }
 0x66f   :  { %v5727_v31 = vpop.permute.xlu1 %5726 }
 0x670   :  { %v5729_v12 = vadd.f32 %v5727_v31, %v5716_v51  ;;  %v13211_v11 = vpop.permute.xlu0 %5128  ;;  %v14693_v31 = vld [vmem:[#allocation123_spill] sm:$0xff] }
 0x671   :  { %6467 = vrot.lane.b32.xlu1 %v12861_v18, %s7457_s20  ;;  %v6486_v18 = vmul.f32 %v12664_v63, %v5181_v43 }
 0x672   :  { %v5898_v29 = vadd.f32 %v14690_v24, %v5729_v12 }
 0x673   :  { %v4649_v10 = vpop.permute.xlu1 %4648 }
 0x674   :  { %v5905_v35 = vadd.f32 %v5903_v2, %v5898_v29  ;;  %v4651_v16 = vadd.f32 %v4649_v10, %v4642_v41  ;;  %v13227_v23 = vpop.permute.xlu0 %5137 }
 0x675   :  { %6480 = vrot.lane.b32.xlu1 %v12871_v13, %s7457_s20  ;;  %s6606_s20 = sshll.u32 %s7461_s0, 4  ;;  %s6607_s20 = int_to_ptr.vmem [resolvable:$true] %s6606_s20 }
 0x676   :  { %v5916_v0 = vadd.f32 %v14691_v21, %v5905_v35  ;;  %v4664_v8 = vadd.f32 %v12909_v27, %v4651_v16  ;;  %v6496_v27 = vrot.slane %v6494_v56, 1  ;;  %v14694_v21 = vstv %s12935_s24  ;;  %p7424_p12 = scmp.lt.s32.totalorder %s6607_s20, %s6607_s20 }
 0x677   :  { %v4675_v17 = vpop.permute.xlu1 %4674 }
 0x678   :  { %v5927_v57 = vadd.f32 %v14692_v55, %v5916_v0  ;;  %v4677_v51 = vadd.f32 %v4675_v17, %v4664_v8  ;;  %v13233_v41 = vpop.permute.xlu0 %5150  ;;  %v6542_v0 = vmul.f32 %v12664_v63, %v14694_v21 }
 0x679   :  { %6488 = vrot.lane.b32.xlu1 %v6486_v18, %s7458_s30 }
 0x67a   :  { %v5938_v12 = vadd.f32 %v14693_v31, %v5927_v57  ;;  %v4690_v13 = vadd.f32 %v12925_v48, %v4677_v51 }
 0x67b   :  { %v5944_v2 = vpop.permute.xlu1 %5943 }
 0x67c   :  { %v4698_v24 = vadd.f32 %v12983_v42, %v4690_v13  ;;  %v13244_v35 = vpop.permute.xlu0 %5163  ;;  %v5946_v56 = vadd.f32 %v5944_v2, %v5938_v12 }
 0x67d   :  { %6497 = vrot.lane.b32.xlu1 %v6496_v27, %s7458_s30 }
 0x67e   :  { %v4707_v43 = vadd.f32 %v12994_v50, %v4698_v24  ;;  %v5955_v57 = vadd.f32 %v12933_v20, %v5946_v56 }
 0x67f   :  { %v5966_v38 = vpop.permute.xlu1 %5965 }
 0x680   :  { %v4720_v29 = vadd.f32 %v13011_v49, %v4707_v43 }
 0x681   :  { %6510 = vrot.lane.b32.xlu1 %v13044_v5, %s7458_s30 }
 0x682   :  { %v4733_v48 = vadd.f32 %v13016_v25, %v4720_v29 }
 0x683   :  { %v13238_v10 = vpop.permute.xlu1 %5991 }
 0x684   :  { %v4746_v42 = vadd.f32 %v13023_v52, %v4733_v48  ;;  %v14695_v52 = vstv %s12937_s8 }
 0x685   :  { %6523 = vrot.lane.b32.xlu1 %v13062_v45, %s7458_s30  ;;  %v6550_v8 = vmul.f32 %v12664_v63, %v14695_v52 }
 0x686   :  { %v4754_v50 = vadd.f32 %v13034_v30, %v4746_v42  ;;  %v13257_v30 = vpop.permute.xlu0 %5176 }
 0x687   :  { %v6000_v16 = vpop.permute.xlu1 %5999 }
 0x688   :  { %v4763_v49 = vadd.f32 %v13052_v22, %v4754_v50 }
 0x689   :  { %6536 = vrot.lane.b32.xlu1 %v13066_v26, %s7458_s30  ;;  %v6552_v26 = vrot.slane %v6550_v8, 1  ;;  %s7419_s30 = scalar_lea.vmem %s6607_s20, 1536 }
 0x68a   :  { %v4776_v5 = vadd.f32 %v13068_v47, %v4763_v49  ;;  %v13264_v55 = vpop.permute.xlu0 %5184  ;;  %p7420_p11 = scmp.ne.s32.totalorder %s6607_s20, %s7419_s30  ;;  %p7425_p13 = scmp.lt.s32.totalorder %s7419_s30, %s7419_s30 }
 0x68b   :  { %v6009_v25 = vpop.permute.xlu1 %6008 }
 0x68c   :  { %v4789_v45 = vadd.f32 %v13080_v60, %v4776_v5  ;;  %p7426_p0 = por %p7425_p13, %p7424_p12 }
 0x68d   :  { %6544 = vrot.lane.b32.xlu1 %v6542_v0, %s7460_s10 }
 0x68e   :  { %v4802_v22 = vadd.f32 %v13099_v53, %v4789_v45  ;;  %v5030_v53 = vmul.f32 %v5029_v7, %v11760_v28  ;;  %p7427_p1 = pnand %p7426_p0, %p7420_p11 }
 0x68f   :  { %v6022_v17 = vpop.permute.xlu1 %6021 }
 0x690   :  { %v4810_v47 = vadd.f32 %v13115_v9, %v4802_v22 }
 0x691   :  { %6553 = vrot.lane.b32.xlu1 %v6552_v26, %s7460_s10 }
 0x692   :  { %v4819_v18 = vadd.f32 %v13129_v59, %v4810_v47 }
 0x693   :  { %v6035_v63 = vpop.permute.xlu1 %6034 }
 0x694   :  { %v4832_v60 = vadd.f32 %v13154_v34, %v4819_v18 }
 0x695   :  { %6566 = vrot.lane.b32.xlu1 %v13084_v33, %s7460_s10 }
 0x696   :  { %v4845_v9 = vadd.f32 %v13167_v46, %v4832_v60 }
 0x697   :  { %v6048_v59 = vpop.permute.xlu1 %6047 }
 0x698   :  { %7430 = shalt.err (!%p7427_p1)
}
 0x699   :  { %s7431_s2 = scalar_lea.hbm %s13337_s11, 1536 }
 0x69a   :  { %p7432_p2 = scmp.ne.s32.totalorder %s13337_s11, %s7431_s2  ;;  %p7435_p3 = scmp.lt.u32.totalorder %s7431_s2, %s13337_s11 }
 0x69c   :  { %p7437_p4 = pnand %p7435_p3, %p7432_p2 }
 0x69e   :  { %7440 = shalt.err (!%p7437_p4)
}
 0x69f   :  { %s7462_s28 = smov 128   ;;  %s7463_s29 = smov 8   ;;  %v14696_v20 = vstv %s13092_s14  ;;  %v4858_v7 = vadd.f32 %v13175_v4, %v4845_v9  ;;  %v5194_v34 = vpop.permute.xlu0 %5193  ;;  %6579 = vrot.lane.b32.xlu1 %v13097_v39, %s7460_s10  ;;  %v5032_v46 = vrot.slane %v5030_v53, 1  ;;  %v5968_v31 = vadd.f32 %v5966_v38, %v5955_v57  ;;  %v6056_v12 = vpop.permute.xlu1 %6055 }
 0x6a0   :  { %6612 = dma.vmem_to_hbm [thread:$0]  %s6607_s20, 1536, %s13337_s11, [#allocation7], %s7462_s28, %s7462_s28, %s7463_s29   ;;  %v5026_v33 = vmul.f32 %v14696_v20, %v11760_v28  ;;  %vm5295_vm1 = vcmask 55296  }
 0x6a1   :  { %v5981_v27 = vadd.f32 %v12961_v40, %v5968_v31 }
 0x6a2   :  { %v5027_v51 = vadd.f32 %v5026_v33, %v4858_v7 }
 0x6a3   :  { %6592 = vrot.lane.b32.xlu1 %v13106_v58, %s7460_s10  ;;  %v5207_v24 = vpop.permute.xlu0 %5206  ;;  %v6065_v28 = vpop.permute.xlu1 %6064  ;;  %v5994_v39 = vadd.f32 %v13238_v10, %v5981_v27 }
 0x6a4   :  { %v5034_v13 = vadd.f32 %v5032_v46, %v5027_v51 }
 0x6a5   :  { %v6002_v48 = vadd.f32 %v6000_v16, %v5994_v39 }
 0x6a6   :  { %v5045_v2 = vadd.f32 %v12974_v15, %v5034_v13 }
 0x6a7   :  { %v6078_v29 = vpop.permute.xlu1 %6077  ;;  %v5220_v42 = vpop.permute.xlu0 %5219  ;;  %v6011_v58 = vadd.f32 %v6009_v25, %v6002_v48 }
 0x6a8   :  { %v5056_v4 = vadd.f32 %v12977_v6, %v5045_v2 }
 0x6a9   :  { %v6024_v40 = vadd.f32 %v6022_v17, %v6011_v58 }
 0x6aa   :  { %v5067_v43 = vadd.f32 %v12988_v3, %v5056_v4 }
 0x6ab   :  { %v6091_v49 = vpop.permute.xlu1 %6090  ;;  %v6037_v21 = vadd.f32 %v6035_v63, %v6024_v40  ;;  %v5233_v6 = vpop.permute.xlu0 %5232 }
 0x6ac   :  { %v5075_v38 = vadd.f32 %v13180_v37, %v5067_v43 }
 0x6ad   :  { %v6050_v10 = vadd.f32 %v6048_v59, %v6037_v21 }
 0x6ae   :  { %v5084_v50 = vadd.f32 %v13185_v32, %v5075_v38 }
 0x6af   :  { %v6104_v0 = vpop.permute.xlu1 %6103  ;;  %v6058_v37 = vadd.f32 %v6056_v12, %v6050_v10  ;;  %v5241_v25 = vpop.permute.xlu0 %5240 }
 0x6b0   :  { %v5097_v15 = vadd.f32 %v13195_v14, %v5084_v50 }
 0x6b1   :  { %v6067_v32 = vadd.f32 %v6065_v28, %v6058_v37  ;;  %v5293_v28 = vstv %s13332_s6 }
 0x6b2   :  { %v5110_v5 = vadd.f32 %v13199_v61, %v5097_v15 }
 0x6b3   :  { %v6112_v16 = vpop.permute.xlu1 %6111  ;;  %v6080_v14 = vadd.f32 %v6078_v29, %v6067_v32 }
 0x6b4   :  { %v5123_v3 = vadd.f32 %v13204_v19, %v5110_v5  ;;  %v5250_v19 = vpop.permute.xlu0 %5249 }
 0x6b5   :  { %v6093_v17 = vadd.f32 %v6091_v49, %v6080_v14 }
 0x6b6   :  { %v5131_v52 = vadd.f32 %v13211_v11, %v5123_v3 }
 0x6b7   :  { %v6121_v22 = vpop.permute.xlu1 %6120  ;;  %v6106_v47 = vadd.f32 %v6104_v0, %v6093_v17 }
 0x6b8   :  { %v5140_v8 = vadd.f32 %v13227_v23, %v5131_v52  ;;  %v5263_v57 = vpop.permute.xlu0 %5262 }
 0x6b9   :  { %v6114_v56 = vadd.f32 %v6112_v16, %v6106_v47 }
 0x6ba   :  { %v5153_v45 = vadd.f32 %v13233_v41, %v5140_v8 }
 0x6bb   :  { %v6134_v18 = vpop.permute.xlu1 %6133  ;;  %v6123_v60 = vadd.f32 %v6121_v22, %v6114_v56 }
 0x6bc   :  { %v5166_v61 = vadd.f32 %v13244_v35, %v5153_v45  ;;  %v5276_v51 = vpop.permute.xlu0 %5275 }
 0x6bd   :  { %v6136_v9 = vadd.f32 %v6134_v18, %v6123_v60 }
 0x6be   :  { %v5179_v26 = vadd.f32 %v13257_v30, %v5166_v61  ;;  %v6336_v30 = vrot.slane %v13139_v44, 1 }
 0x6bf   :  { %v6147_v23 = vpop.permute.xlu1 %6146 }
 0x6c0   :  { %v5187_v11 = vadd.f32 %v13264_v55, %v5179_v26  ;;  %v6149_v59 = vadd.f32 %v6147_v23, %v6136_v9  ;;  %v5289_v4 = vpop.permute.xlu0 %5288 }
 0x6c2   :  { %v5196_v63 = vadd.f32 %v5194_v34, %v5187_v11 }
 0x6c3   :  { %v6160_v20 = vpop.permute.xlu1 %6159 }
 0x6c4   :  { %v5209_v53 = vadd.f32 %v5207_v24, %v5196_v63  ;;  %v6162_v35 = vadd.f32 %v6160_v20, %v6149_v59 }
 0x6c6   :  { %v5222_v41 = vadd.f32 %v5220_v42, %v5209_v53  ;;  %v6331_v46 = vadd.f32 %v13134_v36, %v6162_v35 }
 0x6c7   :  { %v6377_v31 = vpop.permute.xlu1 %6376 }
 0x6c8   :  { %v5235_v33 = vadd.f32 %v5233_v6, %v5222_v41  ;;  %v6338_v12 = vadd.f32 %v6336_v30, %v6331_v46 }
 0x6ca   :  { %v5243_v7 = vadd.f32 %v5241_v25, %v5235_v33  ;;  %v6349_v13 = vadd.f32 %v13160_v54, %v6338_v12 }
 0x6cb   :  { %v6386_v2 = vpop.permute.xlu1 %6385 }
 0x6cc   :  { %v5252_v55 = vadd.f32 %v5250_v19, %v5243_v7  ;;  %v6360_v24 = vadd.f32 %v13163_v1, %v6349_v13 }
 0x6ce   :  { %v5265_v34 = vadd.f32 %v5263_v57, %v5252_v55  ;;  %v6371_v44 = vadd.f32 %v13170_v62, %v6360_v24 }
 0x6cf   :  { %v6399_v36 = vpop.permute.xlu1 %6398 }
 0x6d0   :  { %v5278_v27 = vadd.f32 %v5276_v51, %v5265_v34  ;;  %v6379_v42 = vadd.f32 %v6377_v31, %v6371_v44 }
 0x6d2   :  { %v5291_v43 = vadd.f32 %v5289_v4, %v5278_v27  ;;  %v6388_v58 = vadd.f32 %v6386_v2, %v6379_v42 }
 0x6d3   :  { %v6412_v54 = vpop.permute.xlu1 %6411 }
 0x6d4   :  { %v5294_v39 = vadd.f32 %v5293_v28, %v5291_v43  ;;  %v6401_v15 = vadd.f32 %v6399_v36, %v6388_v58 }
 0x6d6   :  { %5296 = vst.msk [vmem:[%s13338_s12] sm:$0x7f] %vm5295_vm1, %v5294_v39  ;;  %v6414_v62 = vadd.f32 %v6412_v54, %v6401_v15 }
 0x6d7   :  { %v6425_v29 = vpop.permute.xlu1 %6424 }
 0x6d8   :  { %v6427_v21 = vadd.f32 %v6425_v29, %v6414_v62 }
 0x6db   :  { %v6433_v38 = vpop.permute.xlu1 %6432 }
 0x6dc   :  { %v6435_v0 = vadd.f32 %v6433_v38, %v6427_v21 }
 0x6df   :  { %v6442_v1 = vpop.permute.xlu1 %6441 }
 0x6e0   :  { %v6444_v3 = vadd.f32 %v6442_v1, %v6435_v0 }
 0x6e3   :  { %v6455_v48 = vpop.permute.xlu1 %6454 }
 0x6e4   :  { %v6457_v52 = vadd.f32 %v6455_v48, %v6444_v3 }
 0x6e7   :  { %v6468_v50 = vpop.permute.xlu1 %6467 }
 0x6e8   :  { %v6470_v37 = vadd.f32 %v6468_v50, %v6457_v52 }
 0x6eb   :  { %v6481_v49 = vpop.permute.xlu1 %6480 }
 0x6ec   :  { %v6483_v8 = vadd.f32 %v6481_v49, %v6470_v37 }
 0x6ef   :  { %v6489_v40 = vpop.permute.xlu1 %6488 }
 0x6f0   :  { %v6491_v32 = vadd.f32 %v6489_v40, %v6483_v8 }
 0x6f3   :  { %v6498_v5 = vpop.permute.xlu1 %6497 }
 0x6f4   :  { %v6500_v45 = vadd.f32 %v6498_v5, %v6491_v32 }
 0x6f7   :  { %v6511_v6 = vpop.permute.xlu1 %6510 }
 0x6f8   :  { %v6513_v14 = vadd.f32 %v6511_v6, %v6500_v45 }
 0x6fb   :  { %v6524_v10 = vpop.permute.xlu1 %6523 }
 0x6fc   :  { %v6526_v61 = vadd.f32 %v6524_v10, %v6513_v14 }
 0x6ff   :  { %v6537_v16 = vpop.permute.xlu1 %6536 }
 0x700   :  { %v6539_v17 = vadd.f32 %v6537_v16, %v6526_v61 }
 0x703   :  { %v6545_v25 = vpop.permute.xlu1 %6544 }
 0x704   :  { %v6547_v47 = vadd.f32 %v6545_v25, %v6539_v17 }
 0x707   :  { %v6554_v22 = vpop.permute.xlu1 %6553 }
 0x708   :  { %v6556_v19 = vadd.f32 %v6554_v22, %v6547_v47 }
 0x70b   :  { %v6567_v26 = vpop.permute.xlu1 %6566 }
 0x70c   :  { %v6569_v11 = vadd.f32 %v6567_v26, %v6556_v19 }
 0x711   :  { %v6580_v18 = vpop.permute.xlu1 %6579 }
 0x712   :  { %v6582_v56 = vadd.f32 %v6580_v18, %v6569_v11 }
 0x715   :  { %v6593_v63 = vpop.permute.xlu1 %6592 }
 0x716   :  { %v6595_v60 = vadd.f32 %v6593_v63, %v6582_v56 }
 0x718   :  { %v6598_v23 = vadd.f32 %v6595_v60, %v5293_v28 }
 0x71a   :  { %6896 = vst.msk [vmem:[%s13338_s12 + $0x8] sm:$0x7f] %vm5295_vm1, %v6598_v23 }
 0x71b   :  { %7447 = dma.done.wait [#allocation7], 1536  }
 0x71c   :  { %7448 = vsyncadd [#allocation7], 4294965760 }
 0x71d   :  { %6628 = vsyncpa [#allocation7], 1 }
 0x71e   :  { %6629 = vsyncpa [#allocation8], 1 }
 0x71f   :  { %6630 = vsyncpa [#allocation10], 1 }
 0x720   :  { %6631 = vsyncpa [#allocation13], 1 }

</bundles_post_ra>
